<compile_context>
chip_gen: v7x
topology: tpu7x:2x2x1
jax: 0.10.0
libtpu: 0.0.40
codegen_flags: <defaults>
</compile_context>

<pallas_src>
import functools
import math

import jax
import jax.numpy as jnp
from jax.experimental import pallas as pl
from jax.experimental.pallas import tpu as pltpu

HIDDEN = 256          # Config.hidden_dim
HEADS = 4             # Config.num_heads
HEAD_DIM = HIDDEN // HEADS
NUM_LAYERS = 4        # Config.num_layers
NODE_FEAT = 34
EDGE_FEAT = 19
VOCAB = 4             # len(Config.seq_vocab)
PAD_IN = 128          # raw feature dims (34, 19) zero-padded to 128 lanes
PAD_OUT = 128         # cls output dim (4) zero-padded to 128 lanes
LN_EPS = 1e-5
NEG_INF = -1e30
BF16 = jnp.bfloat16


# ------------------------------ kernel helpers ------------------------------

def _layernorm(y, g, b):
    mean = jnp.mean(y, axis=-1, keepdims=True)
    var = jnp.mean((y - mean) ** 2, axis=-1, keepdims=True)
    return (y - mean) * jax.lax.rsqrt(var + LN_EPS) * g + b


def _mlp_ln(x, w_bf16, b, g, beta):
    """Linear -> ReLU -> LayerNorm (Dropout identity at inference).

    bf16 MXU operands, f32 accumulation / LayerNorm."""
    y = jnp.dot(x.astype(BF16), w_bf16, preferred_element_type=jnp.float32) + b
    y = jnp.maximum(y, 0.0)
    return _layernorm(y, g, beta)


# ------------------------------- fused kernel -------------------------------

def rna_gnn_kernel(
        # scalar prefetch (SMEM): flat edge ids dst*N+src, real edges only
        eid_ref,
        # graph data
        x_ref, ea_ref, bias_ref,
        # feat / edge encoders
        wf_ref, bf_ref, gf_ref, betaf_ref,
        we_ref, be_ref, ge_ref, betae_ref,
        # stacked per-layer weights (bf16) + f32 biases / LN params
        wqkvs_ref, bqkvs_ref, wedge_ref,
        wskip_ref, bskip_ref, gskip_ref, betaskip_ref,
        # cls head
        w1_ref, b1_ref, g1_ref, beta1_ref, w2_ref, b2_ref,
        # output
        out_ref,
        # scratch (resident across the layer grid axis)
        h_s, ed_s, eenc_s,
        *, num_nodes, num_edges):
    N = num_nodes
    D = HIDDEN
    l = pl.program_id(0)

    # ----- layer 0 only: encoders + dense edge scatter (linear in E) -----
    @pl.when(l == 0)
    def _init():
        h_s[...] = _mlp_ln(x_ref[...], wf_ref[...], bf_ref[...],
                           gf_ref[...], betaf_ref[...])            # [N, D]
        eenc_s[...] = _mlp_ln(ea_ref[...], we_ref[...], be_ref[...],
                              ge_ref[...], betae_ref[...])         # [E_pad, D]
        ed_s[...] = jnp.zeros_like(ed_s)

        def scatter(e, carry):                                     # per-edge accumulate
            r = eid_ref[e]                                         # dst * N + src
            ed_s[pl.ds(r, 1), :] = ed_s[pl.ds(r, 1), :] + eenc_s[pl.ds(e, 1), :]
            return carry
        jax.lax.fori_loop(0, num_edges, scatter, 0)

    # ------------------ TransformerConv (per-head flash form) ------------------
    h = h_s[...]                                                   # [N, D] f32
    qkvs = (jnp.dot(h.astype(BF16), wqkvs_ref[0],
                    preferred_element_type=jnp.float32) + bqkvs_ref[0])  # [N, 4D]
    q = qkvs[:, 0 * D:1 * D]
    k = qkvs[:, 1 * D:2 * D]
    v = qkvs[:, 2 * D:3 * D]
    skip = qkvs[:, 3 * D:4 * D]                                    # root / lin_skip

    # per-pair projected edge features (added to both keys and values)
    e_proj = jnp.dot(ed_s[...].astype(BF16), wedge_ref[0],
                     preferred_element_type=jnp.float32).reshape(N, N, D)

    bias = bias_ref[...]                                           # [N, N]: 0 / -1e30
    mask = (bias > -1.0).astype(jnp.float32)                       # lane-dense mask
    scale = 1.0 / math.sqrt(HEAD_DIM)

    head_outs = []
    for hh in range(HEADS):                                        # unrolled, HEADS=4
        sl = slice(hh * HEAD_DIM, (hh + 1) * HEAD_DIM)
        qh, kh, vh = q[:, sl], k[:, sl], v[:, sl]                  # [N, HD]
        eh = e_proj[:, :, sl]                                      # [N, N, HD]
        # logits: MXU q@k^T (K=HEAD_DIM) + VPU per-pair edge term
        qk = jax.lax.dot_general(qh.astype(BF16), kh.astype(BF16),
                                 (((1,), (1,)), ((), ())),
                                 preferred_element_type=jnp.float32)   # [N, N]
        qe = jnp.sum(qh[:, None, :] * eh, axis=-1)                 # [N, N]
        lg = (qk + qe) * scale + bias
        m = jnp.max(lg, axis=-1, keepdims=True)                    # lane reduce
        p = jnp.exp(lg - m) * mask
        denom = jnp.sum(p, axis=-1, keepdims=True)
        inv = pl.reciprocal(jnp.where(denom > 0.0, denom, 1.0), approx=True)
        alpha = p * inv                                            # softmax over src
        # aggregation: MXU alpha@v + VPU broadcast / sublane-reduce for edge part
        agg = jnp.dot(alpha.astype(BF16), vh.astype(BF16),
                      preferred_element_type=jnp.float32)          # [N, HD]
        agg = agg + jnp.sum(alpha[:, :, None] * eh, axis=1)
        head_outs.append(agg)

    h_res = jnp.concatenate(head_outs, axis=-1) + skip             # [N, D]

    # -------------- mlp_skip: h = h + LayerNorm(ReLU(Linear(h_res))) ------------
    y = (jnp.dot(h_res.astype(BF16), wskip_ref[0],
                 preferred_element_type=jnp.float32) + bskip_ref[0])
    y = jnp.maximum(y, 0.0)
    h_new = h + _layernorm(y, gskip_ref[0], betaskip_ref[0])

    # single h store per layer (trailing ReLU folded; no store on the last layer)
    @pl.when(l < NUM_LAYERS - 1)
    def _store_h():
        h_s[...] = jnp.maximum(h_new, 0.0)

    # ----------------------- last layer only: cls head --------------------------
    @pl.when(l == NUM_LAYERS - 1)
    def _cls():
        hc = _mlp_ln(h_new, w1_ref[...], b1_ref[...], g1_ref[...], beta1_ref[...])
        out_ref[...] = (jnp.dot(hc.astype(BF16), w2_ref[...],
                                preferred_element_type=jnp.float32) + b2_ref[...])


# ------------------------------- Pallas glue --------------------------------

def _full(shape):
    zeros = (0,) * len(shape)
    return pl.BlockSpec(tuple(shape), lambda l, eid, _z=zeros: _z)


def _layer(shape):
    zeros = (0,) * len(shape)
    return pl.BlockSpec((1,) + tuple(shape), lambda l, eid, _z=zeros: (l,) + _z)


# --------------------------- parameters (synthetic) --------------------------

def _xavier(key, shape):
    fan_in, fan_out = shape
    lim = (6.0 / (fan_in + fan_out)) ** 0.5
    return jax.random.uniform(key, shape, jnp.float32, -lim, lim)


def init_params(key):
    ks = iter(jax.random.split(key, 64))

    def lin_w(din, dout, pad_in=None):
        w = _xavier(next(ks), (din, dout))
        if pad_in is not None and pad_in > din:
            w = jnp.pad(w, ((0, pad_in - din), (0, 0)))
        return w.astype(BF16)            # bf16 MXU operands (f32 accumulation in-kernel)

    def ln_p():
        return (jnp.ones((1, HIDDEN), jnp.float32),
                jnp.zeros((1, HIDDEN), jnp.float32))

    zeros_b = lambda d: jnp.zeros((1, d), jnp.float32)

    p = {}
    g, be = ln_p()
    p['feat'] = dict(w=lin_w(NODE_FEAT, HIDDEN, PAD_IN), b=zeros_b(HIDDEN), g=g, beta=be)
    g, be = ln_p()
    p['edge'] = dict(w=lin_w(EDGE_FEAT, HIDDEN, PAD_IN), b=zeros_b(HIDDEN), g=g, beta=be)

    wqkvs, bqkvs, wedge = [], [], []
    wskip, bskip, gskip, betaskip = [], [], [], []
    for _ in range(NUM_LAYERS):
        wq = lin_w(HIDDEN, HIDDEN)
        wk = lin_w(HIDDEN, HIDDEN)
        wv = lin_w(HIDDEN, HIDDEN)
        wr = lin_w(HIDDEN, HIDDEN)                       # lin_skip / root weight
        wqkvs.append(jnp.concatenate([wq, wk, wv, wr], axis=1))   # [D, 4D] bf16
        bqkvs.append(jnp.zeros((1, 4 * HIDDEN), jnp.float32))
        wedge.append(lin_w(HIDDEN, HIDDEN))              # lin_edge (no bias)
        wskip.append(lin_w(HIDDEN, HIDDEN))
        bskip.append(zeros_b(HIDDEN))
        g, be = ln_p()
        gskip.append(g)
        betaskip.append(be)
    p['wqkvs'] = jnp.stack(wqkvs)        # [L, D, 4D] bf16
    p['bqkvs'] = jnp.stack(bqkvs)        # [L, 1, 4D] f32
    p['wedge'] = jnp.stack(wedge)        # [L, D, D]  bf16
    p['wskip'] = jnp.stack(wskip)        # [L, D, D]  bf16
    p['bskip'] = jnp.stack(bskip)        # [L, 1, D]  f32
    p['gskip'] = jnp.stack(gskip)        # [L, 1, D]  f32
    p['betaskip'] = jnp.stack(betaskip)  # [L, 1, D]  f32

    g, be = ln_p()
    w2 = jnp.pad(_xavier(next(ks), (HIDDEN, VOCAB)),
                 ((0, 0), (0, PAD_OUT - VOCAB))).astype(BF16)
    p['cls'] = dict(w1=lin_w(HIDDEN, HIDDEN), b1=zeros_b(HIDDEN), g=g, beta=be,
                    w2=w2, b2=jnp.zeros((1, PAD_OUT), jnp.float32))
    return p


# ------------------------------- forward pass --------------------------------

def rna_gnn_forward(params, x, edge_index, edge_attr, *, num_nodes):
    N, D = num_nodes, HIDDEN
    NN = N * N
    E = edge_attr.shape[0]
    E_pad = max(8, ((E + 7) // 8) * 8)

    # zero-pad raw feature dims to 128 lanes; bf16 MXU operands
    x_p = jnp.pad(x, ((0, 0), (0, PAD_IN - x.shape[1]))).astype(BF16)
    ea_p = jnp.pad(edge_attr,
                   ((0, E_pad - E), (0, PAD_IN - edge_attr.shape[1]))).astype(BF16)

    src = edge_index[0].astype(jnp.int32)
    dst = edge_index[1].astype(jnp.int32)
    eid = (dst * N + src).astype(jnp.int32)               # [E] edge ids -> SMEM
    # lane-dense additive attention bias: 0 where edge j->i exists, -1e30 otherwise
    bias = jnp.full((N, N), NEG_INF, jnp.float32).at[dst, src].set(0.0)

    fe, ee, cl = params['feat'], params['edge'], params['cls']

    grid_spec = pltpu.PrefetchScalarGridSpec(
        num_scalar_prefetch=1,                             # eid lives in SMEM
        grid=(NUM_LAYERS,),
        in_specs=[
            _full((N, PAD_IN)),                                     # x_p
            _full((E_pad, PAD_IN)),                                 # ea_p
            _full((N, N)),                                          # additive bias
            _full((PAD_IN, D)), _full((1, D)), _full((1, D)), _full((1, D)),  # feat enc
            _full((PAD_IN, D)), _full((1, D)), _full((1, D)), _full((1, D)),  # edge enc
            _layer((D, 4 * D)), _layer((1, 4 * D)), _layer((D, D)),  # qkvs, b, wedge
            _layer((D, D)), _layer((1, D)), _layer((1, D)), _layer((1, D)),   # skip mlp
            _full((D, D)), _full((1, D)), _full((1, D)), _full((1, D)),       # cls lin1+LN
            _full((D, PAD_OUT)), _full((1, PAD_OUT)),               # cls lin2
        ],
        out_specs=pl.BlockSpec((N, PAD_OUT), lambda l, eid: (0, 0)),
        scratch_shapes=[
            pltpu.VMEM((N, D), jnp.float32),       # node features h (resident)
            pltpu.VMEM((NN, D), jnp.float32),      # dense encoded edges (resident)
            pltpu.VMEM((E_pad, D), jnp.float32),   # encoded edge features (init only)
        ],
    )

    logits_p = pl.pallas_call(
        functools.partial(rna_gnn_kernel, num_nodes=N, num_edges=E),
        out_shape=jax.ShapeDtypeStruct((N, PAD_OUT), jnp.float32),
        grid_spec=grid_spec,
        compiler_params=pltpu.CompilerParams(
            dimension_semantics=("arbitrary",),        # layers are sequential
            vmem_limit_bytes=32 * 1024 * 1024),        # re-derive per chip generation
    )(eid,
      x_p, ea_p, bias,
      fe['w'], fe['b'], fe['g'], fe['beta'],
      ee['w'], ee['b'], ee['g'], ee['beta'],
      params['wqkvs'], params['bqkvs'], params['wedge'],
      params['wskip'], params['bskip'], params['gskip'], params['betaskip'],
      cl['w1'], cl['b1'], cl['g'], cl['beta'], cl['w2'], cl['b2'])

    return logits_p[:, :VOCAB]


# ----------------------------------- main ------------------------------------

if __name__ == "__main__":
    key = jax.random.PRNGKey(0)
    kx, ke, kp = jax.random.split(key, 3)

    N = 16               # nodes
    K_NEIGH = 4          # neighbors per node (ring kNN, deterministic)
    x = jax.random.normal(kx, (N, NODE_FEAT), jnp.float32)

    src, dst = [], []
    for i in range(N):
        for d in range(1, K_NEIGH + 1):
            src.append((i + d) % N)   # edge j -> i
            dst.append(i)
    edge_index = jnp.array([src, dst], dtype=jnp.int32)   # [2, E]
    E = edge_index.shape[1]
    edge_attr = jax.random.normal(ke, (E, EDGE_FEAT), jnp.float32)

    params = init_params(kp)

    fwd = jax.jit(functools.partial(rna_gnn_forward, num_nodes=N))
    out = fwd(params, x, edge_index, edge_attr)
    out = jax.block_until_ready(out)
    assert out.shape == (N, VOCAB), out.shape
    print("KERNEL_OK")
</pallas_src>

<mosaic_0001>
module attributes {stable_mosaic.version = 11 : i64} {
  func.func @rna_gnn_kernel(%arg0: i32, %arg1: memref<64xi32, #tpu.memory_space<smem>>, %arg2: memref<16x128xbf16, #tpu.memory_space<vmem>>, %arg3: memref<64x128xbf16, #tpu.memory_space<vmem>>, %arg4: memref<16x16xf32, #tpu.memory_space<vmem>>, %arg5: memref<128x256xbf16, #tpu.memory_space<vmem>>, %arg6: memref<1x256xf32, #tpu.memory_space<vmem>>, %arg7: memref<1x256xf32, #tpu.memory_space<vmem>>, %arg8: memref<1x256xf32, #tpu.memory_space<vmem>>, %arg9: memref<128x256xbf16, #tpu.memory_space<vmem>>, %arg10: memref<1x256xf32, #tpu.memory_space<vmem>>, %arg11: memref<1x256xf32, #tpu.memory_space<vmem>>, %arg12: memref<1x256xf32, #tpu.memory_space<vmem>>, %arg13: memref<1x256x1024xbf16, #tpu.memory_space<vmem>>, %arg14: memref<1x1x1024xf32, #tpu.memory_space<vmem>>, %arg15: memref<1x256x256xbf16, #tpu.memory_space<vmem>>, %arg16: memref<1x256x256xbf16, #tpu.memory_space<vmem>>, %arg17: memref<1x1x256xf32, #tpu.memory_space<vmem>>, %arg18: memref<1x1x256xf32, #tpu.memory_space<vmem>>, %arg19: memref<1x1x256xf32, #tpu.memory_space<vmem>>, %arg20: memref<256x256xbf16, #tpu.memory_space<vmem>>, %arg21: memref<1x256xf32, #tpu.memory_space<vmem>>, %arg22: memref<1x256xf32, #tpu.memory_space<vmem>>, %arg23: memref<1x256xf32, #tpu.memory_space<vmem>>, %arg24: memref<256x128xbf16, #tpu.memory_space<vmem>>, %arg25: memref<1x128xf32, #tpu.memory_space<vmem>>, %arg26: memref<16x128xf32, #tpu.memory_space<vmem>>, %arg27: memref<16x256xf32, #tpu.memory_space<vmem>>, %arg28: memref<256x256xf32, #tpu.memory_space<vmem>>, %arg29: memref<64x256xf32, #tpu.memory_space<vmem>>) attributes {dimension_semantics = [#tpu.dimension_semantics<arbitrary>], iteration_bounds = array<i64: 4>, scalar_prefetch = 1 : i64, scratch_operands = 3 : i64, tpu.core_type = #tpu.core_type<tc>, window_params = [{pipeline_mode = #tpu.pipeline_mode<synchronous>, transform_indices = @transform_0, window_bounds = array<i64: 16, 128>}, {pipeline_mode = #tpu.pipeline_mode<synchronous>, transform_indices = @transform_1, window_bounds = array<i64: 64, 128>}, {pipeline_mode = #tpu.pipeline_mode<synchronous>, transform_indices = @transform_2, window_bounds = array<i64: 16, 16>}, {pipeline_mode = #tpu.pipeline_mode<synchronous>, transform_indices = @transform_3, window_bounds = array<i64: 128, 256>}, {pipeline_mode = #tpu.pipeline_mode<synchronous>, transform_indices = @transform_4, window_bounds = array<i64: 1, 256>}, {pipeline_mode = #tpu.pipeline_mode<synchronous>, transform_indices = @transform_5, window_bounds = array<i64: 1, 256>}, {pipeline_mode = #tpu.pipeline_mode<synchronous>, transform_indices = @transform_6, window_bounds = array<i64: 1, 256>}, {pipeline_mode = #tpu.pipeline_mode<synchronous>, transform_indices = @transform_7, window_bounds = array<i64: 128, 256>}, {pipeline_mode = #tpu.pipeline_mode<synchronous>, transform_indices = @transform_8, window_bounds = array<i64: 1, 256>}, {pipeline_mode = #tpu.pipeline_mode<synchronous>, transform_indices = @transform_9, window_bounds = array<i64: 1, 256>}, {pipeline_mode = #tpu.pipeline_mode<synchronous>, transform_indices = @transform_10, window_bounds = array<i64: 1, 256>}, {transform_indices = @transform_11, window_bounds = array<i64: 1, 256, 1024>}, {transform_indices = @transform_12, window_bounds = array<i64: 1, 1, 1024>}, {transform_indices = @transform_13, window_bounds = array<i64: 1, 256, 256>}, {transform_indices = @transform_14, window_bounds = array<i64: 1, 256, 256>}, {transform_indices = @transform_15, window_bounds = array<i64: 1, 1, 256>}, {transform_indices = @transform_16, window_bounds = array<i64: 1, 1, 256>}, {transform_indices = @transform_17, window_bounds = array<i64: 1, 1, 256>}, {pipeline_mode = #tpu.pipeline_mode<synchronous>, transform_indices = @transform_18, window_bounds = array<i64: 256, 256>}, {pipeline_mode = #tpu.pipeline_mode<synchronous>, transform_indices = @transform_19, window_bounds = array<i64: 1, 256>}, {pipeline_mode = #tpu.pipeline_mode<synchronous>, transform_indices = @transform_20, window_bounds = array<i64: 1, 256>}, {pipeline_mode = #tpu.pipeline_mode<synchronous>, transform_indices = @transform_21, window_bounds = array<i64: 1, 256>}, {pipeline_mode = #tpu.pipeline_mode<synchronous>, transform_indices = @transform_22, window_bounds = array<i64: 256, 128>}, {pipeline_mode = #tpu.pipeline_mode<synchronous>, transform_indices = @transform_23, window_bounds = array<i64: 1, 128>}, {pipeline_mode = #tpu.pipeline_mode<synchronous>, transform_indices = @transform_24, window_bounds = array<i64: 16, 128>}]} {
    %c0_i32 = arith.constant 0 : i32
    %0 = arith.cmpi eq, %arg0, %c0_i32 : i32
    %1 = arith.extui %0 : i1 to i32
    %c0_i32_0 = arith.constant 0 : i32
    %2 = arith.cmpi ne, %1, %c0_i32_0 : i32
    scf.if %2 {
      %c0_75 = arith.constant 0 : index
      %c0_76 = arith.constant 0 : index
      %224 = vector.load %arg2[%c0_75, %c0_76] : memref<16x128xbf16, #tpu.memory_space<vmem>>, vector<16x128xbf16>
      %c0_77 = arith.constant 0 : index
      %c0_78 = arith.constant 0 : index
      %225 = vector.load %arg5[%c0_77, %c0_78] : memref<128x256xbf16, #tpu.memory_space<vmem>>, vector<128x256xbf16>
      %c0_79 = arith.constant 0 : index
      %c0_80 = arith.constant 0 : index
      %226 = vector.load %arg6[%c0_79, %c0_80] : memref<1x256xf32, #tpu.memory_space<vmem>>, vector<1x256xf32>
      %c0_81 = arith.constant 0 : index
      %c0_82 = arith.constant 0 : index
      %227 = vector.load %arg7[%c0_81, %c0_82] : memref<1x256xf32, #tpu.memory_space<vmem>>, vector<1x256xf32>
      %c0_83 = arith.constant 0 : index
      %c0_84 = arith.constant 0 : index
      %228 = vector.load %arg8[%c0_83, %c0_84] : memref<1x256xf32, #tpu.memory_space<vmem>>, vector<1x256xf32>
      %cst_85 = arith.constant dense<0.000000e+00> : vector<16x256xf32>
      %229 = tpu.matmul %224, %225, %cst_85 {dimension_numbers = #tpu.dot_dimension_numbers<[1], [0], [0], [1], [0, 0, 1, 1], [], []>} : vector<16x128xbf16>, vector<128x256xbf16>, vector<16x256xf32> -> vector<16x256xf32>
      %230 = vector.broadcast %226 : vector<1x256xf32> to vector<16x256xf32>
      %231 = arith.addf %229, %230 : vector<16x256xf32>
      %cst_86 = arith.constant 0.000000e+00 : f32
      %232 = vector.broadcast %cst_86 : f32 to vector<16x256xf32>
      %233 = arith.maximumf %231, %232 : vector<16x256xf32>
      %cst_87 = arith.constant dense<0.000000e+00> : vector<16xf32>
      %234 = vector.multi_reduction <add>, %233, %cst_87 [1] : vector<16x256xf32> to vector<16xf32>
      %235 = vector.shape_cast %234 : vector<16xf32> to vector<16x1xf32>
      %cst_88 = arith.constant 2.560000e+02 : f32
      %236 = vector.broadcast %cst_88 : f32 to vector<16x1xf32>
      %237 = arith.divf %235, %236 : vector<16x1xf32>
      %238 = vector.broadcast %237 : vector<16x1xf32> to vector<16x256xf32>
      %239 = arith.subf %233, %238 : vector<16x256xf32>
      %240 = arith.mulf %239, %239 : vector<16x256xf32>
      %cst_89 = arith.constant dense<0.000000e+00> : vector<16xf32>
      %241 = vector.multi_reduction <add>, %240, %cst_89 [1] : vector<16x256xf32> to vector<16xf32>
      %242 = vector.shape_cast %241 : vector<16xf32> to vector<16x1xf32>
      %cst_90 = arith.constant 2.560000e+02 : f32
      %243 = vector.broadcast %cst_90 : f32 to vector<16x1xf32>
      %244 = arith.divf %242, %243 : vector<16x1xf32>
      %245 = vector.broadcast %237 : vector<16x1xf32> to vector<16x256xf32>
      %246 = arith.subf %233, %245 : vector<16x256xf32>
      %cst_91 = arith.constant 9.99999974E-6 : f32
      %247 = vector.broadcast %cst_91 : f32 to vector<16x1xf32>
      %248 = arith.addf %244, %247 : vector<16x1xf32>
      %249 = math.rsqrt %248 : vector<16x1xf32>
      %250 = vector.broadcast %249 : vector<16x1xf32> to vector<16x256xf32>
      %251 = arith.mulf %246, %250 : vector<16x256xf32>
      %252 = vector.broadcast %227 : vector<1x256xf32> to vector<16x256xf32>
      %253 = arith.mulf %251, %252 : vector<16x256xf32>
      %254 = vector.broadcast %228 : vector<1x256xf32> to vector<16x256xf32>
      %255 = arith.addf %253, %254 : vector<16x256xf32>
      %c0_92 = arith.constant 0 : index
      %c0_93 = arith.constant 0 : index
      %256 = vector.load %arg27[%c0_92, %c0_93] : memref<16x256xf32, #tpu.memory_space<vmem>>, vector<16x256xf32>
      tpu.vector_store %arg27[%c0_92, %c0_93], %255 {strides = array<i32>} : memref<16x256xf32, #tpu.memory_space<vmem>>, vector<16x256xf32>,
      %c0_94 = arith.constant 0 : index
      %c0_95 = arith.constant 0 : index
      %257 = vector.load %arg3[%c0_94, %c0_95] : memref<64x128xbf16, #tpu.memory_space<vmem>>, vector<64x128xbf16>
      %c0_96 = arith.constant 0 : index
      %c0_97 = arith.constant 0 : index
      %258 = vector.load %arg9[%c0_96, %c0_97] : memref<128x256xbf16, #tpu.memory_space<vmem>>, vector<128x256xbf16>
      %c0_98 = arith.constant 0 : index
      %c0_99 = arith.constant 0 : index
      %259 = vector.load %arg10[%c0_98, %c0_99] : memref<1x256xf32, #tpu.memory_space<vmem>>, vector<1x256xf32>
      %c0_100 = arith.constant 0 : index
      %c0_101 = arith.constant 0 : index
      %260 = vector.load %arg11[%c0_100, %c0_101] : memref<1x256xf32, #tpu.memory_space<vmem>>, vector<1x256xf32>
      %c0_102 = arith.constant 0 : index
      %c0_103 = arith.constant 0 : index
      %261 = vector.load %arg12[%c0_102, %c0_103] : memref<1x256xf32, #tpu.memory_space<vmem>>, vector<1x256xf32>
      %cst_104 = arith.constant dense<0.000000e+00> : vector<64x256xf32>
      %262 = tpu.matmul %257, %258, %cst_104 {dimension_numbers = #tpu.dot_dimension_numbers<[1], [0], [0], [1], [0, 0, 1, 1], [], []>} : vector<64x128xbf16>, vector<128x256xbf16>, vector<64x256xf32> -> vector<64x256xf32>
      %263 = vector.broadcast %259 : vector<1x256xf32> to vector<64x256xf32>
      %264 = arith.addf %262, %263 : vector<64x256xf32>
      %cst_105 = arith.constant 0.000000e+00 : f32
      %265 = vector.broadcast %cst_105 : f32 to vector<64x256xf32>
      %266 = arith.maximumf %264, %265 : vector<64x256xf32>
      %cst_106 = arith.constant dense<0.000000e+00> : vector<64xf32>
      %267 = vector.multi_reduction <add>, %266, %cst_106 [1] : vector<64x256xf32> to vector<64xf32>
      %268 = vector.shape_cast %267 : vector<64xf32> to vector<64x1xf32>
      %cst_107 = arith.constant 2.560000e+02 : f32
      %269 = vector.broadcast %cst_107 : f32 to vector<64x1xf32>
      %270 = arith.divf %268, %269 : vector<64x1xf32>
      %271 = vector.broadcast %270 : vector<64x1xf32> to vector<64x256xf32>
      %272 = arith.subf %266, %271 : vector<64x256xf32>
      %273 = arith.mulf %272, %272 : vector<64x256xf32>
      %cst_108 = arith.constant dense<0.000000e+00> : vector<64xf32>
      %274 = vector.multi_reduction <add>, %273, %cst_108 [1] : vector<64x256xf32> to vector<64xf32>
      %275 = vector.shape_cast %274 : vector<64xf32> to vector<64x1xf32>
      %cst_109 = arith.constant 2.560000e+02 : f32
      %276 = vector.broadcast %cst_109 : f32 to vector<64x1xf32>
      %277 = arith.divf %275, %276 : vector<64x1xf32>
      %278 = vector.broadcast %270 : vector<64x1xf32> to vector<64x256xf32>
      %279 = arith.subf %266, %278 : vector<64x256xf32>
      %cst_110 = arith.constant 9.99999974E-6 : f32
      %280 = vector.broadcast %cst_110 : f32 to vector<64x1xf32>
      %281 = arith.addf %277, %280 : vector<64x1xf32>
      %282 = math.rsqrt %281 : vector<64x1xf32>
      %283 = vector.broadcast %282 : vector<64x1xf32> to vector<64x256xf32>
      %284 = arith.mulf %279, %283 : vector<64x256xf32>
      %285 = vector.broadcast %260 : vector<1x256xf32> to vector<64x256xf32>
      %286 = arith.mulf %284, %285 : vector<64x256xf32>
      %287 = vector.broadcast %261 : vector<1x256xf32> to vector<64x256xf32>
      %288 = arith.addf %286, %287 : vector<64x256xf32>
      %c0_111 = arith.constant 0 : index
      %c0_112 = arith.constant 0 : index
      %289 = vector.load %arg29[%c0_111, %c0_112] : memref<64x256xf32, #tpu.memory_space<vmem>>, vector<64x256xf32>
      tpu.vector_store %arg29[%c0_111, %c0_112], %288 {strides = array<i32>} : memref<64x256xf32, #tpu.memory_space<vmem>>, vector<64x256xf32>,
      %cst_113 = arith.constant 0.000000e+00 : f32
      %290 = vector.broadcast %cst_113 : f32 to vector<256x256xf32>
      %c0_114 = arith.constant 0 : index
      %c0_115 = arith.constant 0 : index
      %291 = vector.load %arg28[%c0_114, %c0_115] : memref<256x256xf32, #tpu.memory_space<vmem>>, vector<256x256xf32>
      tpu.vector_store %arg28[%c0_114, %c0_115], %290 {strides = array<i32>} : memref<256x256xf32, #tpu.memory_space<vmem>>, vector<256x256xf32>,
      %c0_i32_116 = arith.constant 0 : i32
      %c64_i32 = arith.constant 64 : i32
      %292 = arith.addi %c0_i32_116, %c64_i32 : i32
      %c1_i32 = arith.constant 1 : i32
      scf.for %arg30 = %c0_i32_116 to %292 step %c1_i32  : i32 {
        %293 = arith.index_cast %arg30 : i32 to index
        %294 = memref.load %arg1[%293] : memref<64xi32, #tpu.memory_space<smem>>
        %295 = arith.index_cast %294 : i32 to index
        %c0_118 = arith.constant 0 : index
        %296 = vector.load %arg28[%295, %c0_118] : memref<256x256xf32, #tpu.memory_space<vmem>>, vector<1x256xf32>
        %297 = arith.index_cast %arg30 : i32 to index
        %c0_119 = arith.constant 0 : index
        %298 = vector.load %arg29[%297, %c0_119] : memref<64x256xf32, #tpu.memory_space<vmem>>, vector<1x256xf32>
        %299 = arith.addf %296, %298 : vector<1x256xf32>
        %300 = arith.index_cast %294 : i32 to index
        %c0_120 = arith.constant 0 : index
        %301 = vector.load %arg28[%300, %c0_120] : memref<256x256xf32, #tpu.memory_space<vmem>>, vector<1x256xf32>
        tpu.vector_store %arg28[%300, %c0_120], %299 {strides = array<i32>} : memref<256x256xf32, #tpu.memory_space<vmem>>, vector<1x256xf32>,
      }
      %c64_i32_117 = arith.constant 64 : i32
    } else {
    }
    %c0 = arith.constant 0 : index
    %c0_1 = arith.constant 0 : index
    %3 = vector.load %arg27[%c0, %c0_1] : memref<16x256xf32, #tpu.memory_space<vmem>>, vector<16x256xf32>
    %4 = arith.truncf %3 : vector<16x256xf32> to vector<16x256xbf16>
    %c0_2 = arith.constant 0 : index
    %c0_3 = arith.constant 0 : index
    %c0_4 = arith.constant 0 : index
    %5 = vector.load %arg13[%c0_2, %c0_3, %c0_4] : memref<1x256x1024xbf16, #tpu.memory_space<vmem>>, vector<1x256x1024xbf16>
    %6 = vector.shape_cast %5 : vector<1x256x1024xbf16> to vector<256x1024xbf16>
    %cst = arith.constant dense<0.000000e+00> : vector<16x1024xf32>
    %7 = tpu.matmul %4, %6, %cst {dimension_numbers = #tpu.dot_dimension_numbers<[1], [0], [0], [1], [0, 0, 1, 1], [], []>} : vector<16x256xbf16>, vector<256x1024xbf16>, vector<16x1024xf32> -> vector<16x1024xf32>
    %c0_5 = arith.constant 0 : index
    %c0_6 = arith.constant 0 : index
    %c0_7 = arith.constant 0 : index
    %8 = vector.load %arg14[%c0_5, %c0_6, %c0_7] : memref<1x1x1024xf32, #tpu.memory_space<vmem>>, vector<1x1x1024xf32>
    %9 = vector.shape_cast %8 : vector<1x1x1024xf32> to vector<1x1024xf32>
    %10 = vector.broadcast %9 : vector<1x1024xf32> to vector<16x1024xf32>
    %11 = arith.addf %7, %10 : vector<16x1024xf32>
    %12 = vector.extract_strided_slice %11 {offsets = [0, 0], sizes = [16, 256], strides = [1, 1]} : vector<16x1024xf32> to vector<16x256xf32>
    %13 = vector.extract_strided_slice %11 {offsets = [0, 256], sizes = [16, 256], strides = [1, 1]} : vector<16x1024xf32> to vector<16x256xf32>
    %14 = vector.extract_strided_slice %11 {offsets = [0, 512], sizes = [16, 256], strides = [1, 1]} : vector<16x1024xf32> to vector<16x256xf32>
    %15 = vector.extract_strided_slice %11 {offsets = [0, 768], sizes = [16, 256], strides = [1, 1]} : vector<16x1024xf32> to vector<16x256xf32>
    %c0_8 = arith.constant 0 : index
    %c0_9 = arith.constant 0 : index
    %16 = vector.load %arg28[%c0_8, %c0_9] : memref<256x256xf32, #tpu.memory_space<vmem>>, vector<256x256xf32>
    %17 = arith.truncf %16 : vector<256x256xf32> to vector<256x256xbf16>
    %c0_10 = arith.constant 0 : index
    %c0_11 = arith.constant 0 : index
    %c0_12 = arith.constant 0 : index
    %18 = vector.load %arg15[%c0_10, %c0_11, %c0_12] : memref<1x256x256xbf16, #tpu.memory_space<vmem>>, vector<1x256x256xbf16>
    %19 = vector.shape_cast %18 : vector<1x256x256xbf16> to vector<256x256xbf16>
    %cst_13 = arith.constant dense<0.000000e+00> : vector<256x256xf32>
    %20 = tpu.matmul %17, %19, %cst_13 {dimension_numbers = #tpu.dot_dimension_numbers<[1], [0], [0], [1], [0, 0, 1, 1], [], []>} : vector<256x256xbf16>, vector<256x256xbf16>, vector<256x256xf32> -> vector<256x256xf32>
    %21 = vector.shape_cast %20 : vector<256x256xf32> to vector<16x16x256xf32>
    %c0_14 = arith.constant 0 : index
    %c0_15 = arith.constant 0 : index
    %22 = vector.load %arg4[%c0_14, %c0_15] : memref<16x16xf32, #tpu.memory_space<vmem>>, vector<16x16xf32>
    %cst_16 = arith.constant -1.000000e+00 : f32
    %23 = vector.broadcast %cst_16 : f32 to vector<16x16xf32>
    %24 = arith.cmpf ogt, %22, %23 : vector<16x16xf32>
    %25 = arith.extui %24 : vector<16x16xi1> to vector<16x16xi32>
    %26 = arith.sitofp %25 : vector<16x16xi32> to vector<16x16xf32>
    %27 = vector.extract_strided_slice %12 {offsets = [0, 0], sizes = [16, 64], strides = [1, 1]} : vector<16x256xf32> to vector<16x64xf32>
    %28 = vector.extract_strided_slice %13 {offsets = [0, 0], sizes = [16, 64], strides = [1, 1]} : vector<16x256xf32> to vector<16x64xf32>
    %29 = vector.extract_strided_slice %14 {offsets = [0, 0], sizes = [16, 64], strides = [1, 1]} : vector<16x256xf32> to vector<16x64xf32>
    %30 = vector.extract_strided_slice %21 {offsets = [0, 0, 0], sizes = [16, 16, 64], strides = [1, 1, 1]} : vector<16x16x256xf32> to vector<16x16x64xf32>
    %31 = arith.truncf %27 : vector<16x64xf32> to vector<16x64xbf16>
    %32 = arith.truncf %28 : vector<16x64xf32> to vector<16x64xbf16>
    %cst_17 = arith.constant dense<0.000000e+00> : vector<16x16xf32>
    %33 = tpu.matmul %31, %32, %cst_17 {dimension_numbers = #tpu.dot_dimension_numbers<[1], [1], [0], [0], [0, 0, 1, 0], [], []>} : vector<16x64xbf16>, vector<16x64xbf16>, vector<16x16xf32> -> vector<16x16xf32>
    %34 = vector.shape_cast %27 : vector<16x64xf32> to vector<16x1x64xf32>
    %35 = vector.broadcast %34 : vector<16x1x64xf32> to vector<16x16x64xf32>
    %36 = arith.mulf %35, %30 : vector<16x16x64xf32>
    %cst_18 = arith.constant dense<0.000000e+00> : vector<16x16xf32>
    %37 = vector.multi_reduction <add>, %36, %cst_18 [2] : vector<16x16x64xf32> to vector<16x16xf32>
    %38 = arith.addf %33, %37 : vector<16x16xf32>
    %cst_19 = arith.constant 1.250000e-01 : f32
    %39 = vector.broadcast %cst_19 : f32 to vector<16x16xf32>
    %40 = arith.mulf %38, %39 : vector<16x16xf32>
    %41 = arith.addf %40, %22 : vector<16x16xf32>
    %cst_20 = arith.constant dense<0xFF800000> : vector<16xf32>
    %42 = vector.multi_reduction <maximumf>, %41, %cst_20 [1] : vector<16x16xf32> to vector<16xf32>
    %43 = vector.shape_cast %42 : vector<16xf32> to vector<16x1xf32>
    %44 = vector.broadcast %43 : vector<16x1xf32> to vector<16x16xf32>
    %45 = arith.subf %41, %44 : vector<16x16xf32>
    %46 = math.exp %45 : vector<16x16xf32>
    %47 = arith.mulf %46, %26 : vector<16x16xf32>
    %cst_21 = arith.constant dense<0.000000e+00> : vector<16xf32>
    %48 = vector.multi_reduction <add>, %47, %cst_21 [1] : vector<16x16xf32> to vector<16xf32>
    %49 = vector.shape_cast %48 : vector<16xf32> to vector<16x1xf32>
    %cst_22 = arith.constant 0.000000e+00 : f32
    %50 = vector.broadcast %cst_22 : f32 to vector<16x1xf32>
    %51 = arith.cmpf ogt, %49, %50 : vector<16x1xf32>
    %cst_23 = arith.constant 1.000000e+00 : f32
    %52 = vector.broadcast %cst_23 : f32 to vector<16x1xf32>
    %53 = arith.select %51, %49, %52 : vector<16x1xi1>, vector<16x1xf32>
    %54 = tpu.reciprocal %53 {approx = true} : vector<16x1xf32> -> vector<16x1xf32>
    %55 = vector.broadcast %54 : vector<16x1xf32> to vector<16x16xf32>
    %56 = arith.mulf %47, %55 : vector<16x16xf32>
    %57 = arith.truncf %56 : vector<16x16xf32> to vector<16x16xbf16>
    %58 = arith.truncf %29 : vector<16x64xf32> to vector<16x64xbf16>
    %cst_24 = arith.constant dense<0.000000e+00> : vector<16x64xf32>
    %59 = tpu.matmul %57, %58, %cst_24 {dimension_numbers = #tpu.dot_dimension_numbers<[1], [0], [0], [1], [0, 0, 1, 1], [], []>} : vector<16x16xbf16>, vector<16x64xbf16>, vector<16x64xf32> -> vector<16x64xf32>
    %60 = vector.shape_cast %56 : vector<16x16xf32> to vector<16x16x1xf32>
    %61 = vector.broadcast %60 : vector<16x16x1xf32> to vector<16x16x64xf32>
    %62 = arith.mulf %61, %30 : vector<16x16x64xf32>
    %cst_25 = arith.constant dense<0.000000e+00> : vector<16x64xf32>
    %63 = vector.multi_reduction <add>, %62, %cst_25 [1] : vector<16x16x64xf32> to vector<16x64xf32>
    %64 = arith.addf %59, %63 : vector<16x64xf32>
    %65 = vector.extract_strided_slice %12 {offsets = [0, 64], sizes = [16, 64], strides = [1, 1]} : vector<16x256xf32> to vector<16x64xf32>
    %66 = vector.extract_strided_slice %13 {offsets = [0, 64], sizes = [16, 64], strides = [1, 1]} : vector<16x256xf32> to vector<16x64xf32>
    %67 = vector.extract_strided_slice %14 {offsets = [0, 64], sizes = [16, 64], strides = [1, 1]} : vector<16x256xf32> to vector<16x64xf32>
    %68 = vector.extract_strided_slice %21 {offsets = [0, 0, 64], sizes = [16, 16, 64], strides = [1, 1, 1]} : vector<16x16x256xf32> to vector<16x16x64xf32>
    %69 = arith.truncf %65 : vector<16x64xf32> to vector<16x64xbf16>
    %70 = arith.truncf %66 : vector<16x64xf32> to vector<16x64xbf16>
    %cst_26 = arith.constant dense<0.000000e+00> : vector<16x16xf32>
    %71 = tpu.matmul %69, %70, %cst_26 {dimension_numbers = #tpu.dot_dimension_numbers<[1], [1], [0], [0], [0, 0, 1, 0], [], []>} : vector<16x64xbf16>, vector<16x64xbf16>, vector<16x16xf32> -> vector<16x16xf32>
    %72 = vector.shape_cast %65 : vector<16x64xf32> to vector<16x1x64xf32>
    %73 = vector.broadcast %72 : vector<16x1x64xf32> to vector<16x16x64xf32>
    %74 = arith.mulf %73, %68 : vector<16x16x64xf32>
    %cst_27 = arith.constant dense<0.000000e+00> : vector<16x16xf32>
    %75 = vector.multi_reduction <add>, %74, %cst_27 [2] : vector<16x16x64xf32> to vector<16x16xf32>
    %76 = arith.addf %71, %75 : vector<16x16xf32>
    %cst_28 = arith.constant 1.250000e-01 : f32
    %77 = vector.broadcast %cst_28 : f32 to vector<16x16xf32>
    %78 = arith.mulf %76, %77 : vector<16x16xf32>
    %79 = arith.addf %78, %22 : vector<16x16xf32>
    %cst_29 = arith.constant dense<0xFF800000> : vector<16xf32>
    %80 = vector.multi_reduction <maximumf>, %79, %cst_29 [1] : vector<16x16xf32> to vector<16xf32>
    %81 = vector.shape_cast %80 : vector<16xf32> to vector<16x1xf32>
    %82 = vector.broadcast %81 : vector<16x1xf32> to vector<16x16xf32>
    %83 = arith.subf %79, %82 : vector<16x16xf32>
    %84 = math.exp %83 : vector<16x16xf32>
    %85 = arith.mulf %84, %26 : vector<16x16xf32>
    %cst_30 = arith.constant dense<0.000000e+00> : vector<16xf32>
    %86 = vector.multi_reduction <add>, %85, %cst_30 [1] : vector<16x16xf32> to vector<16xf32>
    %87 = vector.shape_cast %86 : vector<16xf32> to vector<16x1xf32>
    %cst_31 = arith.constant 0.000000e+00 : f32
    %88 = vector.broadcast %cst_31 : f32 to vector<16x1xf32>
    %89 = arith.cmpf ogt, %87, %88 : vector<16x1xf32>
    %cst_32 = arith.constant 1.000000e+00 : f32
    %90 = vector.broadcast %cst_32 : f32 to vector<16x1xf32>
    %91 = arith.select %89, %87, %90 : vector<16x1xi1>, vector<16x1xf32>
    %92 = tpu.reciprocal %91 {approx = true} : vector<16x1xf32> -> vector<16x1xf32>
    %93 = vector.broadcast %92 : vector<16x1xf32> to vector<16x16xf32>
    %94 = arith.mulf %85, %93 : vector<16x16xf32>
    %95 = arith.truncf %94 : vector<16x16xf32> to vector<16x16xbf16>
    %96 = arith.truncf %67 : vector<16x64xf32> to vector<16x64xbf16>
    %cst_33 = arith.constant dense<0.000000e+00> : vector<16x64xf32>
    %97 = tpu.matmul %95, %96, %cst_33 {dimension_numbers = #tpu.dot_dimension_numbers<[1], [0], [0], [1], [0, 0, 1, 1], [], []>} : vector<16x16xbf16>, vector<16x64xbf16>, vector<16x64xf32> -> vector<16x64xf32>
    %98 = vector.shape_cast %94 : vector<16x16xf32> to vector<16x16x1xf32>
    %99 = vector.broadcast %98 : vector<16x16x1xf32> to vector<16x16x64xf32>
    %100 = arith.mulf %99, %68 : vector<16x16x64xf32>
    %cst_34 = arith.constant dense<0.000000e+00> : vector<16x64xf32>
    %101 = vector.multi_reduction <add>, %100, %cst_34 [1] : vector<16x16x64xf32> to vector<16x64xf32>
    %102 = arith.addf %97, %101 : vector<16x64xf32>
    %103 = vector.extract_strided_slice %12 {offsets = [0, 128], sizes = [16, 64], strides = [1, 1]} : vector<16x256xf32> to vector<16x64xf32>
    %104 = vector.extract_strided_slice %13 {offsets = [0, 128], sizes = [16, 64], strides = [1, 1]} : vector<16x256xf32> to vector<16x64xf32>
    %105 = vector.extract_strided_slice %14 {offsets = [0, 128], sizes = [16, 64], strides = [1, 1]} : vector<16x256xf32> to vector<16x64xf32>
    %106 = vector.extract_strided_slice %21 {offsets = [0, 0, 128], sizes = [16, 16, 64], strides = [1, 1, 1]} : vector<16x16x256xf32> to vector<16x16x64xf32>
    %107 = arith.truncf %103 : vector<16x64xf32> to vector<16x64xbf16>
    %108 = arith.truncf %104 : vector<16x64xf32> to vector<16x64xbf16>
    %cst_35 = arith.constant dense<0.000000e+00> : vector<16x16xf32>
    %109 = tpu.matmul %107, %108, %cst_35 {dimension_numbers = #tpu.dot_dimension_numbers<[1], [1], [0], [0], [0, 0, 1, 0], [], []>} : vector<16x64xbf16>, vector<16x64xbf16>, vector<16x16xf32> -> vector<16x16xf32>
    %110 = vector.shape_cast %103 : vector<16x64xf32> to vector<16x1x64xf32>
    %111 = vector.broadcast %110 : vector<16x1x64xf32> to vector<16x16x64xf32>
    %112 = arith.mulf %111, %106 : vector<16x16x64xf32>
    %cst_36 = arith.constant dense<0.000000e+00> : vector<16x16xf32>
    %113 = vector.multi_reduction <add>, %112, %cst_36 [2] : vector<16x16x64xf32> to vector<16x16xf32>
    %114 = arith.addf %109, %113 : vector<16x16xf32>
    %cst_37 = arith.constant 1.250000e-01 : f32
    %115 = vector.broadcast %cst_37 : f32 to vector<16x16xf32>
    %116 = arith.mulf %114, %115 : vector<16x16xf32>
    %117 = arith.addf %116, %22 : vector<16x16xf32>
    %cst_38 = arith.constant dense<0xFF800000> : vector<16xf32>
    %118 = vector.multi_reduction <maximumf>, %117, %cst_38 [1] : vector<16x16xf32> to vector<16xf32>
    %119 = vector.shape_cast %118 : vector<16xf32> to vector<16x1xf32>
    %120 = vector.broadcast %119 : vector<16x1xf32> to vector<16x16xf32>
    %121 = arith.subf %117, %120 : vector<16x16xf32>
    %122 = math.exp %121 : vector<16x16xf32>
    %123 = arith.mulf %122, %26 : vector<16x16xf32>
    %cst_39 = arith.constant dense<0.000000e+00> : vector<16xf32>
    %124 = vector.multi_reduction <add>, %123, %cst_39 [1] : vector<16x16xf32> to vector<16xf32>
    %125 = vector.shape_cast %124 : vector<16xf32> to vector<16x1xf32>
    %cst_40 = arith.constant 0.000000e+00 : f32
    %126 = vector.broadcast %cst_40 : f32 to vector<16x1xf32>
    %127 = arith.cmpf ogt, %125, %126 : vector<16x1xf32>
    %cst_41 = arith.constant 1.000000e+00 : f32
    %128 = vector.broadcast %cst_41 : f32 to vector<16x1xf32>
    %129 = arith.select %127, %125, %128 : vector<16x1xi1>, vector<16x1xf32>
    %130 = tpu.reciprocal %129 {approx = true} : vector<16x1xf32> -> vector<16x1xf32>
    %131 = vector.broadcast %130 : vector<16x1xf32> to vector<16x16xf32>
    %132 = arith.mulf %123, %131 : vector<16x16xf32>
    %133 = arith.truncf %132 : vector<16x16xf32> to vector<16x16xbf16>
    %134 = arith.truncf %105 : vector<16x64xf32> to vector<16x64xbf16>
    %cst_42 = arith.constant dense<0.000000e+00> : vector<16x64xf32>
    %135 = tpu.matmul %133, %134, %cst_42 {dimension_numbers = #tpu.dot_dimension_numbers<[1], [0], [0], [1], [0, 0, 1, 1], [], []>} : vector<16x16xbf16>, vector<16x64xbf16>, vector<16x64xf32> -> vector<16x64xf32>
    %136 = vector.shape_cast %132 : vector<16x16xf32> to vector<16x16x1xf32>
    %137 = vector.broadcast %136 : vector<16x16x1xf32> to vector<16x16x64xf32>
    %138 = arith.mulf %137, %106 : vector<16x16x64xf32>
    %cst_43 = arith.constant dense<0.000000e+00> : vector<16x64xf32>
    %139 = vector.multi_reduction <add>, %138, %cst_43 [1] : vector<16x16x64xf32> to vector<16x64xf32>
    %140 = arith.addf %135, %139 : vector<16x64xf32>
    %141 = vector.extract_strided_slice %12 {offsets = [0, 192], sizes = [16, 64], strides = [1, 1]} : vector<16x256xf32> to vector<16x64xf32>
    %142 = vector.extract_strided_slice %13 {offsets = [0, 192], sizes = [16, 64], strides = [1, 1]} : vector<16x256xf32> to vector<16x64xf32>
    %143 = vector.extract_strided_slice %14 {offsets = [0, 192], sizes = [16, 64], strides = [1, 1]} : vector<16x256xf32> to vector<16x64xf32>
    %144 = vector.extract_strided_slice %21 {offsets = [0, 0, 192], sizes = [16, 16, 64], strides = [1, 1, 1]} : vector<16x16x256xf32> to vector<16x16x64xf32>
    %145 = arith.truncf %141 : vector<16x64xf32> to vector<16x64xbf16>
    %146 = arith.truncf %142 : vector<16x64xf32> to vector<16x64xbf16>
    %cst_44 = arith.constant dense<0.000000e+00> : vector<16x16xf32>
    %147 = tpu.matmul %145, %146, %cst_44 {dimension_numbers = #tpu.dot_dimension_numbers<[1], [1], [0], [0], [0, 0, 1, 0], [], []>} : vector<16x64xbf16>, vector<16x64xbf16>, vector<16x16xf32> -> vector<16x16xf32>
    %148 = vector.shape_cast %141 : vector<16x64xf32> to vector<16x1x64xf32>
    %149 = vector.broadcast %148 : vector<16x1x64xf32> to vector<16x16x64xf32>
    %150 = arith.mulf %149, %144 : vector<16x16x64xf32>
    %cst_45 = arith.constant dense<0.000000e+00> : vector<16x16xf32>
    %151 = vector.multi_reduction <add>, %150, %cst_45 [2] : vector<16x16x64xf32> to vector<16x16xf32>
    %152 = arith.addf %147, %151 : vector<16x16xf32>
    %cst_46 = arith.constant 1.250000e-01 : f32
    %153 = vector.broadcast %cst_46 : f32 to vector<16x16xf32>
    %154 = arith.mulf %152, %153 : vector<16x16xf32>
    %155 = arith.addf %154, %22 : vector<16x16xf32>
    %cst_47 = arith.constant dense<0xFF800000> : vector<16xf32>
    %156 = vector.multi_reduction <maximumf>, %155, %cst_47 [1] : vector<16x16xf32> to vector<16xf32>
    %157 = vector.shape_cast %156 : vector<16xf32> to vector<16x1xf32>
    %158 = vector.broadcast %157 : vector<16x1xf32> to vector<16x16xf32>
    %159 = arith.subf %155, %158 : vector<16x16xf32>
    %160 = math.exp %159 : vector<16x16xf32>
    %161 = arith.mulf %160, %26 : vector<16x16xf32>
    %cst_48 = arith.constant dense<0.000000e+00> : vector<16xf32>
    %162 = vector.multi_reduction <add>, %161, %cst_48 [1] : vector<16x16xf32> to vector<16xf32>
    %163 = vector.shape_cast %162 : vector<16xf32> to vector<16x1xf32>
    %cst_49 = arith.constant 0.000000e+00 : f32
    %164 = vector.broadcast %cst_49 : f32 to vector<16x1xf32>
    %165 = arith.cmpf ogt, %163, %164 : vector<16x1xf32>
    %cst_50 = arith.constant 1.000000e+00 : f32
    %166 = vector.broadcast %cst_50 : f32 to vector<16x1xf32>
    %167 = arith.select %165, %163, %166 : vector<16x1xi1>, vector<16x1xf32>
    %168 = tpu.reciprocal %167 {approx = true} : vector<16x1xf32> -> vector<16x1xf32>
    %169 = vector.broadcast %168 : vector<16x1xf32> to vector<16x16xf32>
    %170 = arith.mulf %161, %169 : vector<16x16xf32>
    %171 = arith.truncf %170 : vector<16x16xf32> to vector<16x16xbf16>
    %172 = arith.truncf %143 : vector<16x64xf32> to vector<16x64xbf16>
    %cst_51 = arith.constant dense<0.000000e+00> : vector<16x64xf32>
    %173 = tpu.matmul %171, %172, %cst_51 {dimension_numbers = #tpu.dot_dimension_numbers<[1], [0], [0], [1], [0, 0, 1, 1], [], []>} : vector<16x16xbf16>, vector<16x64xbf16>, vector<16x64xf32> -> vector<16x64xf32>
    %174 = vector.shape_cast %170 : vector<16x16xf32> to vector<16x16x1xf32>
    %175 = vector.broadcast %174 : vector<16x16x1xf32> to vector<16x16x64xf32>
    %176 = arith.mulf %175, %144 : vector<16x16x64xf32>
    %cst_52 = arith.constant dense<0.000000e+00> : vector<16x64xf32>
    %177 = vector.multi_reduction <add>, %176, %cst_52 [1] : vector<16x16x64xf32> to vector<16x64xf32>
    %178 = arith.addf %173, %177 : vector<16x64xf32>
    %179 = tpu.concatenate %64, %102, %140, %178 in 1 : vector<16x64xf32>, vector<16x64xf32>, vector<16x64xf32>, vector<16x64xf32> -> vector<16x256xf32>
    %180 = arith.addf %179, %15 : vector<16x256xf32>
    %181 = arith.truncf %180 : vector<16x256xf32> to vector<16x256xbf16>
    %c0_53 = arith.constant 0 : index
    %c0_54 = arith.constant 0 : index
    %c0_55 = arith.constant 0 : index
    %182 = vector.load %arg16[%c0_53, %c0_54, %c0_55] : memref<1x256x256xbf16, #tpu.memory_space<vmem>>, vector<1x256x256xbf16>
    %183 = vector.shape_cast %182 : vector<1x256x256xbf16> to vector<256x256xbf16>
    %cst_56 = arith.constant dense<0.000000e+00> : vector<16x256xf32>
    %184 = tpu.matmul %181, %183, %cst_56 {dimension_numbers = #tpu.dot_dimension_numbers<[1], [0], [0], [1], [0, 0, 1, 1], [], []>} : vector<16x256xbf16>, vector<256x256xbf16>, vector<16x256xf32> -> vector<16x256xf32>
    %c0_57 = arith.constant 0 : index
    %c0_58 = arith.constant 0 : index
    %c0_59 = arith.constant 0 : index
    %185 = vector.load %arg17[%c0_57, %c0_58, %c0_59] : memref<1x1x256xf32, #tpu.memory_space<vmem>>, vector<1x1x256xf32>
    %186 = vector.shape_cast %185 : vector<1x1x256xf32> to vector<1x256xf32>
    %187 = vector.broadcast %186 : vector<1x256xf32> to vector<16x256xf32>
    %188 = arith.addf %184, %187 : vector<16x256xf32>
    %cst_60 = arith.constant 0.000000e+00 : f32
    %189 = vector.broadcast %cst_60 : f32 to vector<16x256xf32>
    %190 = arith.maximumf %188, %189 : vector<16x256xf32>
    %c0_61 = arith.constant 0 : index
    %c0_62 = arith.constant 0 : index
    %c0_63 = arith.constant 0 : index
    %191 = vector.load %arg18[%c0_61, %c0_62, %c0_63] : memref<1x1x256xf32, #tpu.memory_space<vmem>>, vector<1x1x256xf32>
    %192 = vector.shape_cast %191 : vector<1x1x256xf32> to vector<1x256xf32>
    %c0_64 = arith.constant 0 : index
    %c0_65 = arith.constant 0 : index
    %c0_66 = arith.constant 0 : index
    %193 = vector.load %arg19[%c0_64, %c0_65, %c0_66] : memref<1x1x256xf32, #tpu.memory_space<vmem>>, vector<1x1x256xf32>
    %194 = vector.shape_cast %193 : vector<1x1x256xf32> to vector<1x256xf32>
    %cst_67 = arith.constant dense<0.000000e+00> : vector<16xf32>
    %195 = vector.multi_reduction <add>, %190, %cst_67 [1] : vector<16x256xf32> to vector<16xf32>
    %196 = vector.shape_cast %195 : vector<16xf32> to vector<16x1xf32>
    %cst_68 = arith.constant 2.560000e+02 : f32
    %197 = vector.broadcast %cst_68 : f32 to vector<16x1xf32>
    %198 = arith.divf %196, %197 : vector<16x1xf32>
    %199 = vector.broadcast %198 : vector<16x1xf32> to vector<16x256xf32>
    %200 = arith.subf %190, %199 : vector<16x256xf32>
    %201 = arith.mulf %200, %200 : vector<16x256xf32>
    %cst_69 = arith.constant dense<0.000000e+00> : vector<16xf32>
    %202 = vector.multi_reduction <add>, %201, %cst_69 [1] : vector<16x256xf32> to vector<16xf32>
    %203 = vector.shape_cast %202 : vector<16xf32> to vector<16x1xf32>
    %cst_70 = arith.constant 2.560000e+02 : f32
    %204 = vector.broadcast %cst_70 : f32 to vector<16x1xf32>
    %205 = arith.divf %203, %204 : vector<16x1xf32>
    %206 = vector.broadcast %198 : vector<16x1xf32> to vector<16x256xf32>
    %207 = arith.subf %190, %206 : vector<16x256xf32>
    %cst_71 = arith.constant 9.99999974E-6 : f32
    %208 = vector.broadcast %cst_71 : f32 to vector<16x1xf32>
    %209 = arith.addf %205, %208 : vector<16x1xf32>
    %210 = math.rsqrt %209 : vector<16x1xf32>
    %211 = vector.broadcast %210 : vector<16x1xf32> to vector<16x256xf32>
    %212 = arith.mulf %207, %211 : vector<16x256xf32>
    %213 = vector.broadcast %192 : vector<1x256xf32> to vector<16x256xf32>
    %214 = arith.mulf %212, %213 : vector<16x256xf32>
    %215 = vector.broadcast %194 : vector<1x256xf32> to vector<16x256xf32>
    %216 = arith.addf %214, %215 : vector<16x256xf32>
    %217 = arith.addf %3, %216 : vector<16x256xf32>
    %c3_i32 = arith.constant 3 : i32
    %218 = arith.cmpi slt, %arg0, %c3_i32 : i32
    %219 = arith.extui %218 : i1 to i32
    %c0_i32_72 = arith.constant 0 : i32
    %220 = arith.cmpi ne, %219, %c0_i32_72 : i32
    scf.if %220 {
      %cst_75 = arith.constant 0.000000e+00 : f32
      %224 = vector.broadcast %cst_75 : f32 to vector<16x256xf32>
      %225 = arith.maximumf %217, %224 : vector<16x256xf32>
      %c0_76 = arith.constant 0 : index
      %c0_77 = arith.constant 0 : index
      %226 = vector.load %arg27[%c0_76, %c0_77] : memref<16x256xf32, #tpu.memory_space<vmem>>, vector<16x256xf32>
      tpu.vector_store %arg27[%c0_76, %c0_77], %225 {strides = array<i32>} : memref<16x256xf32, #tpu.memory_space<vmem>>, vector<16x256xf32>,
    } else {
    }
    %c3_i32_73 = arith.constant 3 : i32
    %221 = arith.cmpi eq, %arg0, %c3_i32_73 : i32
    %222 = arith.extui %221 : i1 to i32
    %c0_i32_74 = arith.constant 0 : i32
    %223 = arith.cmpi ne, %222, %c0_i32_74 : i32
    scf.if %223 {
      %c0_75 = arith.constant 0 : index
      %c0_76 = arith.constant 0 : index
      %224 = vector.load %arg20[%c0_75, %c0_76] : memref<256x256xbf16, #tpu.memory_space<vmem>>, vector<256x256xbf16>
      %c0_77 = arith.constant 0 : index
      %c0_78 = arith.constant 0 : index
      %225 = vector.load %arg21[%c0_77, %c0_78] : memref<1x256xf32, #tpu.memory_space<vmem>>, vector<1x256xf32>
      %c0_79 = arith.constant 0 : index
      %c0_80 = arith.constant 0 : index
      %226 = vector.load %arg22[%c0_79, %c0_80] : memref<1x256xf32, #tpu.memory_space<vmem>>, vector<1x256xf32>
      %c0_81 = arith.constant 0 : index
      %c0_82 = arith.constant 0 : index
      %227 = vector.load %arg23[%c0_81, %c0_82] : memref<1x256xf32, #tpu.memory_space<vmem>>, vector<1x256xf32>
      %228 = arith.truncf %217 : vector<16x256xf32> to vector<16x256xbf16>
      %cst_83 = arith.constant dense<0.000000e+00> : vector<16x256xf32>
      %229 = tpu.matmul %228, %224, %cst_83 {dimension_numbers = #tpu.dot_dimension_numbers<[1], [0], [0], [1], [0, 0, 1, 1], [], []>} : vector<16x256xbf16>, vector<256x256xbf16>, vector<16x256xf32> -> vector<16x256xf32>
      %230 = vector.broadcast %225 : vector<1x256xf32> to vector<16x256xf32>
      %231 = arith.addf %229, %230 : vector<16x256xf32>
      %cst_84 = arith.constant 0.000000e+00 : f32
      %232 = vector.broadcast %cst_84 : f32 to vector<16x256xf32>
      %233 = arith.maximumf %231, %232 : vector<16x256xf32>
      %cst_85 = arith.constant dense<0.000000e+00> : vector<16xf32>
      %234 = vector.multi_reduction <add>, %233, %cst_85 [1] : vector<16x256xf32> to vector<16xf32>
      %235 = vector.shape_cast %234 : vector<16xf32> to vector<16x1xf32>
      %cst_86 = arith.constant 2.560000e+02 : f32
      %236 = vector.broadcast %cst_86 : f32 to vector<16x1xf32>
      %237 = arith.divf %235, %236 : vector<16x1xf32>
      %238 = vector.broadcast %237 : vector<16x1xf32> to vector<16x256xf32>
      %239 = arith.subf %233, %238 : vector<16x256xf32>
      %240 = arith.mulf %239, %239 : vector<16x256xf32>
      %cst_87 = arith.constant dense<0.000000e+00> : vector<16xf32>
      %241 = vector.multi_reduction <add>, %240, %cst_87 [1] : vector<16x256xf32> to vector<16xf32>
      %242 = vector.shape_cast %241 : vector<16xf32> to vector<16x1xf32>
      %cst_88 = arith.constant 2.560000e+02 : f32
      %243 = vector.broadcast %cst_88 : f32 to vector<16x1xf32>
      %244 = arith.divf %242, %243 : vector<16x1xf32>
      %245 = vector.broadcast %237 : vector<16x1xf32> to vector<16x256xf32>
      %246 = arith.subf %233, %245 : vector<16x256xf32>
      %cst_89 = arith.constant 9.99999974E-6 : f32
      %247 = vector.broadcast %cst_89 : f32 to vector<16x1xf32>
      %248 = arith.addf %244, %247 : vector<16x1xf32>
      %249 = math.rsqrt %248 : vector<16x1xf32>
      %250 = vector.broadcast %249 : vector<16x1xf32> to vector<16x256xf32>
      %251 = arith.mulf %246, %250 : vector<16x256xf32>
      %252 = vector.broadcast %226 : vector<1x256xf32> to vector<16x256xf32>
      %253 = arith.mulf %251, %252 : vector<16x256xf32>
      %254 = vector.broadcast %227 : vector<1x256xf32> to vector<16x256xf32>
      %255 = arith.addf %253, %254 : vector<16x256xf32>
      %256 = arith.truncf %255 : vector<16x256xf32> to vector<16x256xbf16>
      %c0_90 = arith.constant 0 : index
      %c0_91 = arith.constant 0 : index
      %257 = vector.load %arg24[%c0_90, %c0_91] : memref<256x128xbf16, #tpu.memory_space<vmem>>, vector<256x128xbf16>
      %cst_92 = arith.constant dense<0.000000e+00> : vector<16x128xf32>
      %258 = tpu.matmul %256, %257, %cst_92 {dimension_numbers = #tpu.dot_dimension_numbers<[1], [0], [0], [1], [0, 0, 1, 1], [], []>} : vector<16x256xbf16>, vector<256x128xbf16>, vector<16x128xf32> -> vector<16x128xf32>
      %c0_93 = arith.constant 0 : index
      %c0_94 = arith.constant 0 : index
      %259 = vector.load %arg25[%c0_93, %c0_94] : memref<1x128xf32, #tpu.memory_space<vmem>>, vector<1x128xf32>
      %260 = vector.broadcast %259 : vector<1x128xf32> to vector<16x128xf32>
      %261 = arith.addf %258, %260 : vector<16x128xf32>
      %c0_95 = arith.constant 0 : index
      %c0_96 = arith.constant 0 : index
      %262 = vector.load %arg26[%c0_95, %c0_96] : memref<16x128xf32, #tpu.memory_space<vmem>>, vector<16x128xf32>
      tpu.vector_store %arg26[%c0_95, %c0_96], %261 {strides = array<i32>} : memref<16x128xf32, #tpu.memory_space<vmem>>, vector<16x128xf32>,
    } else {
    }
    return
  }
  func.func @transform_0(%arg0: i32, %arg1: memref<64xi32, #tpu.memory_space<smem>>) -> (i32, i32) {
    %c0_i32 = arith.constant 0 : i32
    %c0_i32_0 = arith.constant 0 : i32
    %c0_i32_1 = arith.constant 0 : i32
    return %c0_i32, %c0_i32_0 : i32, i32
  }
  func.func @transform_1(%arg0: i32, %arg1: memref<64xi32, #tpu.memory_space<smem>>) -> (i32, i32) {
    %c0_i32 = arith.constant 0 : i32
    %c0_i32_0 = arith.constant 0 : i32
    %c0_i32_1 = arith.constant 0 : i32
    return %c0_i32, %c0_i32_0 : i32, i32
  }
  func.func @transform_2(%arg0: i32, %arg1: memref<64xi32, #tpu.memory_space<smem>>) -> (i32, i32) {
    %c0_i32 = arith.constant 0 : i32
    %c0_i32_0 = arith.constant 0 : i32
    %c0_i32_1 = arith.constant 0 : i32
    return %c0_i32, %c0_i32_0 : i32, i32
  }
  func.func @transform_3(%arg0: i32, %arg1: memref<64xi32, #tpu.memory_space<smem>>) -> (i32, i32) {
    %c0_i32 = arith.constant 0 : i32
    %c0_i32_0 = arith.constant 0 : i32
    %c0_i32_1 = arith.constant 0 : i32
    return %c0_i32, %c0_i32_0 : i32, i32
  }
  func.func @transform_4(%arg0: i32, %arg1: memref<64xi32, #tpu.memory_space<smem>>) -> (i32, i32) {
    %c0_i32 = arith.constant 0 : i32
    %c0_i32_0 = arith.constant 0 : i32
    %c0_i32_1 = arith.constant 0 : i32
    return %c0_i32, %c0_i32_0 : i32, i32
  }
  func.func @transform_5(%arg0: i32, %arg1: memref<64xi32, #tpu.memory_space<smem>>) -> (i32, i32) {
    %c0_i32 = arith.constant 0 : i32
    %c0_i32_0 = arith.constant 0 : i32
    %c0_i32_1 = arith.constant 0 : i32
    return %c0_i32, %c0_i32_0 : i32, i32
  }
  func.func @transform_6(%arg0: i32, %arg1: memref<64xi32, #tpu.memory_space<smem>>) -> (i32, i32) {
    %c0_i32 = arith.constant 0 : i32
    %c0_i32_0 = arith.constant 0 : i32
    %c0_i32_1 = arith.constant 0 : i32
    return %c0_i32, %c0_i32_0 : i32, i32
  }
  func.func @transform_7(%arg0: i32, %arg1: memref<64xi32, #tpu.memory_space<smem>>) -> (i32, i32) {
    %c0_i32 = arith.constant 0 : i32
    %c0_i32_0 = arith.constant 0 : i32
    %c0_i32_1 = arith.constant 0 : i32
    return %c0_i32, %c0_i32_0 : i32, i32
  }
  func.func @transform_8(%arg0: i32, %arg1: memref<64xi32, #tpu.memory_space<smem>>) -> (i32, i32) {
    %c0_i32 = arith.constant 0 : i32
    %c0_i32_0 = arith.constant 0 : i32
    %c0_i32_1 = arith.constant 0 : i32
    return %c0_i32, %c0_i32_0 : i32, i32
  }
  func.func @transform_9(%arg0: i32, %arg1: memref<64xi32, #tpu.memory_space<smem>>) -> (i32, i32) {
    %c0_i32 = arith.constant 0 : i32
    %c0_i32_0 = arith.constant 0 : i32
    %c0_i32_1 = arith.constant 0 : i32
    return %c0_i32, %c0_i32_0 : i32, i32
  }
  func.func @transform_10(%arg0: i32, %arg1: memref<64xi32, #tpu.memory_space<smem>>) -> (i32, i32) {
    %c0_i32 = arith.constant 0 : i32
    %c0_i32_0 = arith.constant 0 : i32
    %c0_i32_1 = arith.constant 0 : i32
    return %c0_i32, %c0_i32_0 : i32, i32
  }
  func.func @transform_11(%arg0: i32, %arg1: memref<64xi32, #tpu.memory_space<smem>>) -> (i32, i32, i32) {
    %c0_i32 = arith.constant 0 : i32
    %c0_i32_0 = arith.constant 0 : i32
    %c0_i32_1 = arith.constant 0 : i32
    return %arg0, %c0_i32, %c0_i32_0 : i32, i32, i32
  }
  func.func @transform_12(%arg0: i32, %arg1: memref<64xi32, #tpu.memory_space<smem>>) -> (i32, i32, i32) {
    %c0_i32 = arith.constant 0 : i32
    %c0_i32_0 = arith.constant 0 : i32
    %c0_i32_1 = arith.constant 0 : i32
    return %arg0, %c0_i32, %c0_i32_0 : i32, i32, i32
  }
  func.func @transform_13(%arg0: i32, %arg1: memref<64xi32, #tpu.memory_space<smem>>) -> (i32, i32, i32) {
    %c0_i32 = arith.constant 0 : i32
    %c0_i32_0 = arith.constant 0 : i32
    %c0_i32_1 = arith.constant 0 : i32
    return %arg0, %c0_i32, %c0_i32_0 : i32, i32, i32
  }
  func.func @transform_14(%arg0: i32, %arg1: memref<64xi32, #tpu.memory_space<smem>>) -> (i32, i32, i32) {
    %c0_i32 = arith.constant 0 : i32
    %c0_i32_0 = arith.constant 0 : i32
    %c0_i32_1 = arith.constant 0 : i32
    return %arg0, %c0_i32, %c0_i32_0 : i32, i32, i32
  }
  func.func @transform_15(%arg0: i32, %arg1: memref<64xi32, #tpu.memory_space<smem>>) -> (i32, i32, i32) {
    %c0_i32 = arith.constant 0 : i32
    %c0_i32_0 = arith.constant 0 : i32
    %c0_i32_1 = arith.constant 0 : i32
    return %arg0, %c0_i32, %c0_i32_0 : i32, i32, i32
  }
  func.func @transform_16(%arg0: i32, %arg1: memref<64xi32, #tpu.memory_space<smem>>) -> (i32, i32, i32) {
    %c0_i32 = arith.constant 0 : i32
    %c0_i32_0 = arith.constant 0 : i32
    %c0_i32_1 = arith.constant 0 : i32
    return %arg0, %c0_i32, %c0_i32_0 : i32, i32, i32
  }
  func.func @transform_17(%arg0: i32, %arg1: memref<64xi32, #tpu.memory_space<smem>>) -> (i32, i32, i32) {
    %c0_i32 = arith.constant 0 : i32
    %c0_i32_0 = arith.constant 0 : i32
    %c0_i32_1 = arith.constant 0 : i32
    return %arg0, %c0_i32, %c0_i32_0 : i32, i32, i32
  }
  func.func @transform_18(%arg0: i32, %arg1: memref<64xi32, #tpu.memory_space<smem>>) -> (i32, i32) {
    %c0_i32 = arith.constant 0 : i32
    %c0_i32_0 = arith.constant 0 : i32
    %c0_i32_1 = arith.constant 0 : i32
    return %c0_i32, %c0_i32_0 : i32, i32
  }
  func.func @transform_19(%arg0: i32, %arg1: memref<64xi32, #tpu.memory_space<smem>>) -> (i32, i32) {
    %c0_i32 = arith.constant 0 : i32
    %c0_i32_0 = arith.constant 0 : i32
    %c0_i32_1 = arith.constant 0 : i32
    return %c0_i32, %c0_i32_0 : i32, i32
  }
  func.func @transform_20(%arg0: i32, %arg1: memref<64xi32, #tpu.memory_space<smem>>) -> (i32, i32) {
    %c0_i32 = arith.constant 0 : i32
    %c0_i32_0 = arith.constant 0 : i32
    %c0_i32_1 = arith.constant 0 : i32
    return %c0_i32, %c0_i32_0 : i32, i32
  }
  func.func @transform_21(%arg0: i32, %arg1: memref<64xi32, #tpu.memory_space<smem>>) -> (i32, i32) {
    %c0_i32 = arith.constant 0 : i32
    %c0_i32_0 = arith.constant 0 : i32
    %c0_i32_1 = arith.constant 0 : i32
    return %c0_i32, %c0_i32_0 : i32, i32
  }
  func.func @transform_22(%arg0: i32, %arg1: memref<64xi32, #tpu.memory_space<smem>>) -> (i32, i32) {
    %c0_i32 = arith.constant 0 : i32
    %c0_i32_0 = arith.constant 0 : i32
    %c0_i32_1 = arith.constant 0 : i32
    return %c0_i32, %c0_i32_0 : i32, i32
  }
  func.func @transform_23(%arg0: i32, %arg1: memref<64xi32, #tpu.memory_space<smem>>) -> (i32, i32) {
    %c0_i32 = arith.constant 0 : i32
    %c0_i32_0 = arith.constant 0 : i32
    %c0_i32_1 = arith.constant 0 : i32
    return %c0_i32, %c0_i32_0 : i32, i32
  }
  func.func @transform_24(%arg0: i32, %arg1: memref<64xi32, #tpu.memory_space<smem>>) -> (i32, i32) {
    %c0_i32 = arith.constant 0 : i32
    %c0_i32_0 = arith.constant 0 : i32
    %c0_i32_1 = arith.constant 0 : i32
    return %c0_i32, %c0_i32_0 : i32, i32
  }
}

</mosaic_0001>

<bundles_post_ra>
// kernel: rna_gnn_forward.1
= control target key start
LH: loop header
LB: loop body
LE: loop exit
PB: predicated region body
PF: predicated region fallthrough
CT: control target
= control target key end

     0   :  { %s13453_s0 = inlined_call_operand.vmem [shape: s32[64], index: 0, kind: input, shape index: {}]   ;;  %s13454_s1 = inlined_call_operand.vmem [shape: bf16[16,128], index: 1, kind: input, shape index: {}]   ;;  %s13455_s2 = inlined_call_operand.vmem [shape: bf16[64,128], index: 2, kind: input, shape index: {}]   ;;  %s13456_s3 = inlined_call_operand.vmem [shape: f32[16,16], index: 3, kind: input, shape index: {}]   ;;  %s13457_s4 = inlined_call_operand.hbm [shape: bf16[128,256], index: 4, kind: input, shape index: {}]   ;;  %s13458_s5 = inlined_call_operand.hbm [shape: f32[1,256], index: 5, kind: input, shape index: {}]   ;;  %s13459_s6 = inlined_call_operand.hbm [shape: f32[1,256], index: 6, kind: input, shape index: {}]   ;;  %s13460_s7 = inlined_call_operand.hbm [shape: f32[1,256], index: 7, kind: input, shape index: {}]   ;;  %s13461_s8 = inlined_call_operand.hbm [shape: bf16[128,256], index: 8, kind: input, shape index: {}]   ;;  %s13462_s9 = inlined_call_operand.hbm [shape: f32[1,256], index: 9, kind: input, shape index: {}]   ;;  %s13463_s10 = inlined_call_operand.hbm [shape: f32[1,256], index: 10, kind: input, shape index: {}]   ;;  %s13464_s11 = inlined_call_operand.hbm [shape: f32[1,256], index: 11, kind: input, shape index: {}]   ;;  %s13465_s12 = inlined_call_operand.hbm [shape: bf16[4,256,1024], index: 12, kind: input, shape index: {}]   ;;  %s13466_s13 = inlined_call_operand.hbm [shape: f32[4,1,1024], index: 13, kind: input, shape index: {}]   ;;  %s13467_s14 = inlined_call_operand.hbm [shape: bf16[4,256,256], index: 14, kind: input, shape index: {}]   ;;  %s13468_s15 = inlined_call_operand.hbm [shape: bf16[4,256,256], index: 15, kind: input, shape index: {}]   ;;  %s13469_s16 = inlined_call_operand.hbm [shape: f32[4,1,256], index: 16, kind: input, shape index: {}]   ;;  %s13470_s17 = inlined_call_operand.hbm [shape: f32[4,1,256], index: 17, kind: input, shape index: {}]   ;;  %s13471_s18 = inlined_call_operand.hbm [shape: f32[4,1,256], index: 18, kind: input, shape index: {}]   ;;  %s13472_s19 = inlined_call_operand.hbm [shape: bf16[256,256], index: 19, kind: input, shape index: {}]   ;;  %s13473_s20 = inlined_call_operand.hbm [shape: f32[1,256], index: 20, kind: input, shape index: {}]   ;;  %s13474_s21 = inlined_call_operand.hbm [shape: f32[1,256], index: 21, kind: input, shape index: {}]   ;;  %s13475_s22 = inlined_call_operand.hbm [shape: f32[1,256], index: 22, kind: input, shape index: {}]   ;;  %s13476_s23 = inlined_call_operand.hbm [shape: bf16[256,128], index: 23, kind: input, shape index: {}]   ;;  %s13477_s24 = inlined_call_operand.hbm [shape: f32[1,128], index: 24, kind: input, shape index: {}]   ;;  %s13478_s25 = inlined_call_operand.vmem [shape: f32[16,128], index: 25, kind: output, shape index: {}]  }
   0x1   :  { %13718 = sst [smem:[#allocation167_spill]] %s13453_s0 }
   0x2   :  { %13719 = sst [smem:[#allocation168_spill]] %s13454_s1 }
   0x3   :  { %13720 = sst [smem:[#allocation169_spill]] %s13455_s2 }
   0x4   :  { %13721 = sst [smem:[#allocation170_spill]] %s13456_s3 }
   0x5   :  { %13722 = sst [smem:[#allocation171_spill]] %s13457_s4 }
   0x6   :  { %13723 = sst [smem:[#allocation172_spill]] %s13458_s5 }
   0x7   :  { %13724 = sst [smem:[#allocation173_spill]] %s13459_s6  ;;  %s13738_s6 = sld [smem:[#allocation167_spill]] }
   0x8   :  { %13725 = sst [smem:[#allocation174_spill]] %s13460_s7 }
   0x9   :  { %13726 = sst [smem:[#allocation175_spill]] %s13461_s8 }
   0xa   :  { %13727 = sst [smem:[#allocation176_spill]] %s13462_s9 }
   0xb   :  { %13728 = sst [smem:[#allocation177_spill]] %s13465_s12 }
   0xc   :  { %13729 = sst [smem:[#allocation178_spill]] %s13466_s13 }
   0xd   :  { %13730 = sst [smem:[#allocation179_spill]] %s13467_s14 }
   0xe   :  { %13731 = sst [smem:[#allocation180_spill]] %s13468_s15 }
   0xf   :  { %13732 = sst [smem:[#allocation181_spill]] %s13469_s16 }
  0x10   :  { %13733 = sst [smem:[#allocation182_spill]] %s13471_s18  ;;  %s30_s18 = sshll.u32 %s13738_s6, 4  ;;  %s31_s18 = int_to_ptr.vmem [resolvable:$true] %s30_s18 }
  0x11   :  { %13734 = sst [smem:[#allocation183_spill]] %s13474_s21  ;;  %s9417_s30 = scalar_lea.vmem %s31_s18, 16 }
  0x12   :  { %13735 = sst [smem:[#allocation184_spill]] %s13475_s22  ;;  %p9418_p0 = scmp.ne.s32.totalorder %s31_s18, %s9417_s30 }
  0x13   :  { %13736 = sst [smem:[#allocation185_spill]] %s13477_s24  ;;  %p9422_p1 = scmp.lt.s32.totalorder %s31_s18, %s31_s18 }
  0x14   :  { %13737 = sst [smem:[#allocation186_spill]] %s13478_s25  ;;  %p9423_p2 = scmp.lt.s32.totalorder %s9417_s30, %s9417_s30 }
  0x16   :  { %p9424_p3 = por %p9423_p2, %p9422_p1 }
  0x18   :  { %p9425_p4 = pnand %p9424_p3, %p9418_p0 }
  0x1a   :  { %9428 = shalt.err (!%p9425_p4)  }
  0x1b   :  { %s10117_s7 = smov [#allocation6]  }
  0x1c   :  { %33 = dma.vmem_to_smem %s31_s18, 16, %s10117_s7, [#allocation5] }
  0x1d   :  { %10051 = dma.done.wait [#allocation5], 16 }
  0x1e   :  { %10052 = vsyncadd [#allocation5], 4294967280 }
  0x1f   :  { %35 = sfence }
  0x20   :  { %36 = vsyncpa [#allocation8], 0 }
  0x21   :  { %37 = vsyncpa [#allocation10], 0 }
  0x22   :  { %38 = vsyncpa [#allocation13], 0 }
  0x23   :  { %39 = vsyncpa [#allocation16], 0 }
  0x24   :  { %40 = vsyncpa [#allocation19], 0 }
  0x25   :  { %41 = vsyncpa [#allocation32], 0  ;;  %s10284_s3 = smov 0   ;;  %s10286_s26 = smov 0  }
  0x26   :  { %s10288_s1 = smov 0   ;;  %s10290_s8 = smov 0  }
  0x27 LB: > { %13739 = sst [smem:[#allocation46_spill]] %s10103_s26  ;;  %s10118_s18 = smov [#allocation7]   ;;  %s10111_s8 = sphi %s10290_s8, %s14119_s8   ;;  %s10107_s1 = sphi %s10288_s1, %s14122_s1   ;;  %s10103_s26 = sphi %s10286_s26, %s14121_s26   ;;  %s10099_s3 = sphi %s10284_s3, %s14120_s3  }
  0x28   : > { %13740 = sst [smem:[#allocation47_spill]] %s10107_s1  ;;  %s633_s27 = sshll.u32 %s10118_s18, 4  ;;  %s634_s27 = int_to_ptr.vmem [resolvable:$true] %s633_s27 }
  0x29   : > { %s10305_s4 = sadd.s32 4294967295, %s10111_s8   ;;  %p8455_p5 = scmp.ge.s32.totalorder %s10111_s8, 1 }
  0x2a   : > { %13741 = sst [smem:[#allocation48_spill]] %s10305_s4  ;;  %p13490_p6 = scmp.eq.s32.totalorder %s10305_s4, 0 }
  0x2b   : > { %p612_p7 = scmp.lt.s32.totalorder %s10111_s8, 5  ;;  %s10324_s5 = sadd.s32 1, %s10111_s8  }
  0x2c   : > { %13745 = sst [smem:[#allocation50_spill]] %s10324_s5  ;;  %s13746_s2 = sld [smem:[#allocation171_spill]] }
  0x2d   : > { %p10311_p9 = pnand %p8455_p5, %p612_p7 }
  0x2f   : > { %s13742_s28 = scalar_select %p10311_p9, 1, 0 }
  0x30   : > { %p8976_p10 = pneg %p10311_p9 }
  0x31   : > { %13743 = sst [smem:[#allocation49_spill]] %s13742_s28 }
  0x32   : > { %p10319_p11 = pnand %p8976_p10, %p13490_p6  ;;  %s9429_s6 = scalar_lea.hbm %s13746_s2, 2048 }
  0x33   : > { %p9430_p12 = scmp.ne.s32.totalorder %s13746_s2, %s9429_s6  ;;  %p9436_p2 = scmp.lt.u32.totalorder %s9429_s6, %s13746_s2 }
  0x34   : > { %s13744_s9 = scalar_select %p10319_p11, 1, 0 }
  0x35   : > { %p10334_p13 = pneg %p10319_p11 }
  0x37   : > { %s13747_s18 = scalar_select %p10334_p13, 1, 0 }
  0x38   : > { %p9432_p0 = pnand %p10334_p13, %p9430_p12 }
  0x3a   : > { %p9433_p1 = pneg %p9432_p0 }
  0x3c   : > { %p9438_p3 = pnand %p9436_p2, %p9433_p1 }
  0x3e   : > { %9441 = shalt.err (!%p9438_p3)
}
  0x3f   : > { %s9442_s0 = scalar_lea.vmem %s634_s27, 2048  ;;  %p9450_p10 = scmp.lt.s32.totalorder %s634_s27, %s634_s27 }
  0x40   : > { %p9443_p4 = scmp.ne.s32.totalorder %s634_s27, %s9442_s0  ;;  %p9451_p8 = scmp.lt.s32.totalorder %s9442_s0, %s9442_s0 }
  0x42   : > { %p9445_p5 = pnand %p9443_p4, %p10334_p13  ;;  %p9452_p6 = por %p9451_p8, %p9450_p10 }
  0x44   : > { %p9446_p7 = pneg %p9445_p5 }
  0x46   : > { %p9453_p9 = pnand %p9452_p6, %p9446_p7 }
  0x48   : > { %9456 = shalt.err (!%p9453_p9)
}
  0x49   : > { %s13495_s29 = smov 128   ;;  %s13497_s25 = smov 8  }
  0x4a   : > { %8979 = dma.hbm_to_vmem [thread:$0]  (!%p10319_p11), %s13746_s2, 2048, %s634_s27, [#allocation8], %s13495_s29, %s13495_s29, %s13497_s25  }
  0x4b   : > { %s282_s30 = ssub.s32 %s10111_s8, %s10324_s5  ;;  %s285_s7 = sadd.s32 1, %s10107_s1 }
  0x4c   : > { %p283_p6 = scmp.eq.s32.totalorder %s282_s30, 0  ;;  %p292_p8 = scmp.ne.s32.totalorder %s10107_s1, %s10103_s26 }
  0x4d   : > { %p293_p9 = scmp.eq.s32.totalorder %s10111_s8, 0  ;;  %p298_p12 = scmp.ne.s32.totalorder %s10103_s26, %s10099_s3 }
  0x4e   : > { %s10362_s0 = scalar_select %p283_p6, %s10107_s1, %s285_s7  }
  0x4f   : > { %p294_p0 = por %p293_p9, %p292_p8  ;;  %p13749_p1 = scmp.eq.s32.totalorder %s10305_s4, 0 }
  0x50   : > { %13748 = sst [smem:[#allocation51_spill]] %s10362_s0  ;;  %p9055_p3 = scmp.lt.s32.totalorder %s10111_s8, 4 }
  0x51   : > { %p10366_p2 = por %p13749_p1, %p298_p12  ;;  %s796_s22 = sand.u32 1, %s10111_s8  }
  0x52   : > { %s10373_s21 = sand.u32 1, %s10107_s1   ;;  %s8811_s28 = sshll.u32 %s10111_s8, 14 }
  0x53   : > { %s13750_s24 = scalar_select %p10366_p2, 1, 0 }
  0x54   : > { %s8471_s27 = sshll.u32 %s10373_s21, 10  ;;  %s13752_s12 = sld [smem:[#allocation177_spill]] }
  0x55   : > { %13751 = sst [smem:[#allocation52_spill]] %s13750_s24  ;;  %s800_s3 = scalar_lea.vmem [#allocation20], %s8471_s27 }
  0x56   : > { %s807_s7 = sshll.u32 %s800_s3, 4  ;;  %p10382_p4 = pnand %p9055_p3, %p294_p0  ;;  %s10386_s7 = int_to_ptr.vmem [resolvable:$true] %s807_s7 }
  0x57   : > { %s10388_s2 = scalar_lea.sflag [#allocation8], %s796_s22 }
  0x58   : > { %s13753_s25 = scalar_select %p10382_p4, 1, 0 }
  0x59   : > { %p10394_p7 = pneg %p10382_p4 }
  0x5a   : > { %s10380_s29 = scalar_lea.hbm %s13752_s12, %s8811_s28  ;;  %s9462_s30 = scalar_lea.hbm %s13752_s12, 65536 }
  0x5b   : > { %s9457_s0 = scalar_lea.hbm %s10380_s29, 16384  ;;  %p9463_p8 = scmp.lt.u32.totalorder %s10380_s29, %s13752_s12 }
  0x5c   : > { %p9458_p5 = scmp.ne.s32.totalorder %s10380_s29, %s9457_s0  ;;  %p9464_p9 = scmp.lt.u32.totalorder %s9462_s30, %s9457_s0 }
  0x5d   : > { %s13754_s28 = scalar_select %p10394_p7, 1, 0 }
  0x5e   : > { %p9460_p10 = pnand %p10394_p7, %p9458_p5  ;;  %p9465_p12 = por %p9464_p9, %p9463_p8 }
  0x5f   : > { %p9466_p0 = scmp.lt.u32.totalorder %s9457_s0, %s10380_s29 }
  0x60   : > { %p9461_p6 = pneg %p9460_p10 }
  0x61   : > { %p9467_p1 = por %p9466_p0, %p9465_p12 }
  0x63   : > { %p9468_p3 = pnand %p9467_p1, %p9461_p6 }
  0x65   : > { %9471 = shalt.err (!%p9468_p3)
}
  0x66   : > { %s9472_s22 = scalar_lea.vmem %s10386_s7, 16384  ;;  %s10121_s27 = smov [#allocation20]  }
  0x67   : > { %p9473_p5 = scmp.ne.s32.totalorder %s10386_s7, %s9472_s22  ;;  %s9477_s6 = sshll.u32 %s10121_s27, 4  ;;  %s9478_s6 = int_to_ptr.vmem [resolvable:$false] %s9477_s6 }
  0x68   : > { %s9479_s1 = scalar_lea.vmem %s9478_s6, 32768  ;;  %p9480_p11 = scmp.lt.s32.totalorder %s10386_s7, %s9478_s6 }
  0x69   : > { %p9475_p10 = pnand %p9473_p5, %p10394_p7  ;;  %p9481_p13 = scmp.lt.s32.totalorder %s9479_s1, %s9472_s22 }
  0x6b   : > { %p9476_p2 = pneg %p9475_p10  ;;  %p9482_p8 = por %p9481_p13, %p9480_p11 }
  0x6d   : > { %p9483_p9 = pnand %p9482_p8, %p9476_p2 }
  0x6f   : > { %9486 = shalt.err (!%p9483_p9)
}
  0x70   : > { %s10122_s0 = smov 512   ;;  %s10123_s30 = smov 32  }
  0x71   : > { %9022 = dma.hbm_to_vmem [thread:$0]  (!%p10382_p4), %s10380_s29, 16384, %s10386_s7, %s10388_s2, %s10122_s0, %s10122_s0, %s10123_s30  }
  0x72   : > { %s8474_s3 = sshll.u32 %s10373_s21, 3  ;;  %s8812_s27 = sshll.u32 %s10111_s8, 7 }
  0x73   : > { %s13755_s13 = sld [smem:[#allocation178_spill]]  ;;  %s821_s1 = scalar_lea.vmem [#allocation21], %s8474_s3 }
  0x74   : > { %s829_s5 = sshll.u32 %s821_s1, 4  ;;  %s8477_s24 = sshll.u32 %s10373_s21, 8  ;;  %s830_s5 = int_to_ptr.vmem [resolvable:$true] %s829_s5 }
  0x79   : > { %s10423_s22 = scalar_lea.hbm %s13755_s13, %s8812_s27  ;;  %s9492_s0 = scalar_lea.hbm %s13755_s13, 512 }
  0x7a   : > { %s9487_s26 = scalar_lea.hbm %s10423_s22, 128  ;;  %p9493_p6 = scmp.lt.u32.totalorder %s10423_s22, %s13755_s13 }
  0x7b   : > { %p9488_p11 = scmp.ne.s32.totalorder %s10423_s22, %s9487_s26  ;;  %p9494_p12 = scmp.lt.u32.totalorder %s9492_s0, %s9487_s26 }
  0x7c   : > { %p9496_p1 = scmp.lt.u32.totalorder %s9487_s26, %s10423_s22 }
  0x7d   : > { %p9490_p13 = pnand %p9488_p11, %p10394_p7  ;;  %p9495_p0 = por %p9494_p12, %p9493_p6 }
  0x7f   : > { %p9491_p2 = pneg %p9490_p13  ;;  %p9497_p3 = por %p9496_p1, %p9495_p0 }
  0x81   : > { %p9498_p5 = pnand %p9497_p3, %p9491_p2 }
  0x83   : > { %9501 = shalt.err (!%p9498_p5)
}
  0x84   : > { %s9502_s3 = scalar_lea.vmem %s830_s5, 128  ;;  %s10124_s27 = smov [#allocation21]  }
  0x85   : > { %p9503_p10 = scmp.ne.s32.totalorder %s830_s5, %s9502_s3  ;;  %s9507_s6 = sshll.u32 %s10124_s27, 4  ;;  %s9508_s6 = int_to_ptr.vmem [resolvable:$false] %s9507_s6 }
  0x86   : > { %s9509_s1 = scalar_lea.vmem %s9508_s6, 256  ;;  %p9510_p11 = scmp.lt.s32.totalorder %s830_s5, %s9508_s6 }
  0x87   : > { %p9505_p8 = pnand %p9503_p10, %p10394_p7  ;;  %p9511_p13 = scmp.lt.s32.totalorder %s9509_s1, %s9502_s3 }
  0x89   : > { %p9506_p9 = pneg %p9505_p8  ;;  %p9512_p4 = por %p9511_p13, %p9510_p11 }
  0x8b   : > { %p9513_p6 = pnand %p9512_p4, %p9506_p9 }
  0x8d   : > { %9516 = shalt.err (!%p9513_p6)
}
  0x8e   : > { %p13756_p12 = scmp.ne.s32.totalorder %s13753_s25, 0  ;;  %s8813_s26 = sshll.u32 %s10111_s8, 12 }
  0x8f   : > { %s840_s29 = scalar_lea.vmem [#allocation22], %s8477_s24  ;;  %s13757_s14 = sld [smem:[#allocation179_spill]] }
  0x90   : > { %9025 = dma.hbm_to_vmem [thread:$0]  (!%p13756_p12), %s10423_s22, 128, %s830_s5, %s10388_s2  }
  0x91   : > { %s847_s7 = sshll.u32 %s840_s29, 4  ;;  %s10454_s7 = int_to_ptr.vmem [resolvable:$true] %s847_s7 }
  0x95   : > { %s10452_s30 = scalar_lea.hbm %s13757_s14, %s8813_s26  ;;  %s9522_s27 = scalar_lea.hbm %s13757_s14, 16384 }
  0x96   : > { %s9517_s3 = scalar_lea.hbm %s10452_s30, 4096  ;;  %p9523_p1 = scmp.lt.u32.totalorder %s10452_s30, %s13757_s14 }
  0x97   : > { %p9518_p4 = scmp.ne.s32.totalorder %s10452_s30, %s9517_s3  ;;  %p9524_p3 = scmp.lt.u32.totalorder %s9522_s27, %s9517_s3 }
  0x98   : > { %p9526_p10 = scmp.lt.u32.totalorder %s9517_s3, %s10452_s30 }
  0x99   : > { %p9520_p2 = pnand %p9518_p4, %p10394_p7  ;;  %p9525_p5 = por %p9524_p3, %p9523_p1 }
  0x9b   : > { %p9521_p0 = pneg %p9520_p2  ;;  %p9527_p8 = por %p9526_p10, %p9525_p5 }
  0x9d   : > { %p9528_p9 = pnand %p9527_p8, %p9521_p0 }
  0x9f   : > { %9531 = shalt.err (!%p9528_p9)
}
  0xa0   : > { %s9532_s29 = scalar_lea.vmem %s10454_s7, 4096  ;;  %s10125_s0 = smov [#allocation22]  }
  0xa1   : > { %p9533_p11 = scmp.ne.s32.totalorder %s10454_s7, %s9532_s29  ;;  %s9537_s12 = sshll.u32 %s10125_s0, 4  ;;  %s9538_s12 = int_to_ptr.vmem [resolvable:$false] %s9537_s12 }
  0xa2   : > { %s9539_s5 = scalar_lea.vmem %s9538_s12, 8192  ;;  %p9540_p4 = scmp.lt.s32.totalorder %s10454_s7, %s9538_s12 }
  0xa3   : > { %p9535_p13 = pnand %p9533_p11, %p10394_p7  ;;  %p9541_p2 = scmp.lt.s32.totalorder %s9539_s5, %s9532_s29 }
  0xa5   : > { %p9536_p6 = pneg %p9535_p13  ;;  %p9542_p1 = por %p9541_p2, %p9540_p4 }
  0xa7   : > { %p9543_p3 = pnand %p9542_p1, %p9536_p6 }
  0xa9   : > { %9546 = shalt.err (!%p9543_p3)
}
  0xaa   : > { %s13758_s3 = smov 8   ;;  %s13759_s22 = smov 128  }
  0xab   : > { %9028 = dma.hbm_to_vmem [thread:$0]  (!%p13756_p12), %s10452_s30, 4096, %s10454_s7, %s10388_s2, %s13759_s22, %s13759_s22, %s13758_s3  }
  0xac   : > { %s13760_s15 = sld [smem:[#allocation180_spill]]  ;;  %s861_s29 = scalar_lea.vmem [#allocation23], %s8477_s24 }
  0xad   : > { %s868_s0 = sshll.u32 %s861_s29, 4  ;;  %s10126_s12 = smov [#allocation9]   ;;  %s10490_s0 = int_to_ptr.vmem [resolvable:$true] %s868_s0 }
  0xae   : > { %s10492_s5 = sshll.u32 %s10126_s12, 4  ;;  %s648_s5 = int_to_ptr.vmem [resolvable:$true] %s10492_s5 }
  0xb2   : > { %s10486_s1 = scalar_lea.hbm %s13760_s15, %s8813_s26  ;;  %s9552_s30 = scalar_lea.hbm %s13760_s15, 16384 }
  0xb3   : > { %s9547_s13 = scalar_lea.hbm %s10486_s1, 4096  ;;  %p9553_p8 = scmp.lt.u32.totalorder %s10486_s1, %s13760_s15 }
  0xb4   : > { %p9548_p0 = scmp.ne.s32.totalorder %s10486_s1, %s9547_s13  ;;  %p9554_p9 = scmp.lt.u32.totalorder %s9552_s30, %s9547_s13 }
  0xb5   : > { %p9556_p13 = scmp.lt.u32.totalorder %s9547_s13, %s10486_s1 }
  0xb6   : > { %p9550_p5 = pnand %p9548_p0, %p10394_p7  ;;  %p9555_p11 = por %p9554_p9, %p9553_p8 }
  0xb8   : > { %p9551_p10 = pneg %p9550_p5  ;;  %p9557_p6 = por %p9556_p13, %p9555_p11 }
  0xba   : > { %p9558_p4 = pnand %p9557_p6, %p9551_p10 }
  0xbc   : > { %9561 = shalt.err (!%p9558_p4)
}
  0xbd   : > { %s9562_s24 = scalar_lea.vmem %s10490_s0, 4096  ;;  %s10127_s29 = smov [#allocation23]  }
  0xbe   : > { %p9563_p2 = scmp.ne.s32.totalorder %s10490_s0, %s9562_s24  ;;  %s9567_s12 = sshll.u32 %s10127_s29, 4  ;;  %s9568_s12 = int_to_ptr.vmem [resolvable:$false] %s9567_s12 }
  0xbf   : > { %s9569_s7 = scalar_lea.vmem %s9568_s12, 8192  ;;  %p9570_p0 = scmp.lt.s32.totalorder %s10490_s0, %s9568_s12 }
  0xc0   : > { %p9565_p1 = pnand %p9563_p2, %p10394_p7  ;;  %p9571_p5 = scmp.lt.s32.totalorder %s9569_s7, %s9562_s24 }
  0xc2   : > { %p9566_p3 = pneg %p9565_p1  ;;  %p9572_p8 = por %p9571_p5, %p9570_p0 }
  0xc4   : > { %p9573_p9 = pnand %p9572_p8, %p9566_p3 }
  0xc6   : > { %9576 = shalt.err (!%p9573_p9)
}
  0xc7   : > { %9031 = dma.hbm_to_vmem [thread:$0]  (!%p13756_p12), %s10486_s1, 4096, %s10490_s0, %s10388_s2, %s13759_s22, %s13759_s22, %s13758_s3  }
  0xc8   : > { %s13761_s30 = sld [smem:[#allocation172_spill]]  ;;  %p13762_p11 = scmp.ne.s32.totalorder %s13747_s18, 0 }
  0xce   : > { %s9577_s27 = scalar_lea.hbm %s13761_s30, 32 }
  0xcf   : > { %p9578_p10 = scmp.ne.s32.totalorder %s13761_s30, %s9577_s27  ;;  %p9584_p4 = scmp.lt.u32.totalorder %s9577_s27, %s13761_s30 }
  0xd1   : > { %p9580_p13 = pnand %p9578_p10, %p13762_p11 }
  0xd3   : > { %p9581_p6 = pneg %p9580_p13 }
  0xd5   : > { %p9586_p2 = pnand %p9584_p4, %p9581_p6 }
  0xd7   : > { %9589 = shalt.err (!%p9586_p2)
}
  0xd8   : > { %s9590_s7 = scalar_lea.vmem %s648_s5, 32  ;;  %p9598_p5 = scmp.lt.s32.totalorder %s648_s5, %s648_s5 }
  0xd9   : > { %p9591_p1 = scmp.ne.s32.totalorder %s648_s5, %s9590_s7  ;;  %p9599_p8 = scmp.lt.s32.totalorder %s9590_s7, %s9590_s7 }
  0xdb   : > { %p9593_p3 = pnand %p9591_p1, %p13762_p11  ;;  %p9600_p9 = por %p9599_p8, %p9598_p5 }
  0xdd   : > { %p9594_p0 = pneg %p9593_p3 }
  0xdf   : > { %p9601_p12 = pnand %p9600_p9, %p9594_p0 }
  0xe1   : > { %9604 = shalt.err (!%p9601_p12)
}
  0xe2   : > { %p13763_p10 = scmp.ne.s32.totalorder %s13744_s9, 0  ;;  %s10128_s13 = smov [#allocation12]  }
  0xe3   : > { %s669_s26 = sshll.u32 %s10128_s13, 4  ;;  %s10129_s27 = smov [#allocation15]   ;;  %s670_s26 = int_to_ptr.vmem [resolvable:$true] %s669_s26 }
  0xe4   : > { %8982 = dma.hbm_to_vmem [thread:$0]  (!%p13763_p10), %s13761_s30, 32, %s648_s5, [#allocation10]  }
  0xe5   : > { %s693_s6 = sshll.u32 %s10129_s27, 4  ;;  %s13764_s12 = sld [smem:[#allocation174_spill]]  ;;  %s694_s6 = int_to_ptr.vmem [resolvable:$true] %s693_s6 }
  0xeb   : > { %s9605_s14 = scalar_lea.hbm %s13764_s12, 32 }
  0xec   : > { %p9606_p12 = scmp.ne.s32.totalorder %s13764_s12, %s9605_s14  ;;  %p9612_p4 = scmp.lt.u32.totalorder %s9605_s14, %s13764_s12 }
  0xee   : > { %p9608_p13 = pnand %p9606_p12, %p13762_p11 }
  0xf0   : > { %p9609_p6 = pneg %p9608_p13 }
  0xf2   : > { %p9614_p2 = pnand %p9612_p4, %p9609_p6 }
  0xf4   : > { %9617 = shalt.err (!%p9614_p2)
}
  0xf5   : > { %s9618_s5 = scalar_lea.vmem %s670_s26, 32  ;;  %p9626_p5 = scmp.lt.s32.totalorder %s670_s26, %s670_s26 }
  0xf6   : > { %p9619_p1 = scmp.ne.s32.totalorder %s670_s26, %s9618_s5  ;;  %p9627_p8 = scmp.lt.s32.totalorder %s9618_s5, %s9618_s5 }
  0xf8   : > { %p9621_p3 = pnand %p9619_p1, %p13762_p11  ;;  %p9628_p9 = por %p9627_p8, %p9626_p5 }
  0xfa   : > { %p9622_p0 = pneg %p9621_p3 }
  0xfc   : > { %p9629_p7 = pnand %p9628_p9, %p9622_p0 }
  0xfe   : > { %9632 = shalt.err (!%p9629_p7)
}
  0xff   : > { %8988 = dma.hbm_to_vmem [thread:$0]  (!%p13763_p10), %s13764_s12, 32, %s670_s26, [#allocation13]  }
 0x100   : > { %s10557_s14 = sshll.u32 %s10373_s21, 1  ;;  %s13765_s27 = sld [smem:[#allocation176_spill]] }
 0x106   : > { %s9633_s24 = scalar_lea.hbm %s13765_s27, 32 }
 0x107   : > { %p9634_p12 = scmp.ne.s32.totalorder %s13765_s27, %s9633_s24  ;;  %p9640_p6 = scmp.lt.u32.totalorder %s9633_s24, %s13765_s27 }
 0x109   : > { %p9636_p7 = pnand %p9634_p12, %p13762_p11 }
 0x10b   : > { %p9637_p13 = pneg %p9636_p7 }
 0x10d   : > { %p9642_p4 = pnand %p9640_p6, %p9637_p13 }
 0x10f   : > { %9645 = shalt.err (!%p9642_p4)
}
 0x110   : > { %s9646_s26 = scalar_lea.vmem %s694_s6, 32  ;;  %p9654_p0 = scmp.lt.s32.totalorder %s694_s6, %s694_s6 }
 0x111   : > { %p9647_p2 = scmp.ne.s32.totalorder %s694_s6, %s9646_s26  ;;  %p9655_p5 = scmp.lt.s32.totalorder %s9646_s26, %s9646_s26 }
 0x113   : > { %p9649_p1 = pnand %p9647_p2, %p13762_p11  ;;  %p9656_p8 = por %p9655_p5, %p9654_p0 }
 0x115   : > { %p9650_p3 = pneg %p9649_p1 }
 0x117   : > { %p9657_p9 = pnand %p9656_p8, %p9650_p3 }
 0x119   : > { %9660 = shalt.err (!%p9657_p9)
}
 0x11a   : > { %8994 = dma.hbm_to_vmem [thread:$0]  (!%p13763_p10), %s13765_s27, 32, %s694_s6, [#allocation16]  }
 0x11b   : > { %s10578_s0 = sshll.u32 %s10111_s8, 5  ;;  %s13766_s16 = sld [smem:[#allocation181_spill]] }
 0x11c   : > { %s882_s29 = scalar_lea.vmem [#allocation24], %s10557_s14  ;;  %p13767_p7 = scmp.ne.s32.totalorder %s13754_s28, 0 }
 0x11d   : > { %s890_s7 = sshll.u32 %s882_s29, 4  ;;  %s891_s7 = int_to_ptr.vmem [resolvable:$true] %s890_s7 }
 0x121   : > { %s10584_s24 = scalar_lea.hbm %s13766_s16, %s10578_s0  ;;  %s9666_s5 = scalar_lea.hbm %s13766_s16, 128 }
 0x122   : > { %s9661_s1 = scalar_lea.hbm %s10584_s24, 32  ;;  %p9667_p4 = scmp.lt.u32.totalorder %s10584_s24, %s13766_s16 }
 0x123   : > { %p9662_p12 = scmp.ne.s32.totalorder %s10584_s24, %s9661_s1  ;;  %p9668_p2 = scmp.lt.u32.totalorder %s9666_s5, %s9661_s1 }
 0x124   : > { %p9670_p3 = scmp.lt.u32.totalorder %s9661_s1, %s10584_s24 }
 0x125   : > { %p9664_p13 = pnand %p9662_p12, %p13767_p7  ;;  %p9669_p1 = por %p9668_p2, %p9667_p4 }
 0x127   : > { %p9665_p6 = pneg %p9664_p13  ;;  %p9671_p0 = por %p9670_p3, %p9669_p1 }
 0x129   : > { %p9672_p5 = pnand %p9671_p0, %p9665_p6 }
 0x12b   : > { %9675 = shalt.err (!%p9672_p5)
}
 0x12c   : > { %s9676_s15 = scalar_lea.vmem %s891_s7, 32  ;;  %s10130_s4 = smov [#allocation24]  }
 0x12d   : > { %p9677_p8 = scmp.ne.s32.totalorder %s891_s7, %s9676_s15  ;;  %s9681_s13 = sshll.u32 %s10130_s4, 4  ;;  %s9682_s13 = int_to_ptr.vmem [resolvable:$false] %s9681_s13 }
 0x12e   : > { %s9683_s29 = scalar_lea.vmem %s9682_s13, 64  ;;  %p9684_p13 = scmp.lt.s32.totalorder %s891_s7, %s9682_s13 }
 0x12f   : > { %p9679_p9 = pnand %p9677_p8, %p13767_p7  ;;  %p9685_p10 = scmp.lt.s32.totalorder %s9683_s29, %s9676_s15 }
 0x131   : > { %p9680_p12 = pneg %p9679_p9  ;;  %p9686_p11 = por %p9685_p10, %p9684_p13 }
 0x133   : > { %p9687_p2 = pnand %p9686_p11, %p9680_p12 }
 0x135   : > { %9690 = shalt.err (!%p9687_p2)
}
 0x136   : > { %p13768_p4 = scmp.ne.s32.totalorder %s13753_s25, 0  ;;  %s10131_s1 = smov [#allocation11]  }
 0x137   : > { %s658_s8 = sshll.u32 %s10131_s1, 4  ;;  %s10132_s6 = smov [#allocation14]   ;;  %s659_s8 = int_to_ptr.vmem [resolvable:$true] %s658_s8 }
 0x138   : > { %9034 = dma.hbm_to_vmem [thread:$0]  (!%p13768_p4), %s10584_s24, 32, %s891_s7, %s10388_s2  }
 0x139   : > { %s679_s5 = sshll.u32 %s10132_s6, 4  ;;  %s13769_s4 = sld [smem:[#allocation173_spill]]  ;;  %s680_s5 = int_to_ptr.vmem [resolvable:$true] %s679_s5 }
 0x13a   : > { %p13770_p10 = scmp.ne.s32.totalorder %s13747_s18, 0 }
 0x13f   : > { %s9691_s12 = scalar_lea.hbm %s13769_s4, 32 }
 0x140   : > { %p9692_p11 = scmp.ne.s32.totalorder %s13769_s4, %s9691_s12  ;;  %p9698_p3 = scmp.lt.u32.totalorder %s9691_s12, %s13769_s4 }
 0x142   : > { %p9694_p6 = pnand %p9692_p11, %p13770_p10 }
 0x144   : > { %p9695_p1 = pneg %p9694_p6 }
 0x146   : > { %p9700_p0 = pnand %p9698_p3, %p9695_p1 }
 0x148   : > { %9703 = shalt.err (!%p9700_p0)
}
 0x149   : > { %s9704_s24 = scalar_lea.vmem %s659_s8, 32  ;;  %p9712_p12 = scmp.lt.s32.totalorder %s659_s8, %s659_s8 }
 0x14a   : > { %p9705_p5 = scmp.ne.s32.totalorder %s659_s8, %s9704_s24  ;;  %p9713_p13 = scmp.lt.s32.totalorder %s9704_s24, %s9704_s24 }
 0x14c   : > { %p9707_p8 = pnand %p9705_p5, %p13770_p10  ;;  %p9714_p2 = por %p9713_p13, %p9712_p12 }
 0x14e   : > { %p9708_p9 = pneg %p9707_p8 }
 0x150   : > { %p9715_p4 = pnand %p9714_p2, %p9708_p9 }
 0x152   : > { %9718 = shalt.err (!%p9715_p4)
}
 0x153   : > { %p13771_p11 = scmp.ne.s32.totalorder %s13744_s9, 0  ;;  %s13772_s6 = sld [smem:[#allocation175_spill]] }
 0x155   : > { %8985 = dma.hbm_to_vmem [thread:$0]  (!%p13771_p11), %s13769_s4, 32, %s659_s8, [#allocation10]  }
 0x159   : > { %s9719_s26 = scalar_lea.hbm %s13772_s6, 2048 }
 0x15a   : > { %p9720_p6 = scmp.ne.s32.totalorder %s13772_s6, %s9719_s26  ;;  %p9726_p4 = scmp.lt.u32.totalorder %s9719_s26, %s13772_s6 }
 0x15c   : > { %p9722_p1 = pnand %p9720_p6, %p13770_p10 }
 0x15e   : > { %p9723_p3 = pneg %p9722_p1 }
 0x160   : > { %p9728_p0 = pnand %p9726_p4, %p9723_p3 }
 0x162   : > { %9731 = shalt.err (!%p9728_p0)
}
 0x163   : > { %s9732_s24 = scalar_lea.vmem %s680_s5, 2048  ;;  %p9740_p12 = scmp.lt.s32.totalorder %s680_s5, %s680_s5 }
 0x164   : > { %p9733_p5 = scmp.ne.s32.totalorder %s680_s5, %s9732_s24  ;;  %p9741_p13 = scmp.lt.s32.totalorder %s9732_s24, %s9732_s24 }
 0x166   : > { %p9735_p8 = pnand %p9733_p5, %p13770_p10  ;;  %p9742_p2 = por %p9741_p13, %p9740_p12 }
 0x168   : > { %p9736_p9 = pneg %p9735_p8 }
 0x16a   : > { %p9743_p7 = pnand %p9742_p2, %p9736_p9 }
 0x16c   : > { %9746 = shalt.err (!%p9743_p7)
}
 0x16d   : > { %8991 = dma.hbm_to_vmem [thread:$0]  (!%p13771_p11), %s13772_s6, 2048, %s680_s5, [#allocation13], %s13759_s22, %s13759_s22, %s13758_s3  }
 0x16e   : > { %s10133_s1 = smov [#allocation17]   ;;  %s10134_s12 = smov [#allocation18]  }
 0x16f   : > { %s704_s16 = sshll.u32 %s10133_s1, 4  ;;  %s715_s26 = sshll.u32 %s10134_s12, 4  ;;  %s705_s16 = int_to_ptr.vmem [resolvable:$true] %s704_s16  ;;  %s716_s26 = int_to_ptr.vmem [resolvable:$true] %s715_s26 }
 0x170   : > { %s9747_s15 = scalar_lea.hbm %s13463_s10, 32 }
 0x171   : > { %p9748_p7 = scmp.ne.s32.totalorder %s13463_s10, %s9747_s15  ;;  %p9754_p3 = scmp.lt.u32.totalorder %s9747_s15, %s13463_s10 }
 0x173   : > { %p9750_p6 = pnand %p9748_p7, %p13770_p10 }
 0x175   : > { %p9751_p1 = pneg %p9750_p6 }
 0x177   : > { %p9756_p4 = pnand %p9754_p3, %p9751_p1 }
 0x179   : > { %9759 = shalt.err (!%p9756_p4)
}
 0x17a   : > { %s9760_s5 = scalar_lea.vmem %s705_s16, 32  ;;  %p9768_p9 = scmp.lt.s32.totalorder %s705_s16, %s705_s16 }
 0x17b   : > { %p9761_p0 = scmp.ne.s32.totalorder %s705_s16, %s9760_s5  ;;  %p9769_p12 = scmp.lt.s32.totalorder %s9760_s5, %s9760_s5 }
 0x17d   : > { %p9763_p5 = pnand %p9761_p0, %p13770_p10  ;;  %p9770_p13 = por %p9769_p12, %p9768_p9 }
 0x17f   : > { %p9764_p8 = pneg %p9763_p5 }
 0x181   : > { %p9771_p2 = pnand %p9770_p13, %p9764_p8 }
 0x183   : > { %9774 = shalt.err (!%p9771_p2)
}
 0x184   : > { %8997 = dma.hbm_to_vmem [thread:$0]  (!%p13771_p11), %s13463_s10, 32, %s705_s16, [#allocation16]  }
 0x185   : > { %s9775_s21 = scalar_lea.hbm %s13464_s11, 32 }
 0x186   : > { %p9776_p7 = scmp.ne.s32.totalorder %s13464_s11, %s9775_s21  ;;  %p9782_p3 = scmp.lt.u32.totalorder %s9775_s21, %s13464_s11 }
 0x188   : > { %p9778_p6 = pnand %p9776_p7, %p13770_p10 }
 0x18a   : > { %p9779_p1 = pneg %p9778_p6 }
 0x18c   : > { %p9784_p4 = pnand %p9782_p3, %p9779_p1 }
 0x18e   : > { %9787 = shalt.err (!%p9784_p4)
}
 0x18f   : > { %s9788_s8 = scalar_lea.vmem %s716_s26, 32  ;;  %p9796_p9 = scmp.lt.s32.totalorder %s716_s26, %s716_s26 }
 0x190   : > { %p9789_p0 = scmp.ne.s32.totalorder %s716_s26, %s9788_s8  ;;  %p9797_p12 = scmp.lt.s32.totalorder %s9788_s8, %s9788_s8 }
 0x192   : > { %p9791_p5 = pnand %p9789_p0, %p13770_p10  ;;  %p9798_p13 = por %p9797_p12, %p9796_p9 }
 0x194   : > { %p9792_p8 = pneg %p9791_p5 }
 0x196   : > { %p9799_p2 = pnand %p9798_p13, %p9792_p8 }
 0x198   : > { %9802 = shalt.err (!%p9799_p2)
}
 0x199   : > { %9000 = dma.hbm_to_vmem [thread:$0]  (!%p13771_p11), %s13464_s11, 32, %s716_s26, [#allocation19]  }
 0x19a   : > { %s10135_s7 = smov [#allocation31]   ;;  %s9803_s21 = scalar_lea.hbm %s13476_s23, 2048 }
 0x19b   : > { %s771_s1 = sshll.u32 %s10135_s7, 4  ;;  %p9804_p7 = scmp.ne.s32.totalorder %s13476_s23, %s9803_s21  ;;  %s772_s1 = int_to_ptr.vmem [resolvable:$true] %s771_s1 }
 0x19c   : > { %p9810_p3 = scmp.lt.u32.totalorder %s9803_s21, %s13476_s23 }
 0x19d   : > { %p9806_p6 = pnand %p9804_p7, %p13770_p10 }
 0x19f   : > { %p9807_p1 = pneg %p9806_p6 }
 0x1a1   : > { %p9812_p4 = pnand %p9810_p3, %p9807_p1 }
 0x1a3   : > { %9815 = shalt.err (!%p9812_p4)
}
 0x1a4   : > { %s9816_s26 = scalar_lea.vmem %s772_s1, 2048  ;;  %p9824_p9 = scmp.lt.s32.totalorder %s772_s1, %s772_s1 }
 0x1a5   : > { %p9817_p0 = scmp.ne.s32.totalorder %s772_s1, %s9816_s26  ;;  %p9825_p12 = scmp.lt.s32.totalorder %s9816_s26, %s9816_s26 }
 0x1a7   : > { %p9819_p5 = pnand %p9817_p0, %p13770_p10  ;;  %p9826_p13 = por %p9825_p12, %p9824_p9 }
 0x1a9   : > { %p9820_p8 = pneg %p9819_p5 }
 0x1ab   : > { %p9827_p2 = pnand %p9826_p13, %p9820_p8 }
 0x1ad   : > { %9830 = shalt.err (!%p9827_p2)
}
 0x1ae   : > { %s10136_s8 = smov 64   ;;  %s10137_s16 = smov 4  }
 0x1af   : > { %9015 = dma.hbm_to_vmem [thread:$0]  (!%p13771_p11), %s13476_s23, 2048, %s772_s1, [#allocation32], %s10136_s8, %s10136_s8, %s10137_s16  }
 0x1b0   : > { %s10702_s21 = scalar_lea.hbm %s13470_s17, %s10578_s0  ;;  %s901_s13 = scalar_lea.vmem [#allocation25], %s10557_s14 }
 0x1b1   : > { %s909_s15 = sshll.u32 %s901_s13, 4  ;;  %s10138_s29 = smov [#allocation27]   ;;  %s10705_s15 = int_to_ptr.vmem [resolvable:$true] %s909_s15 }
 0x1b2   : > { %s725_s24 = sshll.u32 %s10138_s29, 4  ;;  %s9831_s26 = scalar_lea.hbm %s10702_s21, 32  ;;  %s726_s24 = int_to_ptr.vmem [resolvable:$true] %s725_s24 }
 0x1b3   : > { %p9832_p7 = scmp.ne.s32.totalorder %s10702_s21, %s9831_s26  ;;  %p13773_p6 = scmp.ne.s32.totalorder %s13754_s28, 0 }
 0x1b4   : > { %s9836_s16 = scalar_lea.hbm %s13470_s17, 128  ;;  %p9837_p4 = scmp.lt.u32.totalorder %s10702_s21, %s13470_s17 }
 0x1b5   : > { %p9834_p1 = pnand %p9832_p7, %p13773_p6  ;;  %p9838_p0 = scmp.lt.u32.totalorder %s9836_s16, %s9831_s26 }
 0x1b6   : > { %p9840_p8 = scmp.lt.u32.totalorder %s9831_s26, %s10702_s21 }
 0x1b7   : > { %p9835_p3 = pneg %p9834_p1  ;;  %p9839_p5 = por %p9838_p0, %p9837_p4 }
 0x1b9   : > { %p9841_p9 = por %p9840_p8, %p9839_p5 }
 0x1bb   : > { %p9842_p12 = pnand %p9841_p9, %p9835_p3 }
 0x1bd   : > { %9845 = shalt.err (!%p9842_p12)
}
 0x1be   : > { %s9846_s4 = scalar_lea.vmem %s10705_s15, 32  ;;  %s10139_s12 = smov [#allocation25]  }
 0x1bf   : > { %p9847_p13 = scmp.ne.s32.totalorder %s10705_s15, %s9846_s4  ;;  %s9851_s13 = sshll.u32 %s10139_s12, 4  ;;  %s9852_s13 = int_to_ptr.vmem [resolvable:$false] %s9851_s13 }
 0x1c0   : > { %s9853_s29 = scalar_lea.vmem %s9852_s13, 64  ;;  %p9854_p1 = scmp.lt.s32.totalorder %s10705_s15, %s9852_s13 }
 0x1c1   : > { %p9849_p2 = pnand %p9847_p13, %p13773_p6  ;;  %p9855_p11 = scmp.lt.s32.totalorder %s9853_s29, %s9846_s4 }
 0x1c3   : > { %p9850_p7 = pneg %p9849_p2  ;;  %p9856_p4 = por %p9855_p11, %p9854_p1 }
 0x1c5   : > { %p9857_p0 = pnand %p9856_p4, %p9850_p7 }
 0x1c7   : > { %9860 = shalt.err (!%p9857_p0)
}
 0x1c8   : > { %p13774_p3 = scmp.ne.s32.totalorder %s13753_s25, 0  ;;  %s9861_s8 = scalar_lea.hbm %s13472_s19, 4096 }
 0x1c9   : > { %p9862_p5 = scmp.ne.s32.totalorder %s13472_s19, %s9861_s8  ;;  %p9868_p9 = scmp.lt.u32.totalorder %s9861_s8, %s13472_s19 }
 0x1ca   : > { %9037 = dma.hbm_to_vmem [thread:$0]  (!%p13774_p3), %s10702_s21, 32, %s10705_s15, %s10388_s2  }
 0x1cb   : > { %p9864_p11 = pnand %p9862_p5, %p13770_p10 }
 0x1cd   : > { %p9865_p8 = pneg %p9864_p11 }
 0x1cf   : > { %p9870_p12 = pnand %p9868_p9, %p9865_p8 }
 0x1d1   : > { %9873 = shalt.err (!%p9870_p12)
}
 0x1d2   : > { %s9874_s12 = scalar_lea.vmem %s726_s24, 4096  ;;  %p9882_p1 = scmp.lt.s32.totalorder %s726_s24, %s726_s24 }
 0x1d3   : > { %p9875_p13 = scmp.ne.s32.totalorder %s726_s24, %s9874_s12  ;;  %p9883_p4 = scmp.lt.s32.totalorder %s9874_s12, %s9874_s12 }
 0x1d5   : > { %p9877_p2 = pnand %p9875_p13, %p13770_p10  ;;  %p9884_p0 = por %p9883_p4, %p9882_p1 }
 0x1d7   : > { %p9878_p7 = pneg %p9877_p2 }
 0x1d9   : > { %p9885_p3 = pnand %p9884_p0, %p9878_p7 }
 0x1db   : > { %9888 = shalt.err (!%p9885_p3)
}
 0x1dc   : > { %p13775_p5 = scmp.ne.s32.totalorder %s13744_s9, 0  ;;  %s10140_s13 = smov [#allocation28]  }
 0x1dd   : > { %s739_s29 = sshll.u32 %s10140_s13, 4  ;;  %s10141_s26 = smov [#allocation29]   ;;  %s740_s29 = int_to_ptr.vmem [resolvable:$true] %s739_s29 }
 0x1de   : > { %9003 = dma.hbm_to_vmem [thread:$0]  (!%p13775_p5), %s13472_s19, 4096, %s726_s24, [#allocation10], %s13759_s22, %s13759_s22, %s13758_s3  }
 0x1df   : > { %s750_s1 = sshll.u32 %s10141_s26, 4  ;;  %s9889_s5 = scalar_lea.hbm %s13473_s20, 32  ;;  %s751_s1 = int_to_ptr.vmem [resolvable:$true] %s750_s1 }
 0x1e0   : > { %p9890_p3 = scmp.ne.s32.totalorder %s13473_s20, %s9889_s5  ;;  %p9896_p9 = scmp.lt.u32.totalorder %s9889_s5, %s13473_s20 }
 0x1e2   : > { %p9892_p11 = pnand %p9890_p3, %p13770_p10 }
 0x1e4   : > { %p9893_p8 = pneg %p9892_p11 }
 0x1e6   : > { %p9898_p12 = pnand %p9896_p9, %p9893_p8 }
 0x1e8   : > { %9901 = shalt.err (!%p9898_p12)
}
 0x1e9   : > { %s9902_s3 = scalar_lea.vmem %s740_s29, 32  ;;  %p9910_p1 = scmp.lt.s32.totalorder %s740_s29, %s740_s29 }
 0x1ea   : > { %p9903_p13 = scmp.ne.s32.totalorder %s740_s29, %s9902_s3  ;;  %p9911_p4 = scmp.lt.s32.totalorder %s9902_s3, %s9902_s3 }
 0x1ec   : > { %p9905_p2 = pnand %p9903_p13, %p13770_p10  ;;  %p9912_p0 = por %p9911_p4, %p9910_p1 }
 0x1ee   : > { %p9906_p7 = pneg %p9905_p2 }
 0x1f0   : > { %p9913_p6 = pnand %p9912_p0, %p9906_p7 }
 0x1f2   : > { %9916 = shalt.err (!%p9913_p6)
}
 0x1f3   : > { %9006 = dma.hbm_to_vmem [thread:$0]  (!%p13775_p5), %s13473_s20, 32, %s740_s29, [#allocation13]  }
 0x1f4   : > { %s13776_s26 = sld [smem:[#allocation183_spill]] }
 0x1fa   : > { %s13777_s16 = smov %s13776_s26  ;;  %s9917_s8 = scalar_lea.hbm %s13776_s26, 32 }
 0x1fb   : > { %p9918_p3 = scmp.ne.s32.totalorder %s13777_s16, %s9917_s8  ;;  %p9924_p6 = scmp.lt.u32.totalorder %s9917_s8, %s13777_s16 }
 0x1fd   : > { %p9920_p11 = pnand %p9918_p3, %p13770_p10 }
 0x1ff   : > { %p9921_p8 = pneg %p9920_p11 }
 0x201   : > { %p9926_p9 = pnand %p9924_p6, %p9921_p8 }
 0x203   : > { %9929 = shalt.err (!%p9926_p9)
}
 0x204   : > { %s9930_s21 = scalar_lea.vmem %s751_s1, 32  ;;  %p9938_p7 = scmp.lt.s32.totalorder %s751_s1, %s751_s1 }
 0x205   : > { %p9931_p12 = scmp.ne.s32.totalorder %s751_s1, %s9930_s21  ;;  %p9939_p1 = scmp.lt.s32.totalorder %s9930_s21, %s9930_s21 }
 0x207   : > { %p9933_p13 = pnand %p9931_p12, %p13770_p10  ;;  %p9940_p4 = por %p9939_p1, %p9938_p7 }
 0x209   : > { %p9934_p2 = pneg %p9933_p13 }
 0x20b   : > { %p9941_p0 = pnand %p9940_p4, %p9934_p2 }
 0x20d   : > { %9944 = shalt.err (!%p9941_p0)
}
 0x20e   : > { %9009 = dma.hbm_to_vmem [thread:$0]  (!%p13775_p5), %s13777_s16, 32, %s751_s1, [#allocation16]  }
 0x20f   : > { %s10142_s22 = smov [#allocation30]   ;;  %s10143_s15 = smov [#allocation33]  }
 0x210   : > { %s761_s24 = sshll.u32 %s10142_s22, 4  ;;  %s785_s13 = sshll.u32 %s10143_s15, 4  ;;  %s762_s24 = int_to_ptr.vmem [resolvable:$true] %s761_s24  ;;  %s786_s13 = int_to_ptr.vmem [resolvable:$true] %s785_s13 }
 0x211   : > { %s13778_s5 = sld [smem:[#allocation184_spill]] }
 0x217   : > { %s9945_s7 = scalar_lea.hbm %s13778_s5, 32 }
 0x218   : > { %p9946_p3 = scmp.ne.s32.totalorder %s13778_s5, %s9945_s7  ;;  %p9952_p6 = scmp.lt.u32.totalorder %s9945_s7, %s13778_s5 }
 0x21a   : > { %p9948_p11 = pnand %p9946_p3, %p13770_p10 }
 0x21c   : > { %p9949_p8 = pneg %p9948_p11 }
 0x21e   : > { %p9954_p9 = pnand %p9952_p6, %p9949_p8 }
 0x220   : > { %9957 = shalt.err (!%p9954_p9)
}
 0x221   : > { %s9958_s1 = scalar_lea.vmem %s762_s24, 32  ;;  %p9966_p7 = scmp.lt.s32.totalorder %s762_s24, %s762_s24 }
 0x222   : > { %p9959_p12 = scmp.ne.s32.totalorder %s762_s24, %s9958_s1  ;;  %p9967_p1 = scmp.lt.s32.totalorder %s9958_s1, %s9958_s1 }
 0x224   : > { %p9961_p13 = pnand %p9959_p12, %p13770_p10  ;;  %p9968_p4 = por %p9967_p1, %p9966_p7 }
 0x226   : > { %p9962_p2 = pneg %p9961_p13 }
 0x228   : > { %p9969_p0 = pnand %p9968_p4, %p9962_p2 }
 0x22a   : > { %9972 = shalt.err (!%p9969_p0)
}
 0x22b   : > { %9012 = dma.hbm_to_vmem [thread:$0]  (!%p13775_p5), %s13778_s5, 32, %s762_s24, [#allocation19]  }
 0x22c   : > { %s13779_s8 = sld [smem:[#allocation185_spill]] }
 0x232   : > { %s13780_s7 = smov %s13779_s8  ;;  %s9973_s4 = scalar_lea.hbm %s13779_s8, 16 }
 0x233   : > { %p9974_p3 = scmp.ne.s32.totalorder %s13780_s7, %s9973_s4  ;;  %p9980_p6 = scmp.lt.u32.totalorder %s9973_s4, %s13780_s7 }
 0x235   : > { %p9976_p11 = pnand %p9974_p3, %p13770_p10 }
 0x237   : > { %p9977_p8 = pneg %p9976_p11 }
 0x239   : > { %p9982_p9 = pnand %p9980_p6, %p9977_p8 }
 0x23b   : > { %9985 = shalt.err (!%p9982_p9)
}
 0x23c   : > { %s9986_s3 = scalar_lea.vmem %s786_s13, 16  ;;  %s9993_s24 = scalar_lea.vmem %s786_s13, 32 }
 0x23d   : > { %p9987_p12 = scmp.ne.s32.totalorder %s786_s13, %s9986_s3  ;;  %p9994_p7 = scmp.lt.s32.totalorder %s786_s13, %s786_s13 }
 0x23e   : > { %p9995_p1 = scmp.lt.s32.totalorder %s9993_s24, %s9986_s3 }
 0x23f   : > { %p9989_p13 = pnand %p9987_p12, %p13770_p10 }
 0x240   : > { %p9996_p4 = por %p9995_p1, %p9994_p7 }
 0x241   : > { %p9990_p2 = pneg %p9989_p13 }
 0x243   : > { %p9997_p0 = pnand %p9996_p4, %p9990_p2 }
 0x245   : > { %10000 = shalt.err (!%p9997_p0)
}
 0x246   : > { %9018 = dma.hbm_to_vmem [thread:$0]  (!%p13775_p5), %s13780_s7, 16, %s786_s13, [#allocation32]  }
 0x247   : > { %s13781_s18 = sld [smem:[#allocation182_spill]]  ;;  %s920_s12 = scalar_lea.vmem [#allocation26], %s10557_s14 }
 0x248   : > { %s928_s21 = sshll.u32 %s920_s12, 4  ;;  %p13782_p3 = scmp.ne.s32.totalorder %s13754_s28, 0  ;;  %s929_s21 = int_to_ptr.vmem [resolvable:$true] %s928_s21 }
 0x24d   : > { %s10826_s4 = scalar_lea.hbm %s13781_s18, %s10578_s0  ;;  %s10006_s13 = scalar_lea.hbm %s13781_s18, 128 }
 0x24e   : > { %s10001_s9 = scalar_lea.hbm %s10826_s4, 32  ;;  %p10007_p5 = scmp.lt.u32.totalorder %s10826_s4, %s13781_s18 }
 0x24f   : > { %p10002_p10 = scmp.ne.s32.totalorder %s10826_s4, %s10001_s9  ;;  %p10008_p6 = scmp.lt.u32.totalorder %s10006_s13, %s10001_s9 }
 0x250   : > { %p10010_p12 = scmp.lt.u32.totalorder %s10001_s9, %s10826_s4 }
 0x251   : > { %p10004_p11 = pnand %p10002_p10, %p13782_p3  ;;  %p10009_p9 = por %p10008_p6, %p10007_p5 }
 0x253   : > { %p10005_p8 = pneg %p10004_p11  ;;  %p10011_p13 = por %p10010_p12, %p10009_p9 }
 0x255   : > { %p10012_p2 = pnand %p10011_p13, %p10005_p8 }
 0x257   : > { %10015 = shalt.err (!%p10012_p2)
}
 0x258   : > { %s10016_s14 = scalar_lea.vmem %s929_s21, 32  ;;  %s10144_s0 = smov [#allocation26]  }
 0x259   : > { %p10017_p7 = scmp.ne.s32.totalorder %s929_s21, %s10016_s14  ;;  %s10021_s22 = sshll.u32 %s10144_s0, 4  ;;  %s10022_s22 = int_to_ptr.vmem [resolvable:$false] %s10021_s22 }
 0x25a   : > { %s10023_s15 = scalar_lea.vmem %s10022_s22, 64  ;;  %p10024_p0 = scmp.lt.s32.totalorder %s929_s21, %s10022_s22 }
 0x25b   : > { %p10019_p1 = pnand %p10017_p7, %p13782_p3  ;;  %p10025_p10 = scmp.lt.s32.totalorder %s10023_s15, %s10016_s14 }
 0x25d   : > { %p10020_p4 = pneg %p10019_p1  ;;  %p10026_p11 = por %p10025_p10, %p10024_p0 }
 0x25f   : > { %p10027_p5 = pnand %p10026_p11, %p10020_p4 }
 0x261   : > { %10030 = shalt.err (!%p10027_p5)
}
 0x262   : > { %p13783_p6 = scmp.ne.s32.totalorder %s13753_s25, 0  ;;  %s13784_s26 = sld [smem:[#allocation49_spill]] }
 0x264   : > { %9040 = dma.hbm_to_vmem [thread:$0]  (!%p13783_p6), %s10826_s4, 32, %s929_s21, %s10388_s2  }
 0x268   : > { %p13785_p8 = scmp.ne.s32.totalorder %s13784_s26, 0 }
 0x26a   : > { %937 = sbr.rel (%p13785_p8) target bundleno = 5815 (0x16b7), region = 116 }
 0x271   : > { %s13786_s28 = sld [smem:[#allocation48_spill]] }
 0x277   : > { %p13787_p3 = scmp.eq.s32.totalorder %s13786_s28, 0 }
 0x279   : > { %10054 = dma.done.wait (%p13787_p3), [#allocation8], 2048   ;;  %p13788_p9 = pmov %p13787_p3 }
 0x27a   : > { %p13789_p12 = pmov %p13787_p3 }
 0x27b   : > { %10056 = vsyncadd (%p13788_p9), [#allocation8], 4294965248 }
 0x27c   : > { %10058 = dma.done.wait (%p13789_p12), [#allocation10], 64   ;;  %p13790_p13 = pmov %p13787_p3 }
 0x27d   : > { %p13791_p2 = pmov %p13787_p3 }
 0x27e   : > { %10060 = vsyncadd (%p13790_p13), [#allocation10], 4294967232 }
 0x27f   : > { %10062 = dma.done.wait (%p13791_p2), [#allocation13], 2080   ;;  %p13792_p7 = pmov %p13791_p2 }
 0x280   : > { %p13793_p1 = pmov %p13791_p2 }
 0x281   : > { %10064 = vsyncadd (%p13792_p7), [#allocation13], 4294965216 }
 0x282   : > { %10066 = dma.done.wait (%p13793_p1), [#allocation16], 64   ;;  %p13794_p4 = pmov %p13793_p1 }
 0x283   : > { %p13795_p0 = pmov %p13793_p1 }
 0x284   : > { %10068 = vsyncadd (%p13794_p4), [#allocation16], 4294967232 }
 0x285   : > { %10070 = dma.done.wait (%p13795_p0), [#allocation19], 32   ;;  %p13796_p10 = pmov %p13795_p0 }
 0x286   : > { %s13797_s2 = sld [smem:[#allocation46_spill]]  ;;  %s13798_s25 = sld [smem:[#allocation52_spill]] }
 0x287   : > { %10072 = vsyncadd (%p13796_p10), [#allocation19], 4294967264  ;;  %s971_s8 = sand.u32 1, %s13786_s28  }
 0x288   : > { %s972_s21 = scalar_lea.sflag [#allocation8], %s971_s8 }
 0x28c   : > { %s973_s4 = sand.u32 1, %s13797_s2   ;;  %p13799_p11 = scmp.ne.s32.totalorder %s13798_s25, 0 }
 0x28d   : > { %s8501_s12 = sshll.u32 %s973_s4, 10 }
 0x28e   : > { %s10871_s9 = scalar_lea.vmem [#allocation20], %s8501_s12 }
 0x28f   : > { %10074 = dma.done.wait (%p13799_p11), %s972_s21, 24800  }
 0x290   : > { %10076 = vsyncadd (%p13799_p11), %s972_s21, 4294942496  ;;  %s8502_s29 = sshll.u32 %s973_s4, 3  ;;  %s8503_s1 = sshll.u32 %s973_s4, 8 }
 0x291   : > { %s10877_s13 = sshll.u32 %s973_s4, 1  ;;  %s10879_s3 = scalar_lea.vmem [#allocation21], %s8502_s29 }
 0x292   : > { %s10881_s24 = scalar_lea.vmem [#allocation22], %s8503_s1  ;;  %s10883_s14 = scalar_lea.vmem [#allocation23], %s8503_s1 }
 0x293   : > { %p13800_p5 = pmov %p13795_p0 }
 0x294   : > { %p13801_p6 = pmov %p13795_p0 }
 0x295   : > { %10078 = dma.done.wait (%p13800_p5), [#allocation10], 4096  }
 0x296   : > { %10080 = vsyncadd (%p13801_p6), [#allocation10], 4294963200  ;;  %p13802_p8 = pmov %p13795_p0 }
 0x297   : > { %p13803_p3 = pmov %p13795_p0 }
 0x298   : > { %10082 = dma.done.wait (%p13802_p8), [#allocation13], 32  }
 0x299   : > { %10084 = vsyncadd (%p13803_p3), [#allocation13], 4294967264  ;;  %p13804_p9 = pmov %p13795_p0 }
 0x29a   : > { %p13805_p12 = pmov %p13795_p0 }
 0x29b   : > { %10086 = dma.done.wait (%p13804_p9), [#allocation16], 32  }
 0x29c   : > { %10088 = vsyncadd (%p13805_p12), [#allocation16], 4294967264  ;;  %p13806_p13 = pmov %p13795_p0 }
 0x29d   : > { %p13807_p2 = pmov %p13795_p0 }
 0x29e   : > { %10090 = dma.done.wait (%p13806_p13), [#allocation19], 32  }
 0x29f   : > { %10092 = vsyncadd (%p13807_p2), [#allocation19], 4294967264  ;;  %p13808_p7 = pmov %p13795_p0 }
 0x2a0   : > { %p13809_p1 = pmov %p13795_p0 }
 0x2a1   : > { %10094 = dma.done.wait (%p13808_p7), [#allocation32], 2064  }
 0x2a2   : > { %10096 = vsyncadd (%p13809_p1), [#allocation32], 4294965232  ;;  %p13810_p4 = scmp.ne.s32.totalorder %s13786_s28, 0 }
 0x2a3   : > { %v9137_v0 = vld [vmem:[#allocation7 + $0x4] ss:$8 sps:$4 sm:$0xff] (!%p13810_p4)   ;;  %v10145_v2 = vmov (!%p13810_p4), 0   ;;  %v9141_v3 = vld [vmem:[#allocation7] ss:$8 sps:$4 sm:$0xff] (!%p13810_p4)   ;;  %s13811_s2 = sld [smem:[#allocation168_spill]] (!%p13810_p4)  ;;  %v1170_v38 = vlaneseq (!%p13810_p4) }
 0x2a4   : > { %1147 = sbr.rel (%p13810_p4) target bundleno = 1283 (0x503), region = 204  ;;  %v9139_v1 = vld [vmem:[#allocation14 + $0x4] ss:$8 sps:$4 sm:$0xff] (!%p13810_p4)   ;;  %1298 = vmatprep.mubr.bf16.mxu0 (!%p13810_p4), %v10145_v2  ;;  %1554 = vmatprep.mubr.bf16.mxu1 (!%p13810_p4), %v10145_v2  ;;  %v9142_v4 = vld [vmem:[#allocation14] ss:$8 sps:$4 sm:$0xff] (!%p13810_p4)   ;;  %s13812_s4 = sld [smem:[#allocation169_spill]] (!%p13810_p4) }
 0x2a5   : > { %1266 = vmatprep.subr.bf16.mxu0 (!%p13810_p4), %v9137_v0  ;;  %1522 = vmatprep.subr.bf16.mxu1 (!%p13810_p4), %v9139_v1  ;;  %v9143_v5 = vld [vmem:[#allocation7 + $0x14] ss:$8 sps:$4 sm:$0xff] (!%p13810_p4)   ;;  %v9147_v7 = vld [vmem:[#allocation7 + $0x10] ss:$8 sps:$4 sm:$0xff] (!%p13810_p4)   ;;  %v9149_v9 = vld [vmem:[#allocation7 + $0x24] ss:$8 sps:$4 sm:$0xff] (!%p13810_p4)  }
 0x2a6   : > { %1267 = vmatpush1.bf16.msra.mxu0 (!%p13810_p4), %v9141_v3  ;;  %1523 = vmatpush1.bf16.msra.mxu1 (!%p13810_p4), %v9142_v4  ;;  %v9145_v6 = vld [vmem:[#allocation14 + $0x14] ss:$8 sps:$4 sm:$0xff] (!%p13810_p4)   ;;  %v9148_v8 = vld [vmem:[#allocation14 + $0x10] ss:$8 sps:$4 sm:$0xff] (!%p13810_p4)   ;;  %v9151_v10 = vld [vmem:[#allocation14 + $0x24] ss:$8 sps:$4 sm:$0xff] (!%p13810_p4)  }
 0x2a7   : > { %1268 = vmatprep.subr.bf16.mxu0 (!%p13810_p4), %v9143_v5  ;;  %1524 = vmatprep.subr.bf16.mxu1 (!%p13810_p4), %v9145_v6  ;;  %v9153_v11 = vld [vmem:[#allocation7 + $0x20] ss:$8 sps:$4 sm:$0xff] (!%p13810_p4)   ;;  %v9155_v13 = vld [vmem:[#allocation7 + $0x34] ss:$8 sps:$4 sm:$0xff] (!%p13810_p4)   ;;  %v9159_v15 = vld [vmem:[#allocation7 + $0x30] ss:$8 sps:$4 sm:$0xff] (!%p13810_p4)  }
 0x2a8   : > { %v9154_v12 = vld [vmem:[#allocation14 + $0x20] ss:$8 sps:$4 sm:$0xff] (!%p13810_p4)   ;;  %v9157_v14 = vld [vmem:[#allocation14 + $0x34] ss:$8 sps:$4 sm:$0xff] (!%p13810_p4)   ;;  %v9160_v16 = vld [vmem:[#allocation14 + $0x30] ss:$8 sps:$4 sm:$0xff] (!%p13810_p4)  }
 0x2a9   : > { %v9161_v17 = vld [vmem:[#allocation7 + $0x44] ss:$8 sps:$4 sm:$0xff] (!%p13810_p4)   ;;  %v9165_v19 = vld [vmem:[#allocation7 + $0x40] ss:$8 sps:$4 sm:$0xff] (!%p13810_p4)   ;;  %v9167_v21 = vld [vmem:[#allocation7 + $0x54] ss:$8 sps:$4 sm:$0xff] (!%p13810_p4)  }
 0x2aa   : > { %1269 = vmatpush1.bf16.msra.mxu0 (!%p13810_p4), %v9147_v7  ;;  %1525 = vmatpush1.bf16.msra.mxu1 (!%p13810_p4), %v9148_v8  ;;  %v9163_v18 = vld [vmem:[#allocation14 + $0x44] ss:$8 sps:$4 sm:$0xff] (!%p13810_p4)   ;;  %v9166_v20 = vld [vmem:[#allocation14 + $0x40] ss:$8 sps:$4 sm:$0xff] (!%p13810_p4)   ;;  %v9169_v22 = vld [vmem:[#allocation14 + $0x54] ss:$8 sps:$4 sm:$0xff] (!%p13810_p4)  }
 0x2ab   : > { %1270 = vmatprep.subr.bf16.mxu0 %v9149_v9  ;;  %1526 = vmatprep.subr.bf16.mxu1 %v9151_v10  ;;  %v9171_v23 = vld [vmem:[#allocation7 + $0x50] ss:$8 sps:$4 sm:$0xff]   ;;  %v9173_v25 = vld [vmem:[#allocation7 + $0x64] ss:$8 sps:$4 sm:$0xff]   ;;  %v9177_v27 = vld [vmem:[#allocation7 + $0x60] ss:$8 sps:$4 sm:$0xff]  }
 0x2ac   : > { %v9172_v24 = vld [vmem:[#allocation14 + $0x50] ss:$8 sps:$4 sm:$0xff]   ;;  %v9175_v26 = vld [vmem:[#allocation14 + $0x64] ss:$8 sps:$4 sm:$0xff]   ;;  %v9178_v28 = vld [vmem:[#allocation14 + $0x60] ss:$8 sps:$4 sm:$0xff]  }
 0x2ad   : > { %v9179_v29 = vld [vmem:[#allocation7 + $0x74] ss:$8 sps:$4 sm:$0xff]   ;;  %v9183_v31 = vld [vmem:[#allocation7 + $0x70] ss:$8 sps:$4 sm:$0xff]   ;;  %v9185_v33 = vld [vmem:[%s13811_s2] sm:$0xff]   ;;  %v1171_v39 = vshrl.u32 %v1170_v38, 7 }
 0x2ae   : > { %1271 = vmatpush1.bf16.msra.mxu0 %v9153_v11  ;;  %1527 = vmatpush1.bf16.msra.mxu1 %v9154_v12  ;;  %v9181_v30 = vld [vmem:[#allocation14 + $0x74] ss:$8 sps:$4 sm:$0xff]   ;;  %v9184_v32 = vld [vmem:[#allocation14 + $0x70] ss:$8 sps:$4 sm:$0xff]   ;;  %v9187_v35 = vld [vmem:[%s13812_s4 + $0x8] sm:$0xff]   ;;  %s10113_s2 = smov 0  }
 0x2af   : > { %1272 = vmatprep.subr.bf16.mxu0 %v9155_v13  ;;  %1528 = vmatprep.subr.bf16.mxu1 %v9157_v14  ;;  %v9186_v34 = vld [vmem:[%s13812_s4] sm:$0xff]   ;;  %v9188_v36 = vld [vmem:[%s13812_s4 + $0x10] sm:$0xff]   ;;  %v9189_v37 = vld [vmem:[%s13812_s4 + $0x18] sm:$0xff]   ;;  %v10931_v40 = vsub.s32 0, %v1171_v39  ;;  %v10933_v43 = vsub.s32 1, %v1171_v39 }
 0x2b0   : > { %v1166_v41 = vld [vmem:[#allocation9] sm:$0x3]  ;;  %v1404_v42 = vld [vmem:[#allocation15] sm:$0x3] }
 0x2b1   : > { %v1173_v44 = vrot.slane %v1166_v41, %v10931_v40  ;;  %v10937_v45 = vrot.slane %v1404_v42, %v10931_v40  ;;  %v1177_v46 = vrot.slane %v1166_v41, %v10933_v43  ;;  %v10941_v47 = vrot.slane %v1404_v42, %v10933_v43 }
 0x2b2   : > { %1273 = vmatpush1.bf16.msra.mxu0 %v9159_v15  ;;  %1529 = vmatpush1.bf16.msra.mxu1 %v9160_v16 }
 0x2b3   : > { %1274 = vmatprep.subr.bf16.mxu0 %v9161_v17  ;;  %1530 = vmatprep.subr.bf16.mxu1 %v9163_v18 }
 0x2b6   : > { %1275 = vmatpush1.bf16.msra.mxu0 %v9165_v19  ;;  %1531 = vmatpush1.bf16.msra.mxu1 %v9166_v20 }
 0x2b7   : > { %1276 = vmatprep.subr.bf16.mxu0 %v9167_v21  ;;  %1532 = vmatprep.subr.bf16.mxu1 %v9169_v22 }
 0x2ba   : > { %1277 = vmatpush1.bf16.msra.mxu0 %v9171_v23  ;;  %1533 = vmatpush1.bf16.msra.mxu1 %v9172_v24 }
 0x2bb   : > { %1278 = vmatprep.subr.bf16.mxu0 %v9173_v25  ;;  %1534 = vmatprep.subr.bf16.mxu1 %v9175_v26 }
 0x2be   : > { %1279 = vmatpush1.bf16.msra.mxu0 %v9177_v27  ;;  %1535 = vmatpush1.bf16.msra.mxu1 %v9178_v28 }
 0x2bf   : > { %1280 = vmatprep.subr.bf16.mxu0 %v9179_v29  ;;  %1536 = vmatprep.subr.bf16.mxu1 %v9181_v30 }
 0x2c2   : > { %1281 = vmatpush1.bf16.msra.mxu0 %v9183_v31  ;;  %1537 = vmatpush1.bf16.msra.mxu1 %v9184_v32 }
 0x2c5   : > { %1299 = vmatmul.mubr.bf16.vlgmr.msra.gmra.mrb[0].mxu0 %v9185_v33  ;;  %1555 = vmatmul.mubr.bf16.vlgmr.msra.gmra.mrb[0].mxu1 %v9186_v34 }
 0x2c6   : > { %1564 = vmatprep.mubr.bf16.mxu1 %v10145_v2 }
 0x2cd   : > { %1565 = vmatmul.mubr.bf16.gmra.mrb[4].mxu1 %v9187_v35 }
 0x2ce   : > { %1574 = vmatprep.mubr.bf16.mxu1 %v10145_v2 }
 0x2d5   : > { %1575 = vmatmul.mubr.bf16.gmra.mrb[8].mxu1 %v9188_v36 }
 0x2d6   : > { %1584 = vmatprep.mubr.bf16.mxu1 %v10145_v2 }
 0x2dd   : > { %1585 = vmatmul.mubr.bf16.gmra.mrb[12].mxu1 %v9189_v37 }
 0x398   : > { %v1300_v48 = vpop.f32.mrb[0].mxu0  ;;  %v1556_v49 = vpop.f32.mrb[0].mxu1 }
 0x399   : > { %v10943_v50 = vadd.f32 %v1300_v48, %v1173_v44  ;;  %v10946_v51 = vadd.f32 %v1556_v49, %v10937_v45  ;;  %v1302_v52 = vpop.f32.mrb[1].mxu0  ;;  %v1558_v53 = vpop.f32.mrb[1].mxu1 }
 0x39a   : > { %v10948_v54 = vadd.f32 %v1302_v52, %v1177_v46  ;;  %v10951_v55 = vadd.f32 %v1558_v53, %v10941_v47  ;;  %v1560_v56 = vpop.f32.mrb[2].mxu1  ;;  %v1304_v57 = vpop.f32.mrb[2].mxu0 }
 0x39b   : > { %v1309_v58 = vmax.f32 %v10943_v50, 0.0  ;;  %v1595_v59 = vmax.f32 %v10946_v51, 0.0  ;;  %v10956_v60 = vadd.f32 %v1560_v56, %v10937_v45  ;;  %v1562_v61 = vpop.f32.mrb[3].mxu1  ;;  %v10958_v62 = vadd.f32 %v1304_v57, %v1173_v44  ;;  %v1306_v63 = vpop.f32.mrb[3].mxu0 }
 0x39c   : > { %v1310_v0 = vmax.f32 %v10948_v54, 0.0  ;;  %v1596_v1 = vmax.f32 %v10951_v55, 0.0  ;;  %v10963_v2 = vadd.f32 %v1562_v61, %v10941_v47  ;;  %v10965_v3 = vadd.f32 %v1306_v63, %v1177_v46 }
 0x39d   : > { %v1597_v4 = vmax.f32 %v10956_v60, 0.0  ;;  %v1311_v5 = vmax.f32 %v10958_v62, 0.0 }
 0x39e   : > { %v1598_v6 = vmax.f32 %v10963_v2, 0.0  ;;  %v1312_v7 = vmax.f32 %v10965_v3, 0.0  ;;  %v1611_v8 = vadd.f32 %v1596_v1, %v1595_v59  ;;  %v1313_v9 = vadd.f32 %v1310_v0, %v1309_v58 }
 0x3a0   : > { %v1566_v10 = vpop.f32.mrb[4].mxu1  ;;  %1612 = vadd.xlane.f32.xlu1 %v1611_v8  ;;  %1314 = vadd.xlane.f32.xlu0 %v1313_v9  ;;  %v1316_v11 = vadd.f32 %v1312_v7, %v1311_v5  ;;  %v1614_v16 = vadd.f32 %v1598_v6, %v1597_v4 }
 0x3a1   : > { %v10984_v12 = vadd.f32 %v1566_v10, %v10937_v45  ;;  %v1568_v13 = vpop.f32.mrb[5].mxu1 }
 0x3a2   : > { %v10987_v14 = vadd.f32 %v1568_v13, %v10941_v47  ;;  %v1570_v15 = vpop.f32.mrb[6].mxu1 }
 0x3a3   : > { %v1599_v17 = vmax.f32 %v10984_v12, 0.0  ;;  %v10995_v18 = vadd.f32 %v1570_v15, %v10937_v45  ;;  %v1572_v19 = vpop.f32.mrb[7].mxu1 }
 0x3a4   : > { %v1600_v20 = vmax.f32 %v10987_v14, 0.0  ;;  %v10999_v21 = vadd.f32 %v1572_v19, %v10941_v47  ;;  %1615 = vadd.xlane.f32.xlu1 %v1614_v16  ;;  %1317 = vadd.xlane.f32.xlu0 %v1316_v11 }
 0x3a5   : > { %v1601_v22 = vmax.f32 %v10995_v18, 0.0 }
 0x3a6   : > { %v1602_v23 = vmax.f32 %v10999_v21, 0.0  ;;  %v1617_v24 = vadd.f32 %v1600_v20, %v1599_v17 }
 0x3a8   : > { %v1576_v25 = vpop.f32.mrb[8].mxu1  ;;  %1618 = vadd.xlane.f32.xlu0 %v1617_v24  ;;  %v1620_v26 = vadd.f32 %v1602_v23, %v1601_v22 }
 0x3a9   : > { %v11012_v27 = vadd.f32 %v1576_v25, %v10937_v45  ;;  %v1578_v28 = vpop.f32.mrb[9].mxu1 }
 0x3aa   : > { %v11015_v29 = vadd.f32 %v1578_v28, %v10941_v47  ;;  %v1580_v30 = vpop.f32.mrb[10].mxu1  ;;  %1621 = vadd.xlane.f32.xlu1 %v1620_v26 }
 0x3ab   : > { %v1603_v31 = vmax.f32 %v11012_v27, 0.0  ;;  %v11019_v32 = vadd.f32 %v1580_v30, %v10937_v45  ;;  %v1582_v33 = vpop.f32.mrb[11].mxu1 }
 0x3ac   : > { %v1604_v34 = vmax.f32 %v11015_v29, 0.0  ;;  %v11023_v35 = vadd.f32 %v1582_v33, %v10941_v47 }
 0x3ad   : > { %v1605_v36 = vmax.f32 %v11019_v32, 0.0 }
 0x3ae   : > { %v1606_v37 = vmax.f32 %v11023_v35, 0.0  ;;  %v1623_v39 = vadd.f32 %v1604_v34, %v1603_v31 }
 0x3b0   : > { %v1586_v41 = vpop.f32.mrb[12].mxu1  ;;  %1624 = vadd.xlane.f32.xlu0 %v1623_v39  ;;  %v1626_v42 = vadd.f32 %v1606_v37, %v1605_v36 }
 0x3b1   : > { %v11036_v44 = vadd.f32 %v1586_v41, %v10937_v45  ;;  %v1588_v46 = vpop.f32.mrb[13].mxu1 }
 0x3b2   : > { %v11039_v48 = vadd.f32 %v1588_v46, %v10941_v47  ;;  %v1590_v49 = vpop.f32.mrb[14].mxu1  ;;  %1627 = vadd.xlane.f32.xlu1 %v1626_v42 }
 0x3b3   : > { %v1607_v52 = vmax.f32 %v11036_v44, 0.0  ;;  %v11043_v53 = vadd.f32 %v1590_v49, %v10937_v45  ;;  %v1592_v56 = vpop.f32.mrb[15].mxu1 }
 0x3b4   : > { %v1608_v57 = vmax.f32 %v11039_v48, 0.0  ;;  %v11047_v61 = vadd.f32 %v1592_v56, %v10941_v47 }
 0x3b5   : > { %v1609_v63 = vmax.f32 %v11043_v53, 0.0 }
 0x3b6   : > { %v1610_v8 = vmax.f32 %v11047_v61, 0.0  ;;  %v1629_v9 = vadd.f32 %v1608_v57, %v1607_v52 }
 0x3b8   : > { %1630 = vadd.xlane.f32.xlu0 %v1629_v9  ;;  %v1632_v45 = vadd.f32 %v1610_v8, %v1609_v63 }
 0x3ba   : > { %1633 = vadd.xlane.f32.xlu1 %v1632_v45 }
 0x42d   : > { %v1613_v10 = vpop.xlane.xlu1 %1612  ;;  %v1315_v11 = vpop.xlane.xlu0 %1314 }
 0x42e   : > { %v1635_v47 = vmul.f32 0.00390625, %v1613_v10  ;;  %v1320_v13 = vmul.f32 0.00390625, %v1315_v11 }
 0x430   : > { %v11061_v15 = vsub.f32 %v1309_v58, %v1320_v13  ;;  %v11065_v16 = vsub.f32 %v1310_v0, %v1320_v13  ;;  %v11069_v19 = vsub.f32 %v1595_v59, %v1635_v47  ;;  %v11073_v24 = vsub.f32 %v1596_v1, %v1635_v47 }
 0x431   : > { %v1616_v25 = vpop.xlane.xlu1 %1615  ;;  %v1318_v26 = vpop.xlane.xlu0 %1317 }
 0x432   : > { %v1636_v28 = vmul.f32 0.00390625, %v1616_v25  ;;  %v1321_v30 = vmul.f32 0.00390625, %v1318_v26  ;;  %v1326_v50 = vmul.f32 %v11061_v15, %v11061_v15  ;;  %v1327_v54 = vmul.f32 %v11065_v16, %v11065_v16 }
 0x433   : > { %v1659_v33 = vmul.f32 %v11069_v19, %v11069_v19  ;;  %v1660_v60 = vmul.f32 %v11073_v24, %v11073_v24 }
 0x434   : > { %v11081_v58 = vsub.f32 %v1597_v4, %v1636_v28  ;;  %v11085_v51 = vsub.f32 %v1598_v6, %v1636_v28  ;;  %v11089_v55 = vsub.f32 %v1311_v5, %v1321_v30  ;;  %v11093_v59 = vsub.f32 %v1312_v7, %v1321_v30 }
 0x435   : > { %v1619_v0 = vpop.xlane.xlu0 %1618  ;;  %v1330_v1 = vadd.f32 %v1327_v54, %v1326_v50  ;;  %v1675_v46 = vadd.f32 %v1660_v60, %v1659_v33 }
 0x436   : > { %v1637_v4 = vmul.f32 0.00390625, %v1619_v0  ;;  %v1328_v2 = vmul.f32 %v11089_v55, %v11089_v55  ;;  %v1329_v62 = vmul.f32 %v11093_v59, %v11093_v59  ;;  %v1661_v3 = vmul.f32 %v11081_v58, %v11081_v58 }
 0x437   : > { %1331 = vadd.xlane.f32.xlu0 %v1330_v1  ;;  %v1622_v5 = vpop.xlane.xlu1 %1621  ;;  %v1662_v6 = vmul.f32 %v11085_v51, %v11085_v51 }
 0x438   : > { %v11109_v7 = vsub.f32 %v1599_v17, %v1637_v4  ;;  %v11113_v39 = vsub.f32 %v1600_v20, %v1637_v4  ;;  %v1638_v41 = vmul.f32 0.00390625, %v1622_v5  ;;  %v1333_v42 = vadd.f32 %v1329_v62, %v1328_v2 }
 0x439   : > { %v1678_v17 = vadd.f32 %v1662_v6, %v1661_v3 }
 0x43a   : > { %v11117_v49 = vsub.f32 %v1601_v22, %v1638_v41  ;;  %v11121_v56 = vsub.f32 %v1602_v23, %v1638_v41  ;;  %1334 = vadd.xlane.f32.xlu1 %v1333_v42  ;;  %v1663_v12 = vmul.f32 %v11109_v7, %v11109_v7  ;;  %v1664_v14 = vmul.f32 %v11113_v39, %v11113_v39 }
 0x43b   : > { %1676 = vadd.xlane.f32.xlu0 %v1675_v46 }
 0x43c   : > { %v1681_v20 = vadd.f32 %v1664_v14, %v1663_v12  ;;  %v1665_v9 = vmul.f32 %v11117_v49, %v11117_v49  ;;  %v1666_v18 = vmul.f32 %v11121_v56, %v11121_v56  ;;  %v1167_v14 = vld [vmem:[#allocation11] sm:$0x3] }
 0x43d   : > { %v1625_v22 = vpop.xlane.xlu0 %1624 }
 0x43e   : > { %v1639_v21 = vmul.f32 0.00390625, %v1625_v22  ;;  %1679 = vadd.xlane.f32.xlu1 %v1678_v17  ;;  %v1684_v47 = vadd.f32 %v1666_v18, %v1665_v9  ;;  %v1168_v9 = vld [vmem:[#allocation12] sm:$0x3]  ;;  %v1405_v22 = vld [vmem:[#allocation17] sm:$0x3] }
 0x43f   : > { %1682 = vadd.xlane.f32.xlu0 %v1681_v20  ;;  %v1628_v23 = vpop.xlane.xlu1 %1627 }
 0x440   : > { %v11133_v45 = vsub.f32 %v1603_v31, %v1639_v21  ;;  %v11137_v10 = vsub.f32 %v1604_v34, %v1639_v21  ;;  %v1640_v11 = vmul.f32 0.00390625, %v1628_v23  ;;  %v1350_v21 = vrot.slane %v1167_v14, %v10931_v40 }
 0x441   : > { %v1354_v23 = vrot.slane %v1167_v14, %v10933_v43 }
 0x442   : > { %v11141_v13 = vsub.f32 %v1605_v36, %v1640_v11  ;;  %v11145_v25 = vsub.f32 %v1606_v37, %v1640_v11  ;;  %1685 = vadd.xlane.f32.xlu1 %v1684_v47  ;;  %v1667_v27 = vmul.f32 %v11133_v45, %v11133_v45  ;;  %v1668_v31 = vmul.f32 %v11137_v10, %v11137_v10 }
 0x444   : > { %v1687_v29 = vadd.f32 %v1668_v31, %v1667_v27  ;;  %v1669_v34 = vmul.f32 %v11141_v13, %v11141_v13  ;;  %v1670_v32 = vmul.f32 %v11145_v25, %v11145_v25  ;;  %v1365_v27 = vrot.slane %v1168_v9, %v10931_v40 }
 0x445   : > { %v1631_v36 = vpop.xlane.xlu0 %1630  ;;  %v1369_v31 = vrot.slane %v1168_v9, %v10933_v43 }
 0x446   : > { %v1641_v26 = vmul.f32 0.00390625, %v1631_v36  ;;  %1688 = vadd.xlane.f32.xlu0 %v1687_v29  ;;  %v1690_v35 = vadd.f32 %v1670_v32, %v1669_v34  ;;  %v1406_v34 = vld [vmem:[#allocation18] sm:$0x3] }
 0x447   : > { %v1634_v37 = vpop.xlane.xlu1 %1633 }
 0x448   : > { %v11157_v28 = vsub.f32 %v1607_v52, %v1641_v26  ;;  %v11161_v30 = vsub.f32 %v1608_v57, %v1641_v26  ;;  %v1642_v50 = vmul.f32 0.00390625, %v1634_v37  ;;  %1691 = vadd.xlane.f32.xlu1 %v1690_v35  ;;  %v11250_v35 = vrot.slane %v1405_v22, %v10931_v40 }
 0x449   : > { %v11253_v37 = vrot.slane %v1405_v22, %v10933_v43 }
 0x44a   : > { %v11165_v54 = vsub.f32 %v1609_v63, %v1642_v50  ;;  %v11169_v0 = vsub.f32 %v1610_v8, %v1642_v50  ;;  %v1671_v1 = vmul.f32 %v11157_v28, %v11157_v28  ;;  %v1672_v44 = vmul.f32 %v11161_v30, %v11161_v30 }
 0x44b   : > { %v10146_v63 = vmov 0.0  }
 0x44c   : > { %v1693_v52 = vadd.f32 %v1672_v44, %v1671_v1  ;;  %v1673_v48 = vmul.f32 %v11165_v54, %v11165_v54  ;;  %v1674_v57 = vmul.f32 %v11169_v0, %v11169_v0  ;;  %1809 = vst [vmem:[#allocation3] sm:$0xff] %v10146_v63  ;;  %1810 = vst [vmem:[#allocation3 + $0x8] sm:$0xff] %v10146_v63 }
 0x44d   : > { %1811 = vst [vmem:[#allocation3 + $0x10] sm:$0xff] %v10146_v63  ;;  %1812 = vst [vmem:[#allocation3 + $0x18] sm:$0xff] %v10146_v63 }
 0x44e   : > { %1694 = vadd.xlane.f32.xlu0 %v1693_v52  ;;  %v1696_v53 = vadd.f32 %v1674_v57, %v1673_v48  ;;  %1813 = vst [vmem:[#allocation3 + $0x20] sm:$0xff] %v10146_v63  ;;  %1814 = vst [vmem:[#allocation3 + $0x28] sm:$0xff] %v10146_v63 }
 0x44f   : > { %1815 = vst [vmem:[#allocation3 + $0x30] sm:$0xff] %v10146_v63  ;;  %1816 = vst [vmem:[#allocation3 + $0x38] sm:$0xff] %v10146_v63 }
 0x450   : > { %1697 = vadd.xlane.f32.xlu1 %v1696_v53  ;;  %1817 = vst [vmem:[#allocation3 + $0x40] sm:$0xff] %v10146_v63  ;;  %1818 = vst [vmem:[#allocation3 + $0x48] sm:$0xff] %v10146_v63 }
 0x451   : > { %1819 = vst [vmem:[#allocation3 + $0x50] sm:$0xff] %v10146_v63  ;;  %1820 = vst [vmem:[#allocation3 + $0x58] sm:$0xff] %v10146_v63 }
 0x452   : > { %1821 = vst [vmem:[#allocation3 + $0x60] sm:$0xff] %v10146_v63  ;;  %1822 = vst [vmem:[#allocation3 + $0x68] sm:$0xff] %v10146_v63 }
 0x453   : > { %1823 = vst [vmem:[#allocation3 + $0x70] sm:$0xff] %v10146_v63  ;;  %1824 = vst [vmem:[#allocation3 + $0x78] sm:$0xff] %v10146_v63 }
 0x454   : > { %1825 = vst [vmem:[#allocation3 + $0x80] sm:$0xff] %v10146_v63  ;;  %1826 = vst [vmem:[#allocation3 + $0x88] sm:$0xff] %v10146_v63 }
 0x455   : > { %1827 = vst [vmem:[#allocation3 + $0x90] sm:$0xff] %v10146_v63  ;;  %1828 = vst [vmem:[#allocation3 + $0x98] sm:$0xff] %v10146_v63 }
 0x456   : > { %1829 = vst [vmem:[#allocation3 + $0xa0] sm:$0xff] %v10146_v63  ;;  %1830 = vst [vmem:[#allocation3 + $0xa8] sm:$0xff] %v10146_v63 }
 0x457   : > { %1831 = vst [vmem:[#allocation3 + $0xb0] sm:$0xff] %v10146_v63  ;;  %1832 = vst [vmem:[#allocation3 + $0xb8] sm:$0xff] %v10146_v63 }
 0x458   : > { %1833 = vst [vmem:[#allocation3 + $0xc0] sm:$0xff] %v10146_v63  ;;  %1834 = vst [vmem:[#allocation3 + $0xc8] sm:$0xff] %v10146_v63 }
 0x459   : > { %1835 = vst [vmem:[#allocation3 + $0xd0] sm:$0xff] %v10146_v63  ;;  %1836 = vst [vmem:[#allocation3 + $0xd8] sm:$0xff] %v10146_v63 }
 0x45a   : > { %1837 = vst [vmem:[#allocation3 + $0xe0] sm:$0xff] %v10146_v63  ;;  %1838 = vst [vmem:[#allocation3 + $0xe8] sm:$0xff] %v10146_v63 }
 0x45b   : > { %1839 = vst [vmem:[#allocation3 + $0xf0] sm:$0xff] %v10146_v63  ;;  %1840 = vst [vmem:[#allocation3 + $0xf8] sm:$0xff] %v10146_v63 }
 0x45c   : > { %1841 = vst [vmem:[#allocation3 + $0x100] sm:$0xff] %v10146_v63  ;;  %1842 = vst [vmem:[#allocation3 + $0x108] sm:$0xff] %v10146_v63 }
 0x45d   : > { %1843 = vst [vmem:[#allocation3 + $0x110] sm:$0xff] %v10146_v63  ;;  %1844 = vst [vmem:[#allocation3 + $0x118] sm:$0xff] %v10146_v63 }
 0x45e   : > { %1845 = vst [vmem:[#allocation3 + $0x120] sm:$0xff] %v10146_v63  ;;  %1846 = vst [vmem:[#allocation3 + $0x128] sm:$0xff] %v10146_v63 }
 0x45f   : > { %1847 = vst [vmem:[#allocation3 + $0x130] sm:$0xff] %v10146_v63  ;;  %1848 = vst [vmem:[#allocation3 + $0x138] sm:$0xff] %v10146_v63 }
 0x460   : > { %1849 = vst [vmem:[#allocation3 + $0x140] sm:$0xff] %v10146_v63  ;;  %1850 = vst [vmem:[#allocation3 + $0x148] sm:$0xff] %v10146_v63 }
 0x461   : > { %1851 = vst [vmem:[#allocation3 + $0x150] sm:$0xff] %v10146_v63  ;;  %1852 = vst [vmem:[#allocation3 + $0x158] sm:$0xff] %v10146_v63 }
 0x462   : > { %1853 = vst [vmem:[#allocation3 + $0x160] sm:$0xff] %v10146_v63  ;;  %1854 = vst [vmem:[#allocation3 + $0x168] sm:$0xff] %v10146_v63 }
 0x463   : > { %1855 = vst [vmem:[#allocation3 + $0x170] sm:$0xff] %v10146_v63  ;;  %1856 = vst [vmem:[#allocation3 + $0x178] sm:$0xff] %v10146_v63 }
 0x464   : > { %1857 = vst [vmem:[#allocation3 + $0x180] sm:$0xff] %v10146_v63  ;;  %1858 = vst [vmem:[#allocation3 + $0x188] sm:$0xff] %v10146_v63 }
 0x465   : > { %1859 = vst [vmem:[#allocation3 + $0x190] sm:$0xff] %v10146_v63  ;;  %1860 = vst [vmem:[#allocation3 + $0x198] sm:$0xff] %v10146_v63 }
 0x466   : > { %1861 = vst [vmem:[#allocation3 + $0x1a0] sm:$0xff] %v10146_v63  ;;  %1862 = vst [vmem:[#allocation3 + $0x1a8] sm:$0xff] %v10146_v63 }
 0x467   : > { %1863 = vst [vmem:[#allocation3 + $0x1b0] sm:$0xff] %v10146_v63  ;;  %1864 = vst [vmem:[#allocation3 + $0x1b8] sm:$0xff] %v10146_v63 }
 0x468   : > { %1865 = vst [vmem:[#allocation3 + $0x1c0] sm:$0xff] %v10146_v63  ;;  %1866 = vst [vmem:[#allocation3 + $0x1c8] sm:$0xff] %v10146_v63 }
 0x469   : > { %1867 = vst [vmem:[#allocation3 + $0x1d0] sm:$0xff] %v10146_v63  ;;  %1868 = vst [vmem:[#allocation3 + $0x1d8] sm:$0xff] %v10146_v63 }
 0x46a   : > { %1869 = vst [vmem:[#allocation3 + $0x1e0] sm:$0xff] %v10146_v63  ;;  %1870 = vst [vmem:[#allocation3 + $0x1e8] sm:$0xff] %v10146_v63 }
 0x46b   : > { %1871 = vst [vmem:[#allocation3 + $0x1f0] sm:$0xff] %v10146_v63  ;;  %1872 = vst [vmem:[#allocation3 + $0x1f8] sm:$0xff] %v10146_v63  ;;  %v11256_v63 = vrot.slane %v1406_v34, %v10931_v40 }
 0x4c4   : > { %v1332_v61 = vpop.xlane.xlu0 %1331 }
 0x4c5   : > { %v1336_v8 = vmul.f32 0.00390625, %v1332_v61 }
 0x4c7   : > { %v1338_v33 = vadd.f32 1e-05, %v1336_v8  ;;  %v1335_v60 = vpop.xlane.xlu1 %1334 }
 0x4c8   : > { %v1337_v4 = vmul.f32 0.00390625, %v1335_v60  ;;  %v1677_v2 = vpop.xlane.xlu0 %1676 }
 0x4c9   : > { %9190 = vrsqrt.f32 %v1338_v33  ;;  %v1699_v62 = vmul.f32 0.00390625, %v1677_v2 }
 0x4ca   : > { %v1339_v5 = vadd.f32 1e-05, %v1337_v4 }
 0x4cb   : > { %v1707_v3 = vadd.f32 1e-05, %v1699_v62  ;;  %v1680_v6 = vpop.xlane.xlu1 %1679 }
 0x4cc   : > { %9192 = vrsqrt.f32 %v1339_v5  ;;  %v1700_v41 = vmul.f32 0.00390625, %v1680_v6  ;;  %v1683_v42 = vpop.xlane.xlu0 %1682 }
 0x4cd   : > { %9194 = vrsqrt.f32 %v1707_v3  ;;  %v1701_v46 = vmul.f32 0.00390625, %v1683_v42 }
 0x4ce   : > { %v1708_v12 = vadd.f32 1e-05, %v1700_v41 }
 0x4cf   : > { %v1709_v17 = vadd.f32 1e-05, %v1701_v46  ;;  %v1686_v20 = vpop.xlane.xlu1 %1685 }
 0x4d0   : > { %9196 = vrsqrt.f32 %v1708_v12  ;;  %v1702_v18 = vmul.f32 0.00390625, %v1686_v20 }
 0x4d1   : > { %9198 = vrsqrt.f32 %v1709_v17 }
 0x4d2   : > { %v1710_v11 = vadd.f32 1e-05, %v1702_v18 }
 0x4d3   : > { %v9191_v47 = vpop.eup %9190  ;;  %v1689_v29 = vpop.xlane.xlu0 %1688 }
 0x4d4   : > { %v1342_v32 = vmul.f32 %v9191_v47, %v11061_v15  ;;  %v1343_v36 = vmul.f32 %v9191_v47, %v11065_v16  ;;  %9200 = vrsqrt.f32 %v1710_v11  ;;  %v1703_v26 = vmul.f32 0.00390625, %v1689_v29 }
 0x4d5   : > { %v1692_v50 = vpop.xlane.xlu1 %1691  ;;  %v11259_v15 = vrot.slane %v1406_v34, %v10933_v43 }
 0x4d6   : > { %v9193_v1 = vpop.eup %9192  ;;  %v1357_v44 = vmul.f32 %v1350_v21, %v1342_v32  ;;  %v1358_v52 = vmul.f32 %v1354_v23, %v1343_v36  ;;  %v1711_v48 = vadd.f32 1e-05, %v1703_v26  ;;  %v1704_v57 = vmul.f32 0.00390625, %v1692_v50 }
 0x4d7   : > { %v9195_v53 = vpop.eup %9194  ;;  %v1344_v16 = vmul.f32 %v9193_v1, %v11089_v55  ;;  %v1345_v61 = vmul.f32 %v9193_v1, %v11093_v59 }
 0x4d8   : > { %v1372_v8 = vadd.f32 %v1365_v27, %v1357_v44  ;;  %v1373_v33 = vadd.f32 %v1369_v31, %v1358_v52  ;;  %v1723_v60 = vmul.f32 %v9195_v53, %v11069_v19  ;;  %v1724_v4 = vmul.f32 %v9195_v53, %v11073_v24 }
 0x4d9   : > { %v1359_v2 = vmul.f32 %v1350_v21, %v1344_v16  ;;  %v1360_v62 = vmul.f32 %v1354_v23, %v1345_v61  ;;  %9202 = vrsqrt.f32 %v1711_v48  ;;  %v1712_v5 = vadd.f32 1e-05, %v1704_v57 }
 0x4da   : > { %v9197_v3 = vpop.eup %9196  ;;  %1376 = vst [vmem:[#allocation2] sm:$0xff] %v1372_v8  ;;  %1377 = vst [vmem:[#allocation2 + $0x8] sm:$0xff] %v1373_v33  ;;  %v1750_v40 = vmul.f32 %v11250_v35, %v1723_v60  ;;  %v1751_v43 = vmul.f32 %v11253_v37, %v1724_v4 }
 0x4db   : > { %v9199_v55 = vpop.eup %9198  ;;  %v1374_v6 = vadd.f32 %v1365_v27, %v1359_v2  ;;  %v1375_v59 = vadd.f32 %v1369_v31, %v1360_v62  ;;  %v1725_v41 = vmul.f32 %v9197_v3, %v11081_v58  ;;  %v1726_v19 = vmul.f32 %v9197_v3, %v11085_v51  ;;  %v1695_v42 = vpop.xlane.xlu0 %1694 }
 0x4dc   : > { %v1777_v24 = vadd.f32 %v11256_v63, %v1750_v40  ;;  %v1778_v46 = vadd.f32 %v11259_v15, %v1751_v43  ;;  %v1727_v12 = vmul.f32 %v9199_v55, %v11109_v7  ;;  %v1728_v14 = vmul.f32 %v9199_v55, %v11113_v39 }
 0x4dd   : > { %1378 = vst [vmem:[#allocation2 + $0x10] sm:$0xff] %v1374_v6  ;;  %1379 = vst [vmem:[#allocation2 + $0x18] sm:$0xff] %v1375_v59  ;;  %v1752_v17 = vmul.f32 %v11250_v35, %v1725_v41  ;;  %v1753_v20 = vmul.f32 %v11253_v37, %v1726_v19  ;;  %9204 = vrsqrt.f32 %v1712_v5  ;;  %v1705_v9 = vmul.f32 0.00390625, %v1695_v42  ;;  %v1698_v58 = vpop.xlane.xlu1 %1697 }
 0x4de   : > { %v9201_v18 = vpop.eup %9200  ;;  %1793 = vst [vmem:[#allocation4] sm:$0xff] %v1777_v24  ;;  %1794 = vst [vmem:[#allocation4 + $0x8] sm:$0xff] %v1778_v46  ;;  %v1754_v51 = vmul.f32 %v11250_v35, %v1727_v12  ;;  %v1755_v22 = vmul.f32 %v11253_v37, %v1728_v14  ;;  %v1706_v21 = vmul.f32 0.00390625, %v1698_v58 }
 0x4df   : > { %v1779_v7 = vadd.f32 %v11256_v63, %v1752_v17  ;;  %v1780_v39 = vadd.f32 %v11259_v15, %v1753_v20  ;;  %v1729_v23 = vmul.f32 %v9201_v18, %v11117_v49  ;;  %v1730_v11 = vmul.f32 %v9201_v18, %v11121_v56 }
 0x4e0   : > { %v1781_v47 = vadd.f32 %v11256_v63, %v1754_v51  ;;  %v1782_v27 = vadd.f32 %v11259_v15, %v1755_v22  ;;  %v1713_v31 = vadd.f32 1e-05, %v1705_v9  ;;  %v1714_v29 = vadd.f32 1e-05, %v1706_v21 }
 0x4e1   : > { %1795 = vst [vmem:[#allocation4 + $0x10] sm:$0xff] %v1779_v7  ;;  %1796 = vst [vmem:[#allocation4 + $0x18] sm:$0xff] %v1780_v39  ;;  %v1756_v34 = vmul.f32 %v11250_v35, %v1729_v23  ;;  %v1757_v32 = vmul.f32 %v11253_v37, %v1730_v11 }
 0x4e2   : > { %1797 = vst [vmem:[#allocation4 + $0x20] sm:$0xff] %v1781_v47  ;;  %1798 = vst [vmem:[#allocation4 + $0x28] sm:$0xff] %v1782_v27  ;;  %9206 = vrsqrt.f32 %v1713_v31 }
 0x4e3   : > { %v9203_v36 = vpop.eup %9202  ;;  %v1783_v49 = vadd.f32 %v11256_v63, %v1756_v34  ;;  %v1784_v56 = vadd.f32 %v11259_v15, %v1757_v32  ;;  %9208 = vrsqrt.f32 %v1714_v29 }
 0x4e4   : > { %v1731_v26 = vmul.f32 %v9203_v36, %v11133_v45  ;;  %v1732_v50 = vmul.f32 %v9203_v36, %v11137_v10 }
 0x4e5   : > { %1799 = vst [vmem:[#allocation4 + $0x30] sm:$0xff] %v1783_v49  ;;  %1800 = vst [vmem:[#allocation4 + $0x38] sm:$0xff] %v1784_v56 }
 0x4e6   : > { %v1758_v1 = vmul.f32 %v11250_v35, %v1731_v26  ;;  %v1759_v44 = vmul.f32 %v11253_v37, %v1732_v50 }
 0x4e7   : > { %v9205_v52 = vpop.eup %9204 }
 0x4e8   : > { %v1785_v48 = vadd.f32 %v11256_v63, %v1758_v1  ;;  %v1786_v57 = vadd.f32 %v11259_v15, %v1759_v44  ;;  %v1733_v53 = vmul.f32 %v9205_v52, %v11141_v13  ;;  %v1734_v16 = vmul.f32 %v9205_v52, %v11145_v25 }
 0x4ea   : > { %1801 = vst [vmem:[#allocation4 + $0x40] sm:$0xff] %v1785_v48  ;;  %1802 = vst [vmem:[#allocation4 + $0x48] sm:$0xff] %v1786_v57  ;;  %v1760_v45 = vmul.f32 %v11250_v35, %v1733_v53  ;;  %v1761_v10 = vmul.f32 %v11253_v37, %v1734_v16 }
 0x4ec   : > { %v9207_v61 = vpop.eup %9206  ;;  %v1787_v8 = vadd.f32 %v11256_v63, %v1760_v45  ;;  %v1788_v33 = vadd.f32 %v11259_v15, %v1761_v10 }
 0x4ed   : > { %v9209_v60 = vpop.eup %9208  ;;  %v1735_v4 = vmul.f32 %v9207_v61, %v11157_v28  ;;  %v1736_v2 = vmul.f32 %v9207_v61, %v11161_v30 }
 0x4ee   : > { %1803 = vst [vmem:[#allocation4 + $0x50] sm:$0xff] %v1787_v8  ;;  %1804 = vst [vmem:[#allocation4 + $0x58] sm:$0xff] %v1788_v33  ;;  %v1737_v13 = vmul.f32 %v9209_v60, %v11165_v54  ;;  %v1738_v25 = vmul.f32 %v9209_v60, %v11169_v0 }
 0x4ef   : > { %v1762_v62 = vmul.f32 %v11250_v35, %v1735_v4  ;;  %v1763_v5 = vmul.f32 %v11253_v37, %v1736_v2 }
 0x4f0   : > { %v1764_v3 = vmul.f32 %v11250_v35, %v1737_v13  ;;  %v1765_v40 = vmul.f32 %v11253_v37, %v1738_v25 }
 0x4f1   : > { %v1789_v43 = vadd.f32 %v11256_v63, %v1762_v62  ;;  %v1790_v28 = vadd.f32 %v11259_v15, %v1763_v5 }
 0x4f2   : > { %v1791_v30 = vadd.f32 %v11256_v63, %v1764_v3  ;;  %v1792_v55 = vadd.f32 %v11259_v15, %v1765_v40 }
 0x4f3   : > { %1805 = vst [vmem:[#allocation4 + $0x60] sm:$0xff] %v1789_v43  ;;  %1806 = vst [vmem:[#allocation4 + $0x68] sm:$0xff] %v1790_v28 }
 0x4f4   : > { %1807 = vst [vmem:[#allocation4 + $0x70] sm:$0xff] %v1791_v30  ;;  %1808 = vst [vmem:[#allocation4 + $0x78] sm:$0xff] %v1792_v55 }
 0x4f5 LB: >> { %s1879_s25 = sld [smem:[#allocation6 + %s10115_s2]]  ;;  %s1889_s8 = sshra.s32 %s10115_s2, 3  ;;  %vm1901_vm0 = vcmp.lt.s32.totalorder %v1170_v38, 256  ;;  %s10115_s2 = sphi %s10113_s2, %s1878_s2  }
 0x4f6   : >> { %s1892_s12 = sand.u32 7, %s10115_s2  ;;  %s8819_s21 = sshll.u32 %s1889_s8, 4 }
 0x4f7   : >> { %s1895_s29 = sadd.s32 %s8819_s21, %s1892_s12  ;;  %s1878_s2 = sadd.s32 1, %s10115_s2  }
 0x4f8   : >> { %s1896_s22 = scalar_lea.vmem [#allocation4], %s1895_s29  ;;  %p1875_p0 = scmp.ge.s32.totalorder %s1878_s2, 64  }
 0x4fb   : >> { %s1880_s1 = sshra.s32 %s1879_s25, 3  ;;  %s1883_s26 = sand.u32 7, %s1879_s25  ;;  %v1897_v54 = vld [vmem:[%s1896_s22] ss:$8 sm:$0x3] }
 0x4fc   : >> { %s8818_s28 = sshll.u32 %s1880_s1, 4  ;;  %1877 = sbr.rel (!%p1875_p0) target bundleno = 1269 (0x4f5), region = 294 }
 0x4fd   : >> { %s1886_s15 = sadd.s32 %s8818_s28, %s1883_s26 }
 0x4fe   : >> { %s1887_s0 = scalar_lea.vmem [#allocation3], %s1886_s15 }
 0x4ff   : >> { %v1888_v0 = vld [vmem:[%s1887_s0] ss:$8 sm:$0x3] }
 0x500   : >> { %v1898_v35 = vadd.f32 %v1897_v54, %v1888_v0 }
 0x502   : >> { %1903 = vst.msk [vmem:[%s1887_s0] ss:$8 sm:$0x3] %vm1901_vm0, %v1898_v35 }
 0x503 PF: > { %v1911_v37 = vld [vmem:[%s10871_s9] sm:$0xff]  ;;  %v1912_v15 = vld [vmem:[%s10871_s9 + $0x8] sm:$0xff]  ;;  %vm10148_vm1 = vmmov 0   ;;  %vm3596_vm2 = vcmask 523264   ;;  %vm3736_vm3 = vcmask 130112   ;;  %vm3873_vm4 = vcmask 1041409  }
 0x504   : > { %v1915_v63 = vld [vmem:[%s10871_s9 + $0x20] sm:$0xff]  ;;  %v1916_v59 = vld [vmem:[%s10871_s9 + $0x28] sm:$0xff]  ;;  %vm3875_vm5 = vcmask 1042434   ;;  %vm3877_vm6 = vcmask 1043459   ;;  %vm3879_vm7 = vcmask 1044484   ;;  %vm3881_vm8 = vcmask 1045509  }
 0x505   : > { %v8557_v6 = vcombine.high %v1911_v37, %v1915_v63  ;;  %v8556_v41 = vcombine.low %v1911_v37, %v1915_v63  ;;  %v1919_v19 = vld [vmem:[%s10871_s9 + $0x40] sm:$0xff]  ;;  %v8559_v42 = vcombine.high %v1912_v15, %v1916_v59  ;;  %v8558_v24 = vcombine.low %v1912_v15, %v1916_v59  ;;  %v1920_v12 = vld [vmem:[%s10871_s9 + $0x48] sm:$0xff]  ;;  %s13924_s0 = sld [smem:[#allocation170_spill]]  ;;  %s10150_s2 = smov 64  }
 0x506   : > { %v1923_v38 = vld [vmem:[%s10871_s9 + $0x60] sm:$0xff]  ;;  %v1924_v14 = vld [vmem:[%s10871_s9 + $0x68] sm:$0xff]  ;;  %vm3883_vm9 = vcmask 1046534   ;;  %vm3885_vm10 = vcmask 1047559   ;;  %vm3947_vm11 = vcmask 130048   ;;  %s14113_s29 = scalar_lea.vmem [#allocation26], %s10877_s13 }
 0x507   : > { %v8565_v46 = vcombine.high %v1919_v19, %v1923_v38  ;;  %v1927_v17 = vld [vmem:[%s10871_s9 + $0x80] sm:$0xff]  ;;  %2721 = vmatprep.subr.bf16.mxu0 %v8557_v6  ;;  %v8567_v20 = vcombine.high %v1920_v12, %v1924_v14  ;;  %v1928_v58 = vld [vmem:[%s10871_s9 + $0x88] sm:$0xff]  ;;  %2764 = vmatprep.subr.bf16.mxu1 %v8559_v42  ;;  %v8564_v51 = vcombine.low %v1919_v19, %v1923_v38 }
 0x508   : > { %v1931_v9 = vld [vmem:[%s10871_s9 + $0xa0] sm:$0xff]  ;;  %v1932_v18 = vld [vmem:[%s10871_s9 + $0xa8] sm:$0xff]  ;;  %2722 = vmatpush1.bf16.msra.mxu0 %v8556_v41  ;;  %2765 = vmatpush1.bf16.msra.mxu1 %v8558_v24  ;;  %v8566_v22 = vcombine.low %v1920_v12, %v1924_v14 }
 0x509   : > { %2723 = vmatprep.subr.bf16.mxu0 %v8565_v46  ;;  %v8573_v21 = vcombine.high %v1927_v17, %v1931_v9  ;;  %2766 = vmatprep.subr.bf16.mxu1 %v8567_v20  ;;  %v8575_v7 = vcombine.high %v1928_v58, %v1932_v18  ;;  %v1935_v39 = vld [vmem:[%s10871_s9 + $0xc0] sm:$0xff]  ;;  %v1936_v11 = vld [vmem:[%s10871_s9 + $0xc8] sm:$0xff]  ;;  %v8572_v27 = vcombine.low %v1927_v17, %v1931_v9 }
 0x50a   : > { %v1939_v23 = vld [vmem:[%s10871_s9 + $0xe0] sm:$0xff]  ;;  %v1940_v47 = vld [vmem:[%s10871_s9 + $0xe8] sm:$0xff]  ;;  %v8574_v31 = vcombine.low %v1928_v58, %v1932_v18 }
 0x50b   : > { %v8581_v29 = vcombine.high %v1935_v39, %v1939_v23  ;;  %v8583_v34 = vcombine.high %v1936_v11, %v1940_v47  ;;  %v1943_v32 = vld [vmem:[%s10871_s9 + $0x100] sm:$0xff]  ;;  %v1944_v49 = vld [vmem:[%s10871_s9 + $0x108] sm:$0xff]  ;;  %v8580_v26 = vcombine.low %v1935_v39, %v1939_v23  ;;  %v8582_v50 = vcombine.low %v1936_v11, %v1940_v47 }
 0x50c   : > { %2724 = vmatpush1.bf16.msra.mxu0 %v8564_v51  ;;  %2767 = vmatpush1.bf16.msra.mxu1 %v8566_v22  ;;  %v1947_v36 = vld [vmem:[%s10871_s9 + $0x120] sm:$0xff]  ;;  %v1948_v56 = vld [vmem:[%s10871_s9 + $0x128] sm:$0xff] }
 0x50d   : > { %2725 = vmatprep.subr.bf16.mxu0 %v8573_v21  ;;  %2768 = vmatprep.subr.bf16.mxu1 %v8575_v7  ;;  %v8589_v1 = vcombine.high %v1943_v32, %v1947_v36  ;;  %v8591_v44 = vcombine.high %v1944_v49, %v1948_v56  ;;  %v1951_v52 = vld [vmem:[%s10871_s9 + $0x140] sm:$0xff]  ;;  %v1952_v57 = vld [vmem:[%s10871_s9 + $0x148] sm:$0xff]  ;;  %v8588_v16 = vcombine.low %v1943_v32, %v1947_v36 }
 0x50e   : > { %v1955_v48 = vld [vmem:[%s10871_s9 + $0x160] sm:$0xff]  ;;  %v1956_v53 = vld [vmem:[%s10871_s9 + $0x168] sm:$0xff]  ;;  %v8590_v45 = vcombine.low %v1944_v49, %v1948_v56 }
 0x50f   : > { %v8597_v10 = vcombine.high %v1951_v52, %v1955_v48  ;;  %v8599_v61 = vcombine.high %v1952_v57, %v1956_v53  ;;  %v1959_v8 = vld [vmem:[%s10871_s9 + $0x180] sm:$0xff]  ;;  %v1960_v60 = vld [vmem:[%s10871_s9 + $0x188] sm:$0xff]  ;;  %v8596_v2 = vcombine.low %v1951_v52, %v1955_v48  ;;  %v8598_v13 = vcombine.low %v1952_v57, %v1956_v53 }
 0x510   : > { %2726 = vmatpush1.bf16.msra.mxu0 %v8572_v27  ;;  %2769 = vmatpush1.bf16.msra.mxu1 %v8574_v31  ;;  %v1963_v33 = vld [vmem:[%s10871_s9 + $0x1a0] sm:$0xff]  ;;  %v1964_v4 = vld [vmem:[%s10871_s9 + $0x1a8] sm:$0xff] }
 0x511   : > { %2727 = vmatprep.subr.bf16.mxu0 %v8581_v29  ;;  %2770 = vmatprep.subr.bf16.mxu1 %v8583_v34  ;;  %v8605_v25 = vcombine.high %v1959_v8, %v1963_v33  ;;  %v1906_v62 = vld [vmem:[#allocation2 + $0x8] sm:$0xff]  ;;  %v1908_v5 = vld [vmem:[#allocation2 + $0x18] sm:$0xff]  ;;  %v8607_v3 = vcombine.high %v1960_v60, %v1964_v4  ;;  %v8604_v54 = vcombine.low %v1959_v8, %v1963_v33 }
 0x512   : > { %v1967_v40 = vld [vmem:[%s10871_s9 + $0x1c0] sm:$0xff]  ;;  %v11342_v28 = vpack.c.bf16 %v1908_v5, %v1906_v62  ;;  %v1968_v30 = vld [vmem:[%s10871_s9 + $0x1c8] sm:$0xff]  ;;  %v8606_v0 = vcombine.low %v1960_v60, %v1964_v4 }
 0x513   : > { %v1971_v43 = vld [vmem:[%s10871_s9 + $0x1e0] sm:$0xff]  ;;  %v1972_v55 = vld [vmem:[%s10871_s9 + $0x1e8] sm:$0xff] }
 0x514   : > { %2728 = vmatpush1.bf16.msra.mxu0 %v8580_v26  ;;  %2771 = vmatpush1.bf16.msra.mxu1 %v8582_v50  ;;  %v8613_v35 = vcombine.high %v1967_v40, %v1971_v43  ;;  %v8615_v37 = vcombine.high %v1968_v30, %v1972_v55  ;;  %v1975_v63 = vld [vmem:[%s10871_s9 + $0x200] sm:$0xff]  ;;  %v1976_v6 = vld [vmem:[%s10871_s9 + $0x208] sm:$0xff]  ;;  %v8612_v41 = vcombine.low %v1967_v40, %v1971_v43 }
 0x515   : > { %2729 = vmatprep.subr.bf16.mxu0 %v8589_v1  ;;  %2772 = vmatprep.subr.bf16.mxu1 %v8591_v44  ;;  %v1979_v15 = vld [vmem:[%s10871_s9 + $0x220] sm:$0xff]  ;;  %v1980_v59 = vld [vmem:[%s10871_s9 + $0x228] sm:$0xff]  ;;  %v8614_v19 = vcombine.low %v1968_v30, %v1972_v55 }
 0x516   : > { %2753 = vmatprep.mubr.bf16.mxu0 %v11342_v28  ;;  %2796 = vmatprep.mubr.bf16.mxu1 %v11342_v28  ;;  %v8621_v38 = vcombine.high %v1975_v63, %v1979_v15  ;;  %v8623_v42 = vcombine.high %v1976_v6, %v1980_v59  ;;  %v1983_v24 = vld [vmem:[%s10871_s9 + $0x240] sm:$0xff]  ;;  %v1984_v12 = vld [vmem:[%s10871_s9 + $0x248] sm:$0xff]  ;;  %v8620_v17 = vcombine.low %v1975_v63, %v1979_v15 }
 0x517   : > { %v1987_v46 = vld [vmem:[%s10871_s9 + $0x260] sm:$0xff]  ;;  %v1988_v14 = vld [vmem:[%s10871_s9 + $0x268] sm:$0xff]  ;;  %v8622_v20 = vcombine.low %v1976_v6, %v1980_v59  ;;  %v1905_v59 = vld [vmem:[#allocation2] sm:$0xff] }
 0x518   : > { %2730 = vmatpush1.bf16.msra.mxu0 %v8588_v16  ;;  %2773 = vmatpush1.bf16.msra.mxu1 %v8590_v45  ;;  %v8629_v9 = vcombine.high %v1983_v24, %v1987_v46  ;;  %v8631_v58 = vcombine.high %v1984_v12, %v1988_v14  ;;  %v1991_v18 = vld [vmem:[%s10871_s9 + $0x280] sm:$0xff]  ;;  %v1992_v22 = vld [vmem:[%s10871_s9 + $0x288] sm:$0xff]  ;;  %v8628_v7 = vcombine.low %v1983_v24, %v1987_v46 }
 0x519   : > { %2731 = vmatprep.subr.bf16.mxu0 %v8597_v10  ;;  %2774 = vmatprep.subr.bf16.mxu1 %v8599_v61  ;;  %v1995_v51 = vld [vmem:[%s10871_s9 + $0x2a0] sm:$0xff]  ;;  %v1996_v21 = vld [vmem:[%s10871_s9 + $0x2a8] sm:$0xff]  ;;  %v8630_v39 = vcombine.low %v1984_v12, %v1988_v14 }
 0x51a   : > { %v8637_v23 = vcombine.high %v1991_v18, %v1995_v51  ;;  %v8639_v11 = vcombine.high %v1992_v22, %v1996_v21  ;;  %v1999_v47 = vld [vmem:[%s10871_s9 + $0x2c0] sm:$0xff]  ;;  %v2000_v31 = vld [vmem:[%s10871_s9 + $0x2c8] sm:$0xff]  ;;  %v8636_v34 = vcombine.low %v1991_v18, %v1995_v51  ;;  %v8638_v32 = vcombine.low %v1992_v22, %v1996_v21  ;;  %v1937_v51 = vld [vmem:[%s10871_s9 + $0xd0] sm:$0xff] }
 0x51b   : > { %v2003_v27 = vld [vmem:[%s10871_s9 + $0x2e0] sm:$0xff]  ;;  %v2004_v29 = vld [vmem:[%s10871_s9 + $0x2e8] sm:$0xff]  ;;  %v1941_v22 = vld [vmem:[%s10871_s9 + $0xf0] sm:$0xff] }
 0x51c   : > { %2732 = vmatpush1.bf16.msra.mxu0 %v8596_v2  ;;  %2775 = vmatpush1.bf16.msra.mxu1 %v8598_v13  ;;  %v8645_v36 = vcombine.high %v1999_v47, %v2003_v27  ;;  %v8647_v49 = vcombine.high %v2000_v31, %v2004_v29  ;;  %v2007_v56 = vld [vmem:[%s10871_s9 + $0x300] sm:$0xff]  ;;  %v2008_v50 = vld [vmem:[%s10871_s9 + $0x308] sm:$0xff]  ;;  %v8644_v44 = vcombine.low %v1999_v47, %v2003_v27  ;;  %v1953_v27 = vld [vmem:[%s10871_s9 + $0x150] sm:$0xff] }
 0x51d   : > { %2733 = vmatprep.subr.bf16.mxu0 %v8605_v25  ;;  %2776 = vmatprep.subr.bf16.mxu1 %v8607_v3  ;;  %v2011_v26 = vld [vmem:[%s10871_s9 + $0x320] sm:$0xff]  ;;  %v2012_v1 = vld [vmem:[%s10871_s9 + $0x328] sm:$0xff]  ;;  %v8646_v52 = vcombine.low %v2000_v31, %v2004_v29  ;;  %v1957_v31 = vld [vmem:[%s10871_s9 + $0x170] sm:$0xff] }
 0x51e   : > { %v8653_v48 = vcombine.high %v2007_v56, %v2011_v26  ;;  %v8655_v57 = vcombine.high %v2008_v50, %v2012_v1  ;;  %v2015_v53 = vld [vmem:[%s10871_s9 + $0x340] sm:$0xff]  ;;  %v2016_v45 = vld [vmem:[%s10871_s9 + $0x348] sm:$0xff]  ;;  %v8652_v61 = vcombine.low %v2007_v56, %v2011_v26  ;;  %v8654_v33 = vcombine.low %v2008_v50, %v2012_v1 }
 0x51f   : > { %v2019_v16 = vld [vmem:[%s10871_s9 + $0x360] sm:$0xff]  ;;  %v2020_v10 = vld [vmem:[%s10871_s9 + $0x368] sm:$0xff]  ;;  %v8601_v29 = vcombine.high %v1953_v27, %v1957_v31  ;;  %v8600_v56 = vcombine.low %v1953_v27, %v1957_v31  ;;  %v2025_v31 = vld [vmem:[%s10871_s9 + $0x390] sm:$0xff] }
 0x520   : > { %2734 = vmatpush1.bf16.msra.mxu0 %v8604_v54  ;;  %2777 = vmatpush1.bf16.msra.mxu1 %v8606_v0  ;;  %v2023_v8 = vld [vmem:[%s10871_s9 + $0x380] sm:$0xff]  ;;  %v8661_v60 = vcombine.high %v2015_v53, %v2019_v16  ;;  %v8663_v2 = vcombine.high %v2016_v45, %v2020_v10  ;;  %v2024_v13 = vld [vmem:[%s10871_s9 + $0x388] sm:$0xff]  ;;  %v8660_v62 = vcombine.low %v2015_v53, %v2019_v16  ;;  %v1977_v53 = vld [vmem:[%s10871_s9 + $0x210] sm:$0xff] }
 0x521   : > { %2735 = vmatprep.subr.bf16.mxu0 %v8613_v35  ;;  %2778 = vmatprep.subr.bf16.mxu1 %v8615_v37  ;;  %v2027_v4 = vld [vmem:[%s10871_s9 + $0x3a0] sm:$0xff]  ;;  %v2028_v25 = vld [vmem:[%s10871_s9 + $0x3a8] sm:$0xff]  ;;  %v8662_v40 = vcombine.low %v2016_v45, %v2020_v10  ;;  %v1913_v35 = vld [vmem:[%s10871_s9 + $0x10] sm:$0xff] }
 0x522   : > { %v2031_v5 = vld [vmem:[%s10871_s9 + $0x3c0] sm:$0xff]  ;;  %v8669_v43 = vcombine.high %v2023_v8, %v2027_v4  ;;  %v2032_v30 = vld [vmem:[%s10871_s9 + $0x3c8] sm:$0xff]  ;;  %v8671_v54 = vcombine.high %v2024_v13, %v2028_v25  ;;  %v8668_v0 = vcombine.low %v2023_v8, %v2027_v4  ;;  %v1917_v37 = vld [vmem:[%s10871_s9 + $0x30] sm:$0xff]  ;;  %v8670_v63 = vcombine.low %v2024_v13, %v2028_v25 }
 0x523   : > { %v2035_v3 = vld [vmem:[%s10871_s9 + $0x3e0] sm:$0xff]  ;;  %v2036_v55 = vld [vmem:[%s10871_s9 + $0x3e8] sm:$0xff]  ;;  %v8561_v46 = vcombine.high %v1913_v35, %v1917_v37  ;;  %v8560_v14 = vcombine.low %v1913_v35, %v1917_v37  ;;  %v1981_v16 = vld [vmem:[%s10871_s9 + $0x230] sm:$0xff] }
 0x524   : > { %2736 = vmatpush1.bf16.msra.mxu0 %v8612_v41  ;;  %2779 = vmatpush1.bf16.msra.mxu1 %v8614_v19  ;;  %v8677_v15 = vcombine.high %v2031_v5, %v2035_v3  ;;  %v8679_v6 = vcombine.high %v2032_v30, %v2036_v55  ;;  %v1907_v41 = vld [vmem:[#allocation2 + $0x10] sm:$0xff]  ;;  %v8676_v19 = vcombine.low %v2031_v5, %v2035_v3  ;;  %v1922_v45 = vld [vmem:[%s10871_s9 + $0x58] sm:$0xff]  ;;  %v1985_v25 = vld [vmem:[%s10871_s9 + $0x250] sm:$0xff] }
 0x525   : > { %2737 = vmatprep.subr.bf16.mxu0 %v8621_v38  ;;  %2780 = vmatprep.subr.bf16.mxu1 %v8623_v42  ;;  %v1921_v38 = vld [vmem:[%s10871_s9 + $0x50] sm:$0xff]  ;;  %v8678_v24 = vcombine.low %v2032_v30, %v2036_v55  ;;  %v11384_v12 = vpack.c.bf16 %v1907_v41, %v1905_v59  ;;  %v1926_v10 = vld [vmem:[%s10871_s9 + $0x78] sm:$0xff]  ;;  %v8625_v13 = vcombine.high %v1977_v53, %v1981_v16 }
 0x526   : > { %v1925_v42 = vld [vmem:[%s10871_s9 + $0x70] sm:$0xff]  ;;  %v8571_v8 = vcombine.high %v1922_v45, %v1926_v10  ;;  %v8624_v3 = vcombine.low %v1977_v53, %v1981_v16  ;;  %v1938_v55 = vld [vmem:[%s10871_s9 + $0xd8] sm:$0xff] }
 0x527   : > { %v1997_v30 = vld [vmem:[%s10871_s9 + $0x2b0] sm:$0xff]  ;;  %v1946_v37 = vld [vmem:[%s10871_s9 + $0x118] sm:$0xff] }
 0x528   : > { %2738 = vmatpush1.bf16.msra.mxu0 %v8620_v17  ;;  %2781 = vmatpush1.bf16.msra.mxu1 %v8622_v20  ;;  %v8569_v17 = vcombine.high %v1921_v38, %v1925_v42  ;;  %v1929_v20 = vld [vmem:[%s10871_s9 + $0x90] sm:$0xff]  ;;  %v1986_v16 = vld [vmem:[%s10871_s9 + $0x258] sm:$0xff] }
 0x529   : > { %2739 = vmatprep.subr.bf16.mxu0 %v8629_v9  ;;  %2782 = vmatprep.subr.bf16.mxu1 %v8631_v58  ;;  %v1933_v9 = vld [vmem:[%s10871_s9 + $0xb0] sm:$0xff]  ;;  %v8568_v58 = vcombine.low %v1921_v38, %v1925_v42 }
 0x52a   : > { %v8577_v18 = vcombine.high %v1929_v20, %v1933_v9  ;;  %v8576_v21 = vcombine.low %v1929_v20, %v1933_v9  ;;  %v2001_v41 = vld [vmem:[%s10871_s9 + $0x2d0] sm:$0xff]  ;;  %v1958_v20 = vld [vmem:[%s10871_s9 + $0x178] sm:$0xff] }
 0x52c   : > { %2740 = vmatpush1.bf16.msra.mxu0 %v8628_v7  ;;  %2783 = vmatpush1.bf16.msra.mxu1 %v8630_v39  ;;  %v8585_v7 = vcombine.high %v1937_v51, %v1941_v22  ;;  %v1945_v39 = vld [vmem:[%s10871_s9 + $0x110] sm:$0xff] }
 0x52d   : > { %2741 = vmatprep.subr.bf16.mxu0 %v8637_v23  ;;  %2784 = vmatprep.subr.bf16.mxu1 %v8639_v11  ;;  %v1949_v23 = vld [vmem:[%s10871_s9 + $0x130] sm:$0xff]  ;;  %v8584_v11 = vcombine.low %v1937_v51, %v1941_v22  ;;  %v1966_v51 = vld [vmem:[%s10871_s9 + $0x1b8] sm:$0xff] }
 0x52e   : > { %v8593_v47 = vcombine.high %v1945_v39, %v1949_v23 }
 0x530   : > { %2742 = vmatpush1.bf16.msra.mxu0 %v8636_v34  ;;  %2785 = vmatpush1.bf16.msra.mxu1 %v8638_v32  ;;  %v1961_v34 = vld [vmem:[%s10871_s9 + $0x190] sm:$0xff] }
 0x531   : > { %2743 = vmatprep.subr.bf16.mxu0 %v8645_v36  ;;  %2786 = vmatprep.subr.bf16.mxu1 %v8647_v49  ;;  %v1965_v32 = vld [vmem:[%s10871_s9 + $0x1b0] sm:$0xff]  ;;  %v1914_v36 = vld [vmem:[%s10871_s9 + $0x18] sm:$0xff] }
 0x532   : > { %v1918_v49 = vld [vmem:[%s10871_s9 + $0x38] sm:$0xff]  ;;  %v8609_v1 = vcombine.high %v1961_v34, %v1965_v32 }
 0x533   : > { %v8562_v26 = vcombine.low %v1914_v36, %v1918_v49  ;;  %v8563_v50 = vcombine.high %v1914_v36, %v1918_v49  ;;  %v1978_v49 = vld [vmem:[%s10871_s9 + $0x218] sm:$0xff] }
 0x534   : > { %2744 = vmatpush1.bf16.msra.mxu0 %v8644_v44  ;;  %2787 = vmatpush1.bf16.msra.mxu1 %v8646_v52  ;;  %v1969_v44 = vld [vmem:[%s10871_s9 + $0x1d0] sm:$0xff] }
 0x535   : > { %2745 = vmatprep.subr.bf16.mxu0 %v8653_v48  ;;  %2788 = vmatprep.subr.bf16.mxu1 %v8655_v57  ;;  %v1973_v52 = vld [vmem:[%s10871_s9 + $0x1f0] sm:$0xff]  ;;  %v8608_v48 = vcombine.low %v1961_v34, %v1965_v32  ;;  %v1974_v34 = vld [vmem:[%s10871_s9 + $0x1f8] sm:$0xff] }
 0x536   : > { %v8617_v57 = vcombine.high %v1969_v44, %v1973_v52  ;;  %v8616_v4 = vcombine.low %v1969_v44, %v1973_v52  ;;  %v2033_v44 = vld [vmem:[%s10871_s9 + $0x3d0] sm:$0xff] }
 0x537   : > { %v2037_v52 = vld [vmem:[%s10871_s9 + $0x3f0] sm:$0xff] }
 0x538   : > { %2746 = vmatpush1.bf16.msra.mxu0 %v8652_v61  ;;  %2789 = vmatpush1.bf16.msra.mxu1 %v8654_v33  ;;  %v8570_v61 = vcombine.low %v1922_v45, %v1926_v10  ;;  %v1930_v33 = vld [vmem:[%s10871_s9 + $0x98] sm:$0xff]  ;;  %v8681_v53 = vcombine.high %v2033_v44, %v2037_v52 }
 0x539   : > { %2747 = vmatprep.subr.bf16.mxu0 %v8661_v60  ;;  %2790 = vmatprep.subr.bf16.mxu1 %v8663_v2  ;;  %v1934_v60 = vld [vmem:[%s10871_s9 + $0xb8] sm:$0xff] }
 0x53a   : > { %v8579_v2 = vcombine.high %v1930_v33, %v1934_v60  ;;  %v8578_v5 = vcombine.low %v1930_v33, %v1934_v60  ;;  %v1990_v45 = vld [vmem:[%s10871_s9 + $0x278] sm:$0xff]  ;;  %v8680_v60 = vcombine.low %v2033_v44, %v2037_v52  ;;  %v9251_v44 = vld [vmem:[%s10881_s24 + $0xd4] ss:$8 sps:$4 sm:$0xff]   ;;  %v9249_v52 = vld [vmem:[%s10881_s24 + $0xd0] ss:$8 sps:$4 sm:$0xff]  }
 0x53b   : > { %v8634_v10 = vcombine.low %v1986_v16, %v1990_v45  ;;  %v1998_v33 = vld [vmem:[%s10871_s9 + $0x2b8] sm:$0xff] }
 0x53c   : > { %2748 = vmatpush1.bf16.msra.mxu0 %v8660_v62  ;;  %2791 = vmatpush1.bf16.msra.mxu1 %v8662_v40  ;;  %v1989_v62 = vld [vmem:[%s10871_s9 + $0x270] sm:$0xff] }
 0x53d   : > { %2749 = vmatprep.subr.bf16.mxu0 %v8669_v43  ;;  %2792 = vmatprep.subr.bf16.mxu1 %v8671_v54  ;;  %v8633_v40 = vcombine.high %v1985_v25, %v1989_v62  ;;  %v1993_v43 = vld [vmem:[%s10871_s9 + $0x290] sm:$0xff]  ;;  %v1942_v54 = vld [vmem:[%s10871_s9 + $0xf8] sm:$0xff] }
 0x53e   : > { %v8587_v35 = vcombine.high %v1938_v55, %v1942_v54  ;;  %v8641_v59 = vcombine.high %v1993_v43, %v1997_v30  ;;  %v8640_v42 = vcombine.low %v1993_v43, %v1997_v30  ;;  %v2002_v43 = vld [vmem:[%s10871_s9 + $0x2d8] sm:$0xff] }
 0x53f   : > { %v2006_v30 = vld [vmem:[%s10871_s9 + $0x2f8] sm:$0xff] }
 0x540   : > { %2750 = vmatpush1.bf16.msra.mxu0 %v8668_v0  ;;  %2793 = vmatpush1.bf16.msra.mxu1 %v8670_v63  ;;  %v8586_v0 = vcombine.low %v1938_v55, %v1942_v54  ;;  %v1950_v63 = vld [vmem:[%s10871_s9 + $0x138] sm:$0xff]  ;;  %v8650_v55 = vcombine.low %v2002_v43, %v2006_v30  ;;  %v8651_v54 = vcombine.high %v2002_v43, %v2006_v30  ;;  %v2908_v30 = vld [vmem:[#allocation3 + $0x78] sm:$0xff] }
 0x541   : > { %2751 = vmatprep.subr.bf16.mxu0 %v8677_v15  ;;  %2794 = vmatprep.subr.bf16.mxu1 %v8679_v6  ;;  %v8632_v15 = vcombine.low %v1985_v25, %v1989_v62  ;;  %v8595_v6 = vcombine.high %v1946_v37, %v1950_v63  ;;  %v8594_v38 = vcombine.low %v1946_v37, %v1950_v63  ;;  %v2896_v25 = vld [vmem:[#allocation3 + $0x18] sm:$0xff]  ;;  %v9213_v37 = vld [vmem:[%s10881_s24 + $0x10] ss:$8 sps:$4 sm:$0xff]  }
 0x542   : > { %v2906_v43 = vld [vmem:[#allocation3 + $0x68] sm:$0xff] }
 0x544   : > { %2752 = vmatpush1.bf16.msra.mxu0 %v8676_v19  ;;  %2795 = vmatpush1.bf16.msra.mxu1 %v8678_v24  ;;  %v2005_v19 = vld [vmem:[%s10871_s9 + $0x2f0] sm:$0xff] }
 0x545   : > { %2807 = vmatprep.subr.bf16.mxu0 %v8561_v46  ;;  %2850 = vmatprep.subr.bf16.mxu1 %v8563_v50  ;;  %v8649_v24 = vcombine.high %v2001_v41, %v2005_v19  ;;  %v2009_v46 = vld [vmem:[%s10871_s9 + $0x310] sm:$0xff]  ;;  %v8648_v22 = vcombine.low %v2001_v41, %v2005_v19  ;;  %v9221_v41 = vld [vmem:[%s10881_s24 + $0x34] ss:$8 sps:$4 sm:$0xff]   ;;  %v2018_v19 = vld [vmem:[%s10871_s9 + $0x358] sm:$0xff] }
 0x547   : > { %2754 = vmatmul.mubr.bf16.vlgmr.msra.gmra.mrb[0].mxu0 %v11384_v12  ;;  %2797 = vmatmul.mubr.bf16.vlgmr.msra.gmra.mrb[0].mxu1 %v11384_v12 }
 0x548   : > { %2808 = vmatpush1.bf16.msra.mxu0 %v8560_v14  ;;  %2839 = vmatprep.mubr.bf16.mxu0 %v11342_v28  ;;  %v2013_v14 = vld [vmem:[%s10871_s9 + $0x330] sm:$0xff] }
 0x549   : > { %2809 = vmatprep.subr.bf16.mxu0 %v8569_v17  ;;  %2882 = vmatprep.mubr.bf16.mxu1 %v11342_v28  ;;  %v8592_v28 = vcombine.low %v1945_v39, %v1949_v23  ;;  %v1954_v17 = vld [vmem:[%s10871_s9 + $0x158] sm:$0xff]  ;;  %v2017_v39 = vld [vmem:[%s10871_s9 + $0x350] sm:$0xff] }
 0x54a   : > { %2851 = vmatpush1.bf16.msra.mxu1 %v8562_v26  ;;  %v8602_v9 = vcombine.low %v1954_v17, %v1958_v20  ;;  %v2021_v23 = vld [vmem:[%s10871_s9 + $0x370] sm:$0xff] }
 0x54b   : > { %2852 = vmatprep.subr.bf16.mxu1 %v8571_v8  ;;  %v8665_v27 = vcombine.high %v2017_v39, %v2021_v23  ;;  %v8664_v26 = vcombine.low %v2017_v39, %v2021_v23  ;;  %v1994_v8 = vld [vmem:[%s10871_s9 + $0x298] sm:$0xff]  ;;  %v9225_v23 = vld [vmem:[%s10881_s24 + $0x50] ss:$8 sps:$4 sm:$0xff]  }
 0x54c   : > { %2810 = vmatpush1.bf16.msra.mxu0 %v8568_v58  ;;  %v8603_v58 = vcombine.high %v1954_v17, %v1958_v20  ;;  %v8642_v62 = vcombine.low %v1994_v8, %v1998_v33  ;;  %v9219_v17 = vld [vmem:[%s10881_s24 + $0x30] ss:$8 sps:$4 sm:$0xff]  }
 0x54d   : > { %2811 = vmatprep.subr.bf16.mxu0 %v8577_v18  ;;  %v1962_v18 = vld [vmem:[%s10871_s9 + $0x198] sm:$0xff] }
 0x54e   : > { %2853 = vmatpush1.bf16.msra.mxu1 %v8570_v61  ;;  %v8635_v61 = vcombine.high %v1986_v16, %v1990_v45  ;;  %v9255_v16 = vld [vmem:[%s10881_s24 + $0xf0] ss:$8 sps:$4 sm:$0xff]   ;;  %v2893_v45 = vld [vmem:[#allocation3] sm:$0xff] }
 0x54f   : > { %2854 = vmatprep.subr.bf16.mxu1 %v8579_v2  ;;  %v9212_v2 = vld [vmem:[%s10881_s24 + $0x4] ss:$8 sps:$4 sm:$0xff]  }
 0x550   : > { %2812 = vmatpush1.bf16.msra.mxu0 %v8576_v21  ;;  %v8611_v21 = vcombine.high %v1962_v18, %v1966_v51 }
 0x551   : > { %2813 = vmatprep.subr.bf16.mxu0 %v8585_v7  ;;  %v8657_v7 = vcombine.high %v2009_v46, %v2013_v14 }
 0x552   : > { %2855 = vmatpush1.bf16.msra.mxu1 %v8578_v5  ;;  %v9210_v5 = vld [vmem:[%s10881_s24] ss:$8 sps:$4 sm:$0xff]  }
 0x553   : > { %2856 = vmatprep.subr.bf16.mxu1 %v8587_v35  ;;  %v2014_v35 = vld [vmem:[%s10871_s9 + $0x338] sm:$0xff] }
 0x554   : > { %2814 = vmatpush1.bf16.msra.mxu0 %v8584_v11  ;;  %v8610_v11 = vcombine.low %v1962_v18, %v1966_v51  ;;  %v9222_v18 = vld [vmem:[%s10881_s24 + $0x40] ss:$8 sps:$4 sm:$0xff]   ;;  %v9227_v51 = vld [vmem:[%s10881_s24 + $0x54] ss:$8 sps:$4 sm:$0xff]  }
 0x555   : > { %2815 = vmatprep.subr.bf16.mxu0 %v8593_v47  ;;  %v8656_v47 = vcombine.low %v2009_v46, %v2013_v14  ;;  %v2026_v46 = vld [vmem:[%s10871_s9 + $0x398] sm:$0xff] }
 0x556   : > { %2857 = vmatpush1.bf16.msra.mxu1 %v8586_v0  ;;  %v2010_v0 = vld [vmem:[%s10871_s9 + $0x318] sm:$0xff] }
 0x557   : > { %2858 = vmatprep.subr.bf16.mxu1 %v8595_v6  ;;  %v8659_v63 = vcombine.high %v2010_v0, %v2014_v35  ;;  %v8658_v6 = vcombine.low %v2010_v0, %v2014_v35  ;;  %v2030_v14 = vld [vmem:[%s10871_s9 + $0x3b8] sm:$0xff]  ;;  %v2907_v35 = vld [vmem:[#allocation3 + $0x70] sm:$0xff] }
 0x558   : > { %2816 = vmatpush1.bf16.msra.mxu0 %v8592_v28  ;;  %v2029_v28 = vld [vmem:[%s10871_s9 + $0x3b0] sm:$0xff]  ;;  %v8675_v20 = vcombine.high %v2026_v46, %v2030_v14 }
 0x559   : > { %2817 = vmatprep.subr.bf16.mxu0 %v8601_v29  ;;  %v1970_v29 = vld [vmem:[%s10871_s9 + $0x1d8] sm:$0xff] }
 0x55a   : > { %2859 = vmatpush1.bf16.msra.mxu1 %v8594_v38  ;;  %v8618_v32 = vcombine.low %v1970_v29, %v1974_v34  ;;  %v8619_v36 = vcombine.high %v1970_v29, %v1974_v34  ;;  %v2022_v38 = vld [vmem:[%s10871_s9 + $0x378] sm:$0xff]  ;;  %v13525_v29 = vmov 0.0  }
 0x55b   : > { %2860 = vmatprep.subr.bf16.mxu1 %v8603_v58  ;;  %v8674_v58 = vcombine.low %v2026_v46, %v2030_v14  ;;  %v9234_v34 = vld [vmem:[%s10881_s24 + $0x80] ss:$8 sps:$4 sm:$0xff]   ;;  %v2915_v14 = vld [vmem:[#allocation3 + $0xb0] sm:$0xff] }
 0x55c   : > { %2818 = vmatpush1.bf16.msra.mxu0 %v8600_v56  ;;  %v1982_v56 = vld [vmem:[%s10871_s9 + $0x238] sm:$0xff] }
 0x55d   : > { %2819 = vmatprep.subr.bf16.mxu0 %v8609_v1  ;;  %v8627_v50 = vcombine.high %v1978_v49, %v1982_v56  ;;  %v8673_v1 = vcombine.high %v2025_v31, %v2029_v28  ;;  %v2905_v0 = vld [vmem:[#allocation3 + $0x60] sm:$0xff] }
 0x55e   : > { %2861 = vmatpush1.bf16.msra.mxu1 %v8602_v9  ;;  %v9224_v9 = vld [vmem:[%s10881_s24 + $0x44] ss:$8 sps:$4 sm:$0xff]  }
 0x55f   : > { %2862 = vmatprep.subr.bf16.mxu1 %v8611_v21  ;;  %v2038_v21 = vld [vmem:[%s10871_s9 + $0x3f8] sm:$0xff] }
 0x560   : > { %2820 = vmatpush1.bf16.msra.mxu0 %v8608_v48  ;;  %v8626_v48 = vcombine.low %v1978_v49, %v1982_v56  ;;  %v9240_v49 = vld [vmem:[%s10881_s24 + $0xa0] ss:$8 sps:$4 sm:$0xff]   ;;  %v9245_v56 = vld [vmem:[%s10881_s24 + $0xb4] ss:$8 sps:$4 sm:$0xff]  }
 0x561   : > { %2821 = vmatprep.subr.bf16.mxu0 %v8617_v57  ;;  %v8672_v57 = vcombine.low %v2025_v31, %v2029_v28  ;;  %v9231_v31 = vld [vmem:[%s10881_s24 + $0x70] ss:$8 sps:$4 sm:$0xff]   ;;  %v9236_v28 = vld [vmem:[%s10881_s24 + $0x84] ss:$8 sps:$4 sm:$0xff]  }
 0x562   : > { %2863 = vmatpush1.bf16.msra.mxu1 %v8610_v11  ;;  %v9230_v11 = vld [vmem:[%s10881_s24 + $0x64] ss:$8 sps:$4 sm:$0xff]  }
 0x563   : > { %2864 = vmatprep.subr.bf16.mxu1 %v8619_v36  ;;  %v9237_v36 = vld [vmem:[%s10881_s24 + $0x90] ss:$8 sps:$4 sm:$0xff]   ;;  %v2913_v46 = vld [vmem:[#allocation3 + $0xa0] sm:$0xff] }
 0x564   : > { %2822 = vmatpush1.bf16.msra.mxu0 %v8616_v4  ;;  %v8643_v4 = vcombine.high %v1994_v8, %v1998_v33  ;;  %v2900_v8 = vld [vmem:[#allocation3 + $0x38] sm:$0xff] }
 0x565   : > { %2823 = vmatprep.subr.bf16.mxu0 %v8625_v13  ;;  %v2894_v13 = vld [vmem:[#allocation3 + $0x8] sm:$0xff] }
 0x566   : > { %2865 = vmatpush1.bf16.msra.mxu1 %v8618_v32  ;;  %v9239_v32 = vld [vmem:[%s10881_s24 + $0x94] ss:$8 sps:$4 sm:$0xff]  }
 0x567   : > { %2866 = vmatprep.subr.bf16.mxu1 %v8627_v50  ;;  %v9248_v50 = vld [vmem:[%s10881_s24 + $0xc4] ss:$8 sps:$4 sm:$0xff]  }
 0x568   : > { %2824 = vmatpush1.bf16.msra.mxu0 %v8624_v3  ;;  %v2958_v3 = vpack.c.bf16 %v2896_v25, %v2894_v13  ;;  %v2902_v13 = vld [vmem:[#allocation3 + $0x48] sm:$0xff]  ;;  %v2904_v25 = vld [vmem:[#allocation3 + $0x58] sm:$0xff] }
 0x569   : > { %2825 = vmatprep.subr.bf16.mxu0 %v8633_v40  ;;  %v9215_v40 = vld [vmem:[%s10881_s24 + $0x14] ss:$8 sps:$4 sm:$0xff]  }
 0x56a   : > { %2867 = vmatpush1.bf16.msra.mxu1 %v8626_v48  ;;  %v9254_v48 = vld [vmem:[%s10881_s24 + $0xe4] ss:$8 sps:$4 sm:$0xff]  }
 0x56b   : > { %2868 = vmatprep.subr.bf16.mxu1 %v8635_v61  ;;  %v2898_v61 = vld [vmem:[#allocation3 + $0x28] sm:$0xff] }
 0x56c   : > { %2826 = vmatpush1.bf16.msra.mxu0 %v8632_v15  ;;  %v9218_v15 = vld [vmem:[%s10881_s24 + $0x24] ss:$8 sps:$4 sm:$0xff]  }
 0x56d   : > { %2827 = vmatprep.subr.bf16.mxu0 %v8641_v59  ;;  %v9216_v59 = vld [vmem:[%s10881_s24 + $0x20] ss:$8 sps:$4 sm:$0xff]  }
 0x56e   : > { %2869 = vmatpush1.bf16.msra.mxu1 %v8634_v10  ;;  %v2895_v10 = vld [vmem:[#allocation3 + $0x10] sm:$0xff] }
 0x56f   : > { %2870 = vmatprep.subr.bf16.mxu1 %v8643_v4  ;;  %v2957_v33 = vpack.c.bf16 %v2895_v10, %v2893_v45  ;;  %v2897_v4 = vld [vmem:[#allocation3 + $0x20] sm:$0xff]  ;;  %v2935_v45 = vld [vmem:[#allocation3 + $0x150] sm:$0xff]  ;;  %v2938_v10 = vld [vmem:[#allocation3 + $0x168] sm:$0xff] }
 0x570   : > { %2828 = vmatpush1.bf16.msra.mxu0 %v8640_v42  ;;  %v8666_v42 = vcombine.low %v2018_v19, %v2022_v38 }
 0x571   : > { %2829 = vmatprep.subr.bf16.mxu0 %v8649_v24  ;;  %v8667_v24 = vcombine.high %v2018_v19, %v2022_v38  ;;  %v2914_v19 = vld [vmem:[#allocation3 + $0xa8] sm:$0xff]  ;;  %v2916_v38 = vld [vmem:[#allocation3 + $0xb8] sm:$0xff] }
 0x572   : > { %2871 = vmatpush1.bf16.msra.mxu1 %v8642_v62 }
 0x573   : > { %2872 = vmatprep.subr.bf16.mxu1 %v8651_v54  ;;  %v2964_v54 = vpack.c.bf16 %v2908_v30, %v2906_v43  ;;  %v2937_v43 = vld [vmem:[#allocation3 + $0x160] sm:$0xff]  ;;  %v2939_v30 = vld [vmem:[#allocation3 + $0x170] sm:$0xff] }
 0x574   : > { %2830 = vmatpush1.bf16.msra.mxu0 %v8648_v22  ;;  %v2034_v22 = vld [vmem:[%s10871_s9 + $0x3d8] sm:$0xff] }
 0x575   : > { %2831 = vmatprep.subr.bf16.mxu0 %v8657_v7  ;;  %v8682_v7 = vcombine.low %v2034_v22, %v2038_v21  ;;  %v8683_v39 = vcombine.high %v2034_v22, %v2038_v21  ;;  %v2922_v22 = vld [vmem:[#allocation3 + $0xe8] sm:$0xff]  ;;  %v2924_v21 = vld [vmem:[#allocation3 + $0xf8] sm:$0xff] }
 0x576   : > { %2873 = vmatpush1.bf16.msra.mxu1 %v8650_v55 }
 0x577   : > { %2874 = vmatprep.subr.bf16.mxu1 %v8659_v63  ;;  %v2912_v63 = vld [vmem:[#allocation3 + $0x98] sm:$0xff] }
 0x578   : > { %2832 = vmatpush1.bf16.msra.mxu0 %v8656_v47  ;;  %v9228_v47 = vld [vmem:[%s10881_s24 + $0x60] ss:$8 sps:$4 sm:$0xff]  }
 0x579   : > { %2833 = vmatprep.subr.bf16.mxu0 %v8665_v27  ;;  %v9233_v27 = vld [vmem:[%s10881_s24 + $0x74] ss:$8 sps:$4 sm:$0xff]  }
 0x57a   : > { %2875 = vmatpush1.bf16.msra.mxu1 %v8658_v6 }
 0x57b   : > { %2876 = vmatprep.subr.bf16.mxu1 %v8667_v24  ;;  %v2968_v24 = vpack.c.bf16 %v2916_v38, %v2914_v19 }
 0x57c   : > { %2834 = vmatpush1.bf16.msra.mxu0 %v8664_v26  ;;  %v9243_v26 = vld [vmem:[%s10881_s24 + $0xb0] ss:$8 sps:$4 sm:$0xff]  }
 0x57d   : > { %2835 = vmatprep.subr.bf16.mxu0 %v8673_v1  ;;  %v9246_v1 = vld [vmem:[%s10881_s24 + $0xc0] ss:$8 sps:$4 sm:$0xff]  }
 0x57e   : > { %2877 = vmatpush1.bf16.msra.mxu1 %v8666_v42 }
 0x57f   : > { %2878 = vmatprep.subr.bf16.mxu1 %v8675_v20  ;;  %v2920_v20 = vld [vmem:[#allocation3 + $0xd8] sm:$0xff] }
 0x580   : > { %2836 = vmatpush1.bf16.msra.mxu0 %v8672_v57  ;;  %v9252_v57 = vld [vmem:[%s10881_s24 + $0xe0] ss:$8 sps:$4 sm:$0xff]  }
 0x581   : > { %2837 = vmatprep.subr.bf16.mxu0 %v8681_v53  ;;  %v9257_v53 = vld [vmem:[%s10881_s24 + $0xf4] ss:$8 sps:$4 sm:$0xff]  }
 0x582   : > { %2879 = vmatpush1.bf16.msra.mxu1 %v8674_v58 }
 0x583   : > { %2880 = vmatprep.subr.bf16.mxu1 %v8683_v39  ;;  %v2972_v39 = vpack.c.bf16 %v2924_v21, %v2922_v22  ;;  %v2941_v21 = vld [vmem:[#allocation3 + $0x180] sm:$0xff] }
 0x584   : > { %2838 = vmatpush1.bf16.msra.mxu0 %v8680_v60  ;;  %v2960_v60 = vpack.c.bf16 %v2900_v8, %v2898_v61  ;;  %v2940_v61 = vld [vmem:[#allocation3 + $0x178] sm:$0xff]  ;;  %v10149_v8 = vmov 1966171168  }
 0x585   : > { %3181 = vmatprep.subr.bf16.mxu0 %v9212_v2  ;;  %v2899_v2 = vld [vmem:[#allocation3 + $0x30] sm:$0xff] }
 0x586   : > { %2881 = vmatpush1.bf16.msra.mxu1 %v8682_v7  ;;  %v2959_v62 = vpack.c.bf16 %v2899_v2, %v2897_v4  ;;  %v11494_v2 = vld [vmem:[%s10879_s3] sm:$0xff] }
 0x587   : > { %2840 = vmatmul.mubr.bf16.vlgmr.msra.gmra.mrb[4].mxu0 %v11384_v12  ;;  %8858 = vmatprep.subr.bf16.mxu1 %v13525_v29 }
 0x588   : > { %3182 = vmatpush1.bf16.msra.mxu0 %v9210_v5  ;;  %3213 = vmatprep.mubr.bf16.mxu0 %v2958_v3  ;;  %v2962_v5 = vpack.c.bf16 %v2904_v25, %v2902_v13  ;;  %v2901_v3 = vld [vmem:[#allocation3 + $0x40] sm:$0xff]  ;;  %v2980_v25 = vpack.c.bf16 %v2940_v61, %v2938_v10 }
 0x589   : > { %3183 = vmatprep.subr.bf16.mxu0 %v9215_v40  ;;  %2883 = vmatmul.mubr.bf16.vlgmr.msra.gmra.mrb[4].mxu1 %v11384_v12  ;;  %v9242_v12 = vld [vmem:[%s10881_s24 + $0xa4] ss:$8 sps:$4 sm:$0xff]   ;;  %v2903_v40 = vld [vmem:[#allocation3 + $0x50] sm:$0xff] }
 0x58a   : > { %8860 = vmatprep.mubr.msk.bf16.mxu1 %vm10148_vm1, %v13525_v29  ;;  %v2961_v55 = vpack.c.bf16 %v2903_v40, %v2901_v3  ;;  %v2945_v61 = vld [vmem:[#allocation3 + $0x1a0] sm:$0xff] }
 0x58c   : > { %3184 = vmatpush1.bf16.msra.mxu0 %v9213_v37  ;;  %v2910_v37 = vld [vmem:[#allocation3 + $0x88] sm:$0xff] }
 0x58d   : > { %3185 = vmatprep.subr.bf16.mxu0 %v9218_v15  ;;  %v2963_v15 = vpack.c.bf16 %v2907_v35, %v2905_v0  ;;  %v2966_v6 = vpack.c.bf16 %v2912_v63, %v2910_v37  ;;  %v2944_v0 = vld [vmem:[#allocation3 + $0x198] sm:$0xff] }
 0x590   : > { %3186 = vmatpush1.bf16.msra.mxu0 %v9216_v59  ;;  %v2909_v59 = vld [vmem:[#allocation3 + $0x80] sm:$0xff] }
 0x591   : > { %3187 = vmatprep.subr.bf16.mxu0 %v9221_v41  ;;  %v2911_v41 = vld [vmem:[#allocation3 + $0x90] sm:$0xff] }
 0x592   : > { %v2965_v42 = vpack.c.bf16 %v2911_v41, %v2909_v59  ;;  %v2979_v59 = vpack.c.bf16 %v2939_v30, %v2937_v43 }
 0x594   : > { %3188 = vmatpush1.bf16.msra.mxu0 %v9219_v17  ;;  %v2918_v17 = vld [vmem:[#allocation3 + $0xc8] sm:$0xff] }
 0x595   : > { %3189 = vmatprep.subr.bf16.mxu0 %v9224_v9  ;;  %v2967_v9 = vpack.c.bf16 %v2915_v14, %v2913_v46  ;;  %v2970_v58 = vpack.c.bf16 %v2920_v20, %v2918_v17 }
 0x598   : > { %3190 = vmatpush1.bf16.msra.mxu0 %v9222_v18  ;;  %v2917_v18 = vld [vmem:[#allocation3 + $0xc0] sm:$0xff] }
 0x599   : > { %3191 = vmatprep.subr.bf16.mxu0 %v9227_v51  ;;  %v2919_v51 = vld [vmem:[#allocation3 + $0xd0] sm:$0xff] }
 0x59a   : > { %v2969_v7 = vpack.c.bf16 %v2919_v51, %v2917_v18 }
 0x59c   : > { %3192 = vmatpush1.bf16.msra.mxu0 %v9225_v23  ;;  %v2921_v23 = vld [vmem:[#allocation3 + $0xe0] sm:$0xff] }
 0x59d   : > { %3193 = vmatprep.subr.bf16.mxu0 %v9230_v11  ;;  %v2923_v11 = vld [vmem:[#allocation3 + $0xf0] sm:$0xff] }
 0x5a0   : > { %3194 = vmatpush1.bf16.msra.mxu0 %v9228_v47  ;;  %v2926_v47 = vld [vmem:[#allocation3 + $0x108] sm:$0xff] }
 0x5a1   : > { %3195 = vmatprep.subr.bf16.mxu0 %v9233_v27  ;;  %v2928_v27 = vld [vmem:[#allocation3 + $0x118] sm:$0xff] }
 0x5a4   : > { %3196 = vmatpush1.bf16.msra.mxu0 %v9231_v31  ;;  %v2971_v31 = vpack.c.bf16 %v2923_v11, %v2921_v23 }
 0x5a5   : > { %3197 = vmatprep.subr.bf16.mxu0 %v9236_v28  ;;  %v2974_v28 = vpack.c.bf16 %v2928_v27, %v2926_v47 }
 0x5a8   : > { %3198 = vmatpush1.bf16.msra.mxu0 %v9234_v34  ;;  %v2925_v34 = vld [vmem:[#allocation3 + $0x100] sm:$0xff] }
 0x5a9   : > { %3199 = vmatprep.subr.bf16.mxu0 %v9239_v32  ;;  %v2927_v32 = vld [vmem:[#allocation3 + $0x110] sm:$0xff] }
 0x5ac   : > { %3200 = vmatpush1.bf16.msra.mxu0 %v9237_v36  ;;  %v2930_v36 = vld [vmem:[#allocation3 + $0x128] sm:$0xff] }
 0x5ad   : > { %3201 = vmatprep.subr.bf16.mxu0 %v9242_v12  ;;  %v2932_v12 = vld [vmem:[#allocation3 + $0x138] sm:$0xff] }
 0x5b0   : > { %3202 = vmatpush1.bf16.msra.mxu0 %v9240_v49  ;;  %v2973_v49 = vpack.c.bf16 %v2927_v32, %v2925_v34  ;;  %v2946_v32 = vld [vmem:[#allocation3 + $0x1a8] sm:$0xff] }
 0x5b1   : > { %3203 = vmatprep.subr.bf16.mxu0 %v9245_v56  ;;  %v2976_v56 = vpack.c.bf16 %v2932_v12, %v2930_v36  ;;  %v2948_v36 = vld [vmem:[#allocation3 + $0x1b8] sm:$0xff] }
 0x5b4   : > { %3204 = vmatpush1.bf16.msra.mxu0 %v9243_v26  ;;  %v2929_v26 = vld [vmem:[#allocation3 + $0x120] sm:$0xff] }
 0x5b5   : > { %3205 = vmatprep.subr.bf16.mxu0 %v9248_v50  ;;  %v2931_v50 = vld [vmem:[#allocation3 + $0x130] sm:$0xff] }
 0x5b8   : > { %3206 = vmatpush1.bf16.msra.mxu0 %v9246_v1  ;;  %v2934_v1 = vld [vmem:[#allocation3 + $0x148] sm:$0xff] }
 0x5b9   : > { %3207 = vmatprep.subr.bf16.mxu0 %v9251_v44  ;;  %v2936_v44 = vld [vmem:[#allocation3 + $0x158] sm:$0xff] }
 0x5bc   : > { %3208 = vmatpush1.bf16.msra.mxu0 %v9249_v52  ;;  %v2975_v52 = vpack.c.bf16 %v2931_v50, %v2929_v26 }
 0x5bd   : > { %3209 = vmatprep.subr.bf16.mxu0 %v9254_v48  ;;  %v13527_v48 = vlaneseq }
 0x5c0   : > { %3210 = vmatpush1.bf16.msra.mxu0 %v9252_v57  ;;  %v2978_v57 = vpack.c.bf16 %v2936_v44, %v2934_v1 }
 0x5c1   : > { %3211 = vmatprep.subr.bf16.mxu0 %v9257_v53  ;;  %v11488_v53 = vshrl.u32 %v13527_v48, 7 }
 0x5c3   : > { %13813 = vst [vmem:[#allocation53_spill] sm:$0xff] %v11488_v53  ;;  %v11491_v4 = vsub.s32 0, %v11488_v53  ;;  %v11497_v13 = vsub.s32 1, %v11488_v53 }
 0x5c4   : > { %3212 = vmatpush1.bf16.msra.mxu0 %v9255_v16  ;;  %v2933_v16 = vld [vmem:[#allocation3 + $0x140] sm:$0xff] }
 0x5c5   : > { %13814 = vst [vmem:[#allocation54_spill] sm:$0xff] %v11491_v4  ;;  %13815 = vst [vmem:[#allocation55_spill] sm:$0xff] %v11497_v13  ;;  %v2044_v3 = vrot.slane %v11494_v2, %v11491_v4  ;;  %v2048_v40 = vrot.slane %v11494_v2, %v11497_v13 }
 0x5c7   : > { %3214 = vmatmul.mubr.bf16.vlgmr.msra.gmra.mrb[8].mxu0 %v2957_v33  ;;  %v3388_v33 = vunpack.c.l.s4 %v10149_v8  ;;  %v2947_v8 = vld [vmem:[#allocation3 + $0x1b0] sm:$0xff] }
 0x5c8   : > { %3223 = vmatprep.mubr.bf16.mxu0 %v2960_v60  ;;  %v2977_v60 = vpack.c.bf16 %v2935_v45, %v2933_v16 }
 0x5cf   : > { %3224 = vmatmul.mubr.bf16.gmra.mrb[12].mxu0 %v2959_v62  ;;  %v11500_v62 = vsub.s32 2, %v11488_v53 }
 0x5d0   : > { %3233 = vmatprep.mubr.bf16.mxu0 %v2962_v5  ;;  %v3389_v5 = vunpack.c.0.s8 %v3388_v33  ;;  %v2950_v33 = vld [vmem:[#allocation3 + $0x1c8] sm:$0xff] }
 0x5d1   : > { %13816 = vst [vmem:[#allocation56_spill] sm:$0xff] %v11500_v62 }
 0x5d2   : > { %v11509_v37 = vsub.s32 %v3389_v5, %v11488_v53 }
 0x5d7   : > { %3234 = vmatmul.mubr.bf16.gmra.mrb[16].mxu0 %v2961_v55  ;;  %v2052_v55 = vrot.slane %v11494_v2, %v11500_v62 }
 0x5d8   : > { %3243 = vmatprep.mubr.bf16.mxu0 %v2964_v54  ;;  %v2942_v54 = vld [vmem:[#allocation3 + $0x188] sm:$0xff] }
 0x5df   : > { %3244 = vmatmul.mubr.bf16.gmra.mrb[20].mxu0 %v2963_v15 }
 0x5e0   : > { %3253 = vmatprep.mubr.bf16.mxu0 %v2966_v6 }
 0x5e7   : > { %3254 = vmatmul.mubr.bf16.gmra.mrb[24].mxu0 %v2965_v42  ;;  %v2982_v42 = vpack.c.bf16 %v2944_v0, %v2942_v54 }
 0x5e8   : > { %3263 = vmatprep.mubr.bf16.mxu0 %v2968_v24 }
 0x5ef   : > { %3264 = vmatmul.mubr.bf16.gmra.mrb[28].mxu0 %v2967_v9 }
 0x5f0   : > { %3273 = vmatprep.mubr.bf16.mxu0 %v2970_v58 }
 0x5f7   : > { %3274 = vmatmul.mubr.bf16.gmra.mrb[32].mxu0 %v2969_v7  ;;  %v2943_v7 = vld [vmem:[#allocation3 + $0x190] sm:$0xff] }
 0x5f8   : > { %3283 = vmatprep.mubr.bf16.mxu0 %v2972_v39 }
 0x5ff   : > { %3284 = vmatmul.mubr.bf16.gmra.mrb[36].mxu0 %v2971_v31 }
 0x600   : > { %3293 = vmatprep.mubr.bf16.mxu0 %v2974_v28 }
 0x607   : > { %3294 = vmatmul.mubr.bf16.gmra.mrb[40].mxu0 %v2973_v49  ;;  %v2981_v49 = vpack.c.bf16 %v2943_v7, %v2941_v21  ;;  %v11580_v7 = vsub.s32 4, %v11488_v53 }
 0x608   : > { %3303 = vmatprep.mubr.bf16.mxu0 %v2976_v56 }
 0x609   : > { %13820 = vst [vmem:[#allocation60_spill] sm:$0xff] %v11580_v7 }
 0x60f   : > { %3304 = vmatmul.mubr.bf16.gmra.mrb[44].mxu0 %v2975_v52  ;;  %v2984_v52 = vpack.c.bf16 %v2948_v36, %v2946_v32 }
 0x610   : > { %3313 = vmatprep.mubr.bf16.mxu0 %v2978_v57 }
 0x617   : > { %3314 = vmatmul.mubr.bf16.gmra.mrb[48].mxu0 %v2977_v60  ;;  %v2952_v60 = vld [vmem:[#allocation3 + $0x1d8] sm:$0xff] }
 0x618   : > { %3323 = vmatprep.mubr.bf16.mxu0 %v2980_v25  ;;  %v2986_v30 = vpack.c.bf16 %v2952_v60, %v2950_v33 }
 0x61a   : > { %v2755_v35 = vpop.f32.mrb[0].mxu0  ;;  %v2798_v15 = vpop.f32.mrb[0].mxu1 }
 0x61b   : > { %v11511_v63 = vadd.f32 %v2755_v35, %v2044_v3  ;;  %v2757_v6 = vpop.f32.mrb[1].mxu0  ;;  %v11513_v19 = vpop.f32.mrb[1].mxu1  ;;  %v2799_v24 = vadd.f32 %v2798_v15, %v2052_v55  ;;  %v2949_v15 = vld [vmem:[#allocation3 + $0x1c0] sm:$0xff] }
 0x61c   : > { %v2758_v41 = vadd.f32 %v2757_v6, %v2048_v40  ;;  %v2759_v38 = vpop.f32.mrb[2].mxu0  ;;  %v2802_v14 = vpop.f32.mrb[2].mxu1  ;;  %v2951_v6 = vld [vmem:[#allocation3 + $0x1d0] sm:$0xff] }
 0x61d   : > { %v2760_v46 = vadd.f32 %v2759_v38, %v2044_v3  ;;  %v2761_v17 = vpop.f32.mrb[3].mxu0  ;;  %v2803_v58 = vadd.f32 %v2802_v14, %v2052_v55  ;;  %v2983_v3 = vpack.c.bf16 %v2947_v8, %v2945_v61  ;;  %v2955_v14 = vld [vmem:[#allocation3 + $0x1f0] sm:$0xff]  ;;  %v3393_v61 = vrot.slane %v11511_v63, %v11509_v37 }
 0x61e   : > { %v5349_v20 = vcombine.high %v2758_v41, %v2758_v41  ;;  %v5356_v9 = vrot.slane %v2758_v41, %v11509_v37  ;;  %v2762_v18 = vadd.f32 %v2761_v17, %v2048_v40  ;;  %v11572_v17 = vsub.s32 3, %v11488_v53 }
 0x61f   : > { %v11517_v51 = vpack.c.bf16 %v2760_v46, %v11511_v63  ;;  %v3435_v22 = vcombine.high %v2760_v46, %v2760_v46  ;;  %3324 = vmatmul.mubr.bf16.gmra.mrb[52].mxu0 %v2979_v59  ;;  %v3442_v47 = vrot.slane %v2760_v46, %v11509_v37  ;;  %v11525_v31 = vpack.c.bf16 %v2803_v58, %v2799_v24  ;;  %v2954_v59 = vld [vmem:[#allocation3 + $0x1e8] sm:$0xff]  ;;  %v2953_v46 = vld [vmem:[#allocation3 + $0x1e0] sm:$0xff] }
 0x620   : > { %v5363_v39 = vrot.slane %v5349_v20, %v11509_v37  ;;  %v5364_v23 = vcombine.high %v5356_v9, %v5356_v9  ;;  %v11521_v11 = vrot.slane %v5356_v9, %v11509_v37  ;;  %3333 = vmatprep.mubr.bf16.mxu0 %v2982_v42  ;;  %v11527_v28 = vpack.c.bf16 %v2762_v18, %v2758_v41  ;;  %v2956_v41 = vld [vmem:[#allocation3 + $0x1f8] sm:$0xff] }
 0x621   : > { %v3449_v27 = vrot.slane %v3435_v22, %v11509_v37  ;;  %v5398_v34 = vcombine.high %v2762_v18, %v2762_v18  ;;  %v5405_v12 = vrot.slane %v2762_v18, %v11509_v37  ;;  %v3900_v50 = vsel %vm3596_vm2, %v11525_v31, 0  ;;  %13818 = vst [vmem:[#allocation58_spill] sm:$0xff] %v11572_v17  ;;  %v2804_v18 = vpop.f32.mrb[3].mxu1 }
 0x622   : > { %13817 = vst [vmem:[#allocation57_spill] sm:$0xff] %v11527_v28  ;;  %v5365_v56 = vcombine.high %v5363_v39, %v5363_v39  ;;  %v11534_v1 = vrot.slane %v5364_v23, %v11509_v37  ;;  %8859 = vmatpush3.bf16.xpose.msra.mxu1 %v3900_v50  ;;  %v3450_v57 = vcombine.high %v3442_v47, %v3442_v47 }
 0x623   : > { %v5412_v26 = vrot.slane %v5398_v34, %v11509_v37  ;;  %v11537_v44 = vrot.slane %v5405_v12, %v11509_v37  ;;  %8864 = vmatprep.subr.bf16.mxu1 %v13525_v29  ;;  %v5413_v16 = vcombine.high %v5405_v12, %v5405_v12  ;;  %v11541_v45 = vrot.slane %v5363_v39, %v11509_v37 }
 0x624   : > { %v11544_v10 = vrot.slane %v5365_v56, %v11509_v37  ;;  %v11547_v25 = vrot.slane %v3442_v47, %v11509_v37  ;;  %v11555_v43 = vrot.slane %v3450_v57, %v11509_v37  ;;  %v11563_v54 = vrot.slane %v3449_v27, %v11509_v37 }
 0x625   : > { %v5414_v5 = vcombine.high %v5412_v26, %v5412_v26  ;;  %v11552_v40 = vrot.slane %v5413_v16, %v11509_v37  ;;  %v11560_v55 = vrot.slane %v5412_v26, %v11509_v37  ;;  %v3451_v35 = vcombine.high %v3449_v27, %v3449_v27 }
 0x626   : > { %v2985_v42 = vpack.c.bf16 %v2951_v6, %v2949_v15  ;;  %v2988_v24 = vpack.c.bf16 %v2956_v41, %v2954_v59  ;;  %v2987_v20 = vpack.c.bf16 %v2955_v14, %v2953_v46  ;;  %v2056_v9 = vrot.slane %v11494_v2, %v11572_v17 }
 0x627   : > { %3334 = vmatmul.mubr.bf16.gmra.mrb[56].mxu0 %v2981_v49  ;;  %v11566_v0 = vrot.slane %v5414_v5, %v11509_v37  ;;  %v11569_v38 = vrot.slane %v3451_v35, %v11509_v37  ;;  %v11583_v39 = vsub.s32 5, %v11488_v53  ;;  %v2060_v23 = vrot.slane %v11494_v2, %v11580_v7 }
 0x628   : > { %3343 = vmatprep.mubr.bf16.mxu0 %v2984_v52  ;;  %v2801_v58 = vadd.f32 %v11513_v19, %v2056_v9  ;;  %v2805_v22 = vadd.f32 %v2804_v18, %v2056_v9  ;;  %v3409_v8 = vrot.slane %v3393_v61, %v11509_v37  ;;  %v3401_v33 = vcombine.high %v3393_v61, %v3393_v61 }
 0x629   : > { %8861 = vmatmul.mubr.msk.bf16.vlgmr.msra.gmra.mrb[8].mxu1 %vm3596_vm2, %v11517_v51  ;;  %13821 = vst [vmem:[#allocation61_spill] sm:$0xff] %v11583_v39  ;;  %v2064_v27 = vrot.slane %v11494_v2, %v11583_v39  ;;  %v5486_v62 = vrot.slane %v11552_v40, %v11491_v4 }
 0x62a   : > { %8866 = vmatprep.mubr.msk.bf16.mxu1 %vm10148_vm1, %v13525_v29  ;;  %v11577_v21 = vpack.c.bf16 %v2805_v22, %v2801_v58  ;;  %v3487_v60 = vrot.slane %v3409_v8, %v11491_v4  ;;  %v5454_v58 = vrot.slane %v11534_v1, %v11491_v4 }
 0x62c   : > { %13819 = vst [vmem:[#allocation59_spill] sm:$0xff] %v11577_v21 }
 0x62f   : > { %3344 = vmatmul.mubr.bf16.gmra.mrb[60].mxu0 %v2983_v3  ;;  %v5450_v3 = vrot.slane %v11521_v11, %v11491_v4 }
 0x630   : > { %3353 = vmatprep.mubr.bf16.mxu0 %v2986_v30 }
 0x637   : > { %3354 = vmatmul.mubr.bf16.gmra.mrb[64].mxu0 %v2985_v42 }
 0x638   : > { %3363 = vmatprep.mubr.bf16.mxu0 %v2988_v24  ;;  %v3423_v24 = vrot.slane %v3401_v33, %v11509_v37 }
 0x63f   : > { %3364 = vmatmul.mubr.bf16.gmra.mrb[68].mxu0 %v2987_v20  ;;  %v3491_v20 = vrot.slane %v3423_v24, %v11491_v4 }
 0x65a   : > { %v2841_v47 = vpop.f32.mrb[4].mxu0 }
 0x65b   : > { %v2842_v34 = vadd.f32 %v2841_v47, %v2060_v23  ;;  %v2843_v32 = vpop.f32.mrb[5].mxu0 }
 0x65c   : > { %v2845_v19 = vpop.f32.mrb[6].mxu0  ;;  %v2844_v49 = vadd.f32 %v2843_v32, %v2064_v27  ;;  %v11595_v52 = vpop.f32.mrb[4].mxu1 }
 0x65d   : > { %v2846_v36 = vadd.f32 %v2845_v19, %v2060_v23  ;;  %v2847_v12 = vpop.f32.mrb[7].mxu0  ;;  %13824 = vst [vmem:[#allocation64_spill] sm:$0xff] %v11595_v52  ;;  %v11597_v57 = vpop.f32.mrb[5].mxu1  ;;  %v3431_v19 = vcombine.high %v3409_v8, %v3409_v8 }
 0x65e   : > { %v2848_v56 = vadd.f32 %v2847_v12, %v2064_v27  ;;  %13825 = vst [vmem:[#allocation65_spill] sm:$0xff] %v11597_v57  ;;  %v11599_v2 = vpop.f32.mrb[6].mxu1  ;;  %v5394_v12 = vcombine.high %v11521_v11, %v11521_v11  ;;  %v3386_v11 = vcombine.high %v11511_v63, %v11511_v63 }
 0x65f   : > { %v11589_v26 = vpack.c.bf16 %v2846_v36, %v2842_v34  ;;  %13826 = vst [vmem:[#allocation66_spill] sm:$0xff] %v11599_v2  ;;  %v11601_v16 = vpop.f32.mrb[7].mxu1 }
 0x660   : > { %v11591_v50 = vpack.c.bf16 %v2848_v56, %v2844_v49  ;;  %13827 = vst [vmem:[#allocation67_spill] sm:$0xff] %v11601_v16  ;;  %v3495_v56 = vrot.slane %v3431_v19, %v11491_v4  ;;  %v5458_v33 = vrot.slane %v5394_v12, %v11491_v4  ;;  %v5396_v12 = vcombine.high %v11534_v1, %v11534_v1 }
 0x661   : > { %13822 = vst [vmem:[#allocation62_spill] sm:$0xff] %v11589_v26  ;;  %8865 = vmatpush3.bf16.msra.mxu1 %v11589_v26  ;;  %v3400_v63 = vrot.slane %v3386_v11, %v11509_v37 }
 0x662   : > { %13823 = vst [vmem:[#allocation63_spill] sm:$0xff] %v11591_v50  ;;  %8870 = vmatprep.subr.bf16.mxu1 %v13525_v29 }
 0x663   : > { %v3402_v57 = vcombine.high %v3400_v63, %v3400_v63 }
 0x69a   : > { %v11607_v5 = vpop.f32.mrb[8].mxu0 }
 0x69b   : > { %13828 = vst [vmem:[#allocation68_spill] sm:$0xff] %v11607_v5  ;;  %v11611_v30 = vpop.f32.mrb[9].mxu0  ;;  %v11614_v35 = vmul.f32 %v3487_v60, %v11607_v5 }
 0x69c   : > { %13829 = vst [vmem:[#allocation69_spill] sm:$0xff] %v11611_v30  ;;  %v11617_v15 = vmul.f32 %v5450_v3, %v11611_v30  ;;  %v11619_v6 = vpop.f32.mrb[10].mxu0 }
 0x69d   : > { %13830 = vst [vmem:[#allocation70_spill] sm:$0xff] %v11619_v6  ;;  %v11621_v59 = vpop.f32.mrb[11].mxu0  ;;  %v3597_v41 = vsel %vm3596_vm2, %v11614_v35, 0.0  ;;  %v11626_v42 = vmul.f32 %v3487_v60, %v11619_v6  ;;  %v3480_v6 = vcombine.high %v11547_v25, %v11547_v25 }
 0x69e   : > { %13831 = vst [vmem:[#allocation71_spill] sm:$0xff] %v11621_v59  ;;  %v11630_v46 = vmul.f32 %v5450_v3, %v11621_v59  ;;  %3598 = vadd.xlane.f32.xlu0 %v3597_v41 }
 0x69f   : > { %v3600_v14 = vsel %vm3596_vm2, %v11626_v42, 0.0  ;;  %v3527_v50 = vrot.slane %v3480_v6, %v11491_v4 }
 0x6a0   : > { %13832 = vst [vmem:[#allocation72_spill] sm:$0xff] %v11630_v46 }
 0x6a2   : > { %v11635_v9 = vpop.f32.mrb[12].mxu0  ;;  %3601 = vadd.xlane.f32.xlu0 %v3600_v14 }
 0x6a3   : > { %13833 = vst [vmem:[#allocation73_spill] sm:$0xff] %v11635_v9  ;;  %v11639_v18 = vpop.f32.mrb[13].mxu0  ;;  %v11642_v22 = vmul.f32 %v3491_v20, %v11635_v9 }
 0x6a4   : > { %13834 = vst [vmem:[#allocation74_spill] sm:$0xff] %v11639_v18  ;;  %v11645_v23 = vmul.f32 %v5454_v58, %v11639_v18  ;;  %v11647_v47 = vpop.f32.mrb[14].mxu0 }
 0x6a5   : > { %13836 = vst [vmem:[#allocation76_spill] sm:$0xff] %v11647_v47  ;;  %v11649_v27 = vpop.f32.mrb[15].mxu0  ;;  %v3603_v34 = vsel %vm3596_vm2, %v11642_v22, 0.0  ;;  %v11654_v32 = vmul.f32 %v3491_v20, %v11647_v47 }
 0x6a6   : > { %13835 = vst [vmem:[#allocation75_spill] sm:$0xff] %v11645_v23  ;;  %13837 = vst [vmem:[#allocation77_spill] sm:$0xff] %v11649_v27  ;;  %v11657_v36 = vmul.f32 %v5454_v58, %v11649_v27  ;;  %3604 = vadd.xlane.f32.xlu1 %v3603_v34  ;;  %v3433_v34 = vcombine.high %v3423_v24, %v3423_v24  ;;  %v3430_v27 = vrot.slane %v3402_v57, %v11509_v37 }
 0x6a7   : > { %v3606_v49 = vsel %vm3596_vm2, %v11654_v32, 0.0 }
 0x6a8   : > { %13838 = vst [vmem:[#allocation78_spill] sm:$0xff] %v11657_v36  ;;  %v3499_v29 = vrot.slane %v3433_v34, %v11491_v4  ;;  %v3507_v59 = vrot.slane %v3430_v27, %v11491_v4 }
 0x6aa   : > { %v11664_v61 = vpop.f32.mrb[16].mxu0  ;;  %3607 = vadd.xlane.f32.xlu1 %v3606_v49 }
 0x6ab   : > { %13839 = vst [vmem:[#allocation79_spill] sm:$0xff] %v11664_v61  ;;  %v11667_v60 = vpop.f32.mrb[17].mxu0  ;;  %v11670_v8 = vmul.f32 %v3495_v56, %v11664_v61 }
 0x6ac   : > { %13840 = vst [vmem:[#allocation80_spill] sm:$0xff] %v11667_v60  ;;  %v11673_v3 = vmul.f32 %v5458_v33, %v11667_v60  ;;  %v11675_v41 = vpop.f32.mrb[18].mxu0 }
 0x6ad   : > { %13842 = vst [vmem:[#allocation82_spill] sm:$0xff] %v11675_v41  ;;  %v11679_v14 = vpop.f32.mrb[19].mxu0  ;;  %v3609_v20 = vsel %vm3596_vm2, %v11670_v8, 0.0  ;;  %v11684_v58 = vmul.f32 %v3495_v56, %v11675_v41  ;;  %v5462_v56 = vrot.slane %v5396_v12, %v11491_v4  ;;  %v3416_v12 = vrot.slane %v3400_v63, %v11509_v37 }
 0x6ae   : > { %13841 = vst [vmem:[#allocation81_spill] sm:$0xff] %v11673_v3  ;;  %13843 = vst [vmem:[#allocation83_spill] sm:$0xff] %v11679_v14  ;;  %v11687_v19 = vmul.f32 %v5458_v33, %v11679_v14  ;;  %3610 = vadd.xlane.f32.xlu0 %v3609_v20  ;;  %v5466_v14 = vrot.slane %v11541_v45, %v11491_v4 }
 0x6af   : > { %v3612_v49 = vsel %vm3596_vm2, %v11684_v58, 0.0  ;;  %v3503_v52 = vrot.slane %v3416_v12, %v11491_v4 }
 0x6b0   : > { %13844 = vst [vmem:[#allocation84_spill] sm:$0xff] %v11687_v19  ;;  %3613 = vadd.xlane.f32.xlu1 %v3612_v49 }
 0x6b2   : > { %v11695_v48 = vpop.f32.mrb[20].mxu0 }
 0x6b3   : > { %13845 = vst [vmem:[#allocation85_spill] sm:$0xff] %v11695_v48  ;;  %v11698_v24 = vpop.f32.mrb[21].mxu0  ;;  %v11701_v33 = vmul.f32 %v3499_v29, %v11695_v48 }
 0x6b4   : > { %13846 = vst [vmem:[#allocation86_spill] sm:$0xff] %v11698_v24  ;;  %v11704_v20 = vmul.f32 %v5462_v56, %v11698_v24  ;;  %v11706_v1 = vpop.f32.mrb[22].mxu0 }
 0x6b5   : > { %13848 = vst [vmem:[#allocation88_spill] sm:$0xff] %v11706_v1  ;;  %v11708_v2 = vpop.f32.mrb[23].mxu0  ;;  %v3615_v11 = vsel %vm3596_vm2, %v11701_v33, 0.0  ;;  %v11713_v34 = vmul.f32 %v3499_v29, %v11706_v1 }
 0x6b6   : > { %13847 = vst [vmem:[#allocation87_spill] sm:$0xff] %v11704_v20  ;;  %13849 = vst [vmem:[#allocation89_spill] sm:$0xff] %v11708_v2  ;;  %v11717_v49 = vmul.f32 %v5462_v56, %v11708_v2  ;;  %3616 = vadd.xlane.f32.xlu0 %v3615_v11 }
 0x6b7   : > { %v3618_v16 = vsel %vm3596_vm2, %v11713_v34, 0.0 }
 0x6b8   : > { %13850 = vst [vmem:[#allocation90_spill] sm:$0xff] %v11717_v49  ;;  %3619 = vadd.xlane.f32.xlu1 %v3618_v16 }
 0x6ba   : > { %v11722_v24 = vpop.f32.mrb[24].mxu0 }
 0x6bb   : > { %13851 = vst [vmem:[#allocation91_spill] sm:$0xff] %v11722_v24  ;;  %v11726_v29 = vpop.f32.mrb[25].mxu0  ;;  %v11729_v60 = vmul.f32 %v3503_v52, %v11722_v24  ;;  %v5470_v24 = vrot.slane %v11544_v10, %v11491_v4 }
 0x6bc   : > { %13852 = vst [vmem:[#allocation92_spill] sm:$0xff] %v11726_v29  ;;  %v11732_v56 = vmul.f32 %v5466_v14, %v11726_v29  ;;  %v11734_v11 = vpop.f32.mrb[26].mxu0 }
 0x6bd   : > { %13854 = vst [vmem:[#allocation94_spill] sm:$0xff] %v11734_v11  ;;  %v11736_v2 = vpop.f32.mrb[27].mxu0  ;;  %v3621_v16 = vsel %vm3596_vm2, %v11729_v60, 0.0  ;;  %v11741_v63 = vmul.f32 %v3503_v52, %v11734_v11 }
 0x6be   : > { %13853 = vst [vmem:[#allocation93_spill] sm:$0xff] %v11732_v56  ;;  %13855 = vst [vmem:[#allocation95_spill] sm:$0xff] %v11736_v2  ;;  %v11745_v18 = vmul.f32 %v5466_v14, %v11736_v2  ;;  %3622 = vadd.xlane.f32.xlu0 %v3621_v16  ;;  %v3432_v2 = vcombine.high %v3416_v12, %v3416_v12  ;;  %v3539_v56 = vrot.slane %v11569_v38, %v11491_v4 }
 0x6bf   : > { %v3624_v29 = vsel %vm3596_vm2, %v11741_v63, 0.0 }
 0x6c0   : > { %13856 = vst [vmem:[#allocation96_spill] sm:$0xff] %v11745_v18  ;;  %3625 = vadd.xlane.f32.xlu1 %v3624_v29  ;;  %v3511_v48 = vrot.slane %v3432_v2, %v11491_v4 }
 0x6c2   : > { %v11750_v30 = vpop.f32.mrb[28].mxu0 }
 0x6c3   : > { %13857 = vst [vmem:[#allocation97_spill] sm:$0xff] %v11750_v30  ;;  %v11754_v1 = vpop.f32.mrb[29].mxu0  ;;  %v11757_v52 = vmul.f32 %v3507_v59, %v11750_v30  ;;  %v5395_v30 = vcombine.high %v11541_v45, %v11541_v45 }
 0x6c4   : > { %13858 = vst [vmem:[#allocation98_spill] sm:$0xff] %v11754_v1  ;;  %v11760_v37 = vmul.f32 %v5470_v24, %v11754_v1  ;;  %v11762_v57 = vpop.f32.mrb[30].mxu0 }
 0x6c5   : > { %13860 = vst [vmem:[#allocation100_spill] sm:$0xff] %v11762_v57  ;;  %v11764_v14 = vpop.f32.mrb[31].mxu0  ;;  %v3627_v29 = vsel %vm3596_vm2, %v11757_v52, 0.0  ;;  %v11769_v16 = vmul.f32 %v3507_v59, %v11762_v57  ;;  %v5474_v61 = vrot.slane %v5395_v30, %v11491_v4 }
 0x6c6   : > { %13859 = vst [vmem:[#allocation99_spill] sm:$0xff] %v11760_v37  ;;  %13861 = vst [vmem:[#allocation101_spill] sm:$0xff] %v11764_v14  ;;  %v11772_v11 = vmul.f32 %v5470_v24, %v11764_v14  ;;  %3628 = vadd.xlane.f32.xlu0 %v3627_v29  ;;  %v3434_v14 = vcombine.high %v3430_v27, %v3430_v27 }
 0x6c7   : > { %v3630_v1 = vsel %vm3596_vm2, %v11769_v16, 0.0 }
 0x6c8   : > { %13862 = vst [vmem:[#allocation102_spill] sm:$0xff] %v11772_v11  ;;  %3631 = vadd.xlane.f32.xlu1 %v3630_v1  ;;  %v3515_v57 = vrot.slane %v3434_v14, %v11491_v4 }
 0x6ca   : > { %v11779_v41 = vpop.f32.mrb[32].mxu0 }
 0x6cb   : > { %13863 = vst [vmem:[#allocation103_spill] sm:$0xff] %v11779_v41  ;;  %v11782_v59 = vpop.f32.mrb[33].mxu0  ;;  %v11785_v12 = vmul.f32 %v3511_v48, %v11779_v41  ;;  %v5397_v41 = vcombine.high %v11544_v10, %v11544_v10 }
 0x6cc   : > { %13864 = vst [vmem:[#allocation104_spill] sm:$0xff] %v11782_v59  ;;  %v11788_v24 = vmul.f32 %v5474_v61, %v11782_v59  ;;  %v11790_v29 = vpop.f32.mrb[34].mxu0 }
 0x6cd   : > { %13866 = vst [vmem:[#allocation106_spill] sm:$0xff] %v11790_v29  ;;  %v11792_v45 = vpop.f32.mrb[35].mxu0  ;;  %v3633_v1 = vsel %vm3596_vm2, %v11785_v12, 0.0  ;;  %v11797_v2 = vmul.f32 %v3511_v48, %v11790_v29  ;;  %v5478_v9 = vrot.slane %v5397_v41, %v11491_v4  ;;  %v5482_v29 = vrot.slane %v11537_v44, %v11491_v4 }
 0x6ce   : > { %13865 = vst [vmem:[#allocation105_spill] sm:$0xff] %v11788_v24  ;;  %13867 = vst [vmem:[#allocation107_spill] sm:$0xff] %v11792_v45  ;;  %v11800_v30 = vmul.f32 %v5474_v61, %v11792_v45  ;;  %3634 = vadd.xlane.f32.xlu0 %v3633_v1 }
 0x6cf   : > { %v3636_v59 = vsel %vm3596_vm2, %v11797_v2, 0.0 }
 0x6d0   : > { %13868 = vst [vmem:[#allocation108_spill] sm:$0xff] %v11800_v30  ;;  %3637 = vadd.xlane.f32.xlu1 %v3636_v59 }
 0x6d2   : > { %v11807_v47 = vpop.f32.mrb[36].mxu0 }
 0x6d3   : > { %13869 = vst [vmem:[#allocation109_spill] sm:$0xff] %v11807_v47  ;;  %v11810_v48 = vpop.f32.mrb[37].mxu0  ;;  %v11813_v27 = vmul.f32 %v3515_v57, %v11807_v47 }
 0x6d4   : > { %13870 = vst [vmem:[#allocation110_spill] sm:$0xff] %v11810_v48  ;;  %v11816_v61 = vmul.f32 %v5478_v9, %v11810_v48  ;;  %v11818_v1 = vpop.f32.mrb[38].mxu0  ;;  %v3519_v48 = vrot.slane %v11547_v25, %v11491_v4 }
 0x6d5   : > { %13872 = vst [vmem:[#allocation112_spill] sm:$0xff] %v11818_v1  ;;  %v11820_v10 = vpop.f32.mrb[39].mxu0  ;;  %v3639_v59 = vsel %vm3596_vm2, %v11813_v27, 0.0  ;;  %v11825_v14 = vmul.f32 %v3515_v57, %v11818_v1 }
 0x6d6   : > { %13871 = vst [vmem:[#allocation111_spill] sm:$0xff] %v11816_v61  ;;  %13873 = vst [vmem:[#allocation113_spill] sm:$0xff] %v11820_v10  ;;  %v11828_v41 = vmul.f32 %v5478_v9, %v11820_v10  ;;  %3640 = vadd.xlane.f32.xlu0 %v3639_v59 }
 0x6d7   : > { %v3642_v45 = vsel %vm3596_vm2, %v11825_v14, 0.0 }
 0x6d8   : > { %13874 = vst [vmem:[#allocation114_spill] sm:$0xff] %v11828_v41  ;;  %3643 = vadd.xlane.f32.xlu1 %v3642_v45  ;;  %v5498_v41 = vrot.slane %v11560_v55, %v11491_v4 }
 0x6da   : > { %v11834_v47 = vpop.f32.mrb[40].mxu0 }
 0x6db   : > { %13875 = vst [vmem:[#allocation115_spill] sm:$0xff] %v11834_v47  ;;  %v11838_v39 = vpop.f32.mrb[41].mxu0  ;;  %v11841_v57 = vmul.f32 %v3519_v48, %v11834_v47 }
 0x6dc   : > { %13876 = vst [vmem:[#allocation116_spill] sm:$0xff] %v11838_v39  ;;  %v11844_v9 = vmul.f32 %v5482_v29, %v11838_v39  ;;  %v11846_v59 = vpop.f32.mrb[42].mxu0  ;;  %v3523_v39 = vrot.slane %v11555_v43, %v11491_v4 }
 0x6dd   : > { %13878 = vst [vmem:[#allocation118_spill] sm:$0xff] %v11846_v59  ;;  %v11848_v10 = vpop.f32.mrb[43].mxu0  ;;  %v3645_v45 = vsel %vm3596_vm2, %v11841_v57, 0.0  ;;  %v11853_v1 = vmul.f32 %v3519_v48, %v11846_v59 }
 0x6de   : > { %13877 = vst [vmem:[#allocation117_spill] sm:$0xff] %v11844_v9  ;;  %13879 = vst [vmem:[#allocation119_spill] sm:$0xff] %v11848_v10  ;;  %v11856_v7 = vmul.f32 %v5482_v29, %v11848_v10  ;;  %3646 = vadd.xlane.f32.xlu0 %v3645_v45 }
 0x6df   : > { %v3648_v47 = vsel %vm3596_vm2, %v11853_v1, 0.0 }
 0x6e0   : > { %13880 = vst [vmem:[#allocation120_spill] sm:$0xff] %v11856_v7  ;;  %3649 = vadd.xlane.f32.xlu1 %v3648_v47 }
 0x6e2   : > { %v11862_v17 = vpop.f32.mrb[44].mxu0 }
 0x6e3   : > { %13881 = vst [vmem:[#allocation121_spill] sm:$0xff] %v11862_v17  ;;  %v11866_v5 = vpop.f32.mrb[45].mxu0  ;;  %v11869_v48 = vmul.f32 %v3523_v39, %v11862_v17 }
 0x6e4   : > { %13882 = vst [vmem:[#allocation122_spill] sm:$0xff] %v11866_v5  ;;  %v11872_v29 = vmul.f32 %v5486_v62, %v11866_v5  ;;  %v11874_v45 = vpop.f32.mrb[46].mxu0  ;;  %v5443_v5 = vcombine.high %v11537_v44, %v11537_v44 }
 0x6e5   : > { %13884 = vst [vmem:[#allocation124_spill] sm:$0xff] %v11874_v45  ;;  %v11876_v10 = vpop.f32.mrb[47].mxu0  ;;  %v3651_v47 = vsel %vm3596_vm2, %v11869_v48, 0.0  ;;  %v11881_v59 = vmul.f32 %v3523_v39, %v11874_v45 }
 0x6e6   : > { %13883 = vst [vmem:[#allocation123_spill] sm:$0xff] %v11872_v29  ;;  %13885 = vst [vmem:[#allocation125_spill] sm:$0xff] %v11876_v10  ;;  %v11886_v13 = vmul.f32 %v5486_v62, %v11876_v10  ;;  %3652 = vadd.xlane.f32.xlu0 %v3651_v47  ;;  %v5490_v39 = vrot.slane %v5443_v5, %v11491_v4  ;;  %v3482_v5 = vcombine.high %v11555_v43, %v11555_v43 }
 0x6e7   : > { %v3654_v17 = vsel %vm3596_vm2, %v11881_v59, 0.0 }
 0x6e8   : > { %13886 = vst [vmem:[#allocation126_spill] sm:$0xff] %v11886_v13  ;;  %3655 = vadd.xlane.f32.xlu1 %v3654_v17  ;;  %v3531_v21 = vrot.slane %v3482_v5, %v11491_v4 }
 0x6ea   : > { %v11893_v28 = vpop.f32.mrb[48].mxu0 }
 0x6eb   : > { %13887 = vst [vmem:[#allocation127_spill] sm:$0xff] %v11893_v28  ;;  %v11896_v45 = vpop.f32.mrb[49].mxu0  ;;  %v11899_v25 = vmul.f32 %v3527_v50, %v11893_v28 }
 0x6ec   : > { %13888 = vst [vmem:[#allocation128_spill] sm:$0xff] %v11896_v45  ;;  %v11902_v62 = vmul.f32 %v5490_v39, %v11896_v45  ;;  %v11904_v47 = vpop.f32.mrb[50].mxu0  ;;  %v5445_v45 = vcombine.high %v11552_v40, %v11552_v40 }
 0x6ed   : > { %13890 = vst [vmem:[#allocation130_spill] sm:$0xff] %v11904_v47  ;;  %v11906_v44 = vpop.f32.mrb[51].mxu0  ;;  %v3657_v17 = vsel %vm3596_vm2, %v11899_v25, 0.0  ;;  %v11911_v6 = vmul.f32 %v3527_v50, %v11904_v47 }
 0x6ee   : > { %13889 = vst [vmem:[#allocation129_spill] sm:$0xff] %v11902_v62  ;;  %13891 = vst [vmem:[#allocation131_spill] sm:$0xff] %v11906_v44  ;;  %v11916_v10 = vmul.f32 %v5490_v39, %v11906_v44  ;;  %3658 = vadd.xlane.f32.xlu0 %v3657_v17  ;;  %v5494_v50 = vrot.slane %v5445_v45, %v11491_v4 }
 0x6ef   : > { %v3660_v28 = vsel %vm3596_vm2, %v11911_v6, 0.0 }
 0x6f0   : > { %13892 = vst [vmem:[#allocation132_spill] sm:$0xff] %v11916_v10  ;;  %3661 = vadd.xlane.f32.xlu1 %v3660_v28  ;;  %v13923_v10 = vlaneseq }
 0x6f2   : > { %v11923_v61 = vpop.f32.mrb[52].mxu0  ;;  %v3726_v62 = vand.u32 127, %v13923_v10 }
 0x6f3   : > { %13893 = vst [vmem:[#allocation133_spill] sm:$0xff] %v11923_v61  ;;  %v11926_v47 = vpop.f32.mrb[53].mxu0  ;;  %v11929_v43 = vmul.f32 %v3531_v21, %v11923_v61 }
 0x6f4   : > { %13894 = vst [vmem:[#allocation134_spill] sm:$0xff] %v11926_v47  ;;  %v11932_v39 = vmul.f32 %v5494_v50, %v11926_v47  ;;  %v11934_v17 = vpop.f32.mrb[54].mxu0  ;;  %v3535_v47 = vrot.slane %v11563_v54, %v11491_v4 }
 0x6f5   : > { %13896 = vst [vmem:[#allocation136_spill] sm:$0xff] %v11934_v17  ;;  %v11936_v40 = vpop.f32.mrb[55].mxu0  ;;  %v3663_v28 = vsel %vm3596_vm2, %v11929_v43, 0.0  ;;  %v11941_v5 = vmul.f32 %v3531_v21, %v11934_v17 }
 0x6f6   : > { %13895 = vst [vmem:[#allocation135_spill] sm:$0xff] %v11932_v39  ;;  %13897 = vst [vmem:[#allocation137_spill] sm:$0xff] %v11936_v40  ;;  %v11944_v45 = vmul.f32 %v5494_v50, %v11936_v40  ;;  %3664 = vadd.xlane.f32.xlu0 %v3663_v28 }
 0x6f7   : > { %v3666_v44 = vsel %vm3596_vm2, %v11941_v5, 0.0 }
 0x6f8   : > { %13898 = vst [vmem:[#allocation138_spill] sm:$0xff] %v11944_v45  ;;  %3667 = vadd.xlane.f32.xlu1 %v3666_v44 }
 0x6fa   : > { %v11950_v61 = vpop.f32.mrb[56].mxu0 }
 0x6fb   : > { %13899 = vst [vmem:[#allocation139_spill] sm:$0xff] %v11950_v61  ;;  %v11954_v24 = vpop.f32.mrb[57].mxu0  ;;  %v11957_v21 = vmul.f32 %v3535_v47, %v11950_v61 }
 0x6fc   : > { %13900 = vst [vmem:[#allocation140_spill] sm:$0xff] %v11954_v24  ;;  %v11960_v50 = vmul.f32 %v5498_v41, %v11954_v24  ;;  %v11962_v28 = vpop.f32.mrb[58].mxu0  ;;  %v11971_v30 = vpop.f32.mrb[8].mxu1 }
 0x6fd   : > { %13902 = vst [vmem:[#allocation142_spill] sm:$0xff] %v11962_v28  ;;  %v11964_v40 = vpop.f32.mrb[59].mxu0  ;;  %v3669_v44 = vsel %vm3596_vm2, %v11957_v21, 0.0  ;;  %v11969_v17 = vmul.f32 %v3535_v47, %v11962_v28  ;;  %v8862_v61 = vpop.f32.mrb[9].mxu1  ;;  %v5502_v47 = vrot.slane %v11566_v0, %v11491_v4 }
 0x6fe   : > { %13901 = vst [vmem:[#allocation141_spill] sm:$0xff] %v11960_v50  ;;  %13903 = vst [vmem:[#allocation143_spill] sm:$0xff] %v11964_v40  ;;  %v11974_v37 = vmul.f32 %v5498_v41, %v11964_v40  ;;  %3670 = vadd.xlane.f32.xlu0 %v3669_v44  ;;  %v11978_v11 = vpop.f32.mrb[10].mxu1 }
 0x6ff   : > { %v3672_v24 = vsel %vm3596_vm2, %v11969_v17, 0.0  ;;  %v8863_v50 = vpop.f32.mrb[11].mxu1 }
 0x700   : > { %13904 = vst [vmem:[#allocation144_spill] sm:$0xff] %v11974_v37  ;;  %3673 = vadd.xlane.f32.xlu1 %v3672_v24  ;;  %v3481_v37 = vcombine.high %v11563_v54, %v11563_v54 }
 0x702   : > { %v11982_v18 = vpop.f32.mrb[60].mxu0 }
 0x703   : > { %13905 = vst [vmem:[#allocation145_spill] sm:$0xff] %v11982_v18  ;;  %v11986_v28 = vpop.f32.mrb[61].mxu0  ;;  %v11989_v41 = vmul.f32 %v3539_v56, %v11982_v18 }
 0x704   : > { %13906 = vst [vmem:[#allocation146_spill] sm:$0xff] %v11986_v28  ;;  %v11992_v61 = vmul.f32 %v5502_v47, %v11986_v28  ;;  %v11994_v44 = vpop.f32.mrb[62].mxu0  ;;  %v5444_v28 = vcombine.high %v11560_v55, %v11560_v55 }
 0x705   : > { %13908 = vst [vmem:[#allocation148_spill] sm:$0xff] %v11994_v44  ;;  %v11996_v24 = vpop.f32.mrb[63].mxu0  ;;  %v3675_v50 = vsel %vm3596_vm2, %v11989_v41, 0.0  ;;  %v12001_v40 = vmul.f32 %v3539_v56, %v11994_v44 }
 0x706   : > { %13907 = vst [vmem:[#allocation147_spill] sm:$0xff] %v11992_v61  ;;  %13909 = vst [vmem:[#allocation149_spill] sm:$0xff] %v11996_v24  ;;  %v12006_v39 = vmul.f32 %v5502_v47, %v11996_v24  ;;  %3676 = vadd.xlane.f32.xlu0 %v3675_v50  ;;  %v3543_v61 = vrot.slane %v3481_v37, %v11491_v4  ;;  %v5506_v56 = vrot.slane %v5444_v28, %v11491_v4 }
 0x707   : > { %v3678_v18 = vsel %vm3596_vm2, %v12001_v40, 0.0  ;;  %v3483_v28 = vcombine.high %v11569_v38, %v11569_v38 }
 0x708   : > { %13910 = vst [vmem:[#allocation150_spill] sm:$0xff] %v12006_v39  ;;  %3679 = vadd.xlane.f32.xlu1 %v3678_v18 }
 0x70a   : > { %v12013_v45 = vpop.f32.mrb[64].mxu0 }
 0x70b   : > { %13911 = vst [vmem:[#allocation151_spill] sm:$0xff] %v12013_v45  ;;  %v12016_v44 = vpop.f32.mrb[65].mxu0  ;;  %v12019_v54 = vmul.f32 %v3543_v61, %v12013_v45 }
 0x70c   : > { %13912 = vst [vmem:[#allocation152_spill] sm:$0xff] %v12016_v44  ;;  %v12022_v47 = vmul.f32 %v5506_v56, %v12016_v44  ;;  %v12024_v50 = vpop.f32.mrb[66].mxu0  ;;  %v5446_v44 = vcombine.high %v11566_v0, %v11566_v0 }
 0x70d   : > { %13914 = vst [vmem:[#allocation154_spill] sm:$0xff] %v12024_v50  ;;  %v12026_v55 = vpop.f32.mrb[67].mxu0  ;;  %v3681_v18 = vsel %vm3596_vm2, %v12019_v54, 0.0  ;;  %v12031_v37 = vmul.f32 %v3543_v61, %v12024_v50 }
 0x70e   : > { %13913 = vst [vmem:[#allocation153_spill] sm:$0xff] %v12022_v47  ;;  %13915 = vst [vmem:[#allocation155_spill] sm:$0xff] %v12026_v55  ;;  %v12036_v24 = vmul.f32 %v5506_v56, %v12026_v55  ;;  %3682 = vadd.xlane.f32.xlu0 %v3681_v18  ;;  %v3547_v47 = vrot.slane %v3483_v28, %v11491_v4  ;;  %v5510_v61 = vrot.slane %v5446_v44, %v11491_v4 }
 0x70f   : > { %v3684_v45 = vsel %vm3596_vm2, %v12031_v37, 0.0 }
 0x710   : > { %13916 = vst [vmem:[#allocation156_spill] sm:$0xff] %v12036_v24  ;;  %3685 = vadd.xlane.f32.xlu1 %v3684_v45 }
 0x712   : > { %v12043_v39 = vpop.f32.mrb[68].mxu0 }
 0x713   : > { %13917 = vst [vmem:[#allocation157_spill] sm:$0xff] %v12043_v39  ;;  %v12046_v50 = vpop.f32.mrb[69].mxu0  ;;  %v12049_v38 = vmul.f32 %v3547_v47, %v12043_v39 }
 0x714   : > { %13918 = vst [vmem:[#allocation158_spill] sm:$0xff] %v12046_v50  ;;  %v12052_v56 = vmul.f32 %v5510_v61, %v12046_v50  ;;  %v12054_v18 = vpop.f32.mrb[70].mxu0 }
 0x715   : > { %13920 = vst [vmem:[#allocation160_spill] sm:$0xff] %v12054_v18  ;;  %v12056_v0 = vpop.f32.mrb[71].mxu0  ;;  %v3687_v45 = vsel %vm3596_vm2, %v12049_v38, 0.0  ;;  %v12061_v28 = vmul.f32 %v3547_v47, %v12054_v18  ;;  %v3731_v47 = vadd.s32 4294967288, %v3726_v62 }
 0x716   : > { %13919 = vst [vmem:[#allocation159_spill] sm:$0xff] %v12052_v56  ;;  %13921 = vst [vmem:[#allocation161_spill] sm:$0xff] %v12056_v0  ;;  %v12064_v44 = vmul.f32 %v5510_v61, %v12056_v0  ;;  %3688 = vadd.xlane.f32.xlu0 %v3687_v45 }
 0x717   : > { %v3690_v55 = vsel %vm3596_vm2, %v12061_v28, 0.0  ;;  %v12070_v61 = vsub.s32 %v3731_v47, %v11488_v53 }
 0x718   : > { %13922 = vst [vmem:[#allocation162_spill] sm:$0xff] %v12064_v44  ;;  %3691 = vadd.xlane.f32.xlu1 %v3690_v55  ;;  %v12073_v55 = vsub.s32 %v3726_v62, %v11488_v53 }
 0x72b   : > { %v3599_v39 = vpop.xlane.xlu0 %3598 }
 0x72c   : > { %v3730_v62 = vrot.slane %v3599_v39, %v12073_v55 }
 0x72f   : > { %v3602_v56 = vpop.xlane.xlu0 %3601 }
 0x730   : > { %v3735_v13 = vrot.slane %v3602_v56, %v12070_v61 }
 0x733   : > { %v3605_v50 = vpop.xlane.xlu1 %3604 }
 0x734   : > { %v3741_v7 = vrot.slane %v3605_v50, %v12073_v55 }
 0x737   : > { %v3608_v4 = vpop.xlane.xlu1 %3607 }
 0x738   : > { %v3745_v44 = vrot.slane %v3608_v4, %v12070_v61 }
 0x73a   : > { %v3746_v4 = vsel %vm3736_vm3, %v3745_v44, %v3741_v7 }
 0x73b   : > { %v3611_v49 = vpop.xlane.xlu0 %3610 }
 0x73c   : > { %v3750_v47 = vrot.slane %v3611_v49, %v12073_v55  ;;  %v3737_v49 = vsel %vm3736_vm3, %v3735_v13, %v3730_v62 }
 0x73d   : > { %v3614_v24 = vpop.xlane.xlu1 %3613  ;;  %v3874_v7 = vsel %vm3873_vm4, %v3746_v4, %v3737_v49 }
 0x73e   : > { %v3754_v3 = vrot.slane %v3614_v24, %v12070_v61 }
 0x740   : > { %v3755_v50 = vsel %vm3736_vm3, %v3754_v3, %v3750_v47 }
 0x741   : > { %v3876_v3 = vsel %vm3875_vm5, %v3755_v50, %v3874_v7 }
 0x743   : > { %v3617_v20 = vpop.xlane.xlu0 %3616 }
 0x744   : > { %v3759_v24 = vrot.slane %v3617_v20, %v12073_v55 }
 0x745   : > { %v3620_v29 = vpop.xlane.xlu1 %3619 }
 0x746   : > { %v3763_v10 = vrot.slane %v3620_v29, %v12070_v61 }
 0x74b   : > { %v3623_v19 = vpop.xlane.xlu0 %3622 }
 0x74c   : > { %v3768_v29 = vrot.slane %v3623_v19, %v12073_v55 }
 0x74d   : > { %v3626_v18 = vpop.xlane.xlu1 %3625 }
 0x74e   : > { %v3772_v9 = vrot.slane %v3626_v18, %v12070_v61  ;;  %v3764_v18 = vsel %vm3736_vm3, %v3763_v10, %v3759_v24 }
 0x74f   : > { %v3878_v13 = vsel %vm3877_vm6, %v3764_v18, %v3876_v3 }
 0x750   : > { %v3773_v20 = vsel %vm3736_vm3, %v3772_v9, %v3768_v29 }
 0x753   : > { %v3629_v0 = vpop.xlane.xlu0 %3628 }
 0x754   : > { %v3777_v39 = vrot.slane %v3629_v0, %v12073_v55  ;;  %v3880_v0 = vsel %vm3879_vm7, %v3773_v20, %v3878_v13 }
 0x755   : > { %v3632_v45 = vpop.xlane.xlu1 %3631 }
 0x756   : > { %v3781_v56 = vrot.slane %v3632_v45, %v12070_v61 }
 0x75b   : > { %v3635_v36 = vpop.xlane.xlu0 %3634 }
 0x75c   : > { %v3786_v44 = vrot.slane %v3635_v36, %v12073_v55 }
 0x75d   : > { %v3638_v26 = vpop.xlane.xlu1 %3637 }
 0x75e   : > { %v3790_v53 = vrot.slane %v3638_v26, %v12070_v61  ;;  %v3782_v26 = vsel %vm3736_vm3, %v3781_v56, %v3777_v39 }
 0x75f   : > { %v3882_v36 = vsel %vm3881_vm8, %v3782_v26, %v3880_v0 }
 0x760   : > { %v3791_v19 = vsel %vm3736_vm3, %v3790_v53, %v3786_v44  ;;  %v12110_v53 = vld [vmem:[%s13924_s0] sm:$0xff] }
 0x761   : > { %v3884_v4 = vsel %vm3883_vm9, %v3791_v19, %v3882_v36  ;;  %vm3376_vm12 = vcmp.gt.f32.partialorder %v12110_v53, -1.0 }
 0x763   : > { %v3641_v45 = vpop.xlane.xlu0 %3640 }
 0x764   : > { %v3795_v47 = vrot.slane %v3641_v45, %v12073_v55 }
 0x765   : > { %v3644_v10 = vpop.xlane.xlu1 %3643 }
 0x766   : > { %v3799_v9 = vrot.slane %v3644_v10, %v12070_v61 }
 0x768   : > { %v3800_v62 = vsel %vm3736_vm3, %v3799_v9, %v3795_v47 }
 0x769   : > { %v3886_v24 = vsel %vm3885_vm10, %v3800_v62, %v3884_v4 }
 0x76a   : > { %v3937_v56 = vadd.f32 %v11971_v30, %v3886_v24 }
 0x76b   : > { %v3647_v39 = vpop.xlane.xlu0 %3646 }
 0x76c   : > { %v3943_v50 = vmul.f32 0.125, %v3937_v56 }
 0x76d   : > { %v3650_v18 = vpop.xlane.xlu1 %3649 }
 0x76e   : > { %v3945_v29 = vadd.f32 %v3943_v50, %v12110_v53  ;;  %v3808_v9 = vrot.slane %v3650_v18, %v12070_v61 }
 0x770   : > { %v3948_v49 = vsel %vm3947_vm11, %v3945_v29, -inf }
 0x771   : > { %3949 = vmax.xlane.f32.xlu0 %v3948_v49  ;;  %v3804_v49 = vrot.slane %v3647_v39, %v12073_v55 }
 0x773   : > { %v3653_v20 = vpop.xlane.xlu0 %3652  ;;  %v3809_v46 = vsel %vm3736_vm3, %v3808_v9, %v3804_v49 }
 0x774   : > { %v3813_v36 = vrot.slane %v3653_v20, %v12073_v55 }
 0x775   : > { %v3656_v7 = vpop.xlane.xlu1 %3655 }
 0x776   : > { %v3817_v0 = vrot.slane %v3656_v7, %v12070_v61 }
 0x778   : > { %v3818_v23 = vsel %vm3736_vm3, %v3817_v0, %v3813_v36 }
 0x779   : > { %v3887_v39 = vsel %vm3873_vm4, %v3818_v23, %v3809_v46 }
 0x77b   : > { %v3659_v45 = vpop.xlane.xlu0 %3658 }
 0x77c   : > { %v3822_v24 = vrot.slane %v3659_v45, %v12073_v55 }
 0x77d   : > { %v3662_v44 = vpop.xlane.xlu1 %3661 }
 0x77e   : > { %v3826_v47 = vrot.slane %v3662_v44, %v12070_v61 }
 0x780   : > { %v3827_v18 = vsel %vm3736_vm3, %v3826_v47, %v3822_v24 }
 0x783   : > { %v3665_v30 = vpop.xlane.xlu0 %3664 }
 0x784   : > { %v3831_v7 = vrot.slane %v3665_v30, %v12073_v55 }
 0x785   : > { %v3668_v3 = vpop.xlane.xlu1 %3667 }
 0x786   : > { %v3835_v62 = vrot.slane %v3668_v3, %v12070_v61 }
 0x788   : > { %v3836_v45 = vsel %vm3736_vm3, %v3835_v62, %v3831_v7  ;;  %v12149_v7 = vld [vmem:[%s13924_s0 + $0x8] sm:$0xff] }
 0x789   : > { %vm3377_vm13 = vcmp.gt.f32.partialorder %v12149_v7, -1.0 }
 0x78b   : > { %v3671_v13 = vpop.xlane.xlu0 %3670 }
 0x78c   : > { %v3840_v20 = vrot.slane %v3671_v13, %v12073_v55 }
 0x78d   : > { %v3674_v26 = vpop.xlane.xlu1 %3673 }
 0x78e   : > { %v3844_v56 = vrot.slane %v3674_v26, %v12070_v61 }
 0x790   : > { %v3845_v0 = vsel %vm3736_vm3, %v3844_v56, %v3840_v20 }
 0x793   : > { %v3677_v10 = vpop.xlane.xlu0 %3676 }
 0x794   : > { %v3849_v26 = vrot.slane %v3677_v10, %v12073_v55 }
 0x795   : > { %v3680_v19 = vpop.xlane.xlu1 %3679 }
 0x796   : > { %v3853_v44 = vrot.slane %v3680_v19, %v12070_v61  ;;  %v3888_v19 = vsel %vm3875_vm5, %v3827_v18, %v3887_v39  ;;  %v13925_v39 = vmov 0.0  }
 0x797   : > { %v3889_v13 = vsel %vm3877_vm6, %v3836_v45, %v3888_v19 }
 0x798   : > { %v3854_v47 = vsel %vm3736_vm3, %v3853_v44, %v3849_v26  ;;  %v3890_v62 = vsel %vm3879_vm7, %v3845_v0, %v3889_v13  ;;  %v12155_v0 = vsel %vm3376_vm12, 1.0, %v13925_v39 }
 0x799   : > { %v3891_v23 = vsel %vm3881_vm8, %v3854_v47, %v3890_v62 }
 0x79b   : > { %v3683_v50 = vpop.xlane.xlu0 %3682 }
 0x79c   : > { %v3858_v30 = vrot.slane %v3683_v50, %v12073_v55 }
 0x79d   : > { %v3686_v4 = vpop.xlane.xlu1 %3685 }
 0x79e   : > { %v3862_v3 = vrot.slane %v3686_v4, %v12070_v61 }
 0x7a0   : > { %v3863_v4 = vsel %vm3736_vm3, %v3862_v3, %v3858_v30 }
 0x7a1   : > { %v3892_v56 = vsel %vm3883_vm9, %v3863_v4, %v3891_v23 }
 0x7a3   : > { %v3689_v36 = vpop.xlane.xlu0 %3688 }
 0x7a4   : > { %v3867_v10 = vrot.slane %v3689_v36, %v12073_v55 }
 0x7a5   : > { %v3692_v9 = vpop.xlane.xlu1 %3691 }
 0x7a6   : > { %v3871_v46 = vrot.slane %v3692_v9, %v12070_v61 }
 0x7a8   : > { %v3872_v24 = vsel %vm3736_vm3, %v3871_v46, %v3867_v10 }
 0x7a9   : > { %v3893_v50 = vsel %vm3885_vm10, %v3872_v24, %v3892_v56 }
 0x7aa   : > { %v3940_v49 = vadd.f32 %v11978_v11, %v3893_v50 }
 0x7ac   : > { %v3944_v44 = vmul.f32 0.125, %v3940_v49 }
 0x7ae   : > { %v3946_v18 = vadd.f32 %v3944_v44, %v12149_v7 }
 0x7b0   : > { %v3951_v20 = vsel %vm3947_vm11, %v3946_v18, -inf }
 0x7b1   : > { %3952 = vmax.xlane.f32.xlu1 %v3951_v20 }
 0x7fe   : > { %v3950_v3 = vpop.xlane.xlu0 %3949 }
 0x7ff   : > { %v3954_v45 = vsub.f32 %v3945_v29, %v3950_v3 }
 0x801   : > { %v3956_v26 = vmul.f32 1.442695, %v3954_v45 }
 0x803   : > { %9306 = vpow2.f32 %v3956_v26 }
 0x80d   : > { %v9307_v11 = vpop.eup %9306 }
 0x80e   : > { %v12158_v30 = vmul.f32 %v9307_v11, %v12155_v0 }
 0x810   : > { %v3962_v36 = vsel %vm3947_vm11, %v12158_v30, 0.0 }
 0x811   : > { %3963 = vadd.xlane.f32.xlu0 %v3962_v36 }
 0x827   : > { %4634 = vrot.lane.b32.xlu0 %v11525_v31, %s10150_s2 }
 0x82b   : > { %4442 = vrot.lane.b32.xlu0 %v11642_v22, %s10150_s2  ;;  %v12184_v22 = vsel %vm3377_vm13, 1.0, %v13925_v39 }
 0x82f   : > { %4470 = vrot.lane.b32.xlu0 %v11841_v57, %s10150_s2 }
 0x833   : > { %4474 = vrot.lane.b32.xlu0 %v11869_v48, %s10150_s2 }
 0x837   : > { %4446 = vrot.lane.b32.xlu0 %v11670_v8, %s10150_s2 }
 0x83b   : > { %4478 = vrot.lane.b32.xlu0 %v11899_v25, %s10150_s2 }
 0x83e   : > { %v3953_v29 = vpop.xlane.xlu1 %3952 }
 0x83f   : > { %v3955_v19 = vsub.f32 %v3946_v18, %v3953_v29  ;;  %4450 = vrot.lane.b32.xlu0 %v11701_v33, %s10150_s2 }
 0x841   : > { %v3958_v31 = vmul.f32 1.442695, %v3955_v19 }
 0x843   : > { %9308 = vpow2.f32 %v3958_v31  ;;  %4482 = vrot.lane.b32.xlu0 %v11929_v43, %s10150_s2 }
 0x847   : > { %4454 = vrot.lane.b32.xlu0 %v11729_v60, %s10150_s2 }
 0x84b   : > { %4486 = vrot.lane.b32.xlu0 %v11957_v21, %s10150_s2 }
 0x84d   : > { %v9309_v8 = vpop.eup %9308 }
 0x84e   : > { %v3961_v57 = vmul.f32 %v9309_v8, %v12184_v22 }
 0x84f   : > { %4458 = vrot.lane.b32.xlu0 %v11757_v52, %s10150_s2 }
 0x850   : > { %v3965_v33 = vsel %vm3947_vm11, %v3961_v57, 0.0 }
 0x851   : > { %3966 = vadd.xlane.f32.xlu1 %v3965_v33 }
 0x853   : > { %4490 = vrot.lane.b32.xlu0 %v11989_v41, %s10150_s2 }
 0x857   : > { %4462 = vrot.lane.b32.xlu0 %v11785_v12, %s10150_s2 }
 0x85b   : > { %4494 = vrot.lane.b32.xlu0 %v12019_v54, %s10150_s2 }
 0x85f   : > { %4466 = vrot.lane.b32.xlu0 %v11813_v27, %s10150_s2 }
 0x862   : > { %4631 = vrot.lane.b32.xlu1 %v11517_v51, %s10150_s2 }
 0x863   : > { %4498 = vrot.lane.b32.xlu0 %v12049_v38, %s10150_s2 }
 0x866   : > { %4438 = vrot.lane.b32.xlu1 %v11614_v35, %s10150_s2 }
 0x86a   : > { %4440 = vrot.lane.b32.xlu1 %v11626_v42, %s10150_s2 }
 0x86e   : > { %4444 = vrot.lane.b32.xlu1 %v11654_v32, %s10150_s2 }
 0x872   : > { %4472 = vrot.lane.b32.xlu1 %v11853_v1, %s10150_s2 }
 0x876   : > { %4476 = vrot.lane.b32.xlu1 %v11881_v59, %s10150_s2 }
 0x87a   : > { %4448 = vrot.lane.b32.xlu1 %v11684_v58, %s10150_s2 }
 0x87e   : > { %4480 = vrot.lane.b32.xlu1 %v11911_v6, %s10150_s2 }
 0x882   : > { %4452 = vrot.lane.b32.xlu1 %v11713_v34, %s10150_s2 }
 0x886   : > { %4484 = vrot.lane.b32.xlu1 %v11941_v5, %s10150_s2 }
 0x88a   : > { %4456 = vrot.lane.b32.xlu1 %v11741_v63, %s10150_s2 }
 0x88e   : > { %4488 = vrot.lane.b32.xlu1 %v11969_v17, %s10150_s2 }
 0x892   : > { %4460 = vrot.lane.b32.xlu1 %v11769_v16, %s10150_s2 }
 0x896   : > { %4492 = vrot.lane.b32.xlu1 %v12001_v40, %s10150_s2 }
 0x89a   : > { %4464 = vrot.lane.b32.xlu1 %v11797_v2, %s10150_s2 }
 0x89e   : > { %4496 = vrot.lane.b32.xlu1 %v12031_v37, %s10150_s2  ;;  %v3964_v51 = vpop.xlane.xlu0 %3963 }
 0x89f   : > { %vm3968_vm14 = vcmp.gt.f32.partialorder %v3964_v51, 0.0 }
 0x8a0   : > { %v3970_v60 = vsel %vm3968_vm14, %v3964_v51, 1.0 }
 0x8a1   : > { %9310 = vrcp.f32 %v3970_v60 }
 0x8a2   : > { %4468 = vrot.lane.b32.xlu1 %v11825_v14, %s10150_s2  ;;  %v4635_v35 = vpop.permute.xlu0 %4634 }
 0x8a3   : > { %v4832_v41 = vsel %vm3596_vm2, %v4635_v35, 0 }
 0x8a6   : > { %4500 = vrot.lane.b32.xlu1 %v12061_v28, %s10150_s2  ;;  %v4443_v42 = vpop.permute.xlu0 %4442 }
 0x8a7   : > { %v4540_v48 = vsel %vm3596_vm2, %v4443_v42, 0.0 }
 0x8aa   : > { %v4471_v32 = vpop.permute.xlu0 %4470 }
 0x8ab   : > { %v9311_v1 = vpop.eup %9310  ;;  %v4582_v37 = vsel %vm3596_vm2, %v4471_v32, 0.0 }
 0x8ac   : > { %v12240_v6 = vmul.f32 %v9311_v1, %v12158_v30 }
 0x8ae   : > { %v4475_v58 = vpop.permute.xlu0 %4474  ;;  %13926 = vst [vmem:[#allocation163_spill] sm:$0xff] %v12240_v6 }
 0x8af   : > { %v4588_v13 = vsel %vm3596_vm2, %v4475_v58, 0.0 }
 0x8b2   : > { %v4447_v52 = vpop.permute.xlu0 %4446 }
 0x8b3   : > { %v4546_v10 = vsel %vm3596_vm2, %v4447_v52, 0.0 }
 0x8b6   : > { %v4479_v27 = vpop.permute.xlu0 %4478 }
 0x8b7   : > { %v4594_v24 = vsel %vm3596_vm2, %v4479_v27, 0.0 }
 0x8ba   : > { %v4451_v17 = vpop.permute.xlu0 %4450 }
 0x8bb   : > { %v4552_v44 = vsel %vm3596_vm2, %v4451_v17, 0.0 }
 0x8be   : > { %v4483_v28 = vpop.permute.xlu0 %4482 }
 0x8bf   : > { %v4600_v45 = vsel %vm3596_vm2, %v4483_v28, 0.0 }
 0x8c2   : > { %v4455_v9 = vpop.permute.xlu0 %4454 }
 0x8c3   : > { %v4558_v30 = vsel %vm3596_vm2, %v4455_v9, 0.0 }
 0x8c6   : > { %v4487_v50 = vpop.permute.xlu0 %4486 }
 0x8c7   : > { %v4606_v31 = vsel %vm3596_vm2, %v4487_v50, 0.0 }
 0x8ca   : > { %v4459_v20 = vpop.permute.xlu0 %4458 }
 0x8cb   : > { %v4564_v51 = vsel %vm3596_vm2, %v4459_v20, 0.0 }
 0x8ce   : > { %v4491_v29 = vpop.permute.xlu0 %4490 }
 0x8cf   : > { %v4612_v32 = vsel %vm3596_vm2, %v4491_v29, 0.0 }
 0x8de   : > { %v3967_v34 = vpop.xlane.xlu1 %3966 }
 0x8df   : > { %vm3969_vm15 = vcmp.gt.f32.partialorder %v3967_v34, 0.0 }
 0x8e0   : > { %v3971_v63 = vsel %vm3969_vm15, %v3967_v34, 1.0 }
 0x8e1   : > { %9312 = vrcp.f32 %v3971_v63 }
 0x8e2   : > { %v4632_v16 = vpop.permute.xlu1 %4631 }
 0x8e6   : > { %v4439_v12 = vpop.permute.xlu1 %4438 }
 0x8e7   : > { %v4534_v2 = vsel %vm3596_vm2, %v4439_v12, 0.0 }
 0x8e8   : > { %4535 = vadd.xlane.f32.xlu0 %v4534_v2 }
 0x8ea   : > { %v4441_v14 = vpop.permute.xlu1 %4440 }
 0x8eb   : > { %v9313_v59 = vpop.eup %9312  ;;  %v4537_v25 = vsel %vm3596_vm2, %v4441_v14, 0.0 }
 0x8ec   : > { %v12242_v43 = vmul.f32 %v9313_v59, %v3961_v57  ;;  %4541 = vadd.xlane.f32.xlu0 %v4540_v48  ;;  %4538 = vadd.xlane.f32.xlu1 %v4537_v25  ;;  %v4463_v57 = vpop.permute.xlu0 %4462 }
 0x8ed   : > { %v4570_v63 = vsel %vm3596_vm2, %v4463_v57, 0.0 }
 0x8ee   : > { %13927 = vst [vmem:[#allocation164_spill] sm:$0xff] %v12242_v43  ;;  %v4445_v40 = vpop.permute.xlu1 %4444  ;;  %v3976_v5 = vpack.c.bf16 %v12242_v43, %v12240_v6 }
 0x8ef   : > { %v4543_v21 = vsel %vm3596_vm2, %v4445_v40, 0.0 }
 0x8f0   : > { %8867 = vmatmul.mubr.msk.bf16.vlgmr.msra.gmra.mrb[12].mxu1 %vm3947_vm11, %v3976_v5  ;;  %4544 = vadd.xlane.f32.xlu0 %v4543_v21  ;;  %v4495_v58 = vpop.permute.xlu0 %4494 }
 0x8f1   : > { %8871 = vmatpush3.bf16.xpose.msra.mxu1 %v4832_v41  ;;  %8872 = vmatprep.mubr.msk.bf16.mxu1 %vm10148_vm1, %v13925_v39  ;;  %v4618_v2 = vsel %vm3596_vm2, %v4495_v58, 0.0 }
 0x8f2   : > { %v4473_v54 = vpop.permute.xlu1 %4472  ;;  %8876 = vmatprep.subr.bf16.mxu1 %v13925_v39 }
 0x8f3   : > { %v4585_v38 = vsel %vm3596_vm2, %v4473_v54, 0.0 }
 0x8f4   : > { %4583 = vadd.xlane.f32.xlu0 %v4582_v37  ;;  %4586 = vadd.xlane.f32.xlu1 %v4585_v38 }
 0x8f6   : > { %v4477_v47 = vpop.permute.xlu1 %4476 }
 0x8f7   : > { %v4591_v4 = vsel %vm3596_vm2, %v4477_v47, 0.0 }
 0x8f8   : > { %8873 = vmatmul.mubr.msk.bf16.vlgmr.msra.gmra.mrb[16].mxu1 %vm3596_vm2, %v4632_v16  ;;  %4589 = vadd.xlane.f32.xlu0 %v4588_v13  ;;  %v4467_v16 = vpop.permute.xlu0 %4466 }
 0x8f9   : > { %4592 = vadd.xlane.f32.xlu1 %v4591_v4  ;;  %8878 = vmatprep.mubr.msk.bf16.mxu1 %vm10148_vm1, %v13925_v39  ;;  %v4576_v14 = vsel %vm3596_vm2, %v4467_v16, 0.0 }
 0x8fa   : > { %v4449_v62 = vpop.permute.xlu1 %4448 }
 0x8fb   : > { %v4549_v46 = vsel %vm3596_vm2, %v4449_v62, 0.0 }
 0x8fc   : > { %4547 = vadd.xlane.f32.xlu0 %v4546_v10  ;;  %v4499_v48 = vpop.permute.xlu0 %4498 }
 0x8fd   : > { %4550 = vadd.xlane.f32.xlu1 %v4549_v46  ;;  %v4624_v17 = vsel %vm3596_vm2, %v4499_v48, 0.0 }
 0x8fe   : > { %v4481_v23 = vpop.permute.xlu1 %4480 }
 0x8ff   : > { %v4597_v56 = vsel %vm3596_vm2, %v4481_v23, 0.0 }
 0x900   : > { %4595 = vadd.xlane.f32.xlu0 %v4594_v24 }
 0x901   : > { %4598 = vadd.xlane.f32.xlu1 %v4597_v56 }
 0x902   : > { %v4453_v49 = vpop.permute.xlu1 %4452 }
 0x903   : > { %v4555_v18 = vsel %vm3596_vm2, %v4453_v49, 0.0 }
 0x904   : > { %4553 = vadd.xlane.f32.xlu0 %v4552_v44 }
 0x905   : > { %4556 = vadd.xlane.f32.xlu1 %v4555_v18 }
 0x906   : > { %v4485_v3 = vpop.permute.xlu1 %4484 }
 0x907   : > { %v4603_v26 = vsel %vm3596_vm2, %v4485_v3, 0.0 }
 0x908   : > { %4601 = vadd.xlane.f32.xlu0 %v4600_v45 }
 0x909   : > { %4604 = vadd.xlane.f32.xlu1 %v4603_v26 }
 0x90a   : > { %v4457_v11 = vpop.permute.xlu1 %4456 }
 0x90b   : > { %v4561_v36 = vsel %vm3596_vm2, %v4457_v11, 0.0 }
 0x90c   : > { %4559 = vadd.xlane.f32.xlu0 %v4558_v30 }
 0x90d   : > { %4562 = vadd.xlane.f32.xlu1 %v4561_v36 }
 0x90e   : > { %v4489_v19 = vpop.permute.xlu1 %4488 }
 0x90f   : > { %v4609_v8 = vsel %vm3596_vm2, %v4489_v19, 0.0 }
 0x910   : > { %4607 = vadd.xlane.f32.xlu0 %v4606_v31 }
 0x911   : > { %4610 = vadd.xlane.f32.xlu1 %v4609_v8 }
 0x912   : > { %v4461_v33 = vpop.permute.xlu1 %4460 }
 0x913   : > { %v4567_v35 = vsel %vm3596_vm2, %v4461_v33, 0.0 }
 0x914   : > { %4565 = vadd.xlane.f32.xlu0 %v4564_v51 }
 0x915   : > { %4568 = vadd.xlane.f32.xlu1 %v4567_v35 }
 0x916   : > { %v4493_v42 = vpop.permute.xlu1 %4492 }
 0x917   : > { %v4615_v60 = vsel %vm3596_vm2, %v4493_v42, 0.0 }
 0x918   : > { %4613 = vadd.xlane.f32.xlu0 %v4612_v32 }
 0x919   : > { %4616 = vadd.xlane.f32.xlu1 %v4615_v60 }
 0x91a   : > { %v4465_v34 = vpop.permute.xlu1 %4464 }
 0x91b   : > { %v4573_v52 = vsel %vm3596_vm2, %v4465_v34, 0.0 }
 0x91c   : > { %4571 = vadd.xlane.f32.xlu0 %v4570_v63 }
 0x91d   : > { %4574 = vadd.xlane.f32.xlu1 %v4573_v52 }
 0x91e   : > { %v4497_v12 = vpop.permute.xlu1 %4496 }
 0x91f   : > { %v4621_v27 = vsel %vm3596_vm2, %v4497_v12, 0.0 }
 0x920   : > { %4619 = vadd.xlane.f32.xlu0 %v4618_v2 }
 0x921   : > { %4622 = vadd.xlane.f32.xlu1 %v4621_v27 }
 0x922   : > { %v4469_v1 = vpop.permute.xlu1 %4468 }
 0x923   : > { %v4579_v59 = vsel %vm3596_vm2, %v4469_v1, 0.0 }
 0x924   : > { %4577 = vadd.xlane.f32.xlu0 %v4576_v14 }
 0x925   : > { %4580 = vadd.xlane.f32.xlu1 %v4579_v59 }
 0x926   : > { %v4501_v25 = vpop.permute.xlu1 %4500 }
 0x927   : > { %v4627_v40 = vsel %vm3596_vm2, %v4501_v25, 0.0 }
 0x928   : > { %4625 = vadd.xlane.f32.xlu0 %v4624_v17 }
 0x929   : > { %4628 = vadd.xlane.f32.xlu1 %v4627_v40 }
 0x975   : > { %v4536_v5 = vpop.xlane.xlu0 %4535 }
 0x976   : > { %v4671_v33 = vrot.slane %v4536_v5, %v12073_v55 }
 0x979   : > { %v4542_v21 = vpop.xlane.xlu0 %4541  ;;  %v4539_v41 = vpop.xlane.xlu1 %4538 }
 0x97a   : > { %v4680_v19 = vrot.slane %v4542_v21, %v12073_v55  ;;  %v4675_v57 = vrot.slane %v4539_v41, %v12070_v61 }
 0x97c   : > { %v4676_v12 = vsel %vm3736_vm3, %v4675_v57, %v4671_v33 }
 0x97d   : > { %v4545_v54 = vpop.xlane.xlu0 %4544 }
 0x97e   : > { %v4684_v36 = vrot.slane %v4545_v54, %v12070_v61 }
 0x980   : > { %v4685_v51 = vsel %vm3736_vm3, %v4684_v36, %v4680_v19 }
 0x981   : > { %v4584_v37 = vpop.xlane.xlu0 %4583  ;;  %v4587_v38 = vpop.xlane.xlu1 %4586  ;;  %v4812_v2 = vsel %vm3873_vm4, %v4685_v51, %v4676_v12 }
 0x982   : > { %v4743_v35 = vrot.slane %v4584_v37, %v12073_v55  ;;  %v4747_v42 = vrot.slane %v4587_v38, %v12070_v61 }
 0x984   : > { %v4748_v27 = vsel %vm3736_vm3, %v4747_v42, %v4743_v35 }
 0x985   : > { %v4590_v28 = vpop.xlane.xlu0 %4589 }
 0x986   : > { %v4593_v47 = vpop.xlane.xlu1 %4592  ;;  %v4752_v32 = vrot.slane %v4590_v28, %v12073_v55 }
 0x987   : > { %v4756_v60 = vrot.slane %v4593_v47, %v12070_v61 }
 0x989   : > { %v4548_v13 = vpop.xlane.xlu0 %4547  ;;  %v4757_v1 = vsel %vm3736_vm3, %v4756_v60, %v4752_v32 }
 0x98a   : > { %v4551_v4 = vpop.xlane.xlu1 %4550  ;;  %v4689_v31 = vrot.slane %v4548_v13, %v12073_v55  ;;  %v4819_v36 = vsel %vm3873_vm4, %v4757_v1, %v4748_v27 }
 0x98b   : > { %v4693_v8 = vrot.slane %v4551_v4, %v12070_v61 }
 0x98d   : > { %v4596_v9 = vpop.xlane.xlu0 %4595  ;;  %v4694_v34 = vsel %vm3736_vm3, %v4693_v8, %v4689_v31 }
 0x98e   : > { %v4599_v62 = vpop.xlane.xlu1 %4598  ;;  %v4813_v14 = vsel %vm3875_vm5, %v4694_v34, %v4812_v2  ;;  %v4761_v59 = vrot.slane %v4596_v9, %v12073_v55 }
 0x98f   : > { %v4765_v48 = vrot.slane %v4599_v62, %v12070_v61 }
 0x991   : > { %v4554_v10 = vpop.xlane.xlu0 %4553 }
 0x992   : > { %v4557_v46 = vpop.xlane.xlu1 %4556  ;;  %v4698_v63 = vrot.slane %v4554_v10, %v12073_v55 }
 0x993   : > { %v4702_v52 = vrot.slane %v4557_v46, %v12070_v61 }
 0x995   : > { %v12283_v23 = vpop.xlane.xlu0 %4601  ;;  %v4703_v25 = vsel %vm3736_vm3, %v4702_v52, %v4698_v63 }
 0x996   : > { %v4605_v24 = vpop.xlane.xlu1 %4604  ;;  %v4770_v5 = vrot.slane %v12283_v23, %v12073_v55  ;;  %v4814_v19 = vsel %vm3877_vm6, %v4703_v25, %v4813_v14 }
 0x997   : > { %v4774_v21 = vrot.slane %v4605_v24, %v12070_v61 }
 0x999   : > { %v4560_v56 = vpop.xlane.xlu0 %4559 }
 0x99a   : > { %v4563_v50 = vpop.xlane.xlu1 %4562  ;;  %v4707_v17 = vrot.slane %v4560_v56, %v12073_v55  ;;  %v4766_v56 = vsel %vm3736_vm3, %v4765_v48, %v4761_v59 }
 0x99b   : > { %v4711_v40 = vrot.slane %v4563_v50, %v12070_v61 }
 0x99d   : > { %v12285_v49 = vpop.xlane.xlu0 %4607  ;;  %v4712_v50 = vsel %vm3736_vm3, %v4711_v40, %v4707_v17 }
 0x99e   : > { %v12287_v44 = vpop.xlane.xlu1 %4610  ;;  %v4779_v38 = vrot.slane %v12285_v49, %v12073_v55  ;;  %v4815_v33 = vsel %vm3879_vm7, %v4712_v50, %v4814_v19  ;;  %v13931_v50 = vld [vmem:[#allocation75_spill] sm:$0xff]  ;;  %v13936_v19 = vld [vmem:[#allocation126_spill] sm:$0xff] }
 0x99f   : > { %v4783_v28 = vrot.slane %v12287_v44, %v12070_v61 }
 0x9a1   : > { %v4566_v18 = vpop.xlane.xlu0 %4565 }
 0x9a2   : > { %v4569_v20 = vpop.xlane.xlu1 %4568  ;;  %v4716_v41 = vrot.slane %v4566_v18, %v12073_v55 }
 0x9a3   : > { %v4720_v54 = vrot.slane %v4569_v20, %v12070_v61  ;;  %v4775_v20 = vsel %vm3736_vm3, %v4774_v21, %v4770_v5 }
 0x9a5   : > { %v12289_v3 = vpop.xlane.xlu0 %4613 }
 0x9a6   : > { %v12291_v45 = vpop.xlane.xlu1 %4616  ;;  %v4788_v62 = vrot.slane %v12289_v3, %v12073_v55  ;;  %v4721_v3 = vsel %vm3736_vm3, %v4720_v54, %v4716_v41 }
 0x9a7   : > { %v4792_v10 = vrot.slane %v12291_v45, %v12070_v61  ;;  %v4816_v35 = vsel %vm3881_vm8, %v4721_v3, %v4815_v33  ;;  %v13933_v3 = vld [vmem:[#allocation117_spill] sm:$0xff] }
 0x9a8   : > { %v13939_v33 = vld [vmem:[#allocation129_spill] sm:$0xff] }
 0x9a9   : > { %v4572_v26 = vpop.xlane.xlu0 %4571  ;;  %v4793_v8 = vsel %vm3736_vm3, %v4792_v10, %v4788_v62 }
 0x9aa   : > { %v4575_v11 = vpop.xlane.xlu1 %4574  ;;  %v4725_v47 = vrot.slane %v4572_v26, %v12073_v55 }
 0x9ab   : > { %v4729_v13 = vrot.slane %v4575_v11, %v12070_v61 }
 0x9ad   : > { %v12293_v30 = vpop.xlane.xlu0 %4619  ;;  %v4730_v31 = vsel %vm3736_vm3, %v4729_v13, %v4725_v47 }
 0x9ae   : > { %v12296_v29 = vpop.xlane.xlu1 %4622  ;;  %v4797_v49 = vrot.slane %v12293_v30, %v12073_v55  ;;  %v4784_v30 = vsel %vm3736_vm3, %v4783_v28, %v4779_v38  ;;  %v4817_v32 = vsel %vm3883_vm9, %v4730_v31, %v4816_v35  ;;  %v13937_v31 = vld [vmem:[#allocation81_spill] sm:$0xff]  ;;  %v13940_v35 = vld [vmem:[#allocation132_spill] sm:$0xff] }
 0x9af   : > { %v4801_v44 = vrot.slane %v12296_v29, %v12070_v61  ;;  %v4820_v29 = vsel %vm3875_vm5, %v4766_v56, %v4819_v36 }
 0x9b0   : > { %v4821_v51 = vsel %vm3877_vm6, %v4775_v20, %v4820_v29  ;;  %v5571_v29 = vsel %vm3596_vm2, %v13937_v31, 0.0 }
 0x9b1   : > { %v4578_v58 = vpop.xlane.xlu0 %4577  ;;  %v4802_v42 = vsel %vm3736_vm3, %v4801_v44, %v4797_v49  ;;  %v5565_v49 = vsel %vm3596_vm2, %v13931_v50, 0.0  ;;  %v13932_v44 = vld [vmem:[#allocation78_spill] sm:$0xff] }
 0x9b2   : > { %v4581_v16 = vpop.xlane.xlu1 %4580  ;;  %v4734_v46 = vrot.slane %v4578_v58, %v12073_v55  ;;  %v4822_v58 = vsel %vm3879_vm7, %v4784_v30, %v4821_v51  ;;  %v5568_v20 = vsel %vm3596_vm2, %v13932_v44, 0.0  ;;  %v5616_v30 = vsel %vm3596_vm2, %v13936_v19, 0.0 }
 0x9b3   : > { %v4738_v23 = vrot.slane %v4581_v16, %v12070_v61  ;;  %v4823_v52 = vsel %vm3881_vm8, %v4793_v8, %v4822_v58  ;;  %v13938_v8 = vld [vmem:[#allocation84_spill] sm:$0xff]  ;;  %v5619_v51 = vsel %vm3596_vm2, %v13939_v33, 0.0  ;;  %v13942_v58 = vld [vmem:[#allocation123_spill] sm:$0xff] }
 0x9b4   : > { %v4824_v2 = vsel %vm3883_vm9, %v4802_v42, %v4823_v52  ;;  %v5622_v42 = vsel %vm3596_vm2, %v13940_v35, 0.0 }
 0x9b5   : > { %v4626_v37 = vpop.xlane.xlu0 %4625  ;;  %v4739_v57 = vsel %vm3736_vm3, %v4738_v23, %v4734_v46  ;;  %v5559_v23 = vsel %vm3596_vm2, %v11617_v15, 0.0 }
 0x9b6   : > { %v4629_v4 = vpop.xlane.xlu1 %4628  ;;  %v4806_v45 = vrot.slane %v4626_v37, %v12073_v55  ;;  %v4818_v34 = vsel %vm3885_vm10, %v4739_v57, %v4817_v32  ;;  %v5574_v57 = vsel %vm3596_vm2, %v13938_v8, 0.0  ;;  %v13941_v32 = vld [vmem:[#allocation87_spill] sm:$0xff] }
 0x9b7   : > { %v4810_v26 = vrot.slane %v4629_v4, %v12070_v61 }
 0x9b9   : > { %v4811_v60 = vsel %vm3736_vm3, %v4810_v26, %v4806_v45  ;;  %v5607_v45 = vsel %vm3596_vm2, %v13933_v3, 0.0  ;;  %v13934_v26 = vld [vmem:[#allocation62_spill] sm:$0xff] }
 0x9ba   : > { %v4825_v27 = vsel %vm3885_vm10, %v4811_v60, %v4824_v2  ;;  %v5577_v60 = vsel %vm3596_vm2, %v13941_v32, 0.0  ;;  %v13945_v2 = vld [vmem:[#allocation135_spill] sm:$0xff] }
 0x9c3   : > { %v12332_v9 = vpop.f32.mrb[12].mxu1 }
 0x9c4   : > { %13928 = vst [vmem:[#allocation165_spill] sm:$0xff] %v12332_v9  ;;  %v8868_v24 = vpop.f32.mrb[13].mxu1 }
 0x9c5   : > { %v12346_v18 = vpop.f32.mrb[14].mxu1  ;;  %v13930_v24 = vld [vmem:[#allocation72_spill] sm:$0xff] }
 0x9c6   : > { %13929 = vst [vmem:[#allocation166_spill] sm:$0xff] %v12346_v18  ;;  %v8869_v11 = vpop.f32.mrb[15].mxu1  ;;  %v5562_v56 = vsel %vm3596_vm2, %v13930_v24, 0.0 }
 0x9c7   : > { %v13935_v11 = vld [vmem:[#allocation120_spill] sm:$0xff] }
 0x9c8   : > { %v5610_v36 = vsel %vm3596_vm2, %v13935_v11, 0.0 }
 0x9cb   : > { %v4868_v63 = vpop.f32.mrb[16].mxu1 }
 0x9cc   : > { %v4869_v16 = vadd.f32 %v4868_v63, %v4818_v34  ;;  %v8874_v12 = vpop.f32.mrb[17].mxu1  ;;  %v5613_v34 = vsel %vm3596_vm2, %v13942_v58, 0.0  ;;  %v13943_v63 = vld [vmem:[#allocation90_spill] sm:$0xff] }
 0x9cd   : > { %v4871_v1 = vpop.f32.mrb[18].mxu1  ;;  %v5580_v52 = vsel %vm3596_vm2, %v13943_v63, 0.0 }
 0x9ce   : > { %v4875_v14 = vmul.f32 0.125, %v4869_v16  ;;  %v4872_v59 = vadd.f32 %v4871_v1, %v4825_v27  ;;  %v8875_v48 = vpop.f32.mrb[19].mxu1  ;;  %v13944_v16 = vld [vmem:[#allocation138_spill] sm:$0xff]  ;;  %v5625_v27 = vsel %vm3596_vm2, %v13945_v2, 0.0  ;;  %v13946_v1 = vld [vmem:[#allocation96_spill] sm:$0xff] }
 0x9cf   : > { %v5628_v12 = vsel %vm3596_vm2, %v13944_v16, 0.0 }
 0x9d0   : > { %v4877_v25 = vadd.f32 %v4875_v14, %v12110_v53  ;;  %v4876_v17 = vmul.f32 0.125, %v4872_v59  ;;  %v5586_v14 = vsel %vm3596_vm2, %v13946_v1, 0.0  ;;  %v13947_v59 = vld [vmem:[#allocation93_spill] sm:$0xff] }
 0x9d1   : > { %v5583_v48 = vsel %vm3596_vm2, %v13947_v59, 0.0 }
 0x9d2   : > { %v4878_v40 = vadd.f32 %v4876_v17, %v12149_v7  ;;  %v4879_v5 = vsel %vm3947_vm11, %v4877_v25, -inf }
 0x9d3   : > { %4880 = vmax.xlane.f32.xlu0 %v4879_v5 }
 0x9d4   : > { %v4882_v21 = vsel %vm3947_vm11, %v4878_v40, -inf }
 0x9d5   : > { %4883 = vmax.xlane.f32.xlu1 %v4882_v21  ;;  %v13950_v21 = vld [vmem:[#allocation102_spill] sm:$0xff] }
 0xa60   : > { %v4881_v41 = vpop.xlane.xlu0 %4880 }
 0xa61   : > { %v4885_v54 = vsub.f32 %v4877_v25, %v4881_v41  ;;  %v13948_v25 = vld [vmem:[#allocation144_spill] sm:$0xff]  ;;  %v5592_v41 = vsel %vm3596_vm2, %v13950_v21, 0.0 }
 0xa62   : > { %v4884_v37 = vpop.xlane.xlu1 %4883  ;;  %v5634_v17 = vsel %vm3596_vm2, %v13948_v25, 0.0 }
 0xa63   : > { %v4887_v38 = vmul.f32 1.442695, %v4885_v54  ;;  %v4886_v28 = vsub.f32 %v4878_v40, %v4884_v37  ;;  %v13949_v40 = vld [vmem:[#allocation141_spill] sm:$0xff]  ;;  %v13951_v54 = vld [vmem:[#allocation99_spill] sm:$0xff] }
 0xa64   : > { %v5631_v5 = vsel %vm3596_vm2, %v13949_v40, 0.0  ;;  %v5589_v37 = vsel %vm3596_vm2, %v13951_v54, 0.0 }
 0xa65   : > { %9314 = vpow2.f32 %v4887_v38  ;;  %v4889_v47 = vmul.f32 1.442695, %v4886_v28  ;;  %v13952_v38 = vld [vmem:[#allocation150_spill] sm:$0xff] }
 0xa66   : > { %v5640_v28 = vsel %vm3596_vm2, %v13952_v38, 0.0 }
 0xa67   : > { %9316 = vpow2.f32 %v4889_v47  ;;  %v13953_v47 = vld [vmem:[#allocation147_spill] sm:$0xff] }
 0xa6f   : > { %v9315_v13 = vpop.eup %9314 }
 0xa70   : > { %v12375_v53 = vmul.f32 %v9315_v13, %v12155_v0  ;;  %v5637_v13 = vsel %vm3596_vm2, %v13953_v47, 0.0 }
 0xa71   : > { %v9317_v4 = vpop.eup %9316 }
 0xa72   : > { %v4893_v62 = vsel %vm3947_vm11, %v12375_v53, 0.0  ;;  %v12380_v10 = vmul.f32 %v9317_v4, %v12184_v22  ;;  %v13954_v4 = vld [vmem:[#allocation108_spill] sm:$0xff] }
 0xa73   : > { %4894 = vadd.xlane.f32.xlu0 %v4893_v62  ;;  %v5598_v62 = vsel %vm3596_vm2, %v13954_v4, 0.0 }
 0xa74   : > { %v4896_v46 = vsel %vm3947_vm11, %v12380_v10, 0.0 }
 0xa75   : > { %4897 = vadd.xlane.f32.xlu1 %v4896_v46  ;;  %v13955_v46 = vld [vmem:[#allocation105_spill] sm:$0xff] }
 0xa79   : > { %5560 = vadd.xlane.f32.xlu1 %v5559_v23  ;;  %v5595_v23 = vsel %vm3596_vm2, %v13955_v46, 0.0 }
 0xa7d   : > { %5563 = vadd.xlane.f32.xlu1 %v5562_v56  ;;  %v13956_v56 = vld [vmem:[#allocation156_spill] sm:$0xff] }
 0xa81   : > { %5566 = vadd.xlane.f32.xlu1 %v5565_v49  ;;  %v5646_v49 = vsel %vm3596_vm2, %v13956_v56, 0.0 }
 0xa85   : > { %5569 = vadd.xlane.f32.xlu1 %v5568_v20  ;;  %v13957_v20 = vld [vmem:[#allocation153_spill] sm:$0xff] }
 0xa89   : > { %5262 = vrot.lane.b32.xlu0 %v13934_v26, %s10150_s2  ;;  %5608 = vadd.xlane.f32.xlu1 %v5607_v45  ;;  %v5643_v45 = vsel %vm3596_vm2, %v13957_v20, 0.0  ;;  %v13958_v26 = vld [vmem:[#allocation114_spill] sm:$0xff] }
 0xa8d   : > { %5611 = vadd.xlane.f32.xlu1 %v5610_v36  ;;  %v5604_v36 = vsel %vm3596_vm2, %v13958_v26, 0.0 }
 0xa91   : > { %5617 = vadd.xlane.f32.xlu1 %v5616_v30  ;;  %v13959_v30 = vld [vmem:[#allocation111_spill] sm:$0xff] }
 0xa95   : > { %5572 = vadd.xlane.f32.xlu1 %v5571_v29  ;;  %v5601_v29 = vsel %vm3596_vm2, %v13959_v30, 0.0 }
 0xa99   : > { %5575 = vadd.xlane.f32.xlu1 %v5574_v57  ;;  %v13960_v57 = vld [vmem:[#allocation162_spill] sm:$0xff] }
 0xa9d   : > { %5620 = vadd.xlane.f32.xlu1 %v5619_v51  ;;  %v5652_v51 = vsel %vm3596_vm2, %v13960_v57, 0.0 }
 0xaa1   : > { %5623 = vadd.xlane.f32.xlu1 %v5622_v42  ;;  %v13961_v42 = vld [vmem:[#allocation159_spill] sm:$0xff] }
 0xaa5   : > { %5578 = vadd.xlane.f32.xlu1 %v5577_v60  ;;  %v5649_v60 = vsel %vm3596_vm2, %v13961_v42, 0.0 }
 0xaa8   : > { %5614 = vadd.xlane.f32.xlu0 %v5613_v34 }
 0xaa9   : > { %5581 = vadd.xlane.f32.xlu1 %v5580_v52 }
 0xaac   : > { %5629 = vadd.xlane.f32.xlu0 %v5628_v12 }
 0xaad   : > { %5626 = vadd.xlane.f32.xlu1 %v5625_v27 }
 0xab0   : > { %5587 = vadd.xlane.f32.xlu0 %v5586_v14 }
 0xab1   : > { %5584 = vadd.xlane.f32.xlu1 %v5583_v48 }
 0xab4   : > { %5635 = vadd.xlane.f32.xlu0 %v5634_v17 }
 0xab5   : > { %5632 = vadd.xlane.f32.xlu1 %v5631_v5 }
 0xab8   : > { %5593 = vadd.xlane.f32.xlu0 %v5592_v41 }
 0xab9   : > { %5590 = vadd.xlane.f32.xlu1 %v5589_v37 }
 0xabc   : > { %5641 = vadd.xlane.f32.xlu0 %v5640_v28  ;;  %v13964_v28 = vld [vmem:[#allocation59_spill] sm:$0xff] }
 0xabd   : > { %5638 = vadd.xlane.f32.xlu1 %v5637_v13  ;;  %v5851_v13 = vsel %vm3596_vm2, %v13964_v28, 0 }
 0xac0   : > { %5599 = vadd.xlane.f32.xlu0 %v5598_v62  ;;  %v13965_v62 = vld [vmem:[#allocation57_spill] sm:$0xff] }
 0xac1   : > { %5596 = vadd.xlane.f32.xlu1 %v5595_v23 }
 0xac4   : > { %5647 = vadd.xlane.f32.xlu0 %v5646_v49 }
 0xac5   : > { %5644 = vadd.xlane.f32.xlu1 %v5643_v45 }
 0xac8   : > { %5605 = vadd.xlane.f32.xlu0 %v5604_v36 }
 0xac9   : > { %5602 = vadd.xlane.f32.xlu1 %v5601_v29 }
 0xacc   : > { %5653 = vadd.xlane.f32.xlu0 %v5652_v51 }
 0xacd   : > { %5650 = vadd.xlane.f32.xlu1 %v5649_v60 }
 0xb00   : > { %v4895_v34 = vpop.xlane.xlu0 %4894 }
 0xb01   : > { %vm4899_vm0 = vcmp.gt.f32.partialorder %v4895_v34, 0.0 }
 0xb02   : > { %v4901_v52 = vsel %vm4899_vm0, %v4895_v34, 1.0  ;;  %v4898_v12 = vpop.xlane.xlu1 %4897 }
 0xb03   : > { %9318 = vrcp.f32 %v4901_v52  ;;  %vm4900_vm12 = vcmp.gt.f32.partialorder %v4898_v12, 0.0 }
 0xb04   : > { %v4902_v27 = vsel %vm4900_vm12, %v4898_v12, 1.0  ;;  %v5263_v14 = vpop.permute.xlu0 %5262 }
 0xb05   : > { %9320 = vrcp.f32 %v4902_v27  ;;  %8877 = vmatpush3.bf16.msra.mxu1 %v5263_v14 }
 0xb06   : > { %8882 = vmatprep.subr.bf16.mxu1 %v13925_v39 }
 0xb0d   : > { %v9319_v48 = vpop.eup %9318 }
 0xb0e   : > { %v12452_v5 = vmul.f32 %v9319_v48, %v12375_v53  ;;  %v13966_v53 = vld [vmem:[#allocation63_spill] sm:$0xff] }
 0xb0f   : > { %v9321_v17 = vpop.eup %9320 }
 0xb10   : > { %13962 = vst [vmem:[#allocation72_spill] sm:$0xff] %v12452_v5  ;;  %v12455_v41 = vmul.f32 %v9321_v17, %v12380_v10  ;;  %v5561_v10 = vpop.xlane.xlu1 %5560 }
 0xb11   : > { %v5690_v38 = vrot.slane %v5561_v10, %v12073_v55 }
 0xb12   : > { %13963 = vst [vmem:[#allocation75_spill] sm:$0xff] %v12455_v41  ;;  %v4907_v37 = vpack.c.bf16 %v12455_v41, %v12452_v5 }
 0xb14   : > { %8879 = vmatmul.mubr.msk.bf16.vlgmr.msra.gmra.mrb[20].mxu1 %vm3947_vm11, %v4907_v37  ;;  %v5564_v23 = vpop.xlane.xlu1 %5563 }
 0xb15   : > { %8883 = vmatpush3.bf16.xpose.msra.mxu1 %v5851_v13  ;;  %8884 = vmatprep.mubr.msk.bf16.mxu1 %vm10148_vm1, %v13925_v39  ;;  %v5694_v20 = vrot.slane %v5564_v23, %v12070_v61 }
 0xb16   : > { %8888 = vmatprep.subr.bf16.mxu1 %v13925_v39 }
 0xb17   : > { %v5695_v23 = vsel %vm3736_vm3, %v5694_v20, %v5690_v38 }
 0xb18   : > { %v5567_v49 = vpop.xlane.xlu1 %5566 }
 0xb19   : > { %v5699_v4 = vrot.slane %v5567_v49, %v12073_v55 }
 0xb1c   : > { %8885 = vmatmul.mubr.msk.bf16.vlgmr.msra.gmra.mrb[24].mxu1 %vm3596_vm2, %v13965_v62  ;;  %v5570_v45 = vpop.xlane.xlu1 %5569 }
 0xb1d   : > { %8889 = vmatpush3.bf16.msra.mxu1 %v13966_v53  ;;  %8890 = vmatprep.mubr.msk.bf16.mxu1 %vm10148_vm1, %v13925_v39  ;;  %v5703_v30 = vrot.slane %v5570_v45, %v12070_v61 }
 0xb1e   : > { %8894 = vmatprep.subr.bf16.mxu1 %v13925_v39 }
 0xb1f   : > { %v5704_v47 = vsel %vm3736_vm3, %v5703_v30, %v5699_v4 }
 0xb20   : > { %v5609_v36 = vpop.xlane.xlu1 %5608 }
 0xb21   : > { %v5762_v49 = vrot.slane %v5609_v36, %v12073_v55 }
 0xb24   : > { %v5612_v29 = vpop.xlane.xlu1 %5611 }
 0xb25   : > { %v5766_v21 = vrot.slane %v5612_v29, %v12070_v61 }
 0xb27   : > { %v5767_v30 = vsel %vm3736_vm3, %v5766_v21, %v5762_v49 }
 0xb28   : > { %v5618_v51 = vpop.xlane.xlu1 %5617 }
 0xb29   : > { %v5775_v10 = vrot.slane %v5618_v51, %v12070_v61 }
 0xb2c   : > { %v5573_v60 = vpop.xlane.xlu1 %5572 }
 0xb2d   : > { %v5708_v46 = vrot.slane %v5573_v60, %v12073_v55  ;;  %v5831_v60 = vsel %vm3873_vm4, %v5704_v47, %v5695_v23 }
 0xb30   : > { %v5576_v34 = vpop.xlane.xlu1 %5575 }
 0xb31   : > { %v5712_v56 = vrot.slane %v5576_v34, %v12070_v61 }
 0xb33   : > { %v5713_v25 = vsel %vm3736_vm3, %v5712_v56, %v5708_v46 }
 0xb34   : > { %v12471_v52 = vpop.xlane.xlu1 %5620  ;;  %v5832_v29 = vsel %vm3875_vm5, %v5713_v25, %v5831_v60 }
 0xb35   : > { %v5615_v14 = vpop.xlane.xlu0 %5614  ;;  %v5780_v46 = vrot.slane %v12471_v52, %v12073_v55 }
 0xb36   : > { %v5771_v40 = vrot.slane %v5615_v14, %v12073_v55 }
 0xb38   : > { %v12473_v12 = vpop.xlane.xlu1 %5623  ;;  %v5776_v38 = vsel %vm3736_vm3, %v5775_v10, %v5771_v40 }
 0xb39   : > { %v12475_v17 = vpop.xlane.xlu0 %5629  ;;  %v5784_v56 = vrot.slane %v12473_v12, %v12070_v61 }
 0xb3a   : > { %v5793_v51 = vrot.slane %v12475_v17, %v12070_v61 }
 0xb3b   : > { %v5785_v60 = vsel %vm3736_vm3, %v5784_v56, %v5780_v46 }
 0xb3c   : > { %v5579_v27 = vpop.xlane.xlu1 %5578 }
 0xb3d   : > { %v5588_v13 = vpop.xlane.xlu0 %5587  ;;  %v5717_v4 = vrot.slane %v5579_v27, %v12073_v55 }
 0xb3e   : > { %v5730_v47 = vrot.slane %v5588_v13, %v12070_v61 }
 0xb40   : > { %v5582_v48 = vpop.xlane.xlu1 %5581 }
 0xb41   : > { %v12477_v9 = vpop.xlane.xlu0 %5635  ;;  %v5721_v45 = vrot.slane %v5582_v48, %v12070_v61 }
 0xb42   : > { %v5802_v12 = vrot.slane %v12477_v9, %v12070_v61 }
 0xb43   : > { %v5722_v20 = vsel %vm3736_vm3, %v5721_v45, %v5717_v4 }
 0xb44   : > { %v5627_v37 = vpop.xlane.xlu1 %5626  ;;  %v5833_v10 = vsel %vm3877_vm6, %v5722_v20, %v5832_v29 }
 0xb45   : > { %v5594_v6 = vpop.xlane.xlu0 %5593  ;;  %v5789_v21 = vrot.slane %v5627_v37, %v12073_v55 }
 0xb46   : > { %v5739_v25 = vrot.slane %v5594_v6, %v12070_v61 }
 0xb48   : > { %v5585_v18 = vpop.xlane.xlu1 %5584 }
 0xb49   : > { %v12481_v5 = vpop.xlane.xlu0 %5641  ;;  %v5726_v36 = vrot.slane %v5585_v18, %v12073_v55 }
 0xb4a   : > { %v5811_v17 = vrot.slane %v12481_v5, %v12070_v61  ;;  %v5794_v5 = vsel %vm3736_vm3, %v5793_v51, %v5789_v21 }
 0xb4c   : > { %v12479_v43 = vpop.xlane.xlu1 %5632 }
 0xb4d   : > { %v5600_v39 = vpop.xlane.xlu0 %5599  ;;  %v5798_v40 = vrot.slane %v12479_v43, %v12073_v55  ;;  %v5838_v43 = vsel %vm3873_vm4, %v5776_v38, %v5767_v30 }
 0xb4e   : > { %v5748_v14 = vrot.slane %v5600_v39, %v12070_v61  ;;  %v5731_v39 = vsel %vm3736_vm3, %v5730_v47, %v5726_v36 }
 0xb4f   : > { %v5834_v47 = vsel %vm3879_vm7, %v5731_v39, %v5833_v10 }
 0xb50   : > { %v5591_v41 = vpop.xlane.xlu1 %5590 }
 0xb51   : > { %v12485_v42 = vpop.xlane.xlu0 %5647  ;;  %v5735_v52 = vrot.slane %v5591_v41, %v12073_v55 }
 0xb54   : > { %v12483_v53 = vpop.xlane.xlu1 %5638 }
 0xb55   : > { %v5606_v54 = vpop.xlane.xlu0 %5605  ;;  %v5807_v6 = vrot.slane %v12483_v53, %v12073_v55  ;;  %v5740_v53 = vsel %vm3736_vm3, %v5739_v25, %v5735_v52 }
 0xb56   : > { %v5757_v41 = vrot.slane %v5606_v54, %v12070_v61  ;;  %v5835_v51 = vsel %vm3881_vm8, %v5740_v53, %v5834_v47 }
 0xb57   : > { %v5812_v30 = vsel %vm3736_vm3, %v5811_v17, %v5807_v6 }
 0xb58   : > { %v5597_v57 = vpop.xlane.xlu1 %5596 }
 0xb59   : > { %v5654_v27 = vpop.xlane.xlu0 %5653  ;;  %v5744_v18 = vrot.slane %v5597_v57, %v12073_v55  ;;  %v5820_v57 = vrot.slane %v12485_v42, %v12070_v61  ;;  %v5803_v42 = vsel %vm3736_vm3, %v5802_v12, %v5798_v40 }
 0xb5a   : > { %v5829_v54 = vrot.slane %v5654_v27, %v12070_v61 }
 0xb5b   : > { %v5749_v4 = vsel %vm3736_vm3, %v5748_v14, %v5744_v18 }
 0xb5c   : > { %v12487_v26 = vpop.xlane.xlu1 %5644  ;;  %v5836_v29 = vsel %vm3883_vm9, %v5749_v4, %v5835_v51 }
 0xb5d   : > { %v5816_v45 = vrot.slane %v12487_v26, %v12073_v55  ;;  %v5839_v26 = vsel %vm3875_vm5, %v5785_v60, %v5838_v43 }
 0xb5e   : > { %v5840_v36 = vsel %vm3877_vm6, %v5794_v5, %v5839_v26 }
 0xb5f   : > { %v5821_v46 = vsel %vm3736_vm3, %v5820_v57, %v5816_v45  ;;  %v5841_v20 = vsel %vm3879_vm7, %v5803_v42, %v5840_v36 }
 0xb60   : > { %v5603_v34 = vpop.xlane.xlu1 %5602  ;;  %v5842_v52 = vsel %vm3881_vm8, %v5812_v30, %v5841_v20 }
 0xb61   : > { %v5753_v9 = vrot.slane %v5603_v34, %v12073_v55  ;;  %v5843_v40 = vsel %vm3883_vm9, %v5821_v46, %v5842_v52 }
 0xb63   : > { %v5758_v38 = vsel %vm3736_vm3, %v5757_v41, %v5753_v9  ;;  %v12567_v41 = vld [vmem:[%s13924_s0] sm:$0xff] }
 0xb64   : > { %v5651_v48 = vpop.xlane.xlu1 %5650  ;;  %v5837_v21 = vsel %vm3885_vm10, %v5758_v38, %v5836_v29 }
 0xb65   : > { %v5825_v34 = vrot.slane %v5651_v48, %v12073_v55 }
 0xb67   : > { %v5830_v56 = vsel %vm3736_vm3, %v5829_v54, %v5825_v34 }
 0xb68   : > { %v5844_v14 = vsel %vm3885_vm10, %v5830_v56, %v5843_v40 }
 0xbe7   : > { %v12526_v13 = vpop.f32.mrb[20].mxu1 }
 0xbe8   : > { %13967 = vst [vmem:[#allocation78_spill] sm:$0xff] %v12526_v13  ;;  %v8880_v37 = vpop.f32.mrb[21].mxu1 }
 0xbe9   : > { %v12540_v23 = vpop.f32.mrb[22].mxu1 }
 0xbea   : > { %13968 = vst [vmem:[#allocation117_spill] sm:$0xff] %v12540_v23  ;;  %v8881_v49 = vpop.f32.mrb[23].mxu1 }
 0xbef   : > { %v5887_v25 = vpop.f32.mrb[24].mxu1 }
 0xbf0   : > { %v5888_v27 = vadd.f32 %v5887_v25, %v5837_v21  ;;  %v8886_v12 = vpop.f32.mrb[25].mxu1 }
 0xbf1   : > { %v5890_v18 = vpop.f32.mrb[26].mxu1 }
 0xbf2   : > { %v5894_v48 = vmul.f32 0.125, %v5888_v27  ;;  %v5891_v17 = vadd.f32 %v5890_v18, %v5844_v14  ;;  %v8887_v6 = vpop.f32.mrb[27].mxu1 }
 0xbf4   : > { %v5896_v9 = vadd.f32 %v12567_v41, %v5894_v48  ;;  %v5895_v37 = vmul.f32 0.125, %v5891_v17 }
 0xbf6   : > { %v5897_v43 = vadd.f32 %v5895_v37, %v12149_v7  ;;  %v5898_v39 = vsel %vm3947_vm11, %v5896_v9, -inf }
 0xbf7   : > { %5899 = vmax.xlane.f32.xlu1 %v5898_v39 }
 0xbf8   : > { %v5901_v57 = vsel %vm3947_vm11, %v5897_v43, -inf }
 0xbf9   : > { %5902 = vmax.xlane.f32.xlu0 %v5901_v57 }
 0xc84   : > { %v5900_v45 = vpop.xlane.xlu1 %5899 }
 0xc85   : > { %v5904_v5 = vsub.f32 %v5896_v9, %v5900_v45  ;;  %v13983_v9 = vmov 0.0  }
 0xc86   : > { %v5903_v53 = vpop.xlane.xlu0 %5902 }
 0xc87   : > { %v5906_v54 = vmul.f32 1.442695, %v5904_v5  ;;  %v5905_v34 = vsub.f32 %v5897_v43, %v5903_v53 }
 0xc89   : > { %9322 = vpow2.f32 %v5906_v54  ;;  %v5908_v49 = vmul.f32 1.442695, %v5905_v34 }
 0xc8b   : > { %9324 = vpow2.f32 %v5908_v49 }
 0xc93   : > { %v9323_v60 = vpop.eup %9322 }
 0xc94   : > { %v12574_v10 = vmul.f32 %v9323_v60, %v12155_v0 }
 0xc95   : > { %v9325_v42 = vpop.eup %9324 }
 0xc96   : > { %v5912_v7 = vsel %vm3947_vm11, %v12574_v10, 0.0  ;;  %v5911_v4 = vmul.f32 %v9325_v42, %v12184_v22 }
 0xc97   : > { %5913 = vadd.xlane.f32.xlu1 %v5912_v7 }
 0xc98   : > { %v5915_v26 = vsel %vm3947_vm11, %v5911_v4, 0.0 }
 0xc99   : > { %5916 = vadd.xlane.f32.xlu0 %v5915_v26 }
 0xca8   : > { %6584 = vrot.lane.b32.xlu1 %v13964_v28, %s10150_s2 }
 0xcac   : > { %6388 = vrot.lane.b32.xlu1 %v11617_v15, %s10150_s2  ;;  %v13969_v15 = vld [vmem:[#allocation141_spill] sm:$0xff] }
 0xcaf   : > { %6581 = vrot.lane.b32.xlu0 %v13965_v62, %s10150_s2 }
 0xcb0   : > { %6390 = vrot.lane.b32.xlu1 %v13930_v24, %s10150_s2  ;;  %v13970_v24 = vld [vmem:[#allocation144_spill] sm:$0xff] }
 0xcb3   : > { %6392 = vrot.lane.b32.xlu0 %v13931_v50, %s10150_s2  ;;  %v13971_v50 = vld [vmem:[#allocation99_spill] sm:$0xff] }
 0xcb4   : > { %6394 = vrot.lane.b32.xlu1 %v13932_v44, %s10150_s2  ;;  %v13972_v44 = vld [vmem:[#allocation102_spill] sm:$0xff] }
 0xcb7   : > { %6420 = vrot.lane.b32.xlu0 %v13933_v3, %s10150_s2  ;;  %v13973_v3 = vld [vmem:[#allocation147_spill] sm:$0xff] }
 0xcb8   : > { %6422 = vrot.lane.b32.xlu1 %v13935_v11, %s10150_s2  ;;  %v13974_v11 = vld [vmem:[#allocation150_spill] sm:$0xff] }
 0xcbb   : > { %6424 = vrot.lane.b32.xlu0 %v13942_v58, %s10150_s2  ;;  %v13981_v58 = vld [vmem:[#allocation159_spill] sm:$0xff] }
 0xcbc   : > { %6426 = vrot.lane.b32.xlu1 %v13936_v19, %s10150_s2  ;;  %v13975_v19 = vld [vmem:[#allocation105_spill] sm:$0xff] }
 0xcbf   : > { %6396 = vrot.lane.b32.xlu0 %v13937_v31, %s10150_s2  ;;  %v13976_v31 = vld [vmem:[#allocation108_spill] sm:$0xff] }
 0xcc0   : > { %6398 = vrot.lane.b32.xlu1 %v13938_v8, %s10150_s2  ;;  %v13977_v8 = vld [vmem:[#allocation153_spill] sm:$0xff] }
 0xcc3   : > { %6428 = vrot.lane.b32.xlu0 %v13939_v33, %s10150_s2  ;;  %v13978_v33 = vld [vmem:[#allocation156_spill] sm:$0xff] }
 0xcc4   : > { %6430 = vrot.lane.b32.xlu1 %v13940_v35, %s10150_s2  ;;  %v13979_v35 = vld [vmem:[#allocation111_spill] sm:$0xff] }
 0xcc7   : > { %6400 = vrot.lane.b32.xlu0 %v13941_v32, %s10150_s2  ;;  %v13980_v32 = vld [vmem:[#allocation114_spill] sm:$0xff] }
 0xcc8   : > { %6402 = vrot.lane.b32.xlu1 %v13943_v63, %s10150_s2  ;;  %v13982_v63 = vld [vmem:[#allocation162_spill] sm:$0xff] }
 0xccb   : > { %6432 = vrot.lane.b32.xlu0 %v13945_v2, %s10150_s2 }
 0xccc   : > { %6434 = vrot.lane.b32.xlu1 %v13944_v16, %s10150_s2 }
 0xccf   : > { %6404 = vrot.lane.b32.xlu0 %v13947_v59, %s10150_s2 }
 0xcd0   : > { %6406 = vrot.lane.b32.xlu1 %v13946_v1, %s10150_s2 }
 0xcd3   : > { %6436 = vrot.lane.b32.xlu0 %v13969_v15, %s10150_s2 }
 0xcd4   : > { %6438 = vrot.lane.b32.xlu1 %v13970_v24, %s10150_s2 }
 0xcd7   : > { %6408 = vrot.lane.b32.xlu0 %v13971_v50, %s10150_s2 }
 0xcd8   : > { %6410 = vrot.lane.b32.xlu1 %v13972_v44, %s10150_s2 }
 0xcdb   : > { %6440 = vrot.lane.b32.xlu0 %v13973_v3, %s10150_s2 }
 0xcdc   : > { %6442 = vrot.lane.b32.xlu1 %v13974_v11, %s10150_s2 }
 0xcdf   : > { %6412 = vrot.lane.b32.xlu0 %v13975_v19, %s10150_s2 }
 0xce0   : > { %6414 = vrot.lane.b32.xlu1 %v13976_v31, %s10150_s2 }
 0xce3   : > { %6444 = vrot.lane.b32.xlu0 %v13977_v8, %s10150_s2 }
 0xce4   : > { %6446 = vrot.lane.b32.xlu1 %v13978_v33, %s10150_s2 }
 0xce7   : > { %6416 = vrot.lane.b32.xlu0 %v13979_v35, %s10150_s2 }
 0xce8   : > { %6418 = vrot.lane.b32.xlu1 %v13980_v32, %s10150_s2 }
 0xceb   : > { %6448 = vrot.lane.b32.xlu0 %v13981_v58, %s10150_s2 }
 0xcec   : > { %6450 = vrot.lane.b32.xlu1 %v13982_v63, %s10150_s2 }
 0xd24   : > { %v5914_v16 = vpop.xlane.xlu1 %5913 }
 0xd25   : > { %vm5918_vm13 = vcmp.gt.f32.partialorder %v5914_v16, 0.0 }
 0xd26   : > { %v5920_v2 = vsel %vm5918_vm13, %v5914_v16, 1.0  ;;  %v5917_v1 = vpop.xlane.xlu0 %5916 }
 0xd27   : > { %9326 = vrcp.f32 %v5920_v2  ;;  %vm5919_vm14 = vcmp.gt.f32.partialorder %v5917_v1, 0.0 }
 0xd28   : > { %v5921_v59 = vsel %vm5919_vm14, %v5917_v1, 1.0  ;;  %v6585_v28 = vpop.permute.xlu1 %6584 }
 0xd29   : > { %9328 = vrcp.f32 %v5921_v59  ;;  %v6782_v18 = vsel %vm3596_vm2, %v6585_v28, 0 }
 0xd2a   : > { %v6582_v62 = vpop.permute.xlu0 %6581 }
 0xd2c   : > { %v6389_v30 = vpop.permute.xlu1 %6388 }
 0xd2d   : > { %v6484_v38 = vsel %vm3596_vm2, %v6389_v30, 0.0 }
 0xd2e   : > { %6485 = vadd.xlane.f32.xlu0 %v6484_v38  ;;  %v6393_v47 = vpop.permute.xlu0 %6392 }
 0xd2f   : > { %v6490_v29 = vsel %vm3596_vm2, %v6393_v47, 0.0 }
 0xd30   : > { %v6391_v36 = vpop.permute.xlu1 %6390 }
 0xd31   : > { %v9327_v51 = vpop.eup %9326  ;;  %v6487_v46 = vsel %vm3596_vm2, %v6391_v36, 0.0 }
 0xd32   : > { %6488 = vadd.xlane.f32.xlu1 %v6487_v46  ;;  %6491 = vadd.xlane.f32.xlu0 %v6490_v29  ;;  %v6421_v56 = vpop.permute.xlu0 %6420  ;;  %v12652_v21 = vmul.f32 %v9327_v51, %v12574_v10 }
 0xd33   : > { %v9329_v20 = vpop.eup %9328  ;;  %v6532_v12 = vsel %vm3596_vm2, %v6421_v56, 0.0 }
 0xd34   : > { %v12654_v25 = vmul.f32 %v9329_v20, %v5911_v4  ;;  %v6395_v52 = vpop.permute.xlu1 %6394 }
 0xd35   : > { %v6493_v27 = vsel %vm3596_vm2, %v6395_v52, 0.0 }
 0xd36   : > { %6494 = vadd.xlane.f32.xlu0 %v6493_v27  ;;  %6533 = vadd.xlane.f32.xlu1 %v6532_v12  ;;  %v6425_v40 = vpop.permute.xlu0 %6424  ;;  %v5926_v14 = vpack.c.bf16 %v12654_v25, %v12652_v21 }
 0xd37   : > { %v6538_v6 = vsel %vm3596_vm2, %v6425_v40, 0.0 }
 0xd38   : > { %v6423_v48 = vpop.permute.xlu1 %6422  ;;  %8891 = vmatmul.mubr.msk.bf16.vlgmr.msra.gmra.mrb[28].mxu1 %vm3947_vm11, %v5926_v14 }
 0xd39   : > { %8895 = vmatpush3.bf16.xpose.msra.mxu1 %v6782_v18  ;;  %v6535_v17 = vsel %vm3596_vm2, %v6423_v48, 0.0  ;;  %8896 = vmatprep.mubr.msk.bf16.mxu1 %vm10148_vm1, %v13983_v9 }
 0xd3a   : > { %6536 = vadd.xlane.f32.xlu0 %v6535_v17  ;;  %6539 = vadd.xlane.f32.xlu1 %v6538_v6  ;;  %v6397_v37 = vpop.permute.xlu0 %6396 }
 0xd3b   : > { %8900 = vmatprep.subr.bf16.mxu1 %v13983_v9  ;;  %v6496_v57 = vsel %vm3596_vm2, %v6397_v37, 0.0 }
 0xd3c   : > { %v6427_v43 = vpop.permute.xlu1 %6426 }
 0xd3d   : > { %v6541_v39 = vsel %vm3596_vm2, %v6427_v43, 0.0 }
 0xd3e   : > { %6542 = vadd.xlane.f32.xlu0 %v6541_v39  ;;  %6497 = vadd.xlane.f32.xlu1 %v6496_v57  ;;  %v6429_v45 = vpop.permute.xlu0 %6428 }
 0xd3f   : > { %v6544_v54 = vsel %vm3596_vm2, %v6429_v45, 0.0 }
 0xd40   : > { %v6399_v5 = vpop.permute.xlu1 %6398  ;;  %8897 = vmatmul.mubr.msk.bf16.vlgmr.msra.gmra.mrb[32].mxu1 %vm3596_vm2, %v6582_v62 }
 0xd41   : > { %v6499_v53 = vsel %vm3596_vm2, %v6399_v5, 0.0  ;;  %8902 = vmatprep.mubr.msk.bf16.mxu1 %vm10148_vm1, %v13983_v9  ;;  %vm5116_vm1 = vcmask 1048064  }
 0xd42   : > { %6500 = vadd.xlane.f32.xlu0 %v6499_v53  ;;  %6545 = vadd.xlane.f32.xlu1 %v6544_v54  ;;  %v6401_v34 = vpop.permute.xlu0 %6400 }
 0xd43   : > { %v6502_v10 = vsel %vm3596_vm2, %v6401_v34, 0.0 }
 0xd44   : > { %v6431_v49 = vpop.permute.xlu1 %6430 }
 0xd45   : > { %v6547_v60 = vsel %vm3596_vm2, %v6431_v49, 0.0 }
 0xd46   : > { %6548 = vadd.xlane.f32.xlu0 %v6547_v60  ;;  %6503 = vadd.xlane.f32.xlu1 %v6502_v10  ;;  %v6433_v42 = vpop.permute.xlu0 %6432 }
 0xd47   : > { %v6550_v26 = vsel %vm3596_vm2, %v6433_v42, 0.0 }
 0xd48   : > { %v6403_v7 = vpop.permute.xlu1 %6402 }
 0xd49   : > { %v6505_v4 = vsel %vm3596_vm2, %v6403_v7, 0.0 }
 0xd4a   : > { %6506 = vadd.xlane.f32.xlu0 %v6505_v4  ;;  %6551 = vadd.xlane.f32.xlu1 %v6550_v26  ;;  %v6405_v15 = vpop.permute.xlu0 %6404 }
 0xd4b   : > { %v6508_v44 = vsel %vm3596_vm2, %v6405_v15, 0.0 }
 0xd4c   : > { %v6435_v24 = vpop.permute.xlu1 %6434 }
 0xd4d   : > { %v6553_v50 = vsel %vm3596_vm2, %v6435_v24, 0.0 }
 0xd4e   : > { %6554 = vadd.xlane.f32.xlu0 %v6553_v50  ;;  %6509 = vadd.xlane.f32.xlu1 %v6508_v44  ;;  %v6437_v3 = vpop.permute.xlu0 %6436 }
 0xd4f   : > { %v6556_v31 = vsel %vm3596_vm2, %v6437_v3, 0.0 }
 0xd50   : > { %v6407_v11 = vpop.permute.xlu1 %6406 }
 0xd51   : > { %v6511_v19 = vsel %vm3596_vm2, %v6407_v11, 0.0 }
 0xd52   : > { %6512 = vadd.xlane.f32.xlu0 %v6511_v19  ;;  %6557 = vadd.xlane.f32.xlu1 %v6556_v31  ;;  %v6409_v8 = vpop.permute.xlu0 %6408 }
 0xd53   : > { %v6514_v32 = vsel %vm3596_vm2, %v6409_v8, 0.0 }
 0xd54   : > { %v6439_v33 = vpop.permute.xlu1 %6438 }
 0xd55   : > { %v6559_v35 = vsel %vm3596_vm2, %v6439_v33, 0.0 }
 0xd56   : > { %6560 = vadd.xlane.f32.xlu0 %v6559_v35  ;;  %6515 = vadd.xlane.f32.xlu1 %v6514_v32  ;;  %v6441_v58 = vpop.permute.xlu0 %6440 }
 0xd57   : > { %v6562_v2 = vsel %vm3596_vm2, %v6441_v58, 0.0 }
 0xd58   : > { %v6411_v63 = vpop.permute.xlu1 %6410 }
 0xd59   : > { %v6517_v16 = vsel %vm3596_vm2, %v6411_v63, 0.0 }
 0xd5a   : > { %6518 = vadd.xlane.f32.xlu0 %v6517_v16  ;;  %6563 = vadd.xlane.f32.xlu1 %v6562_v2  ;;  %v6413_v1 = vpop.permute.xlu0 %6412 }
 0xd5b   : > { %v6520_v62 = vsel %vm3596_vm2, %v6413_v1, 0.0 }
 0xd5c   : > { %v6443_v59 = vpop.permute.xlu1 %6442 }
 0xd5d   : > { %v6565_v28 = vsel %vm3596_vm2, %v6443_v59, 0.0 }
 0xd5e   : > { %6566 = vadd.xlane.f32.xlu0 %v6565_v28  ;;  %6521 = vadd.xlane.f32.xlu1 %v6520_v62  ;;  %v6445_v30 = vpop.permute.xlu0 %6444 }
 0xd5f   : > { %v6568_v36 = vsel %vm3596_vm2, %v6445_v30, 0.0 }
 0xd60   : > { %v6415_v38 = vpop.permute.xlu1 %6414 }
 0xd61   : > { %v6523_v47 = vsel %vm3596_vm2, %v6415_v38, 0.0 }
 0xd62   : > { %6524 = vadd.xlane.f32.xlu0 %v6523_v47  ;;  %6569 = vadd.xlane.f32.xlu1 %v6568_v36  ;;  %v6417_v51 = vpop.permute.xlu0 %6416 }
 0xd63   : > { %v6526_v56 = vsel %vm3596_vm2, %v6417_v51, 0.0 }
 0xd64   : > { %v6447_v46 = vpop.permute.xlu1 %6446 }
 0xd65   : > { %v6571_v29 = vsel %vm3596_vm2, %v6447_v46, 0.0 }
 0xd66   : > { %6572 = vadd.xlane.f32.xlu0 %v6571_v29  ;;  %6527 = vadd.xlane.f32.xlu1 %v6526_v56  ;;  %v6449_v20 = vpop.permute.xlu0 %6448 }
 0xd67   : > { %v6574_v12 = vsel %vm3596_vm2, %v6449_v20, 0.0 }
 0xd68   : > { %v6419_v52 = vpop.permute.xlu1 %6418 }
 0xd69   : > { %v6529_v27 = vsel %vm3596_vm2, %v6419_v52, 0.0 }
 0xd6a   : > { %6530 = vadd.xlane.f32.xlu0 %v6529_v27  ;;  %6575 = vadd.xlane.f32.xlu1 %v6574_v12 }
 0xd6c   : > { %v6451_v40 = vpop.permute.xlu1 %6450 }
 0xd6d   : > { %v6577_v14 = vsel %vm3596_vm2, %v6451_v40, 0.0 }
 0xd6e   : > { %6578 = vadd.xlane.f32.xlu0 %v6577_v14 }
 0xdbb   : > { %v6486_v18 = vpop.xlane.xlu0 %6485 }
 0xdbc   : > { %v6621_v28 = vrot.slane %v6486_v18, %v12073_v55 }
 0xdbf   : > { %v6489_v48 = vpop.xlane.xlu1 %6488  ;;  %v6492_v17 = vpop.xlane.xlu0 %6491 }
 0xdc0   : > { %v6625_v32 = vrot.slane %v6489_v48, %v12070_v61  ;;  %v6630_v58 = vrot.slane %v6492_v17, %v12073_v55 }
 0xdc2   : > { %v6626_v29 = vsel %vm3736_vm3, %v6625_v32, %v6621_v28 }
 0xdc3   : > { %v6534_v6 = vpop.xlane.xlu1 %6533  ;;  %v6495_v9 = vpop.xlane.xlu0 %6494 }
 0xdc4   : > { %v6634_v31 = vrot.slane %v6495_v9, %v12070_v61  ;;  %v6693_v62 = vrot.slane %v6534_v6, %v12073_v55 }
 0xdc6   : > { %v6635_v30 = vsel %vm3736_vm3, %v6634_v31, %v6630_v58 }
 0xdc7   : > { %v6540_v37 = vpop.xlane.xlu1 %6539  ;;  %v6537_v43 = vpop.xlane.xlu0 %6536  ;;  %v6762_v52 = vsel %vm3873_vm4, %v6635_v30, %v6626_v29 }
 0xdc8   : > { %v6702_v63 = vrot.slane %v6540_v37, %v12073_v55  ;;  %v6697_v16 = vrot.slane %v6537_v43, %v12070_v61 }
 0xdca   : > { %v6698_v56 = vsel %vm3736_vm3, %v6697_v16, %v6693_v62 }
 0xdcb   : > { %v6498_v39 = vpop.xlane.xlu1 %6497  ;;  %v6543_v57 = vpop.xlane.xlu0 %6542 }
 0xdcc   : > { %v6706_v8 = vrot.slane %v6543_v57, %v12070_v61  ;;  %v6639_v2 = vrot.slane %v6498_v39, %v12073_v55 }
 0xdce   : > { %v6707_v38 = vsel %vm3736_vm3, %v6706_v8, %v6702_v63 }
 0xdcf   : > { %v6501_v45 = vpop.xlane.xlu0 %6500  ;;  %v6546_v5 = vpop.xlane.xlu1 %6545  ;;  %v6769_v27 = vsel %vm3873_vm4, %v6707_v38, %v6698_v56 }
 0xdd0   : > { %v6643_v33 = vrot.slane %v6501_v45, %v12070_v61  ;;  %v6711_v1 = vrot.slane %v6546_v5, %v12073_v55 }
 0xdd2   : > { %v6644_v47 = vsel %vm3736_vm3, %v6643_v33, %v6639_v2 }
 0xdd3   : > { %v6549_v53 = vpop.xlane.xlu0 %6548  ;;  %v6504_v54 = vpop.xlane.xlu1 %6503  ;;  %v6763_v14 = vsel %vm3875_vm5, %v6644_v47, %v6762_v52  ;;  %v9343_v52 = vld [vmem:[%s13924_s0 + $0x8] sm:$0xff] }
 0xdd4   : > { %v6715_v35 = vrot.slane %v6549_v53, %v12070_v61  ;;  %v6648_v12 = vrot.slane %v6504_v54, %v12073_v55 }
 0xdd6   : > { %v6716_v36 = vsel %vm3736_vm3, %v6715_v35, %v6711_v1 }
 0xdd7   : > { %v6507_v34 = vpop.xlane.xlu0 %6506  ;;  %v6552_v60 = vpop.xlane.xlu1 %6551  ;;  %v6770_v18 = vsel %vm3875_vm5, %v6716_v36, %v6769_v27 }
 0xdd8   : > { %v6652_v51 = vrot.slane %v6507_v34, %v12070_v61  ;;  %v6720_v48 = vrot.slane %v6552_v60, %v12073_v55 }
 0xdda   : > { %v6653_v6 = vsel %vm3736_vm3, %v6652_v51, %v6648_v12 }
 0xddb   : > { %v6555_v49 = vpop.xlane.xlu0 %6554  ;;  %v6510_v42 = vpop.xlane.xlu1 %6509  ;;  %v6764_v8 = vsel %vm3877_vm6, %v6653_v6, %v6763_v14  ;;  %v13986_v14 = vld [vmem:[#allocation63_spill] sm:$0xff] }
 0xddc   : > { %v6724_v20 = vrot.slane %v6555_v49, %v12070_v61  ;;  %v6657_v9 = vrot.slane %v6510_v42, %v12073_v55 }
 0xdde   : > { %v6725_v45 = vsel %vm3736_vm3, %v6724_v20, %v6720_v48  ;;  %v13988_v48 = vld [vmem:[#allocation72_spill] sm:$0xff] }
 0xddf   : > { %v6513_v10 = vpop.xlane.xlu0 %6512  ;;  %v12697_v4 = vpop.xlane.xlu1 %6557 }
 0xde0   : > { %v6661_v40 = vrot.slane %v6513_v10, %v12070_v61  ;;  %v6729_v49 = vrot.slane %v12697_v4, %v12073_v55 }
 0xde2   : > { %v6662_v60 = vsel %vm3736_vm3, %v6661_v40, %v6657_v9 }
 0xde3   : > { %v12695_v7 = vpop.xlane.xlu0 %6560  ;;  %v6516_v15 = vpop.xlane.xlu1 %6515  ;;  %v6765_v58 = vsel %vm3879_vm7, %v6662_v60, %v6764_v8 }
 0xde4   : > { %v6733_v37 = vrot.slane %v12695_v7, %v12070_v61  ;;  %v6666_v5 = vrot.slane %v6516_v15, %v12073_v55 }
 0xde7   : > { %v6519_v26 = vpop.xlane.xlu0 %6518  ;;  %v12701_v50 = vpop.xlane.xlu1 %6563 }
 0xde8   : > { %v6670_v17 = vrot.slane %v6519_v26, %v12070_v61  ;;  %v6738_v15 = vrot.slane %v12701_v50, %v12073_v55 }
 0xdeb   : > { %v12699_v24 = vpop.xlane.xlu0 %6566  ;;  %v6522_v3 = vpop.xlane.xlu1 %6521 }
 0xdec   : > { %v6742_v53 = vrot.slane %v12699_v24, %v12070_v61  ;;  %v6675_v10 = vrot.slane %v6522_v3, %v12073_v55  ;;  %v6671_v24 = vsel %vm3736_vm3, %v6670_v17, %v6666_v5  ;;  %v6734_v3 = vsel %vm3736_vm3, %v6733_v37, %v6729_v49 }
 0xded   : > { %v6766_v63 = vsel %vm3881_vm8, %v6671_v24, %v6765_v58  ;;  %v13994_v58 = vld [vmem:[#allocation58_spill] sm:$0xff] }
 0xdee   : > { %v6743_v35 = vsel %vm3736_vm3, %v6742_v53, %v6738_v15 }
 0xdef   : > { %v6525_v44 = vpop.xlane.xlu0 %6524  ;;  %v12705_v19 = vpop.xlane.xlu1 %6569 }
 0xdf0   : > { %v6679_v43 = vrot.slane %v6525_v44, %v12070_v61 }
 0xdf2   : > { %v6680_v33 = vsel %vm3736_vm3, %v6679_v43, %v6675_v10  ;;  %v13991_v10 = vld [vmem:[#allocation68_spill] sm:$0xff] }
 0xdf3   : > { %v12703_v11 = vpop.xlane.xlu0 %6572  ;;  %v6528_v46 = vpop.xlane.xlu1 %6527  ;;  %v6767_v2 = vsel %vm3883_vm9, %v6680_v33, %v6766_v63  ;;  %v13992_v33 = vld [vmem:[#allocation75_spill] sm:$0xff] }
 0xdf4   : > { %v6751_v42 = vrot.slane %v12703_v11, %v12070_v61  ;;  %v6684_v44 = vrot.slane %v6528_v46, %v12073_v55  ;;  %v6747_v11 = vrot.slane %v12705_v19, %v12073_v55  ;;  %v5032_v63 = vrot.slane %v13992_v33, %v13994_v58 }
 0xdf6   : > { %v6752_v16 = vsel %vm3736_vm3, %v6751_v42, %v6747_v11 }
 0xdf7   : > { %v6531_v59 = vpop.xlane.xlu0 %6530  ;;  %v6576_v7 = vpop.xlane.xlu1 %6575 }
 0xdf8   : > { %v6688_v54 = vrot.slane %v6531_v59, %v12070_v61  ;;  %v6756_v50 = vrot.slane %v6576_v7, %v12073_v55 }
 0xdfa   : > { %v6689_v32 = vsel %vm3736_vm3, %v6688_v54, %v6684_v44 }
 0xdfb   : > { %v6579_v39 = vpop.xlane.xlu0 %6578  ;;  %v6768_v59 = vsel %vm3885_vm10, %v6689_v32, %v6767_v2 }
 0xdfc   : > { %v6760_v31 = vrot.slane %v6579_v39, %v12070_v61  ;;  %v6771_v61 = vsel %vm3877_vm6, %v6725_v45, %v6770_v18  ;;  %v13987_v18 = vld [vmem:[#allocation54_spill] sm:$0xff] }
 0xdfd   : > { %v6772_v1 = vsel %vm3879_vm7, %v6734_v3, %v6771_v61  ;;  %v4911_v17 = vrot.slane %v13988_v48, %v13987_v18  ;;  %v4944_v61 = vrot.slane %v13988_v48, %v13994_v58 }
 0xdfe   : > { %v6761_v19 = vsel %vm3736_vm3, %v6760_v31, %v6756_v50  ;;  %v6773_v55 = vsel %vm3881_vm8, %v6743_v35, %v6772_v1  ;;  %v4999_v35 = vrot.slane %v13992_v33, %v13987_v18  ;;  %v13993_v50 = vld [vmem:[#allocation56_spill] sm:$0xff]  ;;  %v13996_v1 = vld [vmem:[#allocation61_spill] sm:$0xff] }
 0xdff   : > { %v6774_v38 = vsel %vm3883_vm9, %v6752_v16, %v6773_v55  ;;  %v4933_v32 = vrot.slane %v13988_v48, %v13993_v50  ;;  %v13995_v16 = vld [vmem:[#allocation60_spill] sm:$0xff]  ;;  %v13997_v55 = vld [vmem:[#allocation53_spill] sm:$0xff] }
 0xe00   : > { %v6775_v47 = vsel %vm3885_vm10, %v6761_v19, %v6774_v38  ;;  %v4955_v2 = vrot.slane %v13988_v48, %v13995_v16  ;;  %v5043_v19 = vrot.slane %v13992_v33, %v13995_v16 }
 0xe0b   : > { %v12740_v57 = vpop.f32.mrb[28].mxu1 }
 0xe0c   : > { %13984 = vst [vmem:[#allocation62_spill] sm:$0xff] %v12740_v57  ;;  %v8892_v34 = vpop.f32.mrb[29].mxu1 }
 0xe0d   : > { %v12753_v26 = vpop.f32.mrb[30].mxu1  ;;  %v13990_v34 = vld [vmem:[#allocation70_spill] sm:$0xff] }
 0xe0e   : > { %13985 = vst [vmem:[#allocation120_spill] sm:$0xff] %v12753_v26  ;;  %v8893_v4 = vpop.f32.mrb[31].mxu1 }
 0xe13   : > { %v6818_v28 = vpop.f32.mrb[32].mxu1 }
 0xe14   : > { %v6819_v62 = vadd.f32 %v6818_v28, %v6768_v59  ;;  %v8898_v30 = vpop.f32.mrb[33].mxu1  ;;  %v4966_v59 = vrot.slane %v13988_v48, %v13996_v1  ;;  %v5054_v28 = vrot.slane %v13992_v33, %v13996_v1 }
 0xe15   : > { %v6821_v36 = vpop.f32.mrb[34].mxu1 }
 0xe16   : > { %v6825_v51 = vmul.f32 0.125, %v6819_v62  ;;  %v6822_v46 = vadd.f32 %v6821_v36, %v6775_v47  ;;  %v8899_v29 = vpop.f32.mrb[35].mxu1  ;;  %v12828_v62 = vsub.s32 6, %v13997_v55  ;;  %v12835_v47 = vsub.s32 7, %v13997_v55 }
 0xe18   : > { %v6827_v56 = vadd.f32 %v12567_v41, %v6825_v51  ;;  %v6826_v20 = vmul.f32 0.125, %v6822_v46  ;;  %v13989_v41 = vld [vmem:[#allocation55_spill] sm:$0xff]  ;;  %v4977_v30 = vrot.slane %v13988_v48, %v12828_v62  ;;  %v5065_v38 = vrot.slane %v13992_v33, %v12828_v62 }
 0xe19   : > { %v4922_v6 = vrot.slane %v13988_v48, %v13989_v41  ;;  %v4988_v36 = vrot.slane %v13988_v48, %v12835_v47  ;;  %v5076_v51 = vrot.slane %v13992_v33, %v12835_v47 }
 0xe1a   : > { %v6828_v27 = vadd.f32 %v9343_v52, %v6826_v20  ;;  %v6829_v12 = vsel %vm3947_vm11, %v6827_v56, -inf }
 0xe1b   : > { %6830 = vmax.xlane.f32.xlu1 %v6829_v12 }
 0xe1c   : > { %v6832_v40 = vsel %vm3947_vm11, %v6828_v27, -inf }
 0xe1d   : > { %6833 = vmax.xlane.f32.xlu0 %v6832_v40 }
 0xe2c   : > { %7211 = vrot.lane.b32.xlu1 %v13986_v14, %s10150_s2  ;;  %v13998_v14 = vld [vmem:[#allocation73_spill] sm:$0xff] }
 0xe30   : > { %4913 = vbcast.lane.b32.xlu1 %v4911_v17, 256 }
 0xe33   : > { %4917 = vbcast.lane.b32.xlu0 %v4911_v17, 264 }
 0xe34   : > { %4924 = vbcast.lane.b32.xlu1 %v4922_v6, 256 }
 0xea8   : > { %v6831_v9 = vpop.xlane.xlu1 %6830 }
 0xea9   : > { %v6835_v37 = vsub.f32 %v6827_v56, %v6831_v9 }
 0xeaa   : > { %v6834_v43 = vpop.xlane.xlu0 %6833 }
 0xeab   : > { %v6837_v39 = vmul.f32 1.442695, %v6835_v37  ;;  %v6836_v45 = vsub.f32 %v6828_v27, %v6834_v43 }
 0xeac   : > { %v7212_v5 = vpop.permute.xlu1 %7211 }
 0xead   : > { %9330 = vpow2.f32 %v6837_v39  ;;  %v6839_v53 = vmul.f32 1.442695, %v6836_v45  ;;  %8901 = vmatpush3.bf16.msra.mxu1 %v7212_v5  ;;  %v14000_v45 = vld [vmem:[#allocation115_spill] sm:$0xff] }
 0xeae   : > { %v4918_v54 = vpop.permute.xlu0 %4917 }
 0xeaf   : > { %9332 = vpow2.f32 %v6839_v53  ;;  %v5085_v49 = vmul.f32 %v4918_v54, %v13990_v34 }
 0xeb0   : > { %v4914_v60 = vpop.permute.xlu1 %4913 }
 0xeb1   : > { %v5084_v42 = vmul.f32 %v4914_v60, %v13991_v10  ;;  %v5118_v7 = vsel %vm5116_vm1, %v5085_v49, 0.0  ;;  %v14001_v60 = vld [vmem:[#allocation118_spill] sm:$0xff] }
 0xeb3   : > { %v5117_v15 = vsel %vm5116_vm1, %v5084_v42, 0.0 }
 0xeb4   : > { %v12795_v24 = vadd.f32 %v5118_v7, %v5117_v15  ;;  %v4925_v46 = vpop.permute.xlu1 %4924 }
 0xeb5   : > { %v5086_v48 = vmul.f32 %v4925_v46, %v13998_v14 }
 0xeb6   : > { %v5120_v56 = vrot.slane %v12795_v24, 4 }
 0xeb7   : > { %v9331_v44 = vpop.eup %9330  ;;  %v5126_v39 = vsel %vm5116_vm1, %v5086_v48, 0.0 }
 0xeb8   : > { %v12798_v31 = vmul.f32 %v9331_v44, %v12155_v0  ;;  %v5010_v0 = vrot.slane %v13992_v33, %v13989_v41  ;;  %v5121_v40 = vadd.f32 %v5120_v56, %v12795_v24 }
 0xeb9   : > { %v9333_v4 = vpop.eup %9332 }
 0xeba   : > { %v6843_v8 = vsel %vm3947_vm11, %v12798_v31, 0.0  ;;  %v12803_v3 = vmul.f32 %v9333_v4, %v12184_v22  ;;  %v5021_v22 = vrot.slane %v13992_v33, %v13993_v50  ;;  %v5122_v43 = vrot.slane %v5121_v40, 2 }
 0xebb   : > { %6844 = vadd.xlane.f32.xlu1 %v6843_v8  ;;  %v14002_v8 = vld [vmem:[#allocation121_spill] sm:$0xff] }
 0xebc   : > { %v6846_v11 = vsel %vm3947_vm11, %v12803_v3, 0.0  ;;  %v5123_v44 = vadd.f32 %v5122_v43, %v5121_v40  ;;  %v14006_v43 = vld [vmem:[#allocation127_spill] sm:$0xff] }
 0xebd   : > { %6847 = vadd.xlane.f32.xlu0 %v6846_v11 }
 0xecc   : > { %5001 = vbcast.lane.b32.xlu1 %v4999_v35, 256 }
 0xed0   : > { %5012 = vbcast.lane.b32.xlu1 %v5010_v0, 256 }
 0xed3   : > { %4928 = vbcast.lane.b32.xlu0 %v4922_v6, 264  ;;  %v13999_v6 = vld [vmem:[#allocation76_spill] sm:$0xff] }
 0xed4   : > { %4935 = vbcast.lane.b32.xlu1 %v4933_v32, 256 }
 0xed7   : > { %5005 = vbcast.lane.b32.xlu0 %v4999_v35, 264 }
 0xed8   : > { %5023 = vbcast.lane.b32.xlu1 %v5021_v22, 256 }
 0xedb   : > { %5016 = vbcast.lane.b32.xlu0 %v5010_v0, 264 }
 0xedc   : > { %4946 = vbcast.lane.b32.xlu1 %v4944_v61, 256 }
 0xedf   : > { %4939 = vbcast.lane.b32.xlu0 %v4933_v32, 264 }
 0xee0   : > { %5034 = vbcast.lane.b32.xlu1 %v5032_v63, 256 }
 0xee3   : > { %5027 = vbcast.lane.b32.xlu0 %v5021_v22, 264 }
 0xee4   : > { %4957 = vbcast.lane.b32.xlu1 %v4955_v2, 256 }
 0xee7   : > { %4950 = vbcast.lane.b32.xlu0 %v4944_v61, 264  ;;  %v14003_v61 = vld [vmem:[#allocation124_spill] sm:$0xff] }
 0xee8   : > { %5045 = vbcast.lane.b32.xlu1 %v5043_v19, 256 }
 0xeeb   : > { %5038 = vbcast.lane.b32.xlu0 %v5032_v63, 264 }
 0xeec   : > { %4968 = vbcast.lane.b32.xlu1 %v4966_v59, 256 }
 0xeef   : > { %4961 = vbcast.lane.b32.xlu0 %v4955_v2, 264 }
 0xef0   : > { %5056 = vbcast.lane.b32.xlu1 %v5054_v28, 256 }
 0xef3   : > { %5049 = vbcast.lane.b32.xlu0 %v5043_v19, 264 }
 0xef4   : > { %4979 = vbcast.lane.b32.xlu1 %v4977_v30, 256 }
 0xef7   : > { %4972 = vbcast.lane.b32.xlu0 %v4966_v59, 264 }
 0xef8   : > { %5067 = vbcast.lane.b32.xlu1 %v5065_v38, 256 }
 0xefb   : > { %5060 = vbcast.lane.b32.xlu0 %v5054_v28, 264 }
 0xefc   : > { %4990 = vbcast.lane.b32.xlu1 %v4988_v36, 256 }
 0xeff   : > { %4983 = vbcast.lane.b32.xlu0 %v4977_v30, 264  ;;  %v5124_v30 = vrot.slane %v5123_v44, 1 }
 0xf00   : > { %5078 = vbcast.lane.b32.xlu1 %v5076_v51, 256 }
 0xf03   : > { %5071 = vbcast.lane.b32.xlu0 %v5065_v38, 264 }
 0xf07   : > { %4994 = vbcast.lane.b32.xlu0 %v4988_v36, 264  ;;  %v14004_v36 = vld [vmem:[#allocation79_spill] sm:$0xff] }
 0xf0b   : > { %5082 = vbcast.lane.b32.xlu0 %v5076_v51, 264 }
 0xf48   : > { %v6845_v29 = vpop.xlane.xlu1 %6844 }
 0xf49   : > { %vm6849_vm3 = vcmp.gt.f32.partialorder %v6845_v29, 0.0 }
 0xf4a   : > { %v6851_v20 = vsel %vm6849_vm3, %v6845_v29, 1.0  ;;  %v6848_v52 = vpop.xlane.xlu0 %6847 }
 0xf4b   : > { %9334 = vrcp.f32 %v6851_v20  ;;  %vm6850_vm15 = vcmp.gt.f32.partialorder %v6848_v52, 0.0 }
 0xf4c   : > { %v6852_v27 = vsel %vm6850_vm15, %v6848_v52, 1.0  ;;  %v5002_v12 = vpop.permute.xlu1 %5001 }
 0xf4d   : > { %9336 = vrcp.f32 %v6852_v27  ;;  %v5100_v5 = vmul.f32 %v5002_v12, %v14000_v45  ;;  %v14005_v27 = vld [vmem:[#allocation82_spill] sm:$0xff] }
 0xf4e   : > { %v4929_v17 = vpop.permute.xlu0 %4928 }
 0xf4f   : > { %v5087_v9 = vmul.f32 %v4929_v17, %v13999_v6  ;;  %v5189_v4 = vsel %vm5116_vm1, %v5100_v5, 0.0 }
 0xf50   : > { %v5013_v37 = vpop.permute.xlu1 %5012 }
 0xf51   : > { %v5127_v53 = vsel %vm5116_vm1, %v5087_v9, 0.0  ;;  %v5102_v11 = vmul.f32 %v5013_v37, %v14002_v8  ;;  %v5125_v9 = vadd.f32 %v5124_v30, %v5123_v44 }
 0xf52   : > { %v5128_v54 = vadd.f32 %v5127_v53, %v5126_v39  ;;  %v5006_v49 = vpop.permute.xlu0 %5005 }
 0xf53   : > { %v5101_v42 = vmul.f32 %v5006_v49, %v14001_v60  ;;  %v5198_v38 = vsel %vm5116_vm1, %v5102_v11, 0.0 }
 0xf54   : > { %v5129_v7 = vrot.slane %v5128_v54, 4  ;;  %v4936_v15 = vpop.permute.xlu1 %4935 }
 0xf55   : > { %v9335_v24 = vpop.eup %9334  ;;  %v5190_v33 = vsel %vm5116_vm1, %v5101_v42, 0.0  ;;  %v5088_v51 = vmul.f32 %v4936_v15, %v14004_v36  ;;  %v14007_v15 = vld [vmem:[#allocation130_spill] sm:$0xff] }
 0xf56   : > { %v5130_v35 = vadd.f32 %v5129_v7, %v5128_v54  ;;  %v5191_v0 = vadd.f32 %v5190_v33, %v5189_v4  ;;  %v5017_v32 = vpop.permute.xlu0 %5016  ;;  %v12854_v2 = vmul.f32 %v9335_v24, %v12798_v31 }
 0xf57   : > { %v9337_v22 = vpop.eup %9336  ;;  %v5103_v63 = vmul.f32 %v5017_v32, %v14003_v61  ;;  %v5135_v37 = vsel %vm5116_vm1, %v5088_v51, 0.0  ;;  %v14008_v32 = vld [vmem:[#allocation85_spill] sm:$0xff] }
 0xf58   : > { %v12857_v19 = vmul.f32 %v9337_v22, %v12803_v3  ;;  %v5131_v59 = vrot.slane %v5130_v35, 2  ;;  %v5192_v28 = vrot.slane %v5191_v0, 4  ;;  %v5024_v55 = vpop.permute.xlu1 %5023 }
 0xf59   : > { %v5199_v46 = vsel %vm5116_vm1, %v5103_v63, 0.0  ;;  %v5104_v39 = vmul.f32 %v5024_v55, %v14006_v43 }
 0xf5a   : > { %v5132_v29 = vadd.f32 %v5131_v59, %v5130_v35  ;;  %v5193_v56 = vadd.f32 %v5192_v28, %v5191_v0  ;;  %v5200_v20 = vadd.f32 %v5199_v46, %v5198_v38  ;;  %v4940_v52 = vpop.permute.xlu0 %4939  ;;  %v6857_v31 = vpack.c.bf16 %v12857_v19, %v12854_v2  ;;  %v14009_v38 = vld [vmem:[#allocation88_spill] sm:$0xff] }
 0xf5b   : > { %v5089_v3 = vmul.f32 %v4940_v52, %v14005_v27  ;;  %v5207_v44 = vsel %vm5116_vm1, %v5104_v39, 0.0 }
 0xf5c   : > { %v5133_v12 = vrot.slane %v5132_v29, 1  ;;  %v5194_v40 = vrot.slane %v5193_v56, 2  ;;  %v5201_v48 = vrot.slane %v5200_v20, 4  ;;  %v4947_v17 = vpop.permute.xlu1 %4946  ;;  %8903 = vmatmul.mubr.msk.bf16.vlgmr.msra.gmra.mrb[36].mxu1 %vm3947_vm11, %v6857_v31 }
 0xf5d   : > { %v5136_v5 = vsel %vm5116_vm1, %v5089_v3, 0.0  ;;  %v5090_v22 = vmul.f32 %v4947_v17, %v14008_v32  ;;  %v14010_v3 = vld [vmem:[#allocation133_spill] sm:$0xff] }
 0xf5e   : > { %v5134_v53 = vadd.f32 %v5133_v12, %v5132_v29  ;;  %v5195_v54 = vadd.f32 %v5194_v40, %v5193_v56  ;;  %v5202_v49 = vadd.f32 %v5201_v48, %v5200_v20  ;;  %v5137_v42 = vadd.f32 %v5136_v5, %v5135_v37  ;;  %v5028_v7 = vpop.permute.xlu0 %5027  ;;  %v14011_v5 = vld [vmem:[#allocation136_spill] sm:$0xff] }
 0xf5f   : > { %v5105_v24 = vmul.f32 %v5028_v7, %v14007_v15  ;;  %v5144_v31 = vsel %vm5116_vm1, %v5090_v22, 0.0 }
 0xf60   : > { %v5281_v4 = vsel %vm3873_vm4, %v5134_v53, %v5125_v9  ;;  %v5203_v11 = vrot.slane %v5202_v49, 2  ;;  %v5138_v33 = vrot.slane %v5137_v42, 4  ;;  %v5035_v35 = vpop.permute.xlu1 %5034  ;;  %v5196_v0 = vrot.slane %v5195_v54, 1 }
 0xf61   : > { %v5208_v63 = vsel %vm5116_vm1, %v5105_v24, 0.0  ;;  %v5106_v12 = vmul.f32 %v5035_v35, %v14010_v3 }
 0xf62   : > { %v5204_v59 = vadd.f32 %v5203_v11, %v5202_v49  ;;  %v5139_v28 = vadd.f32 %v5138_v33, %v5137_v42  ;;  %v5209_v55 = vadd.f32 %v5208_v63, %v5207_v44  ;;  %v4951_v30 = vpop.permute.xlu0 %4950  ;;  %v5197_v52 = vadd.f32 %v5196_v0, %v5195_v54  ;;  %v14012_v33 = vld [vmem:[#allocation91_spill] sm:$0xff] }
 0xf63   : > { %v5091_v51 = vmul.f32 %v4951_v30, %v14009_v38  ;;  %v5216_v54 = vsel %vm5116_vm1, %v5106_v12, 0.0  ;;  %v14014_v12 = vld [vmem:[#allocation139_spill] sm:$0xff] }
 0xf64   : > { %v5205_v46 = vrot.slane %v5204_v59, 1  ;;  %v5140_v29 = vrot.slane %v5139_v28, 2  ;;  %v5210_v56 = vrot.slane %v5209_v55, 4  ;;  %v4958_v20 = vpop.permute.xlu1 %4957 }
 0xf65   : > { %v5145_v40 = vsel %vm5116_vm1, %v5091_v51, 0.0  ;;  %v5092_v0 = vmul.f32 %v4958_v20, %v14012_v33 }
 0xf66   : > { %v5206_v48 = vadd.f32 %v5205_v46, %v5204_v59  ;;  %v5141_v17 = vadd.f32 %v5140_v29, %v5139_v28  ;;  %v5211_v9 = vadd.f32 %v5210_v56, %v5209_v55  ;;  %v5146_v37 = vadd.f32 %v5145_v40, %v5144_v31  ;;  %v5039_v39 = vpop.permute.xlu0 %5038  ;;  %v14013_v55 = vld [vmem:[#allocation94_spill] sm:$0xff] }
 0xf67   : > { %v5107_v53 = vmul.f32 %v5039_v39, %v14011_v5  ;;  %v5153_v31 = vsel %vm5116_vm1, %v5092_v0, 0.0  ;;  %v14016_v0 = vld [vmem:[#allocation97_spill] sm:$0xff] }
 0xf68   : > { %v5288_v49 = vsel %vm3873_vm4, %v5206_v48, %v5197_v52  ;;  %v5142_v42 = vrot.slane %v5141_v17, 1  ;;  %v5212_v7 = vrot.slane %v5211_v9, 2  ;;  %v5147_v24 = vrot.slane %v5146_v37, 4  ;;  %v5046_v11 = vpop.permute.xlu1 %5045 }
 0xf69   : > { %v5217_v35 = vsel %vm5116_vm1, %v5107_v53, 0.0  ;;  %v5108_v40 = vmul.f32 %v5046_v11, %v14014_v12  ;;  %v14015_v53 = vld [vmem:[#allocation142_spill] sm:$0xff] }
 0xf6a   : > { %v5143_v44 = vadd.f32 %v5142_v42, %v5141_v17  ;;  %v5213_v22 = vadd.f32 %v5212_v7, %v5211_v9  ;;  %v5148_v63 = vadd.f32 %v5147_v24, %v5146_v37  ;;  %v5218_v59 = vadd.f32 %v5217_v35, %v5216_v54  ;;  %v4962_v28 = vpop.permute.xlu0 %4961 }
 0xf6b   : > { %v5093_v30 = vmul.f32 %v4962_v28, %v14013_v55 }
 0xf6c   : > { %v5214_v51 = vrot.slane %v5213_v22, 1  ;;  %v5149_v46 = vrot.slane %v5148_v63, 2  ;;  %v5219_v29 = vrot.slane %v5218_v59, 4  ;;  %v4969_v56 = vpop.permute.xlu1 %4968  ;;  %v5282_v52 = vsel %vm3875_vm5, %v5143_v44, %v5281_v4 }
 0xf6d   : > { %v5154_v20 = vsel %vm5116_vm1, %v5093_v30, 0.0  ;;  %v5225_v4 = vsel %vm5116_vm1, %v5108_v40, 0.0  ;;  %v5094_v44 = vmul.f32 %v4969_v56, %v14016_v0  ;;  %v14018_v40 = vld [vmem:[#allocation145_spill] sm:$0xff] }
 0xf6e   : > { %v5215_v48 = vadd.f32 %v5214_v51, %v5213_v22  ;;  %v5150_v17 = vadd.f32 %v5149_v46, %v5148_v63  ;;  %v5220_v9 = vadd.f32 %v5219_v29, %v5218_v59  ;;  %v5155_v37 = vadd.f32 %v5154_v20, %v5153_v31  ;;  %v5050_v39 = vpop.permute.xlu0 %5049  ;;  %v14017_v46 = vld [vmem:[#allocation100_spill] sm:$0xff] }
 0xf6f   : > { %v5109_v42 = vmul.f32 %v5050_v39, %v14015_v53  ;;  %v14049_v53 = vld [vmem:[#allocation110_spill] sm:$0xff] }
 0xf70   : > { %v5151_v7 = vrot.slane %v5150_v17, 1  ;;  %v5221_v24 = vrot.slane %v5220_v9, 2  ;;  %v5156_v54 = vrot.slane %v5155_v37, 4  ;;  %v5057_v35 = vpop.permute.xlu1 %5056  ;;  %v5289_v28 = vsel %vm3875_vm5, %v5215_v48, %v5288_v49 }
 0xf71   : > { %v5226_v11 = vsel %vm5116_vm1, %v5109_v42, 0.0  ;;  %v5162_v49 = vsel %vm5116_vm1, %v5094_v44, 0.0  ;;  %v5110_v48 = vmul.f32 %v5057_v35, %v14018_v40  ;;  %v14020_v44 = vld [vmem:[#allocation103_spill] sm:$0xff] }
 0xf72   : > { %v5152_v30 = vadd.f32 %v5151_v7, %v5150_v17  ;;  %v5222_v22 = vadd.f32 %v5221_v24, %v5220_v9  ;;  %v5157_v63 = vadd.f32 %v5156_v54, %v5155_v37  ;;  %v5227_v59 = vadd.f32 %v5226_v11, %v5225_v4  ;;  %v4973_v51 = vpop.permute.xlu0 %4972  ;;  %v14019_v24 = vld [vmem:[#allocation148_spill] sm:$0xff] }
 0xf73   : > { %v5095_v29 = vmul.f32 %v4973_v51, %v14017_v46 }
 0xf74   : > { %v5223_v31 = vrot.slane %v5222_v22, 1  ;;  %v5158_v20 = vrot.slane %v5157_v63, 2  ;;  %v5228_v39 = vrot.slane %v5227_v59, 4  ;;  %v4980_v26 = vpop.permute.xlu1 %4979  ;;  %v5283_v57 = vsel %vm3877_vm6, %v5152_v30, %v5282_v52 }
 0xf75   : > { %v5163_v56 = vsel %vm5116_vm1, %v5095_v29, 0.0  ;;  %v5234_v52 = vsel %vm5116_vm1, %v5110_v48, 0.0  ;;  %v5096_v30 = vmul.f32 %v4980_v26, %v14020_v44  ;;  %v14022_v48 = vld [vmem:[#allocation151_spill] sm:$0xff] }
 0xf76   : > { %v5224_v42 = vadd.f32 %v5223_v31, %v5222_v22  ;;  %v5159_v17 = vadd.f32 %v5158_v20, %v5157_v63  ;;  %v5229_v9 = vadd.f32 %v5228_v39, %v5227_v59  ;;  %v5164_v37 = vadd.f32 %v5163_v56, %v5162_v49  ;;  %v5061_v7 = vpop.permute.xlu0 %5060  ;;  %v14021_v20 = vld [vmem:[#allocation106_spill] sm:$0xff] }
 0xf77   : > { %v5111_v54 = vmul.f32 %v5061_v7, %v14019_v24 }
 0xf78   : > { %v5160_v4 = vrot.slane %v5159_v17, 1  ;;  %v5230_v11 = vrot.slane %v5229_v9, 2  ;;  %v5165_v51 = vrot.slane %v5164_v37, 4  ;;  %v5068_v46 = vpop.permute.xlu1 %5067  ;;  %v5290_v0 = vsel %vm3877_vm6, %v5224_v42, %v5289_v28 }
 0xf79   : > { %v5235_v35 = vsel %vm5116_vm1, %v5111_v54, 0.0  ;;  %v5171_v28 = vsel %vm5116_vm1, %v5096_v30, 0.0  ;;  %v5112_v42 = vmul.f32 %v5068_v46, %v14022_v48 }
 0xf7a   : > { %v5161_v29 = vadd.f32 %v5160_v4, %v5159_v17  ;;  %v5231_v22 = vadd.f32 %v5230_v11, %v5229_v9  ;;  %v5166_v63 = vadd.f32 %v5165_v51, %v5164_v37  ;;  %v5236_v59 = vadd.f32 %v5235_v35, %v5234_v52  ;;  %v4984_v31 = vpop.permute.xlu0 %4983  ;;  %v14023_v11 = vld [vmem:[#allocation154_spill] sm:$0xff] }
 0xf7b   : > { %v5097_v39 = vmul.f32 %v4984_v31, %v14021_v20 }
 0xf7c   : > { %v5232_v49 = vrot.slane %v5231_v22, 1  ;;  %v5167_v56 = vrot.slane %v5166_v63, 2  ;;  %v5237_v7 = vrot.slane %v5236_v59, 4  ;;  %v4991_v24 = vpop.permute.xlu1 %4990  ;;  %v5284_v40 = vsel %vm3879_vm7, %v5161_v29, %v5283_v57  ;;  %v14024_v29 = vld [vmem:[#allocation109_spill] sm:$0xff] }
 0xf7d   : > { %v5172_v26 = vsel %vm5116_vm1, %v5097_v39, 0.0  ;;  %v5243_v57 = vsel %vm5116_vm1, %v5112_v42, 0.0  ;;  %v5098_v30 = vmul.f32 %v4991_v24, %v14024_v29  ;;  %v14026_v42 = vld [vmem:[#allocation157_spill] sm:$0xff] }
 0xf7e   : > { %v5233_v54 = vadd.f32 %v5232_v49, %v5231_v22  ;;  %v5168_v17 = vadd.f32 %v5167_v56, %v5166_v63  ;;  %v5238_v9 = vadd.f32 %v5237_v7, %v5236_v59  ;;  %v5173_v37 = vadd.f32 %v5172_v26, %v5171_v28  ;;  %v5072_v4 = vpop.permute.xlu0 %5071  ;;  %v14025_v56 = vld [vmem:[#allocation112_spill] sm:$0xff] }
 0xf7f   : > { %v5113_v51 = vmul.f32 %v5072_v4, %v14023_v11 }
 0xf80   : > { %v5169_v52 = vrot.slane %v5168_v17, 1  ;;  %v5239_v35 = vrot.slane %v5238_v9, 2  ;;  %v5174_v31 = vrot.slane %v5173_v37, 4  ;;  %v5291_v20 = vsel %vm3879_vm7, %v5233_v54, %v5290_v0  ;;  %v5079_v59 = vpop.permute.xlu1 %5078 }
 0xf81   : > { %v5244_v46 = vsel %vm5116_vm1, %v5113_v51, 0.0  ;;  %v5180_v0 = vsel %vm5116_vm1, %v5098_v30, 0.0  ;;  %v5114_v54 = vmul.f32 %v5079_v59, %v14026_v42 }
 0xf82   : > { %v5170_v48 = vadd.f32 %v5169_v52, %v5168_v17  ;;  %v5240_v39 = vadd.f32 %v5239_v35, %v5238_v9  ;;  %v5175_v22 = vadd.f32 %v5174_v31, %v5173_v37  ;;  %v5245_v63 = vadd.f32 %v5244_v46, %v5243_v57  ;;  %v4995_v49 = vpop.permute.xlu0 %4994  ;;  %v14027_v35 = vld [vmem:[#allocation160_spill] sm:$0xff] }
 0xf83   : > { %v5099_v7 = vmul.f32 %v4995_v49, %v14025_v56 }
 0xf84   : > { %v5241_v28 = vrot.slane %v5240_v39, 1  ;;  %v5176_v26 = vrot.slane %v5175_v22, 2  ;;  %v5246_v4 = vrot.slane %v5245_v63, 4  ;;  %v5285_v11 = vsel %vm3881_vm8, %v5170_v48, %v5284_v40 }
 0xf85   : > { %v5181_v24 = vsel %vm5116_vm1, %v5099_v7, 0.0  ;;  %v5252_v40 = vsel %vm5116_vm1, %v5114_v54, 0.0 }
 0xf86   : > { %v5242_v51 = vadd.f32 %v5241_v28, %v5240_v39  ;;  %v5177_v17 = vadd.f32 %v5176_v26, %v5175_v22  ;;  %v5247_v9 = vadd.f32 %v5246_v4, %v5245_v63  ;;  %v5182_v37 = vadd.f32 %v5181_v24, %v5180_v0  ;;  %v5083_v52 = vpop.permute.xlu0 %5082 }
 0xf87   : > { %v5115_v31 = vmul.f32 %v5083_v52, %v14027_v35 }
 0xf88   : > { %v5178_v57 = vrot.slane %v5177_v17, 1  ;;  %v5248_v46 = vrot.slane %v5247_v9, 2  ;;  %v5183_v49 = vrot.slane %v5182_v37, 4  ;;  %v5292_v56 = vsel %vm3881_vm8, %v5242_v51, %v5291_v20 }
 0xf89   : > { %v5253_v48 = vsel %vm5116_vm1, %v5115_v31, 0.0 }
 0xf8a   : > { %v5249_v30 = vadd.f32 %v5248_v46, %v5247_v9  ;;  %v5184_v59 = vadd.f32 %v5183_v49, %v5182_v37  ;;  %v5254_v42 = vadd.f32 %v5253_v48, %v5252_v40  ;;  %v5179_v7 = vadd.f32 %v5178_v57, %v5177_v17 }
 0xf8b   : > { %v5931_v37 = vrot.slane %v12652_v21, %v13987_v18  ;;  %v6861_v57 = vrot.slane %v12854_v2, %v13987_v18  ;;  %v6872_v46 = vrot.slane %v12854_v2, %v13989_v41  ;;  %v6883_v49 = vrot.slane %v12854_v2, %v13993_v50 }
 0xf8c   : > { %v5250_v39 = vrot.slane %v5249_v30, 1  ;;  %v5185_v22 = vrot.slane %v5184_v59, 2  ;;  %v5255_v63 = vrot.slane %v5254_v42, 4  ;;  %v5286_v28 = vsel %vm3883_vm9, %v5179_v7, %v5285_v11 }
 0xf8d   : > { %v6894_v40 = vrot.slane %v12854_v2, %v13994_v58  ;;  %v6905_v48 = vrot.slane %v12854_v2, %v13995_v16  ;;  %v6938_v7 = vrot.slane %v12854_v2, %v12835_v47 }
 0xf8e   : > { %v5186_v26 = vadd.f32 %v5185_v22, %v5184_v59  ;;  %v5256_v4 = vadd.f32 %v5255_v63, %v5254_v42  ;;  %v5251_v0 = vadd.f32 %v5250_v39, %v5249_v30  ;;  %v5942_v42 = vrot.slane %v12652_v21, %v13989_v41 }
 0xf8f   : > { %v6916_v30 = vrot.slane %v12854_v2, %v13996_v1  ;;  %v6927_v59 = vrot.slane %v12854_v2, %v12828_v62  ;;  %v6949_v39 = vrot.slane %v12857_v19, %v13987_v18  ;;  %v6960_v22 = vrot.slane %v12857_v19, %v13989_v41 }
 0xf90   : > { %v5257_v24 = vrot.slane %v5256_v4, 2  ;;  %v5187_v52 = vrot.slane %v5186_v26, 1  ;;  %v5293_v20 = vsel %vm3883_vm9, %v5251_v0, %v5292_v56  ;;  %v6019_v56 = vrot.slane %v12654_v25, %v13987_v18 }
 0xf91   : > { %v6971_v63 = vrot.slane %v12857_v19, %v13993_v50  ;;  %v6982_v2 = vrot.slane %v12857_v19, %v13994_v58  ;;  %v7026_v0 = vrot.slane %v12857_v19, %v12835_v47 }
 0xf92   : > { %v5258_v51 = vadd.f32 %v5257_v24, %v5256_v4  ;;  %v5188_v54 = vadd.f32 %v5187_v52, %v5186_v26  ;;  %v7004_v26 = vrot.slane %v12857_v19, %v13996_v1  ;;  %v7015_v4 = vrot.slane %v12857_v19, %v12828_v62  ;;  %v14028_v52 = vld [vmem:[#allocation163_spill] sm:$0xff] }
 0xf93   : > { %v6030_v24 = vrot.slane %v12654_v25, %v13989_v41 }
 0xf94   : > { %v5287_v31 = vsel %vm3885_vm10, %v5188_v54, %v5286_v28  ;;  %v5259_v9 = vrot.slane %v5258_v51, 1  ;;  %v6993_v28 = vrot.slane %v12857_v19, %v13995_v16  ;;  %v14029_v54 = vld [vmem:[#allocation164_spill] sm:$0xff] }
 0xf95   : > { %5295 = vrot.lane.b32.xlu1 %v5287_v31, %s10150_s2  ;;  %v4069_v19 = vrot.slane %v14029_v54, %v13987_v18  ;;  %v4080_v31 = vrot.slane %v14029_v54, %v13989_v41 }
 0xf96   : > { %v5260_v17 = vadd.f32 %v5259_v9, %v5258_v51  ;;  %v3992_v51 = vrot.slane %v14028_v52, %v13989_v41  ;;  %v5953_v9 = vrot.slane %v12652_v21, %v13993_v50 }
 0xf98   : > { %v5294_v11 = vsel %vm3885_vm10, %v5260_v17, %v5293_v20  ;;  %v3981_v20 = vrot.slane %v14028_v52, %v13987_v18  ;;  %v6041_v17 = vrot.slane %v12654_v25, %v13993_v50 }
 0xf99   : > { %5933 = vbcast.lane.b32.xlu1 %v5931_v37, 256  ;;  %5297 = vrot.lane.b32.xlu0 %v5294_v11, %s10150_s2  ;;  %v4091_v11 = vrot.slane %v14029_v54, %v13993_v50 }
 0xf9d   : > { %5944 = vbcast.lane.b32.xlu1 %v5942_v42, 256  ;;  %5937 = vbcast.lane.b32.xlu0 %v5931_v37, 264  ;;  %v4003_v37 = vrot.slane %v14028_v52, %v13993_v50 }
 0xfa1   : > { %6021 = vbcast.lane.b32.xlu1 %v6019_v56, 256  ;;  %5948 = vbcast.lane.b32.xlu0 %v5942_v42, 264 }
 0xfa5   : > { %6867 = vbcast.lane.b32.xlu1 %v6861_v57, 264  ;;  %6025 = vbcast.lane.b32.xlu0 %v6019_v56, 264  ;;  %v5964_v56 = vrot.slane %v12652_v21, %v13994_v58 }
 0xfa9   : > { %6874 = vbcast.lane.b32.xlu1 %v6872_v46, 256  ;;  %6863 = vbcast.lane.b32.xlu0 %v6861_v57, 256 }
 0xfad   : > { %6885 = vbcast.lane.b32.xlu1 %v6883_v49, 256  ;;  %6878 = vbcast.lane.b32.xlu0 %v6872_v46, 264 }
 0xfb1   : > { %6896 = vbcast.lane.b32.xlu1 %v6894_v40, 256  ;;  %6889 = vbcast.lane.b32.xlu0 %v6883_v49, 264  ;;  %v6052_v49 = vrot.slane %v12654_v25, %v13994_v58 }
 0xfb5   : > { %6907 = vbcast.lane.b32.xlu1 %v6905_v48, 256  ;;  %6900 = vbcast.lane.b32.xlu0 %v6894_v40, 264  ;;  %v14032_v40 = vld [vmem:[#allocation69_spill] sm:$0xff] }
 0xfb9   : > { %6918 = vbcast.lane.b32.xlu1 %v6916_v30, 256  ;;  %6911 = vbcast.lane.b32.xlu0 %v6905_v48, 264 }
 0xfbd   : > { %6929 = vbcast.lane.b32.xlu1 %v6927_v59, 256  ;;  %6922 = vbcast.lane.b32.xlu0 %v6916_v30, 264 }
 0xfc1   : > { %6940 = vbcast.lane.b32.xlu1 %v6938_v7, 256  ;;  %6933 = vbcast.lane.b32.xlu0 %v6927_v59, 264  ;;  %v4014_v59 = vrot.slane %v14028_v52, %v13994_v58 }
 0xfc5   : > { %6951 = vbcast.lane.b32.xlu1 %v6949_v39, 256  ;;  %6944 = vbcast.lane.b32.xlu0 %v6938_v7, 264  ;;  %v14033_v7 = vld [vmem:[#allocation71_spill] sm:$0xff] }
 0xfc9   : > { %6962 = vbcast.lane.b32.xlu1 %v6960_v22, 256  ;;  %6955 = vbcast.lane.b32.xlu0 %v6949_v39, 264 }
 0xfcd   : > { %6973 = vbcast.lane.b32.xlu1 %v6971_v63, 256  ;;  %6966 = vbcast.lane.b32.xlu0 %v6960_v22, 264 }
 0xfd1   : > { %6984 = vbcast.lane.b32.xlu1 %v6982_v2, 256  ;;  %6977 = vbcast.lane.b32.xlu0 %v6971_v63, 264  ;;  %v14034_v63 = vld [vmem:[#allocation74_spill] sm:$0xff] }
 0xfd5   : > { %6995 = vbcast.lane.b32.xlu1 %v6993_v28, 256  ;;  %6988 = vbcast.lane.b32.xlu0 %v6982_v2, 264 }
 0xfd9   : > { %7006 = vbcast.lane.b32.xlu1 %v7004_v26, 256  ;;  %6999 = vbcast.lane.b32.xlu0 %v6993_v28, 264 }
 0xfdd   : > { %7017 = vbcast.lane.b32.xlu1 %v7015_v4, 256  ;;  %7010 = vbcast.lane.b32.xlu0 %v7004_v26, 264 }
 0xfe1   : > { %7028 = vbcast.lane.b32.xlu1 %v7026_v0, 256  ;;  %7021 = vbcast.lane.b32.xlu0 %v7015_v4, 264 }
 0xfe5   : > { %6032 = vbcast.lane.b32.xlu1 %v6030_v24, 256  ;;  %7032 = vbcast.lane.b32.xlu0 %v7026_v0, 264 }
 0xfe9   : > { %3983 = vbcast.lane.b32.xlu1 %v3981_v20, 256  ;;  %6036 = vbcast.lane.b32.xlu0 %v6030_v24, 264  ;;  %v4102_v24 = vrot.slane %v14029_v54, %v13994_v58 }
 0xfed   : > { %3994 = vbcast.lane.b32.xlu1 %v3992_v51, 256  ;;  %3987 = vbcast.lane.b32.xlu0 %v3981_v20, 264  ;;  %v14035_v20 = vld [vmem:[#allocation77_spill] sm:$0xff] }
 0xff1   : > { %4071 = vbcast.lane.b32.xlu1 %v4069_v19, 256  ;;  %3998 = vbcast.lane.b32.xlu0 %v3992_v51, 264 }
 0xff5   : > { %4082 = vbcast.lane.b32.xlu1 %v4080_v31, 256  ;;  %4075 = vbcast.lane.b32.xlu0 %v4069_v19, 264 }
 0xff9   : > { %5955 = vbcast.lane.b32.xlu1 %v5953_v9, 256  ;;  %4086 = vbcast.lane.b32.xlu0 %v4080_v31, 264 }
 0xffd   : > { %6043 = vbcast.lane.b32.xlu1 %v6041_v17, 256  ;;  %5959 = vbcast.lane.b32.xlu0 %v5953_v9, 264  ;;  %v14036_v9 = vld [vmem:[#allocation116_spill] sm:$0xff] }
0x1001   : > { %4005 = vbcast.lane.b32.xlu1 %v4003_v37, 256  ;;  %6047 = vbcast.lane.b32.xlu0 %v6041_v17, 264 }
0x1005   : > { %4093 = vbcast.lane.b32.xlu1 %v4091_v11, 256  ;;  %4009 = vbcast.lane.b32.xlu0 %v4003_v37, 264 }
0x1007   : > { %v12984_v42 = vpop.permute.xlu1 %5295 }
0x1008   : > { %14030 = vst [vmem:[#allocation126_spill] sm:$0xff] %v12984_v42 }
0x1009   : > { %5966 = vbcast.lane.b32.xlu1 %v5964_v56, 256  ;;  %4097 = vbcast.lane.b32.xlu0 %v4091_v11, 264 }
0x100b   : > { %v5934_v57 = vpop.permute.xlu1 %5933  ;;  %v12988_v46 = vpop.permute.xlu0 %5297 }
0x100c   : > { %14031 = vst [vmem:[#allocation81_spill] sm:$0xff] %v12988_v46  ;;  %v6104_v48 = vmul.f32 %v5934_v57, %v14032_v40  ;;  %v14044_v46 = vld [vmem:[#allocation98_spill] sm:$0xff] }
0x100d   : > { %6054 = vbcast.lane.b32.xlu1 %v6052_v49, 256  ;;  %5970 = vbcast.lane.b32.xlu0 %v5964_v56, 264 }
0x100e   : > { %v6136_v22 = vsel %vm3596_vm2, %v6104_v48, 0.0  ;;  %v5975_v48 = vrot.slane %v12652_v21, %v13995_v16 }
0x100f   : > { %v5945_v50 = vpop.permute.xlu1 %5944  ;;  %v5938_v30 = vpop.permute.xlu0 %5937 }
0x1010   : > { %v6105_v39 = vmul.f32 %v5938_v30, %v14033_v7  ;;  %v6106_v2 = vmul.f32 %v5945_v50, %v14034_v63  ;;  %v14037_v50 = vld [vmem:[#allocation119_spill] sm:$0xff] }
0x1011   : > { %4016 = vbcast.lane.b32.xlu1 %v4014_v59, 256  ;;  %6058 = vbcast.lane.b32.xlu0 %v6052_v49, 264 }
0x1012   : > { %v6137_v28 = vsel %vm3596_vm2, %v6105_v39, 0.0  ;;  %v6145_v31 = vsel %vm3596_vm2, %v6106_v2, 0.0 }
0x1013   : > { %v6138_v26 = vadd.f32 %v6137_v28, %v6136_v22  ;;  %v6022_v4 = vpop.permute.xlu1 %6021  ;;  %v5949_v0 = vpop.permute.xlu0 %5948 }
0x1014   : > { %v6107_v51 = vmul.f32 %v5949_v0, %v14035_v20  ;;  %v6120_v17 = vmul.f32 %v6022_v4, %v14036_v9 }
0x1015   : > { %v6139_v19 = vrot.slane %v6138_v26, 4  ;;  %4104 = vbcast.lane.b32.xlu1 %v4102_v24, 256  ;;  %4020 = vbcast.lane.b32.xlu0 %v4014_v59, 264 }
0x1016   : > { %v6146_v37 = vsel %vm3596_vm2, %v6107_v51, 0.0  ;;  %v6208_v59 = vsel %vm3596_vm2, %v6120_v17, 0.0 }
0x1017   : > { %v6140_v11 = vadd.f32 %v6139_v19, %v6138_v26  ;;  %v6147_v56 = vadd.f32 %v6146_v37, %v6145_v31  ;;  %v6868_v57 = vpop.permute.xlu1 %6867  ;;  %v6026_v49 = vpop.permute.xlu0 %6025  ;;  %v6063_v19 = vrot.slane %v12654_v25, %v13995_v16 }
0x1018   : > { %v6121_v58 = vmul.f32 %v6026_v49, %v14037_v50  ;;  %v7035_v22 = vmul.f32 %v6868_v57, %v14033_v7 }
0x1019   : > { %v6141_v30 = vrot.slane %v6140_v11, 2  ;;  %v6148_v39 = vrot.slane %v6147_v56, 4  ;;  %5977 = vbcast.lane.b32.xlu1 %v5975_v48, 256  ;;  %4108 = vbcast.lane.b32.xlu0 %v4102_v24, 264 }
0x101a   : > { %v6209_v2 = vsel %vm3596_vm2, %v6121_v58, 0.0  ;;  %v7067_v24 = vsel %vm5116_vm1, %v7035_v22, 0.0  ;;  %v14038_v22 = vld [vmem:[#allocation80_spill] sm:$0xff] }
0x101b   : > { %v6142_v28 = vadd.f32 %v6141_v30, %v6140_v11  ;;  %v6149_v26 = vadd.f32 %v6148_v39, %v6147_v56  ;;  %v13011_v4 = vadd.f32 %v6209_v2, %v6208_v59  ;;  %v6875_v0 = vpop.permute.xlu1 %6874  ;;  %v6864_v51 = vpop.permute.xlu0 %6863  ;;  %v4025_v30 = vrot.slane %v14028_v52, %v13995_v16 }
0x101c   : > { %v7034_v31 = vmul.f32 %v6864_v51, %v14032_v40  ;;  %v7036_v7 = vmul.f32 %v6875_v0, %v14034_v63 }
0x101d   : > { %v6150_v37 = vrot.slane %v6149_v26, 2  ;;  %6065 = vbcast.lane.b32.xlu1 %v6063_v19, 256  ;;  %5981 = vbcast.lane.b32.xlu0 %v5975_v48, 264  ;;  %v6143_v11 = vrot.slane %v6142_v28, 1 }
0x101e   : > { %v7066_v17 = vsel %vm5116_vm1, %v7034_v31, 0.0  ;;  %v7075_v48 = vsel %vm5116_vm1, %v7036_v7, 0.0 }
0x101f   : > { %v6151_v56 = vadd.f32 %v6150_v37, %v6149_v26  ;;  %v7068_v57 = vadd.f32 %v7067_v24, %v7066_v17  ;;  %v6886_v49 = vpop.permute.xlu1 %6885  ;;  %v6879_v58 = vpop.permute.xlu0 %6878  ;;  %v4113_v26 = vrot.slane %v14029_v54, %v13995_v16  ;;  %v6144_v0 = vadd.f32 %v6143_v11, %v6142_v28 }
0x1020   : > { %v7037_v39 = vmul.f32 %v6879_v58, %v14035_v20  ;;  %v7038_v63 = vmul.f32 %v6886_v49, %v14038_v22  ;;  %v14039_v20 = vld [vmem:[#allocation83_spill] sm:$0xff] }
0x1021   : > { %v6152_v40 = vrot.slane %v6151_v56, 1  ;;  %v7069_v59 = vrot.slane %v7068_v57, 4  ;;  %4027 = vbcast.lane.b32.xlu1 %v4025_v30, 256  ;;  %6069 = vbcast.lane.b32.xlu0 %v6063_v19, 264 }
0x1022   : > { %v7076_v2 = vsel %vm5116_vm1, %v7037_v39, 0.0  ;;  %v7084_v49 = vsel %vm5116_vm1, %v7038_v63, 0.0  ;;  %v14040_v39 = vld [vmem:[#allocation86_spill] sm:$0xff] }
0x1023   : > { %v6153_v51 = vadd.f32 %v6152_v40, %v6151_v56  ;;  %v7070_v31 = vadd.f32 %v7069_v59, %v7068_v57  ;;  %v7077_v37 = vadd.f32 %v7076_v2, %v7075_v48  ;;  %v6897_v24 = vpop.permute.xlu1 %6896  ;;  %v6890_v17 = vpop.permute.xlu0 %6889  ;;  %v5986_v59 = vrot.slane %v12652_v21, %v13996_v1  ;;  %v14041_v48 = vld [vmem:[#allocation89_spill] sm:$0xff] }
0x1024   : > { %v7039_v58 = vmul.f32 %v6890_v17, %v14039_v20  ;;  %v7040_v18 = vmul.f32 %v6897_v24, %v14040_v39  ;;  %v14042_v24 = vld [vmem:[#allocation92_spill] sm:$0xff] }
0x1025   : > { %v13029_v41 = vsel %vm3873_vm4, %v6153_v51, %v6144_v0  ;;  %v7071_v19 = vrot.slane %v7070_v31, 2  ;;  %v7078_v7 = vrot.slane %v7077_v37, 4  ;;  %4115 = vbcast.lane.b32.xlu1 %v4113_v26, 256  ;;  %4031 = vbcast.lane.b32.xlu0 %v4025_v30, 264 }
0x1026   : > { %v7085_v16 = vsel %vm5116_vm1, %v7039_v58, 0.0  ;;  %v7093_v63 = vsel %vm5116_vm1, %v7040_v18, 0.0 }
0x1027   : > { %v7072_v28 = vadd.f32 %v7071_v19, %v7070_v31  ;;  %v7079_v11 = vadd.f32 %v7078_v7, %v7077_v37  ;;  %v7086_v56 = vadd.f32 %v7085_v16, %v7084_v49  ;;  %v6908_v57 = vpop.permute.xlu1 %6907  ;;  %v6901_v40 = vpop.permute.xlu0 %6900  ;;  %v14043_v16 = vld [vmem:[#allocation95_spill] sm:$0xff] }
0x1028   : > { %v7041_v2 = vmul.f32 %v6901_v40, %v14041_v48  ;;  %v7042_v17 = vmul.f32 %v6908_v57, %v14042_v24 }
0x1029   : > { %v7080_v0 = vrot.slane %v7079_v11, 2  ;;  %v7087_v51 = vrot.slane %v7086_v56, 4  ;;  %5988 = vbcast.lane.b32.xlu1 %v5986_v59, 256  ;;  %4119 = vbcast.lane.b32.xlu0 %v4113_v26, 264  ;;  %v7073_v30 = vrot.slane %v7072_v28, 1 }
0x102a   : > { %v7094_v31 = vsel %vm5116_vm1, %v7041_v2, 0.0  ;;  %v7102_v26 = vsel %vm5116_vm1, %v7042_v17, 0.0 }
0x102b   : > { %v7081_v37 = vadd.f32 %v7080_v0, %v7079_v11  ;;  %v7088_v58 = vadd.f32 %v7087_v51, %v7086_v56  ;;  %v7095_v19 = vadd.f32 %v7094_v31, %v7093_v63  ;;  %v6919_v7 = vpop.permute.xlu1 %6918  ;;  %v6912_v49 = vpop.permute.xlu0 %6911  ;;  %v7074_v23 = vadd.f32 %v7073_v30, %v7072_v28  ;;  %v14045_v63 = vld [vmem:[#allocation101_spill] sm:$0xff] }
0x102c   : > { %v7043_v35 = vmul.f32 %v6912_v49, %v14043_v16  ;;  %v7044_v18 = vmul.f32 %v6919_v7, %v14044_v46  ;;  %v14050_v46 = vld [vmem:[#allocation107_spill] sm:$0xff] }
0x102d   : > { %v7082_v29 = vrot.slane %v7081_v37, 1  ;;  %v7089_v40 = vrot.slane %v7088_v58, 2  ;;  %v7096_v44 = vrot.slane %v7095_v19, 4  ;;  %5992 = vbcast.lane.b32.xlu0 %v5986_v59, 264 }
0x102e   : > { %v7103_v57 = vsel %vm5116_vm1, %v7043_v35, 0.0  ;;  %v7111_v7 = vsel %vm5116_vm1, %v7044_v18, 0.0 }
0x102f   : > { %v7083_v13 = vadd.f32 %v7082_v29, %v7081_v37  ;;  %v7090_v2 = vadd.f32 %v7089_v40, %v7088_v58  ;;  %v7097_v11 = vadd.f32 %v7096_v44, %v7095_v19  ;;  %v7104_v56 = vadd.f32 %v7103_v57, %v7102_v26  ;;  %v6930_v0 = vpop.permute.xlu1 %6929  ;;  %v6923_v51 = vpop.permute.xlu0 %6922  ;;  %v14048_v57 = vld [vmem:[#allocation104_spill] sm:$0xff] }
0x1030   : > { %v7045_v31 = vmul.f32 %v6923_v51, %v14045_v63  ;;  %v13045_v49 = vpop.f32.mrb[36].mxu1  ;;  %v7046_v51 = vmul.f32 %v6930_v0, %v14048_v57 }
0x1031   : > { %14046 = vst [vmem:[#allocation84_spill] sm:$0xff] %v13045_v49  ;;  %v7230_v42 = vsel %vm3873_vm4, %v7083_v13, %v7074_v23  ;;  %v7091_v59 = vrot.slane %v7090_v2, 1  ;;  %v7098_v28 = vrot.slane %v7097_v11, 2  ;;  %v7105_v30 = vrot.slane %v7104_v56, 4  ;;  %v8904_v17 = vpop.f32.mrb[37].mxu1 }
0x1032   : > { %v7112_v35 = vsel %vm5116_vm1, %v7045_v31, 0.0  ;;  %v13050_v29 = vpop.f32.mrb[38].mxu1 }
0x1033   : > { %14047 = vst [vmem:[#allocation129_spill] sm:$0xff] %v13050_v29  ;;  %v7092_v44 = vadd.f32 %v7091_v59, %v7090_v2  ;;  %v7099_v37 = vadd.f32 %v7098_v28, %v7097_v11  ;;  %v7106_v58 = vadd.f32 %v7105_v30, %v7104_v56  ;;  %v7113_v19 = vadd.f32 %v7112_v35, %v7111_v7  ;;  %v8905_v40 = vpop.f32.mrb[39].mxu1  ;;  %v6941_v26 = vpop.permute.xlu1 %6940 }
0x1034   : > { %v6934_v49 = vpop.permute.xlu0 %6933  ;;  %v7048_v18 = vmul.f32 %v6941_v26, %v14049_v53  ;;  %v7120_v56 = vsel %vm5116_vm1, %v7046_v51, 0.0 }
0x1035   : > { %v7231_v13 = vsel %vm3875_vm5, %v7092_v44, %v7230_v42  ;;  %v7100_v23 = vrot.slane %v7099_v37, 1  ;;  %v7107_v63 = vrot.slane %v7106_v58, 2  ;;  %v7114_v17 = vrot.slane %v7113_v19, 4  ;;  %v14051_v42 = vld [vmem:[#allocation113_spill] sm:$0xff] }
0x1036   : > { %v7047_v31 = vmul.f32 %v6934_v49, %v14050_v46  ;;  %v7129_v44 = vsel %vm5116_vm1, %v7048_v18, 0.0 }
0x1037   : > { %v7101_v55 = vadd.f32 %v7100_v23, %v7099_v37  ;;  %v7108_v29 = vadd.f32 %v7107_v63, %v7106_v58  ;;  %v7115_v2 = vadd.f32 %v7114_v17, %v7113_v19  ;;  %v6952_v11 = vpop.permute.xlu1 %6951 }
0x1038   : > { %v7121_v59 = vsel %vm5116_vm1, %v7047_v31, 0.0  ;;  %v6945_v28 = vpop.permute.xlu0 %6944  ;;  %v7050_v40 = vmul.f32 %v6952_v11, %v14036_v9 }
0x1039   : > { %v7109_v0 = vrot.slane %v7108_v29, 1  ;;  %v7116_v30 = vrot.slane %v7115_v2, 2  ;;  %v7122_v7 = vadd.f32 %v7121_v59, %v7120_v56  ;;  %v7049_v35 = vmul.f32 %v6945_v28, %v14051_v42 }
0x103a   : > { %v7232_v49 = vsel %vm3877_vm6, %v7101_v55, %v7231_v13  ;;  %v7138_v18 = vsel %vm5116_vm1, %v7050_v40, 0.0  ;;  %v14052_v55 = vld [vmem:[#allocation122_spill] sm:$0xff] }
0x103b   : > { %v7110_v37 = vadd.f32 %v7109_v0, %v7108_v29  ;;  %v7117_v63 = vadd.f32 %v7116_v30, %v7115_v2  ;;  %v7123_v58 = vrot.slane %v7122_v7, 4  ;;  %v7130_v19 = vsel %vm5116_vm1, %v7049_v35, 0.0  ;;  %v6963_v26 = vpop.permute.xlu1 %6962 }
0x103c   : > { %v7131_v51 = vadd.f32 %v7130_v19, %v7129_v44  ;;  %v6956_v23 = vpop.permute.xlu0 %6955  ;;  %v7052_v29 = vmul.f32 %v6963_v26, %v14052_v55  ;;  %v14053_v19 = vld [vmem:[#allocation125_spill] sm:$0xff] }
0x103d   : > { %v7118_v17 = vrot.slane %v7117_v63, 1  ;;  %v7124_v31 = vadd.f32 %v7123_v58, %v7122_v7  ;;  %v7051_v56 = vmul.f32 %v6956_v23, %v14037_v50  ;;  %v7233_v59 = vsel %vm3879_vm7, %v7110_v37, %v7232_v49 }
0x103e   : > { %v7132_v28 = vrot.slane %v7131_v51, 4  ;;  %v7147_v40 = vsel %vm5116_vm1, %v7052_v29, 0.0 }
0x103f   : > { %v7119_v9 = vadd.f32 %v7118_v17, %v7117_v63  ;;  %v7125_v11 = vrot.slane %v7124_v31, 2  ;;  %v7139_v13 = vsel %vm5116_vm1, %v7051_v56, 0.0  ;;  %v6974_v2 = vpop.permute.xlu1 %6973  ;;  %v14054_v63 = vld [vmem:[#allocation128_spill] sm:$0xff] }
0x1040   : > { %v7133_v0 = vadd.f32 %v7132_v28, %v7131_v51  ;;  %v7140_v30 = vadd.f32 %v7139_v13, %v7138_v18  ;;  %v6967_v35 = vpop.permute.xlu0 %6966  ;;  %v7054_v23 = vmul.f32 %v6974_v2, %v14054_v63 }
0x1041   : > { %v7126_v44 = vadd.f32 %v7125_v11, %v7124_v31  ;;  %v7053_v7 = vmul.f32 %v6967_v35, %v14053_v19  ;;  %v7234_v50 = vsel %vm3881_vm8, %v7119_v9, %v7233_v59  ;;  %v14055_v31 = vld [vmem:[#allocation131_spill] sm:$0xff]  ;;  %v14056_v9 = vld [vmem:[#allocation134_spill] sm:$0xff] }
0x1042   : > { %v7134_v58 = vrot.slane %v7133_v0, 2  ;;  %v7141_v49 = vrot.slane %v7140_v30, 4  ;;  %v7156_v46 = vsel %vm5116_vm1, %v7054_v23, 0.0 }
0x1043   : > { %v7127_v37 = vrot.slane %v7126_v44, 1  ;;  %v7148_v26 = vsel %vm5116_vm1, %v7053_v7, 0.0  ;;  %v6985_v17 = vpop.permute.xlu1 %6984 }
0x1044   : > { %v7135_v56 = vadd.f32 %v7134_v58, %v7133_v0  ;;  %v7142_v42 = vadd.f32 %v7141_v49, %v7140_v30  ;;  %v7149_v51 = vadd.f32 %v7148_v26, %v7147_v40  ;;  %v6978_v18 = vpop.permute.xlu0 %6977  ;;  %v7056_v53 = vmul.f32 %v6985_v17, %v14056_v9  ;;  %v14057_v49 = vld [vmem:[#allocation137_spill] sm:$0xff]  ;;  %v14058_v17 = vld [vmem:[#allocation140_spill] sm:$0xff] }
0x1045   : > { %v7128_v28 = vadd.f32 %v7127_v37, %v7126_v44  ;;  %v7055_v11 = vmul.f32 %v6978_v18, %v14055_v31 }
0x1046   : > { %v7136_v13 = vrot.slane %v7135_v56, 1  ;;  %v7143_v35 = vrot.slane %v7142_v42, 2  ;;  %v7150_v59 = vrot.slane %v7149_v51, 4  ;;  %v7165_v26 = vsel %vm5116_vm1, %v7056_v53, 0.0 }
0x1047   : > { %v7157_v29 = vsel %vm5116_vm1, %v7055_v11, 0.0  ;;  %v6996_v2 = vpop.permute.xlu1 %6995  ;;  %v7235_v7 = vsel %vm3883_vm9, %v7128_v28, %v7234_v50  ;;  %v14059_v28 = vld [vmem:[#allocation143_spill] sm:$0xff] }
0x1048   : > { %v7144_v57 = vadd.f32 %v7143_v35, %v7142_v42  ;;  %v7151_v0 = vadd.f32 %v7150_v59, %v7149_v51  ;;  %v7158_v30 = vadd.f32 %v7157_v29, %v7156_v46  ;;  %v6989_v58 = vpop.permute.xlu0 %6988  ;;  %v7137_v37 = vadd.f32 %v7136_v13, %v7135_v56 }
0x1049   : > { %v7057_v44 = vmul.f32 %v6989_v58, %v14057_v49  ;;  %v7058_v33 = vmul.f32 %v6996_v2, %v14058_v17  ;;  %v13087_v59 = vrot.slane %v12654_v25, %v13996_v1 }
0x104a   : > { %v7152_v40 = vrot.slane %v7151_v0, 2  ;;  %v7159_v18 = vrot.slane %v7158_v30, 4  ;;  %v7145_v12 = vrot.slane %v7144_v57, 1  ;;  %v7236_v11 = vsel %vm3885_vm10, %v7137_v37, %v7235_v7  ;;  %v14060_v7 = vld [vmem:[#allocation146_spill] sm:$0xff] }
0x104b   : > { %v7166_v23 = vsel %vm5116_vm1, %v7057_v44, 0.0  ;;  %v7007_v16 = vpop.permute.xlu1 %7006  ;;  %7244 = vrot.lane.b32.xlu1 %v7236_v11, %s10150_s2  ;;  %v7174_v2 = vsel %vm5116_vm1, %v7058_v33, 0.0 }
0x104c   : > { %v7153_v50 = vadd.f32 %v7152_v40, %v7151_v0  ;;  %v7160_v42 = vadd.f32 %v7159_v18, %v7158_v30  ;;  %v7167_v51 = vadd.f32 %v7166_v23, %v7165_v26  ;;  %v7000_v46 = vpop.permute.xlu0 %6999  ;;  %v7146_v29 = vadd.f32 %v7145_v12, %v7144_v57  ;;  %v14061_v23 = vld [vmem:[#allocation149_spill] sm:$0xff] }
0x104d   : > { %v7059_v56 = vmul.f32 %v7000_v46, %v14059_v28  ;;  %v7060_v58 = vmul.f32 %v7007_v16, %v14060_v7  ;;  %v13096_v46 = vrot.slane %v14028_v52, %v13996_v1  ;;  %v13118_v28 = vrot.slane %v12652_v21, %v12828_v62 }
0x104e   : > { %v7154_v13 = vrot.slane %v7153_v50, 1  ;;  %v7161_v35 = vrot.slane %v7160_v42, 2  ;;  %v7168_v53 = vrot.slane %v7167_v51, 4 }
0x104f   : > { %v7175_v0 = vsel %vm5116_vm1, %v7059_v56, 0.0  ;;  %v7018_v30 = vpop.permute.xlu1 %7017  ;;  %6076 = vbcast.lane.b32.xlu1 %v13087_v59, 256  ;;  %v7183_v56 = vsel %vm5116_vm1, %v7060_v58, 0.0 }
0x1050   : > { %v7155_v44 = vadd.f32 %v7154_v13, %v7153_v50  ;;  %v7162_v37 = vadd.f32 %v7161_v35, %v7160_v42  ;;  %v7169_v40 = vadd.f32 %v7168_v53, %v7167_v51  ;;  %v7176_v26 = vadd.f32 %v7175_v0, %v7174_v2  ;;  %v7011_v18 = vpop.permute.xlu0 %7010  ;;  %v14062_v50 = vld [vmem:[#allocation152_spill] sm:$0xff] }
0x1051   : > { %v7061_v11 = vmul.f32 %v7011_v18, %v14061_v23  ;;  %v7062_v42 = vmul.f32 %v7018_v30, %v14062_v50  ;;  %v14063_v23 = vld [vmem:[#allocation155_spill] sm:$0xff] }
0x1052   : > { %v7237_v33 = vsel %vm3873_vm4, %v7155_v44, %v7146_v29  ;;  %v7163_v12 = vrot.slane %v7162_v37, 1  ;;  %v7170_v16 = vrot.slane %v7169_v40, 2  ;;  %v7177_v57 = vrot.slane %v7176_v26, 4 }
0x1053   : > { %v7184_v51 = vsel %vm5116_vm1, %v7061_v11, 0.0  ;;  %v7029_v13 = vpop.permute.xlu1 %7028  ;;  %4038 = vbcast.lane.b32.xlu1 %v13096_v46, 256  ;;  %v13106_v29 = vrot.slane %v14029_v54, %v13996_v1  ;;  %v6211_v11 = vrot.slane %v13011_v4, 4 }
0x1054   : > { %v7164_v35 = vadd.f32 %v7163_v12, %v7162_v37  ;;  %v7171_v53 = vadd.f32 %v7170_v16, %v7169_v40  ;;  %v7178_v2 = vadd.f32 %v7177_v57, %v7176_v26  ;;  %v7185_v0 = vadd.f32 %v7184_v51, %v7183_v56  ;;  %v7022_v18 = vpop.permute.xlu0 %7021  ;;  %v14064_v40 = vld [vmem:[#allocation158_spill] sm:$0xff] }
0x1055   : > { %v7063_v7 = vmul.f32 %v7022_v18, %v14063_v23  ;;  %v7192_v37 = vsel %vm5116_vm1, %v7062_v42, 0.0  ;;  %v7064_v26 = vmul.f32 %v7029_v13, %v14064_v40 }
0x1056   : > { %v7238_v58 = vsel %vm3875_vm5, %v7164_v35, %v7237_v33  ;;  %v7172_v44 = vrot.slane %v7171_v53, 1  ;;  %v7179_v30 = vrot.slane %v7178_v2, 2  ;;  %v7186_v50 = vrot.slane %v7185_v0, 4  ;;  %v14065_v35 = vld [vmem:[#allocation161_spill] sm:$0xff] }
0x1057   : > { %v7193_v12 = vsel %vm5116_vm1, %v7063_v7, 0.0  ;;  %v6033_v16 = vpop.permute.xlu1 %6032  ;;  %4126 = vbcast.lane.b32.xlu1 %v13106_v29, 256 }
0x1058   : > { %v7173_v57 = vadd.f32 %v7172_v44, %v7171_v53  ;;  %v7180_v56 = vadd.f32 %v7179_v30, %v7178_v2  ;;  %v7187_v51 = vadd.f32 %v7186_v50, %v7185_v0  ;;  %v7194_v18 = vadd.f32 %v7193_v12, %v7192_v37  ;;  %v7033_v1 = vpop.permute.xlu0 %7032 }
0x1059   : > { %v6122_v33 = vmul.f32 %v6033_v16, %v14052_v55  ;;  %v7065_v23 = vmul.f32 %v7033_v1, %v14065_v35  ;;  %v6212_v53 = vadd.f32 %v6211_v11, %v13011_v4  ;;  %v7201_v50 = vsel %vm5116_vm1, %v7064_v26, 0.0 }
0x105a   : > { %v7181_v42 = vrot.slane %v7180_v56, 1  ;;  %v7188_v13 = vrot.slane %v7187_v51, 2  ;;  %v7195_v40 = vrot.slane %v7194_v18, 4  ;;  %v7239_v7 = vsel %vm3877_vm6, %v7173_v57, %v7238_v58 }
0x105b   : > { %v7202_v2 = vsel %vm5116_vm1, %v7065_v23, 0.0  ;;  %v3984_v0 = vpop.permute.xlu1 %3983  ;;  %5999 = vbcast.lane.b32.xlu1 %v13118_v28, 256  ;;  %v13129_v58 = vrot.slane %v12654_v25, %v12828_v62  ;;  %v6213_v57 = vrot.slane %v6212_v53, 2 }
0x105c   : > { %v7182_v44 = vadd.f32 %v7181_v42, %v7180_v56  ;;  %v7189_v55 = vadd.f32 %v7188_v13, %v7187_v51  ;;  %v7196_v30 = vadd.f32 %v7195_v40, %v7194_v18  ;;  %v7203_v37 = vadd.f32 %v7202_v2, %v7201_v50  ;;  %v6037_v12 = vpop.permute.xlu0 %6036 }
0x105d   : > { %v4154_v16 = vmul.f32 %v3984_v0, %v13991_v10  ;;  %v6123_v1 = vmul.f32 %v6037_v12, %v14053_v19  ;;  %v6217_v40 = vsel %vm3596_vm2, %v6122_v33, 0.0 }
0x105e   : > { %v7190_v4 = vrot.slane %v7189_v55, 1  ;;  %v7197_v11 = vrot.slane %v7196_v30, 2  ;;  %v7204_v26 = vrot.slane %v7203_v37, 4  ;;  %v7240_v23 = vsel %vm3879_vm7, %v7182_v44, %v7239_v7 }
0x105f   : > { %v6218_v56 = vsel %vm3596_vm2, %v6123_v1, 0.0  ;;  %v3995_v51 = vpop.permute.xlu1 %3994  ;;  %6087 = vbcast.lane.b32.xlu1 %v13129_v58, 256  ;;  %v13139_v7 = vrot.slane %v14028_v52, %v12828_v62 }
0x1060   : > { %v7191_v18 = vadd.f32 %v7190_v4, %v7189_v55  ;;  %v7198_v42 = vadd.f32 %v7197_v11, %v7196_v30  ;;  %v7205_v10 = vadd.f32 %v7204_v26, %v7203_v37  ;;  %v6219_v13 = vadd.f32 %v6218_v56, %v6217_v40  ;;  %v3988_v19 = vpop.permute.xlu0 %3987 }
0x1061   : > { %v4156_v50 = vmul.f32 %v3995_v51, %v13998_v14  ;;  %v4155_v2 = vmul.f32 %v3988_v19, %v13990_v34  ;;  %v6214_v55 = vadd.f32 %v6213_v57, %v6212_v53  ;;  %v4186_v30 = vsel %vm3596_vm2, %v4154_v16, 0.0 }
0x1062   : > { %v7199_v0 = vrot.slane %v7198_v42, 1  ;;  %v7206_v33 = vrot.slane %v7205_v10, 2  ;;  %v6220_v44 = vrot.slane %v6219_v13, 4  ;;  %v7241_v12 = vsel %vm3881_vm8, %v7191_v18, %v7240_v23 }
0x1063   : > { %v4187_v37 = vsel %vm3596_vm2, %v4155_v2, 0.0  ;;  %v4072_v1 = vpop.permute.xlu1 %4071  ;;  %4049 = vbcast.lane.b32.xlu1 %v13139_v7, 256  ;;  %v13149_v23 = vrot.slane %v14029_v54, %v12828_v62  ;;  %v6215_v18 = vrot.slane %v6214_v55, 1 }
0x1064   : > { %v7200_v4 = vadd.f32 %v7199_v0, %v7198_v42  ;;  %v7207_v11 = vadd.f32 %v7206_v33, %v7205_v10  ;;  %v6221_v14 = vadd.f32 %v6220_v44, %v6219_v13  ;;  %v4188_v26 = vadd.f32 %v4187_v37, %v4186_v30  ;;  %v3999_v34 = vpop.permute.xlu0 %3998 }
0x1065   : > { %v4170_v40 = vmul.f32 %v4072_v1, %v14000_v45  ;;  %v4157_v56 = vmul.f32 %v3999_v34, %v13999_v6  ;;  %v4195_v42 = vsel %vm3596_vm2, %v4156_v50, 0.0  ;;  %v13159_v50 = vrot.slane %v12652_v21, %v12835_v47 }
0x1066   : > { %v7208_v53 = vrot.slane %v7207_v11, 1  ;;  %v6222_v16 = vrot.slane %v6221_v14, 2  ;;  %v4189_v57 = vrot.slane %v4188_v26, 4  ;;  %v7242_v51 = vsel %vm3883_vm9, %v7200_v4, %v7241_v12 }
0x1067   : > { %v4196_v10 = vsel %vm3596_vm2, %v4157_v56, 0.0  ;;  %v4083_v13 = vpop.permute.xlu1 %4082  ;;  %4137 = vbcast.lane.b32.xlu1 %v13149_v23, 256  ;;  %v6216_v1 = vadd.f32 %v6215_v18, %v6214_v55  ;;  %v4258_v4 = vsel %vm3596_vm2, %v4170_v40, 0.0 }
0x1068   : > { %v6223_v19 = vadd.f32 %v6222_v16, %v6221_v14  ;;  %v4190_v2 = vadd.f32 %v4189_v57, %v4188_v26  ;;  %v4197_v45 = vadd.f32 %v4196_v10, %v4195_v42  ;;  %v4172_v6 = vmul.f32 %v4083_v13, %v14002_v8  ;;  %v4076_v0 = vpop.permute.xlu0 %4075 }
0x1069   : > { %v4171_v33 = vmul.f32 %v4076_v0, %v14001_v60  ;;  %v7209_v44 = vadd.f32 %v7208_v53, %v7207_v11 }
0x106a   : > { %v6224_v30 = vrot.slane %v6223_v19, 1  ;;  %v4191_v37 = vrot.slane %v4190_v2, 2  ;;  %v4198_v12 = vrot.slane %v4197_v45, 4  ;;  %v4267_v42 = vsel %vm3596_vm2, %v4172_v6, 0.0 }
0x106b   : > { %v4259_v14 = vsel %vm3596_vm2, %v4171_v33, 0.0  ;;  %v7243_v26 = vsel %vm3885_vm10, %v7209_v44, %v7242_v51  ;;  %v5956_v34 = vpop.permute.xlu1 %5955  ;;  %6010 = vbcast.lane.b32.xlu1 %v13159_v50, 256  ;;  %v13173_v51 = vrot.slane %v12654_v25, %v12835_v47  ;;  %v13183_v6 = vrot.slane %v14028_v52, %v12835_v47 }
0x106c   : > { %v6225_v8 = vadd.f32 %v6224_v30, %v6223_v19  ;;  %v4192_v56 = vadd.f32 %v4191_v37, %v4190_v2  ;;  %v4199_v16 = vadd.f32 %v4198_v12, %v4197_v45  ;;  %v4260_v60 = vadd.f32 %v4259_v14, %v4258_v4  ;;  %v4087_v11 = vpop.permute.xlu0 %4086  ;;  %7246 = vrot.lane.b32.xlu0 %v7243_v26, %s10150_s2 }
0x106d   : > { %v6108_v21 = vmul.f32 %v5956_v34, %v14038_v22  ;;  %v4173_v55 = vmul.f32 %v4087_v11, %v14003_v61 }
0x106e   : > { %v13169_v40 = vsel %vm3873_vm4, %v6225_v8, %v6216_v1  ;;  %v4200_v53 = vrot.slane %v4199_v16, 2  ;;  %v4261_v57 = vrot.slane %v4260_v60, 4  ;;  %v4193_v18 = vrot.slane %v4192_v56, 1 }
0x106f   : > { %v4268_v10 = vsel %vm3596_vm2, %v4173_v55, 0.0  ;;  %v6044_v13 = vpop.permute.xlu1 %6043  ;;  %6098 = vbcast.lane.b32.xlu1 %v13173_v51, 256  ;;  %v6154_v37 = vsel %vm3596_vm2, %v6108_v21, 0.0 }
0x1070   : > { %v4201_v19 = vadd.f32 %v4200_v53, %v4199_v16  ;;  %v4262_v2 = vadd.f32 %v4261_v57, %v4260_v60  ;;  %v4269_v22 = vadd.f32 %v4268_v10, %v4267_v42  ;;  %v5960_v61 = vpop.permute.xlu0 %5959  ;;  %6080 = vbcast.lane.b32.xlu0 %v13087_v59, 264  ;;  %v6124_v45 = vmul.f32 %v6044_v13, %v14054_v63 }
0x1071   : > { %v6109_v0 = vmul.f32 %v5960_v61, %v14039_v20  ;;  %v4194_v30 = vadd.f32 %v4193_v18, %v4192_v56  ;;  %v13196_v16 = vrot.slane %v14029_v54, %v12835_v47 }
0x1072   : > { %v4202_v25 = vrot.slane %v4201_v19, 1  ;;  %v4263_v33 = vrot.slane %v4262_v2, 2  ;;  %v4270_v44 = vrot.slane %v4269_v22, 4  ;;  %v6226_v11 = vsel %vm3596_vm2, %v6124_v45, 0.0 }
0x1073   : > { %v6155_v12 = vsel %vm3596_vm2, %v6109_v0, 0.0  ;;  %v4006_v1 = vpop.permute.xlu1 %4005  ;;  %4060 = vbcast.lane.b32.xlu1 %v13183_v6, 256 }
0x1074   : > { %v4203_v4 = vadd.f32 %v4202_v25, %v4201_v19  ;;  %v4264_v14 = vadd.f32 %v4263_v33, %v4262_v2  ;;  %v4271_v59 = vadd.f32 %v4270_v44, %v4269_v22  ;;  %v6156_v26 = vadd.f32 %v6155_v12, %v6154_v37  ;;  %v6048_v20 = vpop.permute.xlu0 %6047  ;;  %4042 = vbcast.lane.b32.xlu0 %v13096_v46, 264 }
0x1075   : > { %v4158_v63 = vmul.f32 %v4006_v1, %v14004_v36  ;;  %v6125_v52 = vmul.f32 %v6048_v20, %v14055_v31 }
0x1076   : > { %v13192_v34 = vsel %vm3873_vm4, %v4203_v4, %v4194_v30  ;;  %v4272_v8 = vrot.slane %v4271_v59, 2  ;;  %v6157_v56 = vrot.slane %v6156_v26, 4  ;;  %v4265_v60 = vrot.slane %v4264_v14, 1 }
0x1077   : > { %v6227_v21 = vsel %vm3596_vm2, %v6125_v52, 0.0  ;;  %v4094_v55 = vpop.permute.xlu1 %4093  ;;  %4148 = vbcast.lane.b32.xlu1 %v13196_v16, 256  ;;  %v4204_v19 = vsel %vm3596_vm2, %v4158_v63, 0.0 }
0x1078   : > { %v4273_v46 = vadd.f32 %v4272_v8, %v4271_v59  ;;  %v6158_v53 = vadd.f32 %v6157_v56, %v6156_v26  ;;  %v6228_v36 = vadd.f32 %v6227_v21, %v6226_v11  ;;  %v4010_v31 = vpop.permute.xlu0 %4009  ;;  %4130 = vbcast.lane.b32.xlu0 %v13106_v29, 264  ;;  %v4174_v57 = vmul.f32 %v4094_v55, %v14006_v43 }
0x1079   : > { %v4159_v18 = vmul.f32 %v4010_v31, %v14005_v27  ;;  %v4266_v13 = vadd.f32 %v4265_v60, %v4264_v14 }
0x107a   : > { %v4274_v54 = vrot.slane %v4273_v46, 1  ;;  %v6159_v42 = vrot.slane %v6158_v53, 2  ;;  %v6229_v10 = vrot.slane %v6228_v36, 4  ;;  %v4276_v12 = vsel %vm3596_vm2, %v4174_v57, 0.0 }
0x107b   : > { %v4205_v2 = vsel %vm3596_vm2, %v4159_v18, 0.0  ;;  %v5967_v22 = vpop.permute.xlu1 %5966 }
0x107c   : > { %v4275_v61 = vadd.f32 %v4274_v54, %v4273_v46  ;;  %v6160_v45 = vadd.f32 %v6159_v42, %v6158_v53  ;;  %v6230_v0 = vadd.f32 %v6229_v10, %v6228_v36  ;;  %v4206_v25 = vadd.f32 %v4205_v2, %v4204_v19  ;;  %v4098_v33 = vpop.permute.xlu0 %4097  ;;  %6003 = vbcast.lane.b32.xlu0 %v13118_v28, 264 }
0x107d   : > { %v6110_v43 = vmul.f32 %v5967_v22, %v14040_v39  ;;  %v4175_v27 = vmul.f32 %v4098_v33, %v14007_v15 }
0x107e   : > { %v4353_v29 = vsel %vm3873_vm4, %v4275_v61, %v4266_v13  ;;  %v6161_v44 = vrot.slane %v6160_v45, 1  ;;  %v6231_v30 = vrot.slane %v6230_v0, 2  ;;  %v4207_v37 = vrot.slane %v4206_v25, 4 }
0x107f   : > { %v4277_v1 = vsel %vm3596_vm2, %v4175_v27, 0.0  ;;  %v6055_v4 = vpop.permute.xlu1 %6054  ;;  %v6163_v60 = vsel %vm3596_vm2, %v6110_v43, 0.0 }
0x1080   : > { %v6162_v14 = vadd.f32 %v6161_v44, %v6160_v45  ;;  %v6232_v59 = vadd.f32 %v6231_v30, %v6230_v0  ;;  %v4208_v26 = vadd.f32 %v4207_v37, %v4206_v25  ;;  %v4278_v20 = vadd.f32 %v4277_v1, %v4276_v12  ;;  %v5971_v63 = vpop.permute.xlu0 %5970  ;;  %6091 = vbcast.lane.b32.xlu0 %v13129_v58, 264 }
0x1081   : > { %v6126_v39 = vmul.f32 %v6055_v4, %v14056_v9  ;;  %v6111_v15 = vmul.f32 %v5971_v63, %v14041_v48 }
0x1082   : > { %v6297_v28 = vsel %vm3875_vm5, %v6162_v14, %v13029_v41  ;;  %v6233_v52 = vrot.slane %v6232_v59, 1  ;;  %v4209_v8 = vrot.slane %v4208_v26, 2  ;;  %v4279_v56 = vrot.slane %v4278_v20, 4 }
0x1083   : > { %v6164_v11 = vsel %vm3596_vm2, %v6111_v15, 0.0  ;;  %v4017_v21 = vpop.permute.xlu1 %4016  ;;  %v6235_v54 = vsel %vm3596_vm2, %v6126_v39, 0.0 }
0x1084   : > { %v6234_v55 = vadd.f32 %v6233_v52, %v6232_v59  ;;  %v4210_v46 = vadd.f32 %v4209_v8, %v4208_v26  ;;  %v4280_v53 = vadd.f32 %v4279_v56, %v4278_v20  ;;  %v6165_v36 = vadd.f32 %v6164_v11, %v6163_v60  ;;  %v6059_v58 = vpop.permute.xlu0 %6058  ;;  %4053 = vbcast.lane.b32.xlu0 %v13139_v7, 264 }
0x1085   : > { %v4160_v48 = vmul.f32 %v4017_v21, %v14008_v32  ;;  %v6127_v9 = vmul.f32 %v6059_v58, %v14057_v49 }
0x1086   : > { %v6304_v41 = vsel %vm3875_vm5, %v6234_v55, %v13169_v40  ;;  %v4211_v31 = vrot.slane %v4210_v46, 1  ;;  %v4281_v57 = vrot.slane %v4280_v53, 2  ;;  %v6166_v18 = vrot.slane %v6165_v36, 4 }
0x1087   : > { %v6236_v42 = vsel %vm3596_vm2, %v6127_v9, 0.0  ;;  %v4105_v10 = vpop.permute.xlu1 %4104  ;;  %v4213_v25 = vsel %vm3596_vm2, %v4160_v48, 0.0  ;;  %v14068_v9 = vld [vmem:[#allocation143_spill] sm:$0xff] }
0x1088   : > { %v4212_v13 = vadd.f32 %v4211_v31, %v4210_v46  ;;  %v4282_v19 = vadd.f32 %v4281_v57, %v4280_v53  ;;  %v6167_v2 = vadd.f32 %v6166_v18, %v6165_v36  ;;  %v6237_v22 = vadd.f32 %v6236_v42, %v6235_v54  ;;  %v4021_v7 = vpop.permute.xlu0 %4020  ;;  %4141 = vbcast.lane.b32.xlu0 %v13149_v23, 264 }
0x1089   : > { %v4176_v32 = vmul.f32 %v4105_v10, %v14010_v3  ;;  %v4161_v49 = vmul.f32 %v4021_v7, %v14009_v38 }
0x108a   : > { %v4347_v40 = vsel %vm3875_vm5, %v4212_v13, %v13192_v34  ;;  %v4283_v61 = vrot.slane %v4282_v19, 1  ;;  %v6168_v45 = vrot.slane %v6167_v2, 2  ;;  %v6238_v0 = vrot.slane %v6237_v22, 4 }
0x108b   : > { %v4214_v33 = vsel %vm3596_vm2, %v4161_v49, 0.0  ;;  %v5978_v43 = vpop.permute.xlu1 %5977  ;;  %v4285_v14 = vsel %vm3596_vm2, %v4176_v32, 0.0  ;;  %v14069_v32 = vld [vmem:[#allocation139_spill] sm:$0xff]  ;;  %v14070_v49 = vld [vmem:[#allocation94_spill] sm:$0xff] }
0x108c   : > { %v4284_v27 = vadd.f32 %v4283_v61, %v4282_v19  ;;  %v6169_v44 = vadd.f32 %v6168_v45, %v6167_v2  ;;  %v6239_v30 = vadd.f32 %v6238_v0, %v6237_v22  ;;  %v4215_v37 = vadd.f32 %v4214_v33, %v4213_v25  ;;  %v4109_v23 = vpop.permute.xlu0 %4108  ;;  %6014 = vbcast.lane.b32.xlu0 %v13159_v50, 264 }
0x108d   : > { %v6112_v38 = vmul.f32 %v5978_v43, %v14042_v24  ;;  %v4177_v3 = vmul.f32 %v4109_v23, %v14011_v5  ;;  %v14066_v24 = vld [vmem:[#allocation95_spill] sm:$0xff] }
0x108e   : > { %v13237_v34 = vsel %vm3875_vm5, %v4284_v27, %v4353_v29  ;;  %v6170_v12 = vrot.slane %v6169_v44, 1  ;;  %v6240_v1 = vrot.slane %v6239_v30, 2  ;;  %v4216_v4 = vrot.slane %v4215_v37, 4 }
0x108f   : > { %v4286_v59 = vsel %vm3596_vm2, %v4177_v3, 0.0  ;;  %v6066_v26 = vpop.permute.xlu1 %6065  ;;  %v6172_v11 = vsel %vm3596_vm2, %v6112_v38, 0.0 }
0x1090   : > { %v6171_v20 = vadd.f32 %v6170_v12, %v6169_v44  ;;  %v6241_v63 = vadd.f32 %v6240_v1, %v6239_v30  ;;  %v4217_v39 = vadd.f32 %v4216_v4, %v4215_v37  ;;  %v4287_v15 = vadd.f32 %v4286_v59, %v4285_v14  ;;  %v5982_v50 = vpop.permute.xlu0 %5981  ;;  %6102 = vbcast.lane.b32.xlu0 %v13173_v51, 264  ;;  %v9258_v30 = vld [vmem:[%s10883_s14] ss:$8 sps:$4 sm:$0xff]   ;;  %v9260_v37 = vld [vmem:[%s10883_s14 + $0x4] ss:$8 sps:$4 sm:$0xff]  }
0x1091   : > { %v6128_v5 = vmul.f32 %v6066_v26, %v14058_v17  ;;  %v6113_v29 = vmul.f32 %v5982_v50, %v14066_v24  ;;  %v14067_v17 = vld [vmem:[#allocation91_spill] sm:$0xff]  ;;  %v9263_v1 = vld [vmem:[%s10883_s14 + $0x14] ss:$8 sps:$4 sm:$0xff]   ;;  %7524 = vmatprep.subr.bf16.mxu1 %v9260_v37  ;;  %v9279_v37 = vld [vmem:[%s10883_s14 + $0x70] ss:$8 sps:$4 sm:$0xff]  }
0x1092   : > { %v13245_v52 = vsel %vm3877_vm6, %v6171_v20, %v6297_v28  ;;  %v6242_v8 = vrot.slane %v6241_v63, 1  ;;  %v4218_v56 = vrot.slane %v4217_v39, 2  ;;  %v4288_v60 = vrot.slane %v4287_v15, 4  ;;  %v14072_v14 = vld [vmem:[#allocation142_spill] sm:$0xff]  ;;  %7525 = vmatpush1.bf16.msra.mxu1 %v9258_v30  ;;  %v9266_v24 = vld [vmem:[%s10883_s14 + $0x24] ss:$8 sps:$4 sm:$0xff]  }
0x1093   : > { %v6173_v21 = vsel %vm3596_vm2, %v6113_v29, 0.0  ;;  %v4028_v55 = vpop.permute.xlu1 %4027  ;;  %v6244_v42 = vsel %vm3596_vm2, %v6128_v5, 0.0  ;;  %7526 = vmatprep.subr.bf16.mxu1 %v9263_v1  ;;  %v9278_v30 = vld [vmem:[%s10883_s14 + $0x64] ss:$8 sps:$4 sm:$0xff]  }
0x1094   : > { %v6243_v46 = vadd.f32 %v6242_v8, %v6241_v63  ;;  %v4219_v53 = vadd.f32 %v4218_v56, %v4217_v39  ;;  %v4289_v36 = vadd.f32 %v4288_v60, %v4287_v15  ;;  %v6174_v58 = vadd.f32 %v6173_v21, %v6172_v11  ;;  %v6070_v51 = vpop.permute.xlu0 %6069  ;;  %4064 = vbcast.lane.b32.xlu0 %v13183_v6, 264  ;;  %v9261_v15 = vld [vmem:[%s10883_s14 + $0x10] ss:$8 sps:$4 sm:$0xff]  }
0x1095   : > { %v4162_v48 = vmul.f32 %v4028_v55, %v14067_v17  ;;  %v6129_v28 = vmul.f32 %v6070_v51, %v14068_v9  ;;  %v14073_v21 = vld [vmem:[#allocation101_spill] sm:$0xff]  ;;  %v14074_v1 = vld [vmem:[#allocation84_spill] sm:$0xff] }
0x1096   : > { %v13253_v31 = vsel %vm3877_vm6, %v6243_v46, %v6304_v41  ;;  %v4220_v57 = vrot.slane %v4219_v53, 1  ;;  %v4290_v18 = vrot.slane %v4289_v36, 2  ;;  %v6175_v54 = vrot.slane %v6174_v58, 4  ;;  %7527 = vmatpush1.bf16.msra.mxu1 %v9261_v15  ;;  %v9291_v15 = vld [vmem:[%s10883_s14 + $0xb0] ss:$8 sps:$4 sm:$0xff]  }
0x1097   : > { %v6245_v10 = vsel %vm3596_vm2, %v6129_v28, 0.0  ;;  %v4116_v13 = vpop.permute.xlu1 %4115  ;;  %v4222_v43 = vsel %vm3596_vm2, %v4162_v48, 0.0  ;;  %7528 = vmatprep.subr.bf16.mxu1 %v9266_v24  ;;  %v9269_v48 = vld [vmem:[%s10883_s14 + $0x34] ss:$8 sps:$4 sm:$0xff]   ;;  %v9294_v24 = vld [vmem:[%s10883_s14 + $0xc0] ss:$8 sps:$4 sm:$0xff]  }
0x1098   : > { %v4221_v19 = vadd.f32 %v4220_v57, %v4219_v53  ;;  %v4291_v2 = vadd.f32 %v4290_v18, %v4289_v36  ;;  %v6176_v6 = vadd.f32 %v6175_v54, %v6174_v58  ;;  %v6246_v22 = vadd.f32 %v6245_v10, %v6244_v42  ;;  %v4032_v7 = vpop.permute.xlu0 %4031  ;;  %4152 = vbcast.lane.b32.xlu0 %v13196_v16, 264  ;;  %v9264_v36 = vld [vmem:[%s10883_s14 + $0x20] ss:$8 sps:$4 sm:$0xff]  }
0x1099   : > { %v4178_v41 = vmul.f32 %v4116_v13, %v14069_v32  ;;  %v4163_v61 = vmul.f32 %v4032_v7, %v14070_v49  ;;  %v9267_v13 = vld [vmem:[%s10883_s14 + $0x30] ss:$8 sps:$4 sm:$0xff]  }
0x109a   : > { %v13261_v45 = vsel %vm3877_vm6, %v4221_v19, %v4347_v40  ;;  %v4292_v0 = vrot.slane %v4291_v2, 1  ;;  %v6177_v25 = vrot.slane %v6176_v6, 2  ;;  %v6247_v33 = vrot.slane %v6246_v22, 4  ;;  %v14071_v40 = vld [vmem:[#allocation98_spill] sm:$0xff]  ;;  %7529 = vmatpush1.bf16.msra.mxu1 %v9264_v36  ;;  %v9272_v19 = vld [vmem:[%s10883_s14 + $0x44] ss:$8 sps:$4 sm:$0xff]  }
0x109b   : > { %v4223_v27 = vsel %vm3596_vm2, %v4163_v61, 0.0  ;;  %v5989_v44 = vpop.permute.xlu1 %5988  ;;  %v4294_v50 = vsel %vm3596_vm2, %v4178_v41, 0.0  ;;  %7530 = vmatprep.subr.bf16.mxu1 %v9269_v48  ;;  %v9270_v41 = vld [vmem:[%s10883_s14 + $0x40] ss:$8 sps:$4 sm:$0xff]   ;;  %v14077_v36 = vld [vmem:[#allocation129_spill] sm:$0xff] }
0x109c   : > { %v4293_v16 = vadd.f32 %v4292_v0, %v4291_v2  ;;  %v6178_v23 = vadd.f32 %v6177_v25, %v6176_v6  ;;  %v6248_v38 = vadd.f32 %v6247_v33, %v6246_v22  ;;  %v4224_v3 = vadd.f32 %v4223_v27, %v4222_v43  ;;  %v4120_v12 = vpop.permute.xlu0 %4119  ;;  %v9273_v33 = vld [vmem:[%s10883_s14 + $0x50] ss:$8 sps:$4 sm:$0xff]  }
0x109d   : > { %v6114_v4 = vmul.f32 %v5989_v44, %v14071_v40  ;;  %v4179_v59 = vmul.f32 %v4120_v12, %v14072_v14  ;;  %v9276_v44 = vld [vmem:[%s10883_s14 + $0x60] ss:$8 sps:$4 sm:$0xff]   ;;  %v9290_v14 = vld [vmem:[%s10883_s14 + $0xa4] ss:$8 sps:$4 sm:$0xff]  }
0x109e   : > { %v4355_v26 = vsel %vm3877_vm6, %v4293_v16, %v13237_v34  ;;  %v6179_v20 = vrot.slane %v6178_v23, 1  ;;  %v6249_v63 = vrot.slane %v6248_v38, 2  ;;  %v4225_v39 = vrot.slane %v4224_v3, 4  ;;  %7531 = vmatpush1.bf16.msra.mxu1 %v9267_v13  ;;  %v9281_v16 = vld [vmem:[%s10883_s14 + $0x74] ss:$8 sps:$4 sm:$0xff]  }
0x109f   : > { %v4295_v5 = vsel %vm3596_vm2, %v4179_v59, 0.0  ;;  %v6181_v51 = vsel %vm3596_vm2, %v6114_v4, 0.0  ;;  %7532 = vmatprep.subr.bf16.mxu1 %v9272_v19  ;;  %v9285_v4 = vld [vmem:[%s10883_s14 + $0x90] ss:$8 sps:$4 sm:$0xff]   ;;  %v14075_v59 = vld [vmem:[#allocation126_spill] sm:$0xff] }
0x10a0   : > { %v6180_v29 = vadd.f32 %v6179_v20, %v6178_v23  ;;  %v6250_v8 = vadd.f32 %v6249_v63, %v6248_v38  ;;  %v4226_v56 = vadd.f32 %v4225_v39, %v4224_v3  ;;  %v4296_v60 = vadd.f32 %v4295_v5, %v4294_v50  ;;  %v5993_v11 = vpop.permute.xlu0 %5992  ;;  %v9284_v23 = vld [vmem:[%s10883_s14 + $0x84] ss:$8 sps:$4 sm:$0xff]   ;;  %v9282_v38 = vld [vmem:[%s10883_s14 + $0x80] ss:$8 sps:$4 sm:$0xff]   ;;  %v9287_v3 = vld [vmem:[%s10883_s14 + $0x94] ss:$8 sps:$4 sm:$0xff]  }
0x10a1   : > { %v6115_v34 = vmul.f32 %v5993_v11, %v14073_v21  ;;  %v9288_v63 = vld [vmem:[%s10883_s14 + $0xa0] ss:$8 sps:$4 sm:$0xff]   ;;  %v9293_v39 = vld [vmem:[%s10883_s14 + $0xb4] ss:$8 sps:$4 sm:$0xff]   ;;  %v9296_v50 = vld [vmem:[%s10883_s14 + $0xc4] ss:$8 sps:$4 sm:$0xff]  }
0x10a2   : > { %v6251_v55 = vrot.slane %v6250_v8, 1  ;;  %v4227_v46 = vrot.slane %v4226_v56, 2  ;;  %v4297_v53 = vrot.slane %v4296_v60, 4  ;;  %v6299_v58 = vsel %vm3879_vm7, %v6180_v29, %v13245_v52  ;;  %7533 = vmatpush1.bf16.msra.mxu1 %v9270_v41  ;;  %v9299_v29 = vld [vmem:[%s10883_s14 + $0xd4] ss:$8 sps:$4 sm:$0xff]  }
0x10a3   : > { %v6182_v17 = vsel %vm3596_vm2, %v6115_v34, 0.0  ;;  %v9302_v11 = vld [vmem:[%s10883_s14 + $0xe4] ss:$8 sps:$4 sm:$0xff]   ;;  %v9303_v34 = vld [vmem:[%s10883_s14 + $0xf0] ss:$8 sps:$4 sm:$0xff]  }
0x10a4   : > { %v6252_v9 = vadd.f32 %v6251_v55, %v6250_v8  ;;  %v4228_v28 = vadd.f32 %v4227_v46, %v4226_v56  ;;  %v4298_v57 = vadd.f32 %v4297_v53, %v4296_v60  ;;  %v6183_v18 = vadd.f32 %v6182_v17, %v6181_v51  ;;  %v9297_v8 = vld [vmem:[%s10883_s14 + $0xd0] ss:$8 sps:$4 sm:$0xff]   ;;  %v9300_v60 = vld [vmem:[%s10883_s14 + $0xe0] ss:$8 sps:$4 sm:$0xff]   ;;  %v9305_v55 = vld [vmem:[%s10883_s14 + $0xf4] ss:$8 sps:$4 sm:$0xff]  }
0x10a5   : > { %v14078_v51 = vld [vmem:[#allocation146_spill] sm:$0xff]  ;;  %v14082_v13 = vld [vmem:[#allocation97_spill] sm:$0xff] }
0x10a6   : > { %v4229_v54 = vrot.slane %v4228_v28, 1  ;;  %v4299_v42 = vrot.slane %v4298_v57, 2  ;;  %v6184_v10 = vrot.slane %v6183_v18, 4  ;;  %v13286_v52 = vsel %vm3879_vm7, %v6252_v9, %v13253_v31  ;;  %v9275_v31 = vld [vmem:[%s10883_s14 + $0x54] ss:$8 sps:$4 sm:$0xff]   ;;  %s14112_s14 = scalar_lea.vmem [#allocation25], %s10877_s13 }
0x10a7   : > { %7534 = vmatprep.subr.bf16.mxu1 %v9275_v31 }
0x10a8   : > { %v4230_v2 = vadd.f32 %v4229_v54, %v4228_v28  ;;  %v4300_v6 = vadd.f32 %v4299_v42, %v4298_v57  ;;  %v6185_v22 = vadd.f32 %v6184_v10, %v6183_v18  ;;  %7535 = vmatpush1.bf16.msra.mxu1 %v9273_v33  ;;  %v14079_v28 = vld [vmem:[#allocation81_spill] sm:$0xff] }
0x10a9   : > { %7536 = vmatprep.subr.bf16.mxu1 %v9278_v30  ;;  %v14080_v57 = vld [vmem:[#allocation117_spill] sm:$0xff] }
0x10aa   : > { %v4301_v7 = vrot.slane %v4300_v6, 1  ;;  %v6186_v32 = vrot.slane %v6185_v22, 2  ;;  %v13292_v49 = vsel %vm3879_vm7, %v4230_v2, %v13261_v45  ;;  %v5342_v18 = vadd.f32 %v14080_v57, %v14079_v28  ;;  %v14081_v54 = vld [vmem:[#allocation149_spill] sm:$0xff]  ;;  %v14090_v57 = vld [vmem:[#allocation103_spill] sm:$0xff] }
0x10ac   : > { %v4302_v61 = vadd.f32 %v4301_v7, %v4300_v6  ;;  %v6187_v0 = vadd.f32 %v6186_v32, %v6185_v22  ;;  %7537 = vmatpush1.bf16.msra.mxu1 %v9276_v44  ;;  %v14083_v7 = vld [vmem:[#allocation100_spill] sm:$0xff] }
0x10ad   : > { %7538 = vmatprep.subr.bf16.mxu1 %v9281_v16 }
0x10ae   : > { %v6188_v25 = vrot.slane %v6187_v0, 1  ;;  %v13297_v43 = vsel %vm3879_vm7, %v4302_v61, %v4355_v26  ;;  %v14076_v26 = vld [vmem:[#allocation78_spill] sm:$0xff] }
0x10af   : > { %v5339_v20 = vadd.f32 %v14076_v26, %v14075_v59 }
0x10b0   : > { %v6189_v27 = vadd.f32 %v6188_v25, %v6187_v0  ;;  %7539 = vmatpush1.bf16.msra.mxu1 %v9279_v37  ;;  %v14084_v0 = vld [vmem:[#allocation145_spill] sm:$0xff]  ;;  %v14085_v37 = vld [vmem:[#allocation148_spill] sm:$0xff] }
0x10b1   : > { %7540 = vmatprep.subr.bf16.mxu1 %v9284_v23 }
0x10b2   : > { %v13300_v45 = vsel %vm3881_vm8, %v6189_v27, %v6299_v58 }
0x10b4   : > { %7541 = vmatpush1.bf16.msra.mxu1 %v9282_v38 }
0x10b5   : > { %7542 = vmatprep.subr.bf16.mxu1 %v9287_v3 }
0x10b8   : > { %7543 = vmatpush1.bf16.msra.mxu1 %v9285_v4 }
0x10b9   : > { %7544 = vmatprep.subr.bf16.mxu1 %v9290_v14 }
0x10bc   : > { %7545 = vmatpush1.bf16.msra.mxu1 %v9288_v63  ;;  %v14087_v63 = vld [vmem:[#allocation107_spill] sm:$0xff] }
0x10bd   : > { %v7245_v12 = vpop.permute.xlu1 %7244  ;;  %7546 = vmatprep.subr.bf16.mxu1 %v9293_v39 }
0x10be   : > { %v7288_v40 = vadd.f32 %v14074_v1, %v7245_v12  ;;  %v14086_v12 = vld [vmem:[#allocation104_spill] sm:$0xff] }
0x10c0   : > { %7304 = vrot.lane.b32.xlu1 %v7288_v40, %s10150_s2  ;;  %7547 = vmatpush1.bf16.msra.mxu1 %v9291_v15 }
0x10c1   : > { %v6077_v5 = vpop.permute.xlu1 %6076  ;;  %7548 = vmatprep.subr.bf16.mxu1 %v9296_v50 }
0x10c2   : > { %v6130_v17 = vmul.f32 %v6077_v5, %v14078_v51 }
0x10c4   : > { %7296 = vrot.lane.b32.xlu1 %v5339_v20, %s10150_s2  ;;  %7549 = vmatpush1.bf16.msra.mxu1 %v9294_v24  ;;  %v6253_v10 = vsel %vm3596_vm2, %v6130_v17, 0.0 }
0x10c5   : > { %v4039_v56 = vpop.permute.xlu1 %4038  ;;  %7550 = vmatprep.subr.bf16.mxu1 %v9299_v29  ;;  %v14088_v29 = vld [vmem:[#allocation152_spill] sm:$0xff] }
0x10c6   : > { %v4164_v19 = vmul.f32 %v4039_v56, %v14082_v13 }
0x10c8   : > { %7551 = vmatpush1.bf16.msra.mxu1 %v9297_v8  ;;  %v4231_v61 = vsel %vm3596_vm2, %v4164_v19, 0.0 }
0x10c9   : > { %v4127_v21 = vpop.permute.xlu1 %4126  ;;  %7552 = vmatprep.subr.bf16.mxu1 %v9302_v11 }
0x10ca   : > { %v4180_v25 = vmul.f32 %v4127_v21, %v14084_v0 }
0x10cc   : > { %7553 = vmatpush1.bf16.msra.mxu1 %v9300_v60  ;;  %v4303_v3 = vsel %vm3596_vm2, %v4180_v25, 0.0 }
0x10cd   : > { %v6000_v46 = vpop.permute.xlu1 %5999  ;;  %7554 = vmatprep.subr.bf16.mxu1 %v9305_v55 }
0x10ce   : > { %v6116_v1 = vmul.f32 %v6000_v46, %v14086_v12  ;;  %v14089_v46 = vld [vmem:[#allocation155_spill] sm:$0xff] }
0x10d0   : > { %7555 = vmatpush1.bf16.msra.mxu1 %v9303_v34  ;;  %v6190_v24 = vsel %vm3596_vm2, %v6116_v1, 0.0 }
0x10d1   : > { %v6088_v48 = vpop.permute.xlu1 %6087 }
0x10d2   : > { %v6132_v8 = vmul.f32 %v6088_v48, %v14088_v29 }
0x10d4   : > { %v6262_v28 = vsel %vm3596_vm2, %v6132_v8, 0.0 }
0x10d5   : > { %v4050_v41 = vpop.permute.xlu1 %4049 }
0x10d6   : > { %v4166_v48 = vmul.f32 %v4050_v41, %v14090_v57 }
0x10d9   : > { %v4138_v4 = vpop.permute.xlu1 %4137 }
0x10de   : > { %v7247_v53 = vpop.permute.xlu0 %7246 }
0x10df   : > { %v7291_v58 = vadd.f32 %v14077_v36, %v7247_v53  ;;  %v6011_v36 = vpop.permute.xlu1 %6010 }
0x10e1   : > { %7306 = vrot.lane.b32.xlu0 %v7291_v58, %s10150_s2 }
0x10e2   : > { %v6081_v9 = vpop.permute.xlu0 %6080 }
0x10e3   : > { %v6131_v42 = vmul.f32 %v6081_v9, %v14081_v54  ;;  %v6099_v25 = vpop.permute.xlu1 %6098 }
0x10e5   : > { %v6254_v2 = vsel %vm3596_vm2, %v6131_v42, 0.0  ;;  %7298 = vrot.lane.b32.xlu0 %v5342_v18, %s10150_s2 }
0x10e6   : > { %v6255_v6 = vadd.f32 %v6254_v2, %v6253_v10  ;;  %v4043_v22 = vpop.permute.xlu0 %4042  ;;  %v14091_v2 = vld [vmem:[#allocation106_spill] sm:$0xff] }
0x10e7   : > { %v4165_v32 = vmul.f32 %v4043_v22, %v14083_v7 }
0x10e8   : > { %v6256_v31 = vrot.slane %v6255_v6, 4 }
0x10e9   : > { %v4232_v33 = vsel %vm3596_vm2, %v4165_v32, 0.0 }
0x10ea   : > { %v6257_v27 = vadd.f32 %v6256_v31, %v6255_v6  ;;  %v4233_v44 = vadd.f32 %v4232_v33, %v4231_v61  ;;  %v4131_v30 = vpop.permute.xlu0 %4130  ;;  %v14092_v61 = vld [vmem:[#allocation151_spill] sm:$0xff] }
0x10eb   : > { %v4181_v16 = vmul.f32 %v4131_v30, %v14085_v37  ;;  %v4182_v0 = vmul.f32 %v4138_v4, %v14092_v61 }
0x10ec   : > { %v6258_v23 = vrot.slane %v6257_v27, 2  ;;  %v4234_v38 = vrot.slane %v4233_v44, 4 }
0x10ed   : > { %v4304_v40 = vsel %vm3596_vm2, %v4181_v16, 0.0  ;;  %v14093_v16 = vld [vmem:[#allocation154_spill] sm:$0xff]  ;;  %v4312_v1 = vsel %vm3596_vm2, %v4182_v0, 0.0  ;;  %v14099_v0 = vld [vmem:[#allocation157_spill] sm:$0xff] }
0x10ee   : > { %v6259_v14 = vadd.f32 %v6258_v23, %v6257_v27  ;;  %v4235_v59 = vadd.f32 %v4234_v38, %v4233_v44  ;;  %v4305_v26 = vadd.f32 %v4304_v40, %v4303_v3  ;;  %v6004_v20 = vpop.permute.xlu0 %6003  ;;  %v14094_v40 = vld [vmem:[#allocation110_spill] sm:$0xff] }
0x10ef   : > { %v6117_v39 = vmul.f32 %v6004_v20, %v14087_v63  ;;  %v6118_v4 = vmul.f32 %v6011_v36, %v14094_v40 }
0x10f0   : > { %v6260_v15 = vrot.slane %v6259_v14, 1  ;;  %v4236_v50 = vrot.slane %v4235_v59, 2  ;;  %v4306_v5 = vrot.slane %v4305_v26, 4 }
0x10f1   : > { %v6191_v56 = vsel %vm3596_vm2, %v6117_v39, 0.0 }
0x10f2   : > { %v6261_v60 = vadd.f32 %v6260_v15, %v6259_v14  ;;  %v4237_v11 = vadd.f32 %v4236_v50, %v4235_v59  ;;  %v4307_v21 = vadd.f32 %v4306_v5, %v4305_v26  ;;  %v6192_v34 = vadd.f32 %v6191_v56, %v6190_v24  ;;  %v6092_v55 = vpop.permute.xlu0 %6091  ;;  %v14095_v15 = vld [vmem:[#allocation113_spill] sm:$0xff]  ;;  %v4061_v5 = vpop.permute.xlu1 %4060 }
0x10f3   : > { %v6133_v53 = vmul.f32 %v6092_v55, %v14089_v46  ;;  %v6199_v56 = vsel %vm3596_vm2, %v6118_v4, 0.0 }
0x10f4   : > { %v4238_v58 = vrot.slane %v4237_v11, 1  ;;  %v4308_v51 = vrot.slane %v4307_v21, 2  ;;  %v6193_v17 = vrot.slane %v6192_v34, 4  ;;  %v6307_v9 = vsel %vm3881_vm8, %v6261_v60, %v13286_v52  ;;  %v14096_v60 = vld [vmem:[#allocation158_spill] sm:$0xff] }
0x10f5   : > { %v6263_v18 = vsel %vm3596_vm2, %v6133_v53, 0.0  ;;  %v4240_v52 = vsel %vm3596_vm2, %v4166_v48, 0.0  ;;  %v14097_v48 = vld [vmem:[#allocation109_spill] sm:$0xff] }
0x10f6   : > { %v4239_v54 = vadd.f32 %v4238_v58, %v4237_v11  ;;  %v4309_v42 = vadd.f32 %v4308_v51, %v4307_v21  ;;  %v6194_v10 = vadd.f32 %v6193_v17, %v6192_v34  ;;  %v6264_v13 = vadd.f32 %v6263_v18, %v6262_v28  ;;  %v4054_v19 = vpop.permute.xlu0 %4053 }
0x10f7   : > { %v4167_v6 = vmul.f32 %v4054_v19, %v14091_v2  ;;  %v6134_v11 = vmul.f32 %v6099_v25, %v14096_v60  ;;  %v4168_v18 = vmul.f32 %v4061_v5, %v14097_v48 }
0x10f8   : > { %v4310_v22 = vrot.slane %v4309_v42, 1  ;;  %v6195_v7 = vrot.slane %v6194_v10, 2  ;;  %v6265_v32 = vrot.slane %v6264_v13, 4  ;;  %v4350_v31 = vsel %vm3881_vm8, %v4239_v54, %v13292_v49 }
0x10f9   : > { %v4241_v41 = vsel %vm3596_vm2, %v4167_v6, 0.0 }
0x10fa   : > { %v4311_v33 = vadd.f32 %v4310_v22, %v4309_v42  ;;  %v6196_v27 = vadd.f32 %v6195_v7, %v6194_v10  ;;  %v6266_v44 = vadd.f32 %v6265_v32, %v6264_v13  ;;  %v4242_v30 = vadd.f32 %v4241_v41, %v4240_v52  ;;  %v4142_v37 = vpop.permute.xlu0 %4141  ;;  %v4149_v42 = vpop.permute.xlu1 %4148  ;;  %v14098_v22 = vld [vmem:[#allocation112_spill] sm:$0xff] }
0x10fb   : > { %v4183_v23 = vmul.f32 %v4142_v37, %v14093_v16  ;;  %v4184_v41 = vmul.f32 %v4149_v42, %v14099_v0  ;;  %v14100_v16 = vld [vmem:[#allocation160_spill] sm:$0xff] }
0x10fc   : > { %v6197_v38 = vrot.slane %v6196_v27, 1  ;;  %v6267_v3 = vrot.slane %v6266_v44, 2  ;;  %v4243_v12 = vrot.slane %v4242_v30, 4  ;;  %v4357_v49 = vsel %vm3881_vm8, %v4311_v33, %v13297_v43 }
0x10fd   : > { %v4313_v14 = vsel %vm3596_vm2, %v4183_v23, 0.0 }
0x10fe   : > { %v6198_v59 = vadd.f32 %v6197_v38, %v6196_v27  ;;  %v6268_v26 = vadd.f32 %v6267_v3, %v6266_v44  ;;  %v4244_v20 = vadd.f32 %v4243_v12, %v4242_v30  ;;  %v4314_v63 = vadd.f32 %v4313_v14, %v4312_v1  ;;  %v6015_v39 = vpop.permute.xlu0 %6014 }
0x10ff   : > { %v6119_v50 = vmul.f32 %v6015_v39, %v14095_v15 }
0x1100   : > { %v6269_v24 = vrot.slane %v6268_v26, 1  ;;  %v4245_v29 = vrot.slane %v4244_v20, 2  ;;  %v4315_v8 = vrot.slane %v4314_v63, 4  ;;  %v6301_v43 = vsel %vm3883_vm9, %v6198_v59, %v13300_v45 }
0x1101   : > { %v6200_v21 = vsel %vm3596_vm2, %v6119_v50, 0.0  ;;  %v6271_v45 = vsel %vm3596_vm2, %v6134_v11, 0.0  ;;  %v14101_v50 = vld [vmem:[#allocation62_spill] sm:$0xff]  ;;  %v14102_v11 = vld [vmem:[#allocation120_spill] sm:$0xff] }
0x1102   : > { %v6270_v34 = vadd.f32 %v6269_v24, %v6268_v26  ;;  %v4246_v55 = vadd.f32 %v4245_v29, %v4244_v20  ;;  %v4316_v46 = vadd.f32 %v4315_v8, %v4314_v63  ;;  %v6201_v53 = vadd.f32 %v6200_v21, %v6199_v56  ;;  %v6103_v36 = vpop.permute.xlu0 %6102 }
0x1103   : > { %v6135_v58 = vmul.f32 %v6103_v36, %v14065_v35  ;;  %v14103_v36 = vld [vmem:[#allocation165_spill] sm:$0xff] }
0x1104   : > { %v4247_v51 = vrot.slane %v4246_v55, 1  ;;  %v4317_v17 = vrot.slane %v4316_v46, 2  ;;  %v6202_v28 = vrot.slane %v6201_v53, 4  ;;  %v6308_v57 = vsel %vm3883_vm9, %v6270_v34, %v6307_v9 }
0x1105   : > { %v6272_v54 = vsel %vm3596_vm2, %v6135_v58, 0.0  ;;  %v4249_v9 = vsel %vm3596_vm2, %v4168_v18, 0.0 }
0x1106   : > { %v4248_v10 = vadd.f32 %v4247_v51, %v4246_v55  ;;  %v4318_v13 = vadd.f32 %v4317_v17, %v4316_v46  ;;  %v6203_v19 = vadd.f32 %v6202_v28, %v6201_v53  ;;  %v6273_v2 = vadd.f32 %v6272_v54, %v6271_v45  ;;  %v4065_v6 = vpop.permute.xlu0 %4064  ;;  %v14104_v17 = vld [vmem:[#allocation166_spill] sm:$0xff] }
0x1107   : > { %v4169_v7 = vmul.f32 %v4065_v6, %v14098_v22  ;;  %v9344_v45 = vld [vmem:[%s10879_s3] sm:$0xff]  ;;  %s14109_s3 = scalar_lea.vmem [#allocation24], %s10877_s13  ;;  %s14114_s13 = sld [smem:[#allocation48_spill]] }
0x1108   : > { %v4319_v35 = vrot.slane %v4318_v13, 1  ;;  %v6204_v32 = vrot.slane %v6203_v19, 2  ;;  %v6274_v52 = vrot.slane %v6273_v2, 4  ;;  %v4351_v61 = vsel %vm3883_vm9, %v4248_v10, %v4350_v31 }
0x1109   : > { %v4250_v25 = vsel %vm3596_vm2, %v4169_v7, 0.0  ;;  %v4321_v31 = vsel %vm3596_vm2, %v4184_v41, 0.0  ;;  %v2072_v48 = vrot.slane %v9344_v45, %v12835_v47  ;;  %v2068_v18 = vrot.slane %v9344_v45, %v12828_v62  ;;  %v14108_v62 = vld [vmem:[#allocation66_spill] sm:$0xff]  ;;  %v7571_v45 = vld [vmem:[%s14112_s14] sm:$0x3] }
0x110a   : > { %v4320_v33 = vadd.f32 %v4319_v35, %v4318_v13  ;;  %v6205_v27 = vadd.f32 %v6204_v32, %v6203_v19  ;;  %v6275_v44 = vadd.f32 %v6274_v52, %v6273_v2  ;;  %v4251_v30 = vadd.f32 %v4250_v25, %v4249_v9  ;;  %v4153_v37 = vpop.permute.xlu0 %4152  ;;  %v14106_v19 = vld [vmem:[#allocation64_spill] sm:$0xff]  ;;  %v14107_v35 = vld [vmem:[#allocation67_spill] sm:$0xff] }
0x110b   : > { %v4185_v23 = vmul.f32 %v4153_v37, %v14100_v16  ;;  %v2885_v2 = vadd.f32 %v14106_v19, %v2068_v18  ;;  %v2891_v32 = vadd.f32 %v14107_v35, %v2072_v48  ;;  %v2889_v9 = vadd.f32 %v14108_v62, %v2068_v18  ;;  %v14111_v16 = vld [vmem:[#allocation55_spill] sm:$0xff] }
0x110c   : > { %v6206_v38 = vrot.slane %v6205_v27, 1  ;;  %v6276_v3 = vrot.slane %v6275_v44, 2  ;;  %v4252_v12 = vrot.slane %v4251_v30, 4  ;;  %v4358_v1 = vsel %vm3883_vm9, %v4320_v33, %v4357_v49  ;;  %v9345_v62 = vld [vmem:[#allocation2] sm:$0xff] }
0x110d   : > { %v4322_v40 = vsel %vm3596_vm2, %v4185_v23, 0.0  ;;  %p8758_p10 = scmp.ge.s32.totalorder %s14114_s13, 3 }
0x110e   : > { %v6207_v4 = vadd.f32 %v6206_v38, %v6205_v27  ;;  %v6277_v14 = vadd.f32 %v6276_v3, %v6275_v44  ;;  %v4253_v59 = vadd.f32 %v4252_v12, %v4251_v30  ;;  %v4323_v26 = vadd.f32 %v4322_v40, %v4321_v31  ;;  %v7352_v44 = vld [vmem:[%s14109_s3] sm:$0x3] }
0x110f   : > { %v14110_v30 = vld [vmem:[#allocation54_spill] sm:$0xff]  ;;  %v7361_v23 = vrot.slane %v7352_v44, %v14111_v16 }
0x1110   : > { %v6278_v20 = vrot.slane %v6277_v14, 1  ;;  %v4254_v63 = vrot.slane %v4253_v59, 2  ;;  %v4324_v39 = vrot.slane %v4323_v26, 4  ;;  %v6302_v15 = vsel %vm3885_vm10, %v6207_v4, %v6301_v43 }
0x1111   : > { %v6350_v5 = vadd.f32 %v14101_v50, %v6302_v15  ;;  %v7357_v37 = vrot.slane %v7352_v44, %v14110_v30  ;;  %v7610_v18 = vrot.slane %v7571_v45, %v14110_v30 }
0x1112   : > { %v6279_v24 = vadd.f32 %v6278_v20, %v6277_v14  ;;  %v4255_v29 = vadd.f32 %v4254_v63, %v4253_v59  ;;  %v4325_v8 = vadd.f32 %v4324_v39, %v4323_v26 }
0x1114   : > { %v4256_v49 = vrot.slane %v4255_v29, 1  ;;  %v4326_v56 = vrot.slane %v4325_v8, 2  ;;  %v6309_v60 = vsel %vm3885_vm10, %v6279_v24, %v6308_v57  ;;  %v14105_v57 = vld [vmem:[#allocation65_spill] sm:$0xff] }
0x1115   : > { %v6353_v21 = vadd.f32 %v14102_v11, %v6309_v60  ;;  %v2887_v54 = vadd.f32 %v14105_v57, %v2072_v48  ;;  %v7572_v48 = vld [vmem:[%s14113_s29] sm:$0x3]  ;;  %v7614_v57 = vrot.slane %v7571_v45, %v14111_v16 }
0x1116   : > { %v4257_v34 = vadd.f32 %v4256_v49, %v4255_v29  ;;  %v4327_v55 = vadd.f32 %v4326_v56, %v4325_v8 }
0x1118   : > { %v4328_v46 = vrot.slane %v4327_v55, 1  ;;  %v4352_v53 = vsel %vm3885_vm10, %v4257_v34, %v4351_v61 }
0x1119   : > { %v4400_v58 = vadd.f32 %v14103_v36, %v4352_v53 }
0x111a   : > { %v4329_v43 = vadd.f32 %v4328_v46, %v4327_v55 }
0x111c   : > { %v4359_v51 = vsel %vm3885_vm10, %v4329_v43, %v4358_v1 }
0x111d   : > { %v4403_v28 = vadd.f32 %v14104_v17, %v4359_v51 }
0x1132   : > { %v7305_v42 = vpop.permute.xlu1 %7304 }
0x1133   : > { %v7312_v10 = vsel %vm3596_vm2, %v6350_v5, %v7305_v42  ;;  %v7625_v42 = vrot.slane %v7572_v48, %v14110_v30  ;;  %v9348_v30 = vld [vmem:[#allocation2 + $0x18] sm:$0xff] }
0x1134   : > { %v7315_v13 = vadd.f32 %v7312_v10, %v2887_v54  ;;  %v7629_v10 = vrot.slane %v7572_v48, %v14111_v16 }
0x1136   : > { %v7297_v6 = vpop.permute.xlu1 %7296 }
0x1137   : > { %v7310_v22 = vsel %vm3596_vm2, %v4400_v58, %v7297_v6 }
0x1138   : > { %v7314_v7 = vadd.f32 %v7310_v22, %v2885_v2 }
0x1153   : > { %v7307_v52 = vpop.permute.xlu0 %7306 }
0x1154   : > { %v7313_v47 = vsel %vm3596_vm2, %v6353_v21, %v7307_v52 }
0x1155   : > { %v7317_v61 = vadd.f32 %v7313_v47, %v2891_v32 }
0x1157   : > { %v7299_v0 = vpop.permute.xlu0 %7298  ;;  %v7319_v41 = vpack.c.bf16 %v7317_v61, %v7315_v13 }
0x1158   : > { %v7311_v25 = vsel %vm3596_vm2, %v4403_v28, %v7299_v0  ;;  %v9346_v0 = vld [vmem:[#allocation2 + $0x8] sm:$0xff] }
0x1159   : > { %v7316_v33 = vadd.f32 %v7311_v25, %v2889_v9  ;;  %7556 = vmatprep.mubr.bf16.mxu1 %v7319_v41 }
0x115b   : > { %v7318_v27 = vpack.c.bf16 %v7316_v33, %v7314_v7 }
0x115d   : > { %7557 = vmatmul.mubr.bf16.vlgmr.msra.gmra.mrb[40].mxu1 %v7318_v27  ;;  %v9347_v27 = vld [vmem:[#allocation2 + $0x10] sm:$0xff] }
0x1230   : > { %v7558_v38 = vpop.f32.mrb[40].mxu1 }
0x1231   : > { %v7559_v3 = vadd.f32 %v7558_v38, %v7357_v37  ;;  %v7560_v12 = vpop.f32.mrb[41].mxu1 }
0x1232   : > { %v7561_v1 = vadd.f32 %v7560_v12, %v7361_v23  ;;  %v7562_v31 = vpop.f32.mrb[42].mxu1 }
0x1233   : > { %v7567_v40 = vmax.f32 %v7559_v3, 0.0  ;;  %v7563_v4 = vadd.f32 %v7562_v31, %v7357_v37  ;;  %v7564_v14 = vpop.f32.mrb[43].mxu1 }
0x1234   : > { %v7568_v59 = vmax.f32 %v7561_v1, 0.0  ;;  %v7565_v26 = vadd.f32 %v7564_v14, %v7361_v23 }
0x1235   : > { %v7569_v20 = vmax.f32 %v7563_v4, 0.0 }
0x1236   : > { %v7573_v63 = vadd.f32 %v7568_v59, %v7567_v40  ;;  %v7570_v39 = vmax.f32 %v7565_v26, 0.0 }
0x1238   : > { %v7576_v15 = vadd.f32 %v7570_v39, %v7569_v20  ;;  %7574 = vadd.xlane.f32.xlu1 %v7573_v63 }
0x123a   : > { %7577 = vadd.xlane.f32.xlu0 %v7576_v15 }
0x12c5   : > { %v7575_v50 = vpop.xlane.xlu1 %7574 }
0x12c6   : > { %v7580_v5 = vmul.f32 0.00390625, %v7575_v50 }
0x12c7   : > { %v7578_v24 = vpop.xlane.xlu0 %7577 }
0x12c8   : > { %v7582_v29 = vsub.f32 %v7567_v40, %v7580_v5  ;;  %v7583_v8 = vsub.f32 %v7568_v59, %v7580_v5  ;;  %v7581_v49 = vmul.f32 0.00390625, %v7578_v24 }
0x12ca   : > { %v7586_v56 = vmul.f32 %v7582_v29, %v7582_v29  ;;  %v7587_v60 = vmul.f32 %v7583_v8, %v7583_v8  ;;  %v7584_v11 = vsub.f32 %v7569_v20, %v7581_v49  ;;  %v7585_v21 = vsub.f32 %v7570_v39, %v7581_v49 }
0x12cc   : > { %v7588_v34 = vmul.f32 %v7584_v11, %v7584_v11  ;;  %v7589_v55 = vmul.f32 %v7585_v21, %v7585_v21  ;;  %v7590_v46 = vadd.f32 %v7587_v60, %v7586_v56 }
0x12ce   : > { %7591 = vadd.xlane.f32.xlu0 %v7590_v46  ;;  %v7593_v53 = vadd.f32 %v7589_v55, %v7588_v34 }
0x12d0   : > { %7594 = vadd.xlane.f32.xlu1 %v7593_v53 }
0x135b   : > { %v7592_v36 = vpop.xlane.xlu0 %7591 }
0x135c   : > { %v7596_v58 = vmul.f32 0.00390625, %v7592_v36 }
0x135d   : > { %v7595_v43 = vpop.xlane.xlu1 %7594 }
0x135e   : > { %v7598_v51 = vadd.f32 1e-05, %v7596_v58  ;;  %v7597_v17 = vmul.f32 0.00390625, %v7595_v43 }
0x1360   : > { %9338 = vrsqrt.f32 %v7598_v51  ;;  %v7599_v28 = vadd.f32 1e-05, %v7597_v17 }
0x1362   : > { %9340 = vrsqrt.f32 %v7599_v28 }
0x136a   : > { %v9339_v54 = vpop.eup %9338 }
0x136b   : > { %v7602_v13 = vmul.f32 %v9339_v54, %v7582_v29  ;;  %v7603_v19 = vmul.f32 %v9339_v54, %v7583_v8 }
0x136c   : > { %v9341_v2 = vpop.eup %9340 }
0x136d   : > { %v7617_v6 = vmul.f32 %v7610_v18, %v7602_v13  ;;  %v7618_v22 = vmul.f32 %v7614_v57, %v7603_v19  ;;  %v7604_v7 = vmul.f32 %v9341_v2, %v7584_v11  ;;  %v7605_v35 = vmul.f32 %v9341_v2, %v7585_v21  ;;  %7643 = sbr.rel (%p8758_p10) target bundleno = 4984 (0x1378), region = 215 }
0x136f   : > { %v7632_v32 = vadd.f32 %v7625_v42, %v7617_v6  ;;  %v7633_v52 = vadd.f32 %v7629_v10, %v7618_v22  ;;  %v7619_v47 = vmul.f32 %v7610_v18, %v7604_v7  ;;  %v7620_v61 = vmul.f32 %v7614_v57, %v7605_v35 }
0x1371   : > { %v13418_v9 = vadd.f32 %v9345_v62, %v7632_v32  ;;  %v7637_v41 = vadd.f32 %v9346_v0, %v7633_v52  ;;  %v7634_v25 = vadd.f32 %v7625_v42, %v7619_v47  ;;  %v7635_v33 = vadd.f32 %v7629_v10, %v7620_v61 }
0x1373   : > { %v13420_v44 = vadd.f32 %v9347_v27, %v7634_v25  ;;  %v7639_v37 = vadd.f32 %v9348_v30, %v7635_v33  ;;  %v7644_v16 = vmax.f32 (!%p8758_p10), %v13418_v9, 0.0  ;;  %v7645_v23 = vmax.f32 (!%p8758_p10), %v7637_v41, 0.0 }
0x1375   : > { %v7646_v38 = vmax.f32 %v13420_v44, 0.0  ;;  %v7647_v3 = vmax.f32 %v7639_v37, 0.0  ;;  %7648 = vst [vmem:[#allocation2] sm:$0xff] %v7644_v16  ;;  %7649 = vst [vmem:[#allocation2 + $0x8] sm:$0xff] %v7645_v23 }
0x1377   : > { %7650 = vst [vmem:[#allocation2 + $0x10] sm:$0xff] %v7646_v38  ;;  %7651 = vst [vmem:[#allocation2 + $0x18] sm:$0xff] %v7647_v3 }
0x1378 PF: > { %s14115_s1 = sld [smem:[#allocation48_spill]] }
0x137e   : > { %p8759_p11 = scmp.ne.s32.totalorder %s14115_s1, 3 }
0x137f   : > { %v9349_v12 = vld [vmem:[#allocation27 + $0x4] ss:$8 sps:$4 sm:$0xff] (!%p8759_p11)   ;;  %v7692_v1 = vpack.c.bf16 (!%p8759_p11), %v7639_v37, %v7637_v41  ;;  %v9351_v31 = vld [vmem:[#allocation27] ss:$8 sps:$4 sm:$0xff] (!%p8759_p11)   ;;  %v9352_v40 = vld [vmem:[#allocation27 + $0x14] ss:$8 sps:$4 sm:$0xff] (!%p8759_p11)   ;;  %v7691_v48 = vpack.c.bf16 (!%p8759_p11), %v13420_v44, %v13418_v9 }
0x1380   : > { %7655 = sbr.rel (%p8759_p11) target bundleno = 5815 (0x16b7), region = 219  ;;  %7864 = vmatprep.subr.bf16.mxu0 (!%p8759_p11), %v9349_v12  ;;  %v9354_v4 = vld [vmem:[#allocation27 + $0x10] ss:$8 sps:$4 sm:$0xff] (!%p8759_p11)   ;;  %v9355_v14 = vld [vmem:[#allocation27 + $0x24] ss:$8 sps:$4 sm:$0xff] (!%p8759_p11)   ;;  %s14118_s9 = sld [smem:[#allocation186_spill]] (!%p8759_p11) }
0x1381   : > { %7896 = vmatprep.mubr.bf16.mxu0 (!%p8759_p11), %v7692_v1  ;;  %7865 = vmatpush1.bf16.msra.mxu0 (!%p8759_p11), %v9351_v31  ;;  %v9357_v59 = vld [vmem:[#allocation27 + $0x20] ss:$8 sps:$4 sm:$0xff] (!%p8759_p11)   ;;  %v9358_v26 = vld [vmem:[#allocation27 + $0x34] ss:$8 sps:$4 sm:$0xff] (!%p8759_p11)   ;;  %v9360_v20 = vld [vmem:[#allocation27 + $0x30] ss:$8 sps:$4 sm:$0xff] (!%p8759_p11)  }
0x1382   : > { %7866 = vmatprep.subr.bf16.mxu0 (!%p8759_p11), %v9352_v40  ;;  %v9361_v63 = vld [vmem:[#allocation27 + $0x44] ss:$8 sps:$4 sm:$0xff] (!%p8759_p11)   ;;  %v9363_v39 = vld [vmem:[#allocation27 + $0x40] ss:$8 sps:$4 sm:$0xff] (!%p8759_p11)   ;;  %v9364_v15 = vld [vmem:[#allocation27 + $0x54] ss:$8 sps:$4 sm:$0xff] (!%p8759_p11)  }
0x1383   : > { %v9366_v50 = vld [vmem:[#allocation27 + $0x50] ss:$8 sps:$4 sm:$0xff] (!%p8759_p11)   ;;  %v9367_v5 = vld [vmem:[#allocation27 + $0x64] ss:$8 sps:$4 sm:$0xff] (!%p8759_p11)   ;;  %v9369_v24 = vld [vmem:[#allocation27 + $0x60] ss:$8 sps:$4 sm:$0xff] (!%p8759_p11)  }
0x1384   : > { %v9370_v29 = vld [vmem:[#allocation27 + $0x74] ss:$8 sps:$4 sm:$0xff] (!%p8759_p11)   ;;  %v9372_v8 = vld [vmem:[#allocation27 + $0x70] ss:$8 sps:$4 sm:$0xff] (!%p8759_p11)   ;;  %v9373_v49 = vld [vmem:[#allocation27 + $0x84] ss:$8 sps:$4 sm:$0xff] (!%p8759_p11)  }
0x1385   : > { %7867 = vmatpush1.bf16.msra.mxu0 (!%p8759_p11), %v9354_v4  ;;  %v9375_v56 = vld [vmem:[#allocation27 + $0x80] ss:$8 sps:$4 sm:$0xff] (!%p8759_p11)   ;;  %v9376_v60 = vld [vmem:[#allocation27 + $0x94] ss:$8 sps:$4 sm:$0xff] (!%p8759_p11)   ;;  %v9378_v11 = vld [vmem:[#allocation27 + $0x90] ss:$8 sps:$4 sm:$0xff] (!%p8759_p11)  }
0x1386   : > { %7868 = vmatprep.subr.bf16.mxu0 (!%p8759_p11), %v9355_v14  ;;  %v9379_v21 = vld [vmem:[#allocation27 + $0xa4] ss:$8 sps:$4 sm:$0xff] (!%p8759_p11)   ;;  %v9381_v34 = vld [vmem:[#allocation27 + $0xa0] ss:$8 sps:$4 sm:$0xff] (!%p8759_p11)   ;;  %v9382_v55 = vld [vmem:[#allocation27 + $0xb4] ss:$8 sps:$4 sm:$0xff] (!%p8759_p11)  }
0x1387   : > { %v9384_v46 = vld [vmem:[#allocation27 + $0xb0] ss:$8 sps:$4 sm:$0xff]   ;;  %v9385_v53 = vld [vmem:[#allocation27 + $0xc4] ss:$8 sps:$4 sm:$0xff]   ;;  %v9387_v36 = vld [vmem:[#allocation27 + $0xc0] ss:$8 sps:$4 sm:$0xff]  }
0x1388   : > { %v9388_v58 = vld [vmem:[#allocation27 + $0xd4] ss:$8 sps:$4 sm:$0xff]   ;;  %v9390_v43 = vld [vmem:[#allocation27 + $0xd0] ss:$8 sps:$4 sm:$0xff]   ;;  %v9391_v51 = vld [vmem:[#allocation27 + $0xe4] ss:$8 sps:$4 sm:$0xff]  }
0x1389   : > { %7869 = vmatpush1.bf16.msra.mxu0 %v9357_v59  ;;  %v9393_v17 = vld [vmem:[#allocation27 + $0xe0] ss:$8 sps:$4 sm:$0xff]   ;;  %v9394_v28 = vld [vmem:[#allocation27 + $0xf4] ss:$8 sps:$4 sm:$0xff]   ;;  %v9396_v45 = vld [vmem:[#allocation27 + $0xf0] ss:$8 sps:$4 sm:$0xff]  }
0x138a   : > { %7870 = vmatprep.subr.bf16.mxu0 %v9358_v26  ;;  %v7688_v18 = vld [vmem:[#allocation28] sm:$0x3]  ;;  %v14116_v57 = vld [vmem:[#allocation54_spill] sm:$0xff]  ;;  %v14117_v42 = vld [vmem:[#allocation55_spill] sm:$0xff] }
0x138b   : > { %v7697_v54 = vrot.slane %v7688_v18, %v14116_v57  ;;  %v7701_v10 = vrot.slane %v7688_v18, %v14117_v42  ;;  %v9397_v41 = vld [vmem:[#allocation31 + $0x40] sm:$0xff]   ;;  %v9399_v14 = vld [vmem:[#allocation31 + $0x48] sm:$0xff]   ;;  %v9401_v26 = vld [vmem:[#allocation31 + $0x50] sm:$0xff]  }
0x138c   : > { %v9398_v25 = vld [vmem:[#allocation31] sm:$0xff]   ;;  %8836 = vmatprep.subr.bf16.mxu1 %v9397_v41  ;;  %v9400_v59 = vld [vmem:[#allocation31 + $0x8] sm:$0xff]  }
0x138d   : > { %7871 = vmatpush1.bf16.msra.mxu0 %v9360_v20  ;;  %8837 = vmatpush3.bf16.msra.mxu1 %v9398_v25  ;;  %v9402_v20 = vld [vmem:[#allocation31 + $0x10] sm:$0xff]  }
0x138e   : > { %7872 = vmatprep.subr.bf16.mxu0 %v9361_v63  ;;  %8838 = vmatprep.subr.bf16.mxu1 %v9399_v14  ;;  %v9403_v63 = vld [vmem:[#allocation31 + $0x58] sm:$0xff]  }
0x1391   : > { %7873 = vmatpush1.bf16.msra.mxu0 %v9363_v39  ;;  %8839 = vmatpush3.bf16.msra.mxu1 %v9400_v59  ;;  %v9404_v39 = vld [vmem:[#allocation31 + $0x18] sm:$0xff]  }
0x1392   : > { %7874 = vmatprep.subr.bf16.mxu0 %v9364_v15  ;;  %8840 = vmatprep.subr.bf16.mxu1 %v9401_v26  ;;  %v9405_v15 = vld [vmem:[#allocation31 + $0x60] sm:$0xff]  }
0x1395   : > { %7875 = vmatpush1.bf16.msra.mxu0 %v9366_v50  ;;  %8841 = vmatpush3.bf16.msra.mxu1 %v9402_v20  ;;  %v9406_v50 = vld [vmem:[#allocation31 + $0x20] sm:$0xff]  }
0x1396   : > { %7876 = vmatprep.subr.bf16.mxu0 %v9367_v5  ;;  %8842 = vmatprep.subr.bf16.mxu1 %v9403_v63  ;;  %v9407_v5 = vld [vmem:[#allocation31 + $0x68] sm:$0xff]  }
0x1399   : > { %7877 = vmatpush1.bf16.msra.mxu0 %v9369_v24  ;;  %8843 = vmatpush3.bf16.msra.mxu1 %v9404_v39  ;;  %v9408_v24 = vld [vmem:[#allocation31 + $0x28] sm:$0xff]  }
0x139a   : > { %7878 = vmatprep.subr.bf16.mxu0 %v9370_v29  ;;  %8844 = vmatprep.subr.bf16.mxu1 %v9405_v15  ;;  %v9409_v29 = vld [vmem:[#allocation31 + $0x70] sm:$0xff]  }
0x139d   : > { %7879 = vmatpush1.bf16.msra.mxu0 %v9372_v8  ;;  %8845 = vmatpush3.bf16.msra.mxu1 %v9406_v50  ;;  %v9410_v8 = vld [vmem:[#allocation31 + $0x30] sm:$0xff]  }
0x139e   : > { %7880 = vmatprep.subr.bf16.mxu0 %v9373_v49  ;;  %8846 = vmatprep.subr.bf16.mxu1 %v9407_v5  ;;  %v9411_v49 = vld [vmem:[#allocation31 + $0x78] sm:$0xff]  }
0x13a1   : > { %7881 = vmatpush1.bf16.msra.mxu0 %v9375_v56  ;;  %8847 = vmatpush3.bf16.msra.mxu1 %v9408_v24  ;;  %v9412_v56 = vld [vmem:[#allocation31 + $0x38] sm:$0xff]  }
0x13a2   : > { %7882 = vmatprep.subr.bf16.mxu0 %v9376_v60  ;;  %8848 = vmatprep.subr.bf16.mxu1 %v9409_v29 }
0x13a5   : > { %7883 = vmatpush1.bf16.msra.mxu0 %v9378_v11  ;;  %8849 = vmatpush3.bf16.msra.mxu1 %v9410_v8 }
0x13a6   : > { %7884 = vmatprep.subr.bf16.mxu0 %v9379_v21  ;;  %8850 = vmatprep.subr.bf16.mxu1 %v9411_v49 }
0x13a9   : > { %7885 = vmatpush1.bf16.msra.mxu0 %v9381_v34  ;;  %8851 = vmatpush3.bf16.msra.mxu1 %v9412_v56 }
0x13aa   : > { %7886 = vmatprep.subr.bf16.mxu0 %v9382_v55 }
0x13ad   : > { %7887 = vmatpush1.bf16.msra.mxu0 %v9384_v46 }
0x13ae   : > { %7888 = vmatprep.subr.bf16.mxu0 %v9385_v53  ;;  %v7689_v53 = vld [vmem:[#allocation29] sm:$0x3] }
0x13b1   : > { %7889 = vmatpush1.bf16.msra.mxu0 %v9387_v36 }
0x13b2   : > { %7890 = vmatprep.subr.bf16.mxu0 %v9388_v58  ;;  %v7690_v58 = vld [vmem:[#allocation30] sm:$0x3] }
0x13b3   : > { %v7966_v18 = vrot.slane %v7690_v58, %v14117_v42 }
0x13b5   : > { %7891 = vmatpush1.bf16.msra.mxu0 %v9390_v43 }
0x13b6   : > { %7892 = vmatprep.subr.bf16.mxu0 %v9391_v51  ;;  %v7947_v51 = vrot.slane %v7689_v53, %v14116_v57 }
0x13b9   : > { %7893 = vmatpush1.bf16.msra.mxu0 %v9393_v17  ;;  %v7951_v17 = vrot.slane %v7689_v53, %v14117_v42 }
0x13ba   : > { %7894 = vmatprep.subr.bf16.mxu0 %v9394_v28 }
0x13bd   : > { %7895 = vmatpush1.bf16.msra.mxu0 %v9396_v45 }
0x13c0   : > { %7897 = vmatmul.mubr.bf16.vlgmr.msra.gmra.mrb[0].mxu0 %v7691_v48  ;;  %v7962_v48 = vrot.slane %v7690_v58, %v14116_v57 }
0x1493   : > { %v7898_v13 = vpop.f32.mrb[0].mxu0 }
0x1494   : > { %v7899_v19 = vadd.f32 %v7898_v13, %v7697_v54  ;;  %v7900_v2 = vpop.f32.mrb[1].mxu0 }
0x1495   : > { %v7901_v6 = vadd.f32 %v7900_v2, %v7701_v10  ;;  %v7902_v22 = vpop.f32.mrb[2].mxu0 }
0x1496   : > { %v7907_v7 = vmax.f32 %v7899_v19, 0.0  ;;  %v7903_v35 = vadd.f32 %v7902_v22, %v7697_v54  ;;  %v7904_v32 = vpop.f32.mrb[3].mxu0 }
0x1497   : > { %v7908_v52 = vmax.f32 %v7901_v6, 0.0  ;;  %v7905_v47 = vadd.f32 %v7904_v32, %v7701_v10 }
0x1498   : > { %v7909_v61 = vmax.f32 %v7903_v35, 0.0 }
0x1499   : > { %v7910_v62 = vmax.f32 %v7905_v47, 0.0  ;;  %v7911_v9 = vadd.f32 %v7908_v52, %v7907_v7 }
0x149b   : > { %7912 = vadd.xlane.f32.xlu0 %v7911_v9  ;;  %v7914_v0 = vadd.f32 %v7910_v62, %v7909_v61 }
0x149f   : > { %7915 = vadd.xlane.f32.xlu0 %v7914_v0 }
0x1528   : > { %v7913_v33 = vpop.xlane.xlu0 %7912 }
0x1529   : > { %v7917_v27 = vmul.f32 0.00390625, %v7913_v33 }
0x152b   : > { %v7919_v44 = vsub.f32 %v7907_v7, %v7917_v27  ;;  %v7920_v30 = vsub.f32 %v7908_v52, %v7917_v27 }
0x152c   : > { %v7916_v37 = vpop.xlane.xlu0 %7915 }
0x152d   : > { %v7918_v16 = vmul.f32 0.00390625, %v7916_v37  ;;  %v7923_v23 = vmul.f32 %v7919_v44, %v7919_v44  ;;  %v7924_v38 = vmul.f32 %v7920_v30, %v7920_v30 }
0x152f   : > { %v7921_v3 = vsub.f32 %v7909_v61, %v7918_v16  ;;  %v7922_v12 = vsub.f32 %v7910_v62, %v7918_v16  ;;  %v7927_v1 = vadd.f32 %v7924_v38, %v7923_v23  ;;  %v8792_v62 = vld [vmem:[#allocation33] ss:$0 sm:$0xff] }
0x1531   : > { %7928 = vadd.xlane.f32.xlu1 %v7927_v1  ;;  %v7925_v31 = vmul.f32 %v7921_v3, %v7921_v3  ;;  %v7926_v40 = vmul.f32 %v7922_v12, %v7922_v12 }
0x1533   : > { %v7930_v4 = vadd.f32 %v7926_v40, %v7925_v31 }
0x1535   : > { %7931 = vadd.xlane.f32.xlu1 %v7930_v4 }
0x15be   : > { %v7929_v60 = vpop.xlane.xlu1 %7928 }
0x15bf   : > { %v7933_v11 = vmul.f32 0.00390625, %v7929_v60 }
0x15c1   : > { %v7935_v21 = vadd.f32 1e-05, %v7933_v11 }
0x15c2   : > { %v7932_v34 = vpop.xlane.xlu1 %7931 }
0x15c3   : > { %9413 = vrsqrt.f32 %v7935_v21  ;;  %v7934_v55 = vmul.f32 0.00390625, %v7932_v34 }
0x15c5   : > { %v7936_v46 = vadd.f32 1e-05, %v7934_v55 }
0x15c7   : > { %9415 = vrsqrt.f32 %v7936_v46 }
0x15cd   : > { %v9414_v36 = vpop.eup %9413 }
0x15ce   : > { %v7940_v43 = vmul.f32 %v9414_v36, %v7920_v30  ;;  %v7939_v28 = vmul.f32 %v9414_v36, %v7919_v44 }
0x15d0   : > { %v7955_v10 = vmul.f32 %v7951_v17, %v7940_v43  ;;  %v7954_v19 = vmul.f32 %v7947_v51, %v7939_v28 }
0x15d1   : > { %v9416_v45 = vpop.eup %9415 }
0x15d2   : > { %v7942_v54 = vmul.f32 %v9416_v45, %v7922_v12  ;;  %v7941_v13 = vmul.f32 %v9416_v45, %v7921_v3  ;;  %v7970_v22 = vadd.f32 %v7966_v18, %v7955_v10  ;;  %v7969_v35 = vadd.f32 %v7962_v48, %v7954_v19 }
0x15d4   : > { %v7957_v2 = vmul.f32 %v7951_v17, %v7942_v54  ;;  %v7956_v6 = vmul.f32 %v7947_v51, %v7941_v13 }
0x15d6   : > { %v7972_v7 = vadd.f32 %v7966_v18, %v7957_v2  ;;  %v7971_v32 = vadd.f32 %v7962_v48, %v7956_v6 }
0x15d8   : > { %v7974_v52 = vpack.c.bf16 %v7972_v7, %v7970_v22  ;;  %v7973_v47 = vpack.c.bf16 %v7971_v32, %v7969_v35 }
0x15da   : > { %8142 = vmatprep.mubr.bf16.mxu1 %v7974_v52 }
0x15db   : > { %8143 = vmatmul.mubr.bf16.vlgmr.msra.gmra.mrb[0].mxu1 %v7973_v47 }
0x16ae   : > { %v8852_v61 = vpop.f32.mrb[0].mxu1 }
0x16af   : > { %v8853_v9 = vpop.f32.mrb[1].mxu1 }
0x16b0   : > { %v8854_v57 = vadd.f32 %v8853_v9, %v8852_v61  ;;  %v8855_v0 = vpop.f32.mrb[2].mxu1 }
0x16b1   : > { %v8856_v42 = vpop.f32.mrb[3].mxu1 }
0x16b2   : > { %v8145_v41 = vadd.f32 %v8854_v57, %v8792_v62  ;;  %v8857_v25 = vadd.f32 %v8856_v42, %v8855_v0 }
0x16b4   : > { %8151 = vst [vmem:[%s14118_s9] sm:$0xff] %v8145_v41  ;;  %v8148_v33 = vadd.f32 %v8857_v25, %v8792_v62 }
0x16b6   : > { %8152 = vst [vmem:[%s14118_s9 + $0x8] sm:$0xff] %v8148_v33 }
0x16b7 PF: > { %s14119_s8 = sld [smem:[#allocation50_spill]]  ;;  %s14120_s3 = sld [smem:[#allocation46_spill]] }
0x16b8   : > { %s14121_s26 = sld [smem:[#allocation47_spill]]  ;;  %s14122_s1 = sld [smem:[#allocation51_spill]] }
0x16bd   : > { %p44_p5 = scmp.ge.s32.totalorder %s14119_s8, 6  }
0x16bf   :  { %46 = sbr.rel (!%p44_p5) target bundleno = 39 (0x27), region = 305 }
0x16c6   :  { %8164 = vsyncpa [#allocation8], 1 }
0x16c7   :  { %8166 = vsyncpa [#allocation8 + $0x1], 1 }
0x16c8   :  { %8167 = vsyncpa [#allocation10], 1 }
0x16c9   :  { %8168 = vsyncpa [#allocation13], 1 }
0x16ca   :  { %8169 = vsyncpa [#allocation16], 1 }
0x16cb   :  { %8170 = vsyncpa [#allocation19], 1 }
0x16cc   :  { %8171 = vsyncpa [#allocation32], 1 }

</bundles_post_ra>
